<compile_context>
chip_gen: v6e
topology: v6e:2x2x1
jax: 0.10.0
libtpu: 0.0.40
codegen_flags: <defaults>
</compile_context>

<pallas_src>
import functools
import math

import numpy as np
import jax
import jax.numpy as jnp
from jax.experimental import pallas as pl
from jax.experimental.pallas import tpu as pltpu

LANE = 128


def _ru(x, m):
    return ((x + m - 1) // m) * m


def _fit(x, rows, cols):
    """Slice / zero-pad a 2-D array to exactly (rows, cols)."""
    x = x[:min(x.shape[0], rows), :min(x.shape[1], cols)]
    pr, pc = rows - x.shape[0], cols - x.shape[1]
    if pr or pc:
        x = jnp.pad(x, ((0, pr), (0, pc)))
    return x


# ---------------------------------------------------------------------------
# Pallas kernel 1: fused GEMM (bf16 x bf16 -> f32 acc) + bias + optional ReLU
# ---------------------------------------------------------------------------

def _gemm_bias_act_kernel(a_ref, b_ref, bias_ref, o_ref, acc_ref, *, act):
    k = pl.program_id(2)

    @pl.when(k == 0)
    def _():
        # Fold the bias into the accumulator init (no epilogue add).
        acc_ref[...] = jnp.broadcast_to(bias_ref[...], acc_ref.shape)

    acc_ref[...] += jnp.dot(a_ref[...], b_ref[...],
                            preferred_element_type=jnp.float32)

    @pl.when(k == pl.num_programs(2) - 1)
    def _():
        y = acc_ref[...]
        if act == "relu":
            y = jnp.maximum(y, 0.0)
        o_ref[...] = y.astype(o_ref.dtype)


def _gemm_dims(M, K, N):
    """Tile / pad sizes. K untiled (padded to 16) when small; tiled at 2048 otherwise."""
    TN = 256 if N > 128 else LANE        # 256-wide N when it exists (v6e/v7x MXU)
    Np = _ru(N, TN)
    if K <= 2048:
        Kp = _ru(K, 16)                  # 16-sublane alignment for bf16 operands
        TK = Kp
    else:
        TK = 2048
        Kp = _ru(K, TK)
    TM = min(256, _ru(M, 16))
    Mp = _ru(M, TM)
    return Mp, Kp, Np, TM, TK, TN


@functools.lru_cache(maxsize=None)
def _gemm_call(Mp, Kp, Np, TM, TK, TN, act):
    grid = (Mp // TM, Np // TN, Kp // TK)
    return pl.pallas_call(
        functools.partial(_gemm_bias_act_kernel, act=act),
        out_shape=jax.ShapeDtypeStruct((Mp, Np), jnp.float32),
        grid_spec=pltpu.PrefetchScalarGridSpec(
            num_scalar_prefetch=0,
            grid=grid,
            in_specs=[
                pl.BlockSpec((TM, TK), lambda i, j, k: (i, k)),
                pl.BlockSpec((TK, TN), lambda i, j, k: (k, j)),
                pl.BlockSpec((1, TN), lambda i, j, k: (0, j)),
            ],
            out_specs=pl.BlockSpec((TM, TN), lambda i, j, k: (i, j)),
            scratch_shapes=[pltpu.VMEM((TM, TN), jnp.float32)],
        ),
        compiler_params=pltpu.CompilerParams(
            dimension_semantics=("parallel", "parallel", "arbitrary"),
            vmem_limit_bytes=32 * 1024 * 1024),
    )


class Dense:
    """y = act(x @ W + b) via the fused Pallas GEMM; bf16 W pre-padded at init."""

    def __init__(self, w, b, act="none"):
        K, N = w.shape
        self.K, self.N, self.act = K, N, act
        _, Kp, Np, _, _, _ = _gemm_dims(16, K, N)
        self.Kp, self.Np = Kp, Np
        self.w_pad = jnp.pad(w.astype(jnp.float32),
                             ((0, Kp - K), (0, Np - N))).astype(jnp.bfloat16)
        self.b_pad = jnp.pad(b.astype(jnp.float32), (0, Np - N)).reshape(1, Np)

    def __call__(self, x, padded_out=False):
        M = x.shape[0]
        Mp, Kp, Np, TM, TK, TN = _gemm_dims(M, self.K, self.N)
        a = x.astype(jnp.bfloat16)
        if (Mp - M) or (Kp - self.K):
            a = jnp.pad(a, ((0, Mp - M), (0, Kp - self.K)))
        out = _gemm_call(Mp, Kp, Np, TM, TK, TN, self.act)(a, self.w_pad, self.b_pad)
        if padded_out:
            return out                       # lane-dense (Mp, Np) slab
        return out[:M, :self.N]


# ---------------------------------------------------------------------------
# Pallas kernel 2: fused attention-GRU recurrence + head (one launch)
# ---------------------------------------------------------------------------

def _attn_gru_head_kernel(len_ref, emb_ref, feat_ref, hx0_ref,
                          wx_ref, wh_ref, wca_ref, wih_ref,
                          battn_ref, bcomb_ref, bih_ref, bhh_ref,
                          wl_ref, bl_ref, wl3_ref, bl3_ref,
                          last_ref, z2_ref,
                          xproj_ref, *, T, Bp, H, HP):
    feat = feat_ref[...]                 # (Bp, HP) f32, padded lanes/rows are zero
    hx = hx0_ref[...]                    # (Bp, HP) f32, padded lanes/rows are zero
    lens = len_ref[...]                  # (Bp, 1) int32 (0 for padded rows)

    # Hoisted x-projections for all timesteps: one (T*Bp, HP) x (HP, 2*HP) GEMM.
    emb_all = emb_ref[...].astype(jnp.bfloat16)                  # (T*Bp, HP)
    xproj_ref[...] = jnp.dot(emb_all, wx_ref[...],
                             preferred_element_type=jnp.float32)  # (T*Bp, 2*HP)

    lane = jax.lax.broadcasted_iota(jnp.int32, (Bp, HP), 1)
    valid = lane < H                     # mask padded feature lanes for the softmax

    def step(t, carry):
        hx, last = carry
        row0 = pl.multiple_of(t * Bp, Bp)
        xp = xproj_ref[pl.ds(row0, Bp), :]                       # (Bp, 2*HP)
        # Single packed hx projection: [attn_h | W_hh(r) | W_hh(z) | W_hh(n)]
        hproj = jnp.dot(hx.astype(jnp.bfloat16), wh_ref[...],
                        preferred_element_type=jnp.float32)       # (Bp, 4*HP)
        # attn_weights = softmax(attn(cat(x, hx)), dim=1)
        logits = xp[:, 0:HP] + hproj[:, 0:HP] + battn_ref[...]
        logits = jnp.where(valid, logits, -1e30)
        m = jnp.max(logits, axis=-1, keepdims=True)
        e = jnp.exp(logits - m)
        inv = pl.reciprocal(jnp.sum(e, axis=-1, keepdims=True), approx=True)
        attn_applied = feat * (e * inv)
        # inputs = relu(attn_combine(cat(x, attn_applied)))
        comb = (xp[:, HP:2 * HP]
                + jnp.dot(attn_applied.astype(jnp.bfloat16), wca_ref[...],
                          preferred_element_type=jnp.float32)
                + bcomb_ref[...])
        inp = jnp.maximum(comb, 0.0)
        # GRUCell
        gi = jnp.dot(inp.astype(jnp.bfloat16), wih_ref[...],
                     preferred_element_type=jnp.float32) + bih_ref[...]   # (Bp, 3*HP)
        gh = hproj[:, HP:4 * HP] + bhh_ref[...]                            # (Bp, 3*HP)
        rz = jax.nn.sigmoid(gi[:, 0:2 * HP] + gh[:, 0:2 * HP])
        r = rz[:, 0:HP]
        z = rz[:, HP:2 * HP]
        n = jnp.tanh(gi[:, 2 * HP:3 * HP] + r * gh[:, 2 * HP:3 * HP])
        hx_new = (1.0 - z) * n + z * hx
        last_new = jnp.where(lens == (t + 1), hx_new, last)
        return (hx_new, last_new)

    hx, last = jax.lax.fori_loop(0, T, step, (hx, hx), unroll=(T <= 8))
    last_ref[...] = last

    # Fused head: relu(cat(last, feat) @ W_lin + b) @ W_lin3 + b3  (per row; mean outside)
    z1 = (jnp.dot(last.astype(jnp.bfloat16), wl_ref[0:HP, :],
                  preferred_element_type=jnp.float32)
          + jnp.dot(feat.astype(jnp.bfloat16), wl_ref[HP:2 * HP, :],
                    preferred_element_type=jnp.float32)
          + bl_ref[...])
    z1 = jnp.maximum(z1, 0.0)
    z2_ref[...] = (jnp.dot(z1.astype(jnp.bfloat16), wl3_ref[...],
                           preferred_element_type=jnp.float32) + bl3_ref[...])


@functools.lru_cache(maxsize=None)
def _attn_gru_head_call(T, Bp, HP, H, P2, PO):
    def fullspec(*shape):
        nd = len(shape)
        return pl.BlockSpec(shape, lambda i, nd=nd: (0,) * nd)

    return pl.pallas_call(
        functools.partial(_attn_gru_head_kernel, T=T, Bp=Bp, H=H, HP=HP),
        out_shape=(jax.ShapeDtypeStruct((Bp, HP), jnp.float32),
                   jax.ShapeDtypeStruct((Bp, PO), jnp.float32)),
        grid_spec=pltpu.PrefetchScalarGridSpec(
            num_scalar_prefetch=0,
            grid=(1,),
            in_specs=[
                fullspec(Bp, 1),            # per-row lengths (int32)
                fullspec(T * Bp, HP),       # embeddings, time-major, flattened
                fullspec(Bp, HP),           # features (post fc+bn)
                fullspec(Bp, HP),           # hx0
                fullspec(HP, 2 * HP),       # packed x-proj weight  [attn_x | comb_x]
                fullspec(HP, 4 * HP),       # packed hx-proj weight [attn_h | W_hh]
                fullspec(HP, HP),           # attn_combine, applied part
                fullspec(HP, 3 * HP),       # gru W_ih
                fullspec(1, HP),            # attn bias
                fullspec(1, HP),            # attn_combine bias
                fullspec(1, 3 * HP),        # gru b_ih
                fullspec(1, 3 * HP),        # gru b_hh
                fullspec(2 * HP, P2),       # head linear  [hidden-part ; feat-part]
                fullspec(1, P2),            # head linear bias
                fullspec(P2, PO),           # head linear3
                fullspec(1, PO),            # head linear3 bias
            ],
            out_specs=[fullspec(Bp, HP), fullspec(Bp, PO)],
            scratch_shapes=[pltpu.VMEM((T * Bp, 2 * HP), jnp.float32)],
        ),
        compiler_params=pltpu.CompilerParams(
            dimension_semantics=("arbitrary",),
            vmem_limit_bytes=32 * 1024 * 1024),
    )


# ---------------------------------------------------------------------------
# Deterministic parameter construction + the model
# ---------------------------------------------------------------------------

def key_stream(seed):
    base = jax.random.PRNGKey(seed)
    counter = [0]

    def nk():
        counter[0] += 1
        return jax.random.fold_in(base, counter[0])

    return nk


class DAttentionPallas:
    """Pallas equivalent of the PyTorch D_Attention forward pass."""

    def __init__(self, embed_size, hidden_size, vocab, num_layers, use_log=False, seed=0):
        assert embed_size == hidden_size, \
            "D_Attention requires embed_size == hidden_size (features * attn_weights)"
        del num_layers  # unused by the reference module (single GRUCell)
        kg = key_stream(seed)
        H, E, V = hidden_size, embed_size, len(vocab)
        self.H, self.E, self.V = H, E, V
        HP = _ru(H, LANE)
        P2 = _ru(2 * H, LANE)
        self.HP, self.P2 = HP, P2
        self.use_log = use_log

        # conv = Conv2d(2048, 32, kernel_size=3, stride=1, padding=1)  (default torch init)
        cin, cout, kk = 2048, 32, 3
        self.conv_cin, self.conv_cout, self.conv_k = cin, cout, kk
        fan_in = cin * kk * kk
        bound = 1.0 / math.sqrt(fan_in)
        w_conv = jax.random.uniform(kg(), (kk, kk, cin, cout), jnp.float32, -bound, bound)
        b_conv = jax.random.uniform(kg(), (cout,), jnp.float32, -bound, bound)
        self.conv = Dense(w_conv.reshape(kk * kk * cin, cout), b_conv, act="none")

        # fc = Linear(2048, E) with BatchNorm1d(H) folded in (inference stats).
        # TODO(synk): BatchNorm1d train-mode batch statistics are not modeled.
        w_fc = 0.02 * jax.random.normal(kg(), (2048, E), jnp.float32)
        bn_scale = 1.0 / math.sqrt(1.0 + 1e-5)  # gamma=1, var=1, mean=0, beta=0
        self.fc = Dense(w_fc * bn_scale, jnp.zeros((E,), jnp.float32), act="none")

        # fc2 = Linear(vocab_size, E)
        w_fc2 = 0.02 * jax.random.normal(kg(), (V, E), jnp.float32)
        self.fc2 = Dense(w_fc2, jnp.zeros((E,), jnp.float32), act="none")

        # attn / attn_combine / GRUCell parameters, packed + lane-aligned in bf16.
        w_attn = 0.02 * jax.random.normal(kg(), (2 * H, H), jnp.float32)
        w_comb = 0.02 * jax.random.normal(kg(), (2 * H, H), jnp.float32)
        gb = 1.0 / math.sqrt(H)
        w_ih = jax.random.uniform(kg(), (E, 3 * H), jnp.float32, -gb, gb)
        w_hh = jax.random.uniform(kg(), (H, 3 * H), jnp.float32, -gb, gb)
        b_ih = jax.random.uniform(kg(), (3 * H,), jnp.float32, -gb, gb)
        b_hh = jax.random.uniform(kg(), (3 * H,), jnp.float32, -gb, gb)

        wx = jnp.zeros((HP, 2 * HP), jnp.float32)
        wx = wx.at[0:E, 0:H].set(w_attn[0:E, :])
        wx = wx.at[0:E, HP:HP + H].set(w_comb[0:E, :])
        self.w_x = wx.astype(jnp.bfloat16)

        wh = jnp.zeros((HP, 4 * HP), jnp.float32)
        wh = wh.at[0:H, 0:H].set(w_attn[E:E + H, :])
        for g in range(3):
            wh = wh.at[0:H, (g + 1) * HP:(g + 1) * HP + H].set(w_hh[:, g * H:(g + 1) * H])
        self.w_h = wh.astype(jnp.bfloat16)

        self.w_ca = (jnp.zeros((HP, HP), jnp.float32)
                     .at[0:H, 0:H].set(w_comb[E:E + H, :])).astype(jnp.bfloat16)

        wih_p = jnp.zeros((HP, 3 * HP), jnp.float32)
        bih_p = jnp.zeros((1, 3 * HP), jnp.float32)
        bhh_p = jnp.zeros((1, 3 * HP), jnp.float32)
        for g in range(3):
            wih_p = wih_p.at[0:E, g * HP:g * HP + H].set(w_ih[:, g * H:(g + 1) * H])
            bih_p = bih_p.at[0, g * HP:g * HP + H].set(b_ih[g * H:(g + 1) * H])
            bhh_p = bhh_p.at[0, g * HP:g * HP + H].set(b_hh[g * H:(g + 1) * H])
        self.w_ih = wih_p.astype(jnp.bfloat16)
        self.b_ih, self.b_hh = bih_p, bhh_p
        self.b_attn = jnp.zeros((1, HP), jnp.float32)
        self.b_comb = jnp.zeros((1, HP), jnp.float32)

        # Fused head: linear = Linear(2H, 2H) + ReLU; linear3 = Linear(2H, 1).
        w_lin = jax.random.uniform(kg(), (2 * H, 2 * H), jnp.float32, -0.1, 0.1)
        w_lin3 = jax.random.uniform(kg(), (2 * H, 1), jnp.float32, -0.1, 0.1)
        wl = jnp.zeros((2 * HP, P2), jnp.float32)
        wl = wl.at[0:H, 0:2 * H].set(w_lin[0:H, :])           # hidden part (cat first)
        wl = wl.at[HP:HP + H, 0:2 * H].set(w_lin[H:2 * H, :])  # feature part
        self.w_l = wl.astype(jnp.bfloat16)
        self.b_l = jnp.zeros((1, P2), jnp.float32)
        self.w_l3 = (jnp.zeros((P2, LANE), jnp.float32)
                     .at[0:2 * H, 0:1].set(w_lin3)).astype(jnp.bfloat16)
        self.b_l3 = jnp.zeros((1, LANE), jnp.float32)

        # Single top-level jit over the whole forward pass.
        self._fwd = jax.jit(self._forward_impl, static_argnums=(3, 4))

    # -- forward ------------------------------------------------------------

    def _forward_impl(self, features, captions, states, lengths, batch_sizes):
        B, cin, Hs, Ws = features.shape
        kk = self.conv_k
        H, E, HP = self.H, self.E, self.HP

        # Conv2d(2048->32, 3x3, pad 1) via bf16 im2col + fused Pallas GEMM (+ bias).
        x = jnp.transpose(features, (0, 2, 3, 1)).astype(jnp.bfloat16)   # NHWC bf16
        xp = jnp.pad(x, ((0, 0), (1, 1), (1, 1), (0, 0)))
        cols = [xp[:, i:i + Hs, j:j + Ws, :] for i in range(kk) for j in range(kk)]
        a = jnp.concatenate(cols, axis=-1).reshape(B * Hs * Ws, kk * kk * cin)
        y = self.conv(a).reshape(B, Hs, Ws, self.conv_cout)
        # features.view(N, -1) in torch's NCHW order, then fc (+ folded BatchNorm1d).
        feat_flat = jnp.transpose(y, (0, 3, 1, 2)).reshape(B, self.conv_cout * Hs * Ws)

        Bp = _ru(B, 16)
        feats_pad = _fit(self.fc(feat_flat, padded_out=True), Bp, HP)    # (Bp, HP)

        # fc2(captions) then pad_packed_sequence -> time-major (T, Bp, E) zero-padded.
        emb_pad = self.fc2(captions, padded_out=True)
        emb_pad = _fit(emb_pad, emb_pad.shape[0], HP)                    # (Ntokp, HP)
        T = int(lengths[0])
        idx = np.zeros((T, Bp), dtype=np.int32)
        msk = np.zeros((T, Bp, 1), dtype=np.float32)
        off = 0
        for t, bs in enumerate(batch_sizes):
            for b in range(int(bs)):
                idx[t, b] = off + b
                msk[t, b, 0] = 1.0
            off += int(bs)
        emb_tb = emb_pad[jnp.asarray(idx)] * jnp.asarray(msk)            # (T, Bp, HP)
        emb_2d = emb_tb.reshape(T * Bp, HP)

        hx0 = states[0].astype(jnp.float32)                              # squeeze -> (B, H)
        hx_k = jnp.pad(hx0, ((0, Bp - B), (0, HP - H)))

        lens_np = np.zeros((Bp, 1), dtype=np.int32)
        for i, L in enumerate(lengths):
            lens_np[i, 0] = int(L)
        lens_k = jnp.asarray(lens_np)

        last_pad, z2_pad = _attn_gru_head_call(T, Bp, HP, H, self.P2, LANE)(
            lens_k, emb_2d, feats_pad, hx_k,
            self.w_x, self.w_h, self.w_ca, self.w_ih,
            self.b_attn, self.b_comb, self.b_ih, self.b_hh,
            self.w_l, self.b_l, self.w_l3, self.b_l3)

        z = z2_pad[:B, 0:1]                                              # (B, 1)
        if self.use_log:
            return jax.nn.sigmoid(z), last_pad[:B, :H]
        return jnp.mean(z, axis=0).reshape(1)                            # x.mean(0).view(1)

    def __call__(self, features, captions, lengths, states, batch_sizes):
        return self._fwd(features, captions, states,
                         tuple(int(l) for l in lengths),
                         tuple(int(b) for b in batch_sizes))


# ---------------------------------------------------------------------------

if __name__ == "__main__":
    embed_size = 32
    hidden_size = 32
    vocab = ["w%d" % i for i in range(40)]

    model = DAttentionPallas(embed_size, hidden_size, vocab, num_layers=1,
                             use_log=False, seed=0)

    key = jax.random.PRNGKey(0)
    k1, k2, k3 = jax.random.split(key, 3)
    B = 2
    lengths = [4, 3]                       # sorted descending (packed-sequence convention)
    batch_sizes = [2, 2, 2, 1]             # packed batch sizes for lengths [4, 3]
    n_tok = sum(batch_sizes)

    # fc expects 2048 = 32 * 8 * 8, so conv input spatial must be 8x8.
    features = 0.1 * jax.random.normal(k1, (B, 2048, 8, 8), jnp.float32)
    captions = jax.random.normal(k2, (n_tok, len(vocab)), jnp.float32)
    states = 0.1 * jax.random.normal(k3, (1, B, hidden_size), jnp.float32)

    out = model(features, captions, lengths, states, batch_sizes)
    out = jax.block_until_ready(out)
    assert out.shape == (1,), out.shape
    assert bool(jnp.all(jnp.isfinite(out)))
    print("KERNEL_OK")
</pallas_src>

<mosaic_0001>
module attributes {stable_mosaic.version = 11 : i64} {
  func.func @_gemm_bias_act_kernel(%arg0: i32, %arg1: i32, %arg2: i32, %arg3: memref<128x2048xbf16, #tpu.memory_space<vmem>>, %arg4: memref<2048x128xbf16, #tpu.memory_space<vmem>>, %arg5: memref<1x128xf32, #tpu.memory_space<vmem>>, %arg6: memref<128x128xf32, #tpu.memory_space<vmem>>, %arg7: memref<128x128xf32, #tpu.memory_space<vmem>>) attributes {dimension_semantics = [#tpu.dimension_semantics<parallel>, #tpu.dimension_semantics<parallel>, #tpu.dimension_semantics<arbitrary>], iteration_bounds = array<i64: 1, 1, 9>, scalar_prefetch = 0 : i64, scratch_operands = 1 : i64, tpu.core_type = #tpu.core_type<tc>, window_params = [{transform_indices = @transform_0, window_bounds = array<i64: 128, 2048>}, {transform_indices = @transform_1, window_bounds = array<i64: 2048, 128>}, {transform_indices = @transform_2, window_bounds = array<i64: 1, 128>}, {transform_indices = @transform_3, window_bounds = array<i64: 128, 128>}]} {
    %c0_i32 = arith.constant 0 : i32
    %0 = arith.cmpi eq, %arg2, %c0_i32 : i32
    %1 = arith.extui %0 : i1 to i32
    %c0_i32_0 = arith.constant 0 : i32
    %2 = arith.cmpi ne, %1, %c0_i32_0 : i32
    scf.if %2 {
      %c0_9 = arith.constant 0 : index
      %c0_10 = arith.constant 0 : index
      %12 = vector.load %arg5[%c0_9, %c0_10] : memref<1x128xf32, #tpu.memory_space<vmem>>, vector<1x128xf32>
      %13 = vector.shape_cast %12 : vector<1x128xf32> to vector<1x128xf32>
      %14 = vector.broadcast %13 : vector<1x128xf32> to vector<128x128xf32>
      %c0_11 = arith.constant 0 : index
      %c0_12 = arith.constant 0 : index
      %15 = vector.load %arg7[%c0_11, %c0_12] : memref<128x128xf32, #tpu.memory_space<vmem>>, vector<128x128xf32>
      tpu.vector_store %arg7[%c0_11, %c0_12], %14 {strides = array<i32>} : memref<128x128xf32, #tpu.memory_space<vmem>>, vector<128x128xf32>,
    } else {
    }
    %c0 = arith.constant 0 : index
    %c0_1 = arith.constant 0 : index
    %3 = vector.load %arg7[%c0, %c0_1] : memref<128x128xf32, #tpu.memory_space<vmem>>, vector<128x128xf32>
    %c0_2 = arith.constant 0 : index
    %c0_3 = arith.constant 0 : index
    %4 = vector.load %arg3[%c0_2, %c0_3] : memref<128x2048xbf16, #tpu.memory_space<vmem>>, vector<128x2048xbf16>
    %c0_4 = arith.constant 0 : index
    %c0_5 = arith.constant 0 : index
    %5 = vector.load %arg4[%c0_4, %c0_5] : memref<2048x128xbf16, #tpu.memory_space<vmem>>, vector<2048x128xbf16>
    %cst = arith.constant dense<0.000000e+00> : vector<128x128xf32>
    %6 = tpu.matmul %4, %5, %cst {dimension_numbers = #tpu.dot_dimension_numbers<[1], [0], [0], [1], [0, 0, 1, 1], [], []>} : vector<128x2048xbf16>, vector<2048x128xbf16>, vector<128x128xf32> -> vector<128x128xf32>
    %7 = arith.addf %3, %6 : vector<128x128xf32>
    %c0_6 = arith.constant 0 : index
    %c0_7 = arith.constant 0 : index
    %8 = vector.load %arg7[%c0_6, %c0_7] : memref<128x128xf32, #tpu.memory_space<vmem>>, vector<128x128xf32>
    tpu.vector_store %arg7[%c0_6, %c0_7], %7 {strides = array<i32>} : memref<128x128xf32, #tpu.memory_space<vmem>>, vector<128x128xf32>,
    %c8_i32 = arith.constant 8 : i32
    %9 = arith.cmpi eq, %arg2, %c8_i32 : i32
    %10 = arith.extui %9 : i1 to i32
    %c0_i32_8 = arith.constant 0 : i32
    %11 = arith.cmpi ne, %10, %c0_i32_8 : i32
    scf.if %11 {
      %c0_9 = arith.constant 0 : index
      %c0_10 = arith.constant 0 : index
      %12 = vector.load %arg7[%c0_9, %c0_10] : memref<128x128xf32, #tpu.memory_space<vmem>>, vector<128x128xf32>
      %c0_11 = arith.constant 0 : index
      %c0_12 = arith.constant 0 : index
      %13 = vector.load %arg6[%c0_11, %c0_12] : memref<128x128xf32, #tpu.memory_space<vmem>>, vector<128x128xf32>
      tpu.vector_store %arg6[%c0_11, %c0_12], %12 {strides = array<i32>} : memref<128x128xf32, #tpu.memory_space<vmem>>, vector<128x128xf32>,
    } else {
    }
    return
  }
  func.func @transform_0(%arg0: i32, %arg1: i32, %arg2: i32) -> (i32, i32) {
    %c0_i32 = arith.constant 0 : i32
    return %arg0, %arg2 : i32, i32
  }
  func.func @transform_1(%arg0: i32, %arg1: i32, %arg2: i32) -> (i32, i32) {
    %c0_i32 = arith.constant 0 : i32
    return %arg2, %arg1 : i32, i32
  }
  func.func @transform_2(%arg0: i32, %arg1: i32, %arg2: i32) -> (i32, i32) {
    %c0_i32 = arith.constant 0 : i32
    %c0_i32_0 = arith.constant 0 : i32
    return %c0_i32, %arg1 : i32, i32
  }
  func.func @transform_3(%arg0: i32, %arg1: i32, %arg2: i32) -> (i32, i32) {
    %c0_i32 = arith.constant 0 : i32
    return %arg0, %arg1 : i32, i32
  }
}

module attributes {stable_mosaic.version = 11 : i64} {
  func.func @_gemm_bias_act_kernel(%arg0: i32, %arg1: i32, %arg2: i32, %arg3: memref<16x2048xbf16, #tpu.memory_space<vmem>>, %arg4: memref<2048x128xbf16, #tpu.memory_space<vmem>>, %arg5: memref<1x128xf32, #tpu.memory_space<vmem>>, %arg6: memref<16x128xf32, #tpu.memory_space<vmem>>, %arg7: memref<16x128xf32, #tpu.memory_space<vmem>>) attributes {dimension_semantics = [#tpu.dimension_semantics<parallel>, #tpu.dimension_semantics<parallel>, #tpu.dimension_semantics<arbitrary>], iteration_bounds = array<i64: 1, 1, 1>, scalar_prefetch = 0 : i64, scratch_operands = 1 : i64, tpu.core_type = #tpu.core_type<tc>, window_params = [{transform_indices = @transform_0, window_bounds = array<i64: 16, 2048>}, {transform_indices = @transform_1, window_bounds = array<i64: 2048, 128>}, {transform_indices = @transform_2, window_bounds = array<i64: 1, 128>}, {transform_indices = @transform_3, window_bounds = array<i64: 16, 128>}]} {
    %c0_i32 = arith.constant 0 : i32
    %0 = arith.cmpi eq, %arg2, %c0_i32 : i32
    %1 = arith.extui %0 : i1 to i32
    %c0_i32_0 = arith.constant 0 : i32
    %2 = arith.cmpi ne, %1, %c0_i32_0 : i32
    scf.if %2 {
      %c0_10 = arith.constant 0 : index
      %c0_11 = arith.constant 0 : index
      %12 = vector.load %arg5[%c0_10, %c0_11] : memref<1x128xf32, #tpu.memory_space<vmem>>, vector<1x128xf32>
      %13 = vector.shape_cast %12 : vector<1x128xf32> to vector<1x128xf32>
      %14 = vector.broadcast %13 : vector<1x128xf32> to vector<16x128xf32>
      %c0_12 = arith.constant 0 : index
      %c0_13 = arith.constant 0 : index
      %15 = vector.load %arg7[%c0_12, %c0_13] : memref<16x128xf32, #tpu.memory_space<vmem>>, vector<16x128xf32>
      tpu.vector_store %arg7[%c0_12, %c0_13], %14 {strides = array<i32>} : memref<16x128xf32, #tpu.memory_space<vmem>>, vector<16x128xf32>,
    } else {
    }
    %c0 = arith.constant 0 : index
    %c0_1 = arith.constant 0 : index
    %3 = vector.load %arg7[%c0, %c0_1] : memref<16x128xf32, #tpu.memory_space<vmem>>, vector<16x128xf32>
    %c0_2 = arith.constant 0 : index
    %c0_3 = arith.constant 0 : index
    %4 = vector.load %arg3[%c0_2, %c0_3] : memref<16x2048xbf16, #tpu.memory_space<vmem>>, vector<16x2048xbf16>
    %c0_4 = arith.constant 0 : index
    %c0_5 = arith.constant 0 : index
    %5 = vector.load %arg4[%c0_4, %c0_5] : memref<2048x128xbf16, #tpu.memory_space<vmem>>, vector<2048x128xbf16>
    %cst = arith.constant dense<0.000000e+00> : vector<16x128xf32>
    %6 = tpu.matmul %4, %5, %cst {dimension_numbers = #tpu.dot_dimension_numbers<[1], [0], [0], [1], [0, 0, 1, 1], [], []>} : vector<16x2048xbf16>, vector<2048x128xbf16>, vector<16x128xf32> -> vector<16x128xf32>
    %7 = arith.addf %3, %6 : vector<16x128xf32>
    %c0_6 = arith.constant 0 : index
    %c0_7 = arith.constant 0 : index
    %8 = vector.load %arg7[%c0_6, %c0_7] : memref<16x128xf32, #tpu.memory_space<vmem>>, vector<16x128xf32>
    tpu.vector_store %arg7[%c0_6, %c0_7], %7 {strides = array<i32>} : memref<16x128xf32, #tpu.memory_space<vmem>>, vector<16x128xf32>,
    %c0_i32_8 = arith.constant 0 : i32
    %9 = arith.cmpi eq, %arg2, %c0_i32_8 : i32
    %10 = arith.extui %9 : i1 to i32
    %c0_i32_9 = arith.constant 0 : i32
    %11 = arith.cmpi ne, %10, %c0_i32_9 : i32
    scf.if %11 {
      %c0_10 = arith.constant 0 : index
      %c0_11 = arith.constant 0 : index
      %12 = vector.load %arg7[%c0_10, %c0_11] : memref<16x128xf32, #tpu.memory_space<vmem>>, vector<16x128xf32>
      %c0_12 = arith.constant 0 : index
      %c0_13 = arith.constant 0 : index
      %13 = vector.load %arg6[%c0_12, %c0_13] : memref<16x128xf32, #tpu.memory_space<vmem>>, vector<16x128xf32>
      tpu.vector_store %arg6[%c0_12, %c0_13], %12 {strides = array<i32>} : memref<16x128xf32, #tpu.memory_space<vmem>>, vector<16x128xf32>,
    } else {
    }
    return
  }
  func.func @transform_0(%arg0: i32, %arg1: i32, %arg2: i32) -> (i32, i32) {
    %c0_i32 = arith.constant 0 : i32
    return %arg0, %arg2 : i32, i32
  }
  func.func @transform_1(%arg0: i32, %arg1: i32, %arg2: i32) -> (i32, i32) {
    %c0_i32 = arith.constant 0 : i32
    return %arg2, %arg1 : i32, i32
  }
  func.func @transform_2(%arg0: i32, %arg1: i32, %arg2: i32) -> (i32, i32) {
    %c0_i32 = arith.constant 0 : i32
    %c0_i32_0 = arith.constant 0 : i32
    return %c0_i32, %arg1 : i32, i32
  }
  func.func @transform_3(%arg0: i32, %arg1: i32, %arg2: i32) -> (i32, i32) {
    %c0_i32 = arith.constant 0 : i32
    return %arg0, %arg1 : i32, i32
  }
}

module attributes {stable_mosaic.version = 11 : i64} {
  func.func @_gemm_bias_act_kernel(%arg0: i32, %arg1: i32, %arg2: i32, %arg3: memref<16x48xbf16, #tpu.memory_space<vmem>>, %arg4: memref<48x128xbf16, #tpu.memory_space<vmem>>, %arg5: memref<1x128xf32, #tpu.memory_space<vmem>>, %arg6: memref<16x128xf32, #tpu.memory_space<vmem>>, %arg7: memref<16x128xf32, #tpu.memory_space<vmem>>) attributes {dimension_semantics = [#tpu.dimension_semantics<parallel>, #tpu.dimension_semantics<parallel>, #tpu.dimension_semantics<arbitrary>], iteration_bounds = array<i64: 1, 1, 1>, scalar_prefetch = 0 : i64, scratch_operands = 1 : i64, tpu.core_type = #tpu.core_type<tc>, window_params = [{transform_indices = @transform_0, window_bounds = array<i64: 16, 48>}, {transform_indices = @transform_1, window_bounds = array<i64: 48, 128>}, {transform_indices = @transform_2, window_bounds = array<i64: 1, 128>}, {transform_indices = @transform_3, window_bounds = array<i64: 16, 128>}]} {
    %c0_i32 = arith.constant 0 : i32
    %0 = arith.cmpi eq, %arg2, %c0_i32 : i32
    %1 = arith.extui %0 : i1 to i32
    %c0_i32_0 = arith.constant 0 : i32
    %2 = arith.cmpi ne, %1, %c0_i32_0 : i32
    scf.if %2 {
      %c0_10 = arith.constant 0 : index
      %c0_11 = arith.constant 0 : index
      %12 = vector.load %arg5[%c0_10, %c0_11] : memref<1x128xf32, #tpu.memory_space<vmem>>, vector<1x128xf32>
      %13 = vector.shape_cast %12 : vector<1x128xf32> to vector<1x128xf32>
      %14 = vector.broadcast %13 : vector<1x128xf32> to vector<16x128xf32>
      %c0_12 = arith.constant 0 : index
      %c0_13 = arith.constant 0 : index
      %15 = vector.load %arg7[%c0_12, %c0_13] : memref<16x128xf32, #tpu.memory_space<vmem>>, vector<16x128xf32>
      tpu.vector_store %arg7[%c0_12, %c0_13], %14 {strides = array<i32>} : memref<16x128xf32, #tpu.memory_space<vmem>>, vector<16x128xf32>,
    } else {
    }
    %c0 = arith.constant 0 : index
    %c0_1 = arith.constant 0 : index
    %3 = vector.load %arg7[%c0, %c0_1] : memref<16x128xf32, #tpu.memory_space<vmem>>, vector<16x128xf32>
    %c0_2 = arith.constant 0 : index
    %c0_3 = arith.constant 0 : index
    %4 = vector.load %arg3[%c0_2, %c0_3] : memref<16x48xbf16, #tpu.memory_space<vmem>>, vector<16x48xbf16>
    %c0_4 = arith.constant 0 : index
    %c0_5 = arith.constant 0 : index
    %5 = vector.load %arg4[%c0_4, %c0_5] : memref<48x128xbf16, #tpu.memory_space<vmem>>, vector<48x128xbf16>
    %cst = arith.constant dense<0.000000e+00> : vector<16x128xf32>
    %6 = tpu.matmul %4, %5, %cst {dimension_numbers = #tpu.dot_dimension_numbers<[1], [0], [0], [1], [0, 0, 1, 1], [], []>} : vector<16x48xbf16>, vector<48x128xbf16>, vector<16x128xf32> -> vector<16x128xf32>
    %7 = arith.addf %3, %6 : vector<16x128xf32>
    %c0_6 = arith.constant 0 : index
    %c0_7 = arith.constant 0 : index
    %8 = vector.load %arg7[%c0_6, %c0_7] : memref<16x128xf32, #tpu.memory_space<vmem>>, vector<16x128xf32>
    tpu.vector_store %arg7[%c0_6, %c0_7], %7 {strides = array<i32>} : memref<16x128xf32, #tpu.memory_space<vmem>>, vector<16x128xf32>,
    %c0_i32_8 = arith.constant 0 : i32
    %9 = arith.cmpi eq, %arg2, %c0_i32_8 : i32
    %10 = arith.extui %9 : i1 to i32
    %c0_i32_9 = arith.constant 0 : i32
    %11 = arith.cmpi ne, %10, %c0_i32_9 : i32
    scf.if %11 {
      %c0_10 = arith.constant 0 : index
      %c0_11 = arith.constant 0 : index
      %12 = vector.load %arg7[%c0_10, %c0_11] : memref<16x128xf32, #tpu.memory_space<vmem>>, vector<16x128xf32>
      %c0_12 = arith.constant 0 : index
      %c0_13 = arith.constant 0 : index
      %13 = vector.load %arg6[%c0_12, %c0_13] : memref<16x128xf32, #tpu.memory_space<vmem>>, vector<16x128xf32>
      tpu.vector_store %arg6[%c0_12, %c0_13], %12 {strides = array<i32>} : memref<16x128xf32, #tpu.memory_space<vmem>>, vector<16x128xf32>,
    } else {
    }
    return
  }
  func.func @transform_0(%arg0: i32, %arg1: i32, %arg2: i32) -> (i32, i32) {
    %c0_i32 = arith.constant 0 : i32
    return %arg0, %arg2 : i32, i32
  }
  func.func @transform_1(%arg0: i32, %arg1: i32, %arg2: i32) -> (i32, i32) {
    %c0_i32 = arith.constant 0 : i32
    return %arg2, %arg1 : i32, i32
  }
  func.func @transform_2(%arg0: i32, %arg1: i32, %arg2: i32) -> (i32, i32) {
    %c0_i32 = arith.constant 0 : i32
    %c0_i32_0 = arith.constant 0 : i32
    return %c0_i32, %arg1 : i32, i32
  }
  func.func @transform_3(%arg0: i32, %arg1: i32, %arg2: i32) -> (i32, i32) {
    %c0_i32 = arith.constant 0 : i32
    return %arg0, %arg1 : i32, i32
  }
}

module attributes {stable_mosaic.version = 11 : i64} {
  func.func @_attn_gru_head_kernel(%arg0: i32, %arg1: memref<16x1xi32, #tpu.memory_space<vmem>>, %arg2: memref<64x128xf32, #tpu.memory_space<vmem>>, %arg3: memref<16x128xf32, #tpu.memory_space<vmem>>, %arg4: memref<16x128xf32, #tpu.memory_space<vmem>>, %arg5: memref<128x256xbf16, #tpu.memory_space<vmem>>, %arg6: memref<128x512xbf16, #tpu.memory_space<vmem>>, %arg7: memref<128x128xbf16, #tpu.memory_space<vmem>>, %arg8: memref<128x384xbf16, #tpu.memory_space<vmem>>, %arg9: memref<1x128xf32, #tpu.memory_space<vmem>>, %arg10: memref<1x128xf32, #tpu.memory_space<vmem>>, %arg11: memref<1x384xf32, #tpu.memory_space<vmem>>, %arg12: memref<1x384xf32, #tpu.memory_space<vmem>>, %arg13: memref<256x128xbf16, #tpu.memory_space<vmem>>, %arg14: memref<1x128xf32, #tpu.memory_space<vmem>>, %arg15: memref<128x128xbf16, #tpu.memory_space<vmem>>, %arg16: memref<1x128xf32, #tpu.memory_space<vmem>>, %arg17: memref<16x128xf32, #tpu.memory_space<vmem>>, %arg18: memref<16x128xf32, #tpu.memory_space<vmem>>, %arg19: memref<64x256xf32, #tpu.memory_space<vmem>>) attributes {dimension_semantics = [#tpu.dimension_semantics<arbitrary>], iteration_bounds = array<i64: 1>, scalar_prefetch = 0 : i64, scratch_operands = 1 : i64, tpu.core_type = #tpu.core_type<tc>, window_params = [{pipeline_mode = #tpu.pipeline_mode<synchronous>, transform_indices = @transform_0, window_bounds = array<i64: 16, 1>}, {pipeline_mode = #tpu.pipeline_mode<synchronous>, transform_indices = @transform_1, window_bounds = array<i64: 64, 128>}, {pipeline_mode = #tpu.pipeline_mode<synchronous>, transform_indices = @transform_2, window_bounds = array<i64: 16, 128>}, {pipeline_mode = #tpu.pipeline_mode<synchronous>, transform_indices = @transform_3, window_bounds = array<i64: 16, 128>}, {pipeline_mode = #tpu.pipeline_mode<synchronous>, transform_indices = @transform_4, window_bounds = array<i64: 128, 256>}, {pipeline_mode = #tpu.pipeline_mode<synchronous>, transform_indices = @transform_5, window_bounds = array<i64: 128, 512>}, {pipeline_mode = #tpu.pipeline_mode<synchronous>, transform_indices = @transform_6, window_bounds = array<i64: 128, 128>}, {pipeline_mode = #tpu.pipeline_mode<synchronous>, transform_indices = @transform_7, window_bounds = array<i64: 128, 384>}, {pipeline_mode = #tpu.pipeline_mode<synchronous>, transform_indices = @transform_8, window_bounds = array<i64: 1, 128>}, {pipeline_mode = #tpu.pipeline_mode<synchronous>, transform_indices = @transform_9, window_bounds = array<i64: 1, 128>}, {pipeline_mode = #tpu.pipeline_mode<synchronous>, transform_indices = @transform_10, window_bounds = array<i64: 1, 384>}, {pipeline_mode = #tpu.pipeline_mode<synchronous>, transform_indices = @transform_11, window_bounds = array<i64: 1, 384>}, {pipeline_mode = #tpu.pipeline_mode<synchronous>, transform_indices = @transform_12, window_bounds = array<i64: 256, 128>}, {pipeline_mode = #tpu.pipeline_mode<synchronous>, transform_indices = @transform_13, window_bounds = array<i64: 1, 128>}, {pipeline_mode = #tpu.pipeline_mode<synchronous>, transform_indices = @transform_14, window_bounds = array<i64: 128, 128>}, {pipeline_mode = #tpu.pipeline_mode<synchronous>, transform_indices = @transform_15, window_bounds = array<i64: 1, 128>}, {pipeline_mode = #tpu.pipeline_mode<synchronous>, transform_indices = @transform_16, window_bounds = array<i64: 16, 128>}, {pipeline_mode = #tpu.pipeline_mode<synchronous>, transform_indices = @transform_17, window_bounds = array<i64: 16, 128>}]} {
    %c0 = arith.constant 0 : index
    %c0_0 = arith.constant 0 : index
    %0 = vector.load %arg3[%c0, %c0_0] : memref<16x128xf32, #tpu.memory_space<vmem>>, vector<16x128xf32>
    %c0_1 = arith.constant 0 : index
    %c0_2 = arith.constant 0 : index
    %1 = vector.load %arg4[%c0_1, %c0_2] : memref<16x128xf32, #tpu.memory_space<vmem>>, vector<16x128xf32>
    %c0_3 = arith.constant 0 : index
    %c0_4 = arith.constant 0 : index
    %2 = vector.load %arg1[%c0_3, %c0_4] : memref<16x1xi32, #tpu.memory_space<vmem>>, vector<16x1xi32>
    %c0_5 = arith.constant 0 : index
    %c0_6 = arith.constant 0 : index
    %3 = vector.load %arg2[%c0_5, %c0_6] : memref<64x128xf32, #tpu.memory_space<vmem>>, vector<64x128xf32>
    %4 = arith.truncf %3 : vector<64x128xf32> to vector<64x128xbf16>
    %c0_7 = arith.constant 0 : index
    %c0_8 = arith.constant 0 : index
    %5 = vector.load %arg5[%c0_7, %c0_8] : memref<128x256xbf16, #tpu.memory_space<vmem>>, vector<128x256xbf16>
    %cst = arith.constant dense<0.000000e+00> : vector<64x256xf32>
    %6 = tpu.matmul %4, %5, %cst {dimension_numbers = #tpu.dot_dimension_numbers<[1], [0], [0], [1], [0, 0, 1, 1], [], []>} : vector<64x128xbf16>, vector<128x256xbf16>, vector<64x256xf32> -> vector<64x256xf32>
    %c0_9 = arith.constant 0 : index
    %c0_10 = arith.constant 0 : index
    %7 = vector.load %arg19[%c0_9, %c0_10] : memref<64x256xf32, #tpu.memory_space<vmem>>, vector<64x256xf32>
    tpu.vector_store %arg19[%c0_9, %c0_10], %6 {strides = array<i32>} : memref<64x256xf32, #tpu.memory_space<vmem>>, vector<64x256xf32>,
    %8 = tpu.iota {dimensions = array<i32: 1>} : vector<16x128xi32>
    %c32_i32 = arith.constant 32 : i32
    %9 = vector.broadcast %c32_i32 : i32 to vector<16x128xi32>
    %10 = arith.cmpi slt, %8, %9 : vector<16x128xi32>
    %c0_i32 = arith.constant 0 : i32
    %c16_i32 = arith.constant 16 : i32
    %11 = arith.muli %c0_i32, %c16_i32 : i32
    %12 = tpu.assume_multiple %11, 16 : i32
    %13 = arith.index_cast %12 : i32 to index
    %c0_11 = arith.constant 0 : index
    %14 = vector.load %arg19[%13, %c0_11] : memref<64x256xf32, #tpu.memory_space<vmem>>, vector<16x256xf32>
    %15 = arith.truncf %1 : vector<16x128xf32> to vector<16x128xbf16>
    %c0_12 = arith.constant 0 : index
    %c0_13 = arith.constant 0 : index
    %16 = vector.load %arg6[%c0_12, %c0_13] : memref<128x512xbf16, #tpu.memory_space<vmem>>, vector<128x512xbf16>
    %cst_14 = arith.constant dense<0.000000e+00> : vector<16x512xf32>
    %17 = tpu.matmul %15, %16, %cst_14 {dimension_numbers = #tpu.dot_dimension_numbers<[1], [0], [0], [1], [0, 0, 1, 1], [], []>} : vector<16x128xbf16>, vector<128x512xbf16>, vector<16x512xf32> -> vector<16x512xf32>
    %18 = vector.extract_strided_slice %14 {offsets = [0, 0], sizes = [16, 128], strides = [1, 1]} : vector<16x256xf32> to vector<16x128xf32>
    %19 = vector.extract_strided_slice %17 {offsets = [0, 0], sizes = [16, 128], strides = [1, 1]} : vector<16x512xf32> to vector<16x128xf32>
    %20 = arith.addf %18, %19 : vector<16x128xf32>
    %c0_15 = arith.constant 0 : index
    %c0_16 = arith.constant 0 : index
    %21 = vector.load %arg9[%c0_15, %c0_16] : memref<1x128xf32, #tpu.memory_space<vmem>>, vector<1x128xf32>
    %22 = vector.broadcast %21 : vector<1x128xf32> to vector<16x128xf32>
    %23 = arith.addf %20, %22 : vector<16x128xf32>
    %cst_17 = arith.constant -1.000000e+30 : f32
    %24 = vector.broadcast %cst_17 : f32 to vector<16x128xf32>
    %25 = arith.select %10, %23, %24 : vector<16x128xi1>, vector<16x128xf32>
    %cst_18 = arith.constant dense<0xFF800000> : vector<16xf32>
    %26 = vector.multi_reduction <maximumf>, %25, %cst_18 [1] : vector<16x128xf32> to vector<16xf32>
    %27 = vector.shape_cast %26 : vector<16xf32> to vector<16x1xf32>
    %28 = vector.broadcast %27 : vector<16x1xf32> to vector<16x128xf32>
    %29 = arith.subf %25, %28 : vector<16x128xf32>
    %30 = math.exp %29 : vector<16x128xf32>
    %cst_19 = arith.constant dense<0.000000e+00> : vector<16xf32>
    %31 = vector.multi_reduction <add>, %30, %cst_19 [1] : vector<16x128xf32> to vector<16xf32>
    %32 = vector.shape_cast %31 : vector<16xf32> to vector<16x1xf32>
    %33 = tpu.reciprocal %32 {approx = true} : vector<16x1xf32> -> vector<16x1xf32>
    %34 = vector.broadcast %33 : vector<16x1xf32> to vector<16x128xf32>
    %35 = arith.mulf %30, %34 : vector<16x128xf32>
    %36 = arith.mulf %0, %35 : vector<16x128xf32>
    %37 = vector.extract_strided_slice %14 {offsets = [0, 128], sizes = [16, 128], strides = [1, 1]} : vector<16x256xf32> to vector<16x128xf32>
    %38 = arith.truncf %36 : vector<16x128xf32> to vector<16x128xbf16>
    %c0_20 = arith.constant 0 : index
    %c0_21 = arith.constant 0 : index
    %39 = vector.load %arg7[%c0_20, %c0_21] : memref<128x128xbf16, #tpu.memory_space<vmem>>, vector<128x128xbf16>
    %cst_22 = arith.constant dense<0.000000e+00> : vector<16x128xf32>
    %40 = tpu.matmul %38, %39, %cst_22 {dimension_numbers = #tpu.dot_dimension_numbers<[1], [0], [0], [1], [0, 0, 1, 1], [], []>} : vector<16x128xbf16>, vector<128x128xbf16>, vector<16x128xf32> -> vector<16x128xf32>
    %41 = arith.addf %37, %40 : vector<16x128xf32>
    %c0_23 = arith.constant 0 : index
    %c0_24 = arith.constant 0 : index
    %42 = vector.load %arg10[%c0_23, %c0_24] : memref<1x128xf32, #tpu.memory_space<vmem>>, vector<1x128xf32>
    %43 = vector.broadcast %42 : vector<1x128xf32> to vector<16x128xf32>
    %44 = arith.addf %41, %43 : vector<16x128xf32>
    %cst_25 = arith.constant 0.000000e+00 : f32
    %45 = vector.broadcast %cst_25 : f32 to vector<16x128xf32>
    %46 = arith.maximumf %44, %45 : vector<16x128xf32>
    %47 = arith.truncf %46 : vector<16x128xf32> to vector<16x128xbf16>
    %c0_26 = arith.constant 0 : index
    %c0_27 = arith.constant 0 : index
    %48 = vector.load %arg8[%c0_26, %c0_27] : memref<128x384xbf16, #tpu.memory_space<vmem>>, vector<128x384xbf16>
    %cst_28 = arith.constant dense<0.000000e+00> : vector<16x384xf32>
    %49 = tpu.matmul %47, %48, %cst_28 {dimension_numbers = #tpu.dot_dimension_numbers<[1], [0], [0], [1], [0, 0, 1, 1], [], []>} : vector<16x128xbf16>, vector<128x384xbf16>, vector<16x384xf32> -> vector<16x384xf32>
    %c0_29 = arith.constant 0 : index
    %c0_30 = arith.constant 0 : index
    %50 = vector.load %arg11[%c0_29, %c0_30] : memref<1x384xf32, #tpu.memory_space<vmem>>, vector<1x384xf32>
    %51 = vector.broadcast %50 : vector<1x384xf32> to vector<16x384xf32>
    %52 = arith.addf %49, %51 : vector<16x384xf32>
    %53 = vector.extract_strided_slice %17 {offsets = [0, 128], sizes = [16, 384], strides = [1, 1]} : vector<16x512xf32> to vector<16x384xf32>
    %c0_31 = arith.constant 0 : index
    %c0_32 = arith.constant 0 : index
    %54 = vector.load %arg12[%c0_31, %c0_32] : memref<1x384xf32, #tpu.memory_space<vmem>>, vector<1x384xf32>
    %55 = vector.broadcast %54 : vector<1x384xf32> to vector<16x384xf32>
    %56 = arith.addf %53, %55 : vector<16x384xf32>
    %57 = vector.extract_strided_slice %52 {offsets = [0, 0], sizes = [16, 256], strides = [1, 1]} : vector<16x384xf32> to vector<16x256xf32>
    %58 = vector.extract_strided_slice %56 {offsets = [0, 0], sizes = [16, 256], strides = [1, 1]} : vector<16x384xf32> to vector<16x256xf32>
    %59 = arith.addf %57, %58 : vector<16x256xf32>
    %60 = arith.negf %59 : vector<16x256xf32>
    %61 = math.exp %60 : vector<16x256xf32>
    %cst_33 = arith.constant 1.000000e+00 : f32
    %62 = vector.broadcast %cst_33 : f32 to vector<16x256xf32>
    %63 = arith.addf %62, %61 : vector<16x256xf32>
    %64 = arith.divf %62, %63 : vector<16x256xf32>
    %65 = vector.extract_strided_slice %64 {offsets = [0, 0], sizes = [16, 128], strides = [1, 1]} : vector<16x256xf32> to vector<16x128xf32>
    %66 = vector.extract_strided_slice %64 {offsets = [0, 128], sizes = [16, 128], strides = [1, 1]} : vector<16x256xf32> to vector<16x128xf32>
    %67 = vector.extract_strided_slice %52 {offsets = [0, 256], sizes = [16, 128], strides = [1, 1]} : vector<16x384xf32> to vector<16x128xf32>
    %68 = vector.extract_strided_slice %56 {offsets = [0, 256], sizes = [16, 128], strides = [1, 1]} : vector<16x384xf32> to vector<16x128xf32>
    %69 = arith.mulf %65, %68 : vector<16x128xf32>
    %70 = arith.addf %67, %69 : vector<16x128xf32>
    %71 = math.tanh %70 : vector<16x128xf32>
    %cst_34 = arith.constant 1.000000e+00 : f32
    %72 = vector.broadcast %cst_34 : f32 to vector<16x128xf32>
    %73 = arith.subf %72, %66 : vector<16x128xf32>
    %74 = arith.mulf %73, %71 : vector<16x128xf32>
    %75 = arith.mulf %66, %1 : vector<16x128xf32>
    %76 = arith.addf %74, %75 : vector<16x128xf32>
    %c1_i32 = arith.constant 1 : i32
    %77 = arith.addi %c0_i32, %c1_i32 : i32
    %78 = vector.broadcast %77 : i32 to vector<16x1xi32>
    %79 = arith.cmpi eq, %2, %78 : vector<16x1xi32>
    %80 = vector.shape_cast %79 : vector<16x1xi1> to vector<16x1xi1>
    %81 = vector.broadcast %80 : vector<16x1xi1> to vector<16x128xi1>
    %82 = arith.select %81, %76, %1 : vector<16x128xi1>, vector<16x128xf32>
    %c1_i32_35 = arith.constant 1 : i32
    %c16_i32_36 = arith.constant 16 : i32
    %83 = arith.muli %c1_i32_35, %c16_i32_36 : i32
    %84 = tpu.assume_multiple %83, 16 : i32
    %85 = arith.index_cast %84 : i32 to index
    %c0_37 = arith.constant 0 : index
    %86 = vector.load %arg19[%85, %c0_37] : memref<64x256xf32, #tpu.memory_space<vmem>>, vector<16x256xf32>
    %87 = arith.truncf %76 : vector<16x128xf32> to vector<16x128xbf16>
    %c0_38 = arith.constant 0 : index
    %c0_39 = arith.constant 0 : index
    %88 = vector.load %arg6[%c0_38, %c0_39] : memref<128x512xbf16, #tpu.memory_space<vmem>>, vector<128x512xbf16>
    %cst_40 = arith.constant dense<0.000000e+00> : vector<16x512xf32>
    %89 = tpu.matmul %87, %88, %cst_40 {dimension_numbers = #tpu.dot_dimension_numbers<[1], [0], [0], [1], [0, 0, 1, 1], [], []>} : vector<16x128xbf16>, vector<128x512xbf16>, vector<16x512xf32> -> vector<16x512xf32>
    %90 = vector.extract_strided_slice %86 {offsets = [0, 0], sizes = [16, 128], strides = [1, 1]} : vector<16x256xf32> to vector<16x128xf32>
    %91 = vector.extract_strided_slice %89 {offsets = [0, 0], sizes = [16, 128], strides = [1, 1]} : vector<16x512xf32> to vector<16x128xf32>
    %92 = arith.addf %90, %91 : vector<16x128xf32>
    %c0_41 = arith.constant 0 : index
    %c0_42 = arith.constant 0 : index
    %93 = vector.load %arg9[%c0_41, %c0_42] : memref<1x128xf32, #tpu.memory_space<vmem>>, vector<1x128xf32>
    %94 = vector.broadcast %93 : vector<1x128xf32> to vector<16x128xf32>
    %95 = arith.addf %92, %94 : vector<16x128xf32>
    %cst_43 = arith.constant -1.000000e+30 : f32
    %96 = vector.broadcast %cst_43 : f32 to vector<16x128xf32>
    %97 = arith.select %10, %95, %96 : vector<16x128xi1>, vector<16x128xf32>
    %cst_44 = arith.constant dense<0xFF800000> : vector<16xf32>
    %98 = vector.multi_reduction <maximumf>, %97, %cst_44 [1] : vector<16x128xf32> to vector<16xf32>
    %99 = vector.shape_cast %98 : vector<16xf32> to vector<16x1xf32>
    %100 = vector.broadcast %99 : vector<16x1xf32> to vector<16x128xf32>
    %101 = arith.subf %97, %100 : vector<16x128xf32>
    %102 = math.exp %101 : vector<16x128xf32>
    %cst_45 = arith.constant dense<0.000000e+00> : vector<16xf32>
    %103 = vector.multi_reduction <add>, %102, %cst_45 [1] : vector<16x128xf32> to vector<16xf32>
    %104 = vector.shape_cast %103 : vector<16xf32> to vector<16x1xf32>
    %105 = tpu.reciprocal %104 {approx = true} : vector<16x1xf32> -> vector<16x1xf32>
    %106 = vector.broadcast %105 : vector<16x1xf32> to vector<16x128xf32>
    %107 = arith.mulf %102, %106 : vector<16x128xf32>
    %108 = arith.mulf %0, %107 : vector<16x128xf32>
    %109 = vector.extract_strided_slice %86 {offsets = [0, 128], sizes = [16, 128], strides = [1, 1]} : vector<16x256xf32> to vector<16x128xf32>
    %110 = arith.truncf %108 : vector<16x128xf32> to vector<16x128xbf16>
    %c0_46 = arith.constant 0 : index
    %c0_47 = arith.constant 0 : index
    %111 = vector.load %arg7[%c0_46, %c0_47] : memref<128x128xbf16, #tpu.memory_space<vmem>>, vector<128x128xbf16>
    %cst_48 = arith.constant dense<0.000000e+00> : vector<16x128xf32>
    %112 = tpu.matmul %110, %111, %cst_48 {dimension_numbers = #tpu.dot_dimension_numbers<[1], [0], [0], [1], [0, 0, 1, 1], [], []>} : vector<16x128xbf16>, vector<128x128xbf16>, vector<16x128xf32> -> vector<16x128xf32>
    %113 = arith.addf %109, %112 : vector<16x128xf32>
    %c0_49 = arith.constant 0 : index
    %c0_50 = arith.constant 0 : index
    %114 = vector.load %arg10[%c0_49, %c0_50] : memref<1x128xf32, #tpu.memory_space<vmem>>, vector<1x128xf32>
    %115 = vector.broadcast %114 : vector<1x128xf32> to vector<16x128xf32>
    %116 = arith.addf %113, %115 : vector<16x128xf32>
    %cst_51 = arith.constant 0.000000e+00 : f32
    %117 = vector.broadcast %cst_51 : f32 to vector<16x128xf32>
    %118 = arith.maximumf %116, %117 : vector<16x128xf32>
    %119 = arith.truncf %118 : vector<16x128xf32> to vector<16x128xbf16>
    %c0_52 = arith.constant 0 : index
    %c0_53 = arith.constant 0 : index
    %120 = vector.load %arg8[%c0_52, %c0_53] : memref<128x384xbf16, #tpu.memory_space<vmem>>, vector<128x384xbf16>
    %cst_54 = arith.constant dense<0.000000e+00> : vector<16x384xf32>
    %121 = tpu.matmul %119, %120, %cst_54 {dimension_numbers = #tpu.dot_dimension_numbers<[1], [0], [0], [1], [0, 0, 1, 1], [], []>} : vector<16x128xbf16>, vector<128x384xbf16>, vector<16x384xf32> -> vector<16x384xf32>
    %c0_55 = arith.constant 0 : index
    %c0_56 = arith.constant 0 : index
    %122 = vector.load %arg11[%c0_55, %c0_56] : memref<1x384xf32, #tpu.memory_space<vmem>>, vector<1x384xf32>
    %123 = vector.broadcast %122 : vector<1x384xf32> to vector<16x384xf32>
    %124 = arith.addf %121, %123 : vector<16x384xf32>
    %125 = vector.extract_strided_slice %89 {offsets = [0, 128], sizes = [16, 384], strides = [1, 1]} : vector<16x512xf32> to vector<16x384xf32>
    %c0_57 = arith.constant 0 : index
    %c0_58 = arith.constant 0 : index
    %126 = vector.load %arg12[%c0_57, %c0_58] : memref<1x384xf32, #tpu.memory_space<vmem>>, vector<1x384xf32>
    %127 = vector.broadcast %126 : vector<1x384xf32> to vector<16x384xf32>
    %128 = arith.addf %125, %127 : vector<16x384xf32>
    %129 = vector.extract_strided_slice %124 {offsets = [0, 0], sizes = [16, 256], strides = [1, 1]} : vector<16x384xf32> to vector<16x256xf32>
    %130 = vector.extract_strided_slice %128 {offsets = [0, 0], sizes = [16, 256], strides = [1, 1]} : vector<16x384xf32> to vector<16x256xf32>
    %131 = arith.addf %129, %130 : vector<16x256xf32>
    %132 = arith.negf %131 : vector<16x256xf32>
    %133 = math.exp %132 : vector<16x256xf32>
    %cst_59 = arith.constant 1.000000e+00 : f32
    %134 = vector.broadcast %cst_59 : f32 to vector<16x256xf32>
    %135 = arith.addf %134, %133 : vector<16x256xf32>
    %136 = arith.divf %134, %135 : vector<16x256xf32>
    %137 = vector.extract_strided_slice %136 {offsets = [0, 0], sizes = [16, 128], strides = [1, 1]} : vector<16x256xf32> to vector<16x128xf32>
    %138 = vector.extract_strided_slice %136 {offsets = [0, 128], sizes = [16, 128], strides = [1, 1]} : vector<16x256xf32> to vector<16x128xf32>
    %139 = vector.extract_strided_slice %124 {offsets = [0, 256], sizes = [16, 128], strides = [1, 1]} : vector<16x384xf32> to vector<16x128xf32>
    %140 = vector.extract_strided_slice %128 {offsets = [0, 256], sizes = [16, 128], strides = [1, 1]} : vector<16x384xf32> to vector<16x128xf32>
    %141 = arith.mulf %137, %140 : vector<16x128xf32>
    %142 = arith.addf %139, %141 : vector<16x128xf32>
    %143 = math.tanh %142 : vector<16x128xf32>
    %cst_60 = arith.constant 1.000000e+00 : f32
    %144 = vector.broadcast %cst_60 : f32 to vector<16x128xf32>
    %145 = arith.subf %144, %138 : vector<16x128xf32>
    %146 = arith.mulf %145, %143 : vector<16x128xf32>
    %147 = arith.mulf %138, %76 : vector<16x128xf32>
    %148 = arith.addf %146, %147 : vector<16x128xf32>
    %c1_i32_61 = arith.constant 1 : i32
    %149 = arith.addi %c1_i32_35, %c1_i32_61 : i32
    %150 = vector.broadcast %149 : i32 to vector<16x1xi32>
    %151 = arith.cmpi eq, %2, %150 : vector<16x1xi32>
    %152 = vector.shape_cast %151 : vector<16x1xi1> to vector<16x1xi1>
    %153 = vector.broadcast %152 : vector<16x1xi1> to vector<16x128xi1>
    %154 = arith.select %153, %148, %82 : vector<16x128xi1>, vector<16x128xf32>
    %c2_i32 = arith.constant 2 : i32
    %c16_i32_62 = arith.constant 16 : i32
    %155 = arith.muli %c2_i32, %c16_i32_62 : i32
    %156 = tpu.assume_multiple %155, 16 : i32
    %157 = arith.index_cast %156 : i32 to index
    %c0_63 = arith.constant 0 : index
    %158 = vector.load %arg19[%157, %c0_63] : memref<64x256xf32, #tpu.memory_space<vmem>>, vector<16x256xf32>
    %159 = arith.truncf %148 : vector<16x128xf32> to vector<16x128xbf16>
    %c0_64 = arith.constant 0 : index
    %c0_65 = arith.constant 0 : index
    %160 = vector.load %arg6[%c0_64, %c0_65] : memref<128x512xbf16, #tpu.memory_space<vmem>>, vector<128x512xbf16>
    %cst_66 = arith.constant dense<0.000000e+00> : vector<16x512xf32>
    %161 = tpu.matmul %159, %160, %cst_66 {dimension_numbers = #tpu.dot_dimension_numbers<[1], [0], [0], [1], [0, 0, 1, 1], [], []>} : vector<16x128xbf16>, vector<128x512xbf16>, vector<16x512xf32> -> vector<16x512xf32>
    %162 = vector.extract_strided_slice %158 {offsets = [0, 0], sizes = [16, 128], strides = [1, 1]} : vector<16x256xf32> to vector<16x128xf32>
    %163 = vector.extract_strided_slice %161 {offsets = [0, 0], sizes = [16, 128], strides = [1, 1]} : vector<16x512xf32> to vector<16x128xf32>
    %164 = arith.addf %162, %163 : vector<16x128xf32>
    %c0_67 = arith.constant 0 : index
    %c0_68 = arith.constant 0 : index
    %165 = vector.load %arg9[%c0_67, %c0_68] : memref<1x128xf32, #tpu.memory_space<vmem>>, vector<1x128xf32>
    %166 = vector.broadcast %165 : vector<1x128xf32> to vector<16x128xf32>
    %167 = arith.addf %164, %166 : vector<16x128xf32>
    %cst_69 = arith.constant -1.000000e+30 : f32
    %168 = vector.broadcast %cst_69 : f32 to vector<16x128xf32>
    %169 = arith.select %10, %167, %168 : vector<16x128xi1>, vector<16x128xf32>
    %cst_70 = arith.constant dense<0xFF800000> : vector<16xf32>
    %170 = vector.multi_reduction <maximumf>, %169, %cst_70 [1] : vector<16x128xf32> to vector<16xf32>
    %171 = vector.shape_cast %170 : vector<16xf32> to vector<16x1xf32>
    %172 = vector.broadcast %171 : vector<16x1xf32> to vector<16x128xf32>
    %173 = arith.subf %169, %172 : vector<16x128xf32>
    %174 = math.exp %173 : vector<16x128xf32>
    %cst_71 = arith.constant dense<0.000000e+00> : vector<16xf32>
    %175 = vector.multi_reduction <add>, %174, %cst_71 [1] : vector<16x128xf32> to vector<16xf32>
    %176 = vector.shape_cast %175 : vector<16xf32> to vector<16x1xf32>
    %177 = tpu.reciprocal %176 {approx = true} : vector<16x1xf32> -> vector<16x1xf32>
    %178 = vector.broadcast %177 : vector<16x1xf32> to vector<16x128xf32>
    %179 = arith.mulf %174, %178 : vector<16x128xf32>
    %180 = arith.mulf %0, %179 : vector<16x128xf32>
    %181 = vector.extract_strided_slice %158 {offsets = [0, 128], sizes = [16, 128], strides = [1, 1]} : vector<16x256xf32> to vector<16x128xf32>
    %182 = arith.truncf %180 : vector<16x128xf32> to vector<16x128xbf16>
    %c0_72 = arith.constant 0 : index
    %c0_73 = arith.constant 0 : index
    %183 = vector.load %arg7[%c0_72, %c0_73] : memref<128x128xbf16, #tpu.memory_space<vmem>>, vector<128x128xbf16>
    %cst_74 = arith.constant dense<0.000000e+00> : vector<16x128xf32>
    %184 = tpu.matmul %182, %183, %cst_74 {dimension_numbers = #tpu.dot_dimension_numbers<[1], [0], [0], [1], [0, 0, 1, 1], [], []>} : vector<16x128xbf16>, vector<128x128xbf16>, vector<16x128xf32> -> vector<16x128xf32>
    %185 = arith.addf %181, %184 : vector<16x128xf32>
    %c0_75 = arith.constant 0 : index
    %c0_76 = arith.constant 0 : index
    %186 = vector.load %arg10[%c0_75, %c0_76] : memref<1x128xf32, #tpu.memory_space<vmem>>, vector<1x128xf32>
    %187 = vector.broadcast %186 : vector<1x128xf32> to vector<16x128xf32>
    %188 = arith.addf %185, %187 : vector<16x128xf32>
    %cst_77 = arith.constant 0.000000e+00 : f32
    %189 = vector.broadcast %cst_77 : f32 to vector<16x128xf32>
    %190 = arith.maximumf %188, %189 : vector<16x128xf32>
    %191 = arith.truncf %190 : vector<16x128xf32> to vector<16x128xbf16>
    %c0_78 = arith.constant 0 : index
    %c0_79 = arith.constant 0 : index
    %192 = vector.load %arg8[%c0_78, %c0_79] : memref<128x384xbf16, #tpu.memory_space<vmem>>, vector<128x384xbf16>
    %cst_80 = arith.constant dense<0.000000e+00> : vector<16x384xf32>
    %193 = tpu.matmul %191, %192, %cst_80 {dimension_numbers = #tpu.dot_dimension_numbers<[1], [0], [0], [1], [0, 0, 1, 1], [], []>} : vector<16x128xbf16>, vector<128x384xbf16>, vector<16x384xf32> -> vector<16x384xf32>
    %c0_81 = arith.constant 0 : index
    %c0_82 = arith.constant 0 : index
    %194 = vector.load %arg11[%c0_81, %c0_82] : memref<1x384xf32, #tpu.memory_space<vmem>>, vector<1x384xf32>
    %195 = vector.broadcast %194 : vector<1x384xf32> to vector<16x384xf32>
    %196 = arith.addf %193, %195 : vector<16x384xf32>
    %197 = vector.extract_strided_slice %161 {offsets = [0, 128], sizes = [16, 384], strides = [1, 1]} : vector<16x512xf32> to vector<16x384xf32>
    %c0_83 = arith.constant 0 : index
    %c0_84 = arith.constant 0 : index
    %198 = vector.load %arg12[%c0_83, %c0_84] : memref<1x384xf32, #tpu.memory_space<vmem>>, vector<1x384xf32>
    %199 = vector.broadcast %198 : vector<1x384xf32> to vector<16x384xf32>
    %200 = arith.addf %197, %199 : vector<16x384xf32>
    %201 = vector.extract_strided_slice %196 {offsets = [0, 0], sizes = [16, 256], strides = [1, 1]} : vector<16x384xf32> to vector<16x256xf32>
    %202 = vector.extract_strided_slice %200 {offsets = [0, 0], sizes = [16, 256], strides = [1, 1]} : vector<16x384xf32> to vector<16x256xf32>
    %203 = arith.addf %201, %202 : vector<16x256xf32>
    %204 = arith.negf %203 : vector<16x256xf32>
    %205 = math.exp %204 : vector<16x256xf32>
    %cst_85 = arith.constant 1.000000e+00 : f32
    %206 = vector.broadcast %cst_85 : f32 to vector<16x256xf32>
    %207 = arith.addf %206, %205 : vector<16x256xf32>
    %208 = arith.divf %206, %207 : vector<16x256xf32>
    %209 = vector.extract_strided_slice %208 {offsets = [0, 0], sizes = [16, 128], strides = [1, 1]} : vector<16x256xf32> to vector<16x128xf32>
    %210 = vector.extract_strided_slice %208 {offsets = [0, 128], sizes = [16, 128], strides = [1, 1]} : vector<16x256xf32> to vector<16x128xf32>
    %211 = vector.extract_strided_slice %196 {offsets = [0, 256], sizes = [16, 128], strides = [1, 1]} : vector<16x384xf32> to vector<16x128xf32>
    %212 = vector.extract_strided_slice %200 {offsets = [0, 256], sizes = [16, 128], strides = [1, 1]} : vector<16x384xf32> to vector<16x128xf32>
    %213 = arith.mulf %209, %212 : vector<16x128xf32>
    %214 = arith.addf %211, %213 : vector<16x128xf32>
    %215 = math.tanh %214 : vector<16x128xf32>
    %cst_86 = arith.constant 1.000000e+00 : f32
    %216 = vector.broadcast %cst_86 : f32 to vector<16x128xf32>
    %217 = arith.subf %216, %210 : vector<16x128xf32>
    %218 = arith.mulf %217, %215 : vector<16x128xf32>
    %219 = arith.mulf %210, %148 : vector<16x128xf32>
    %220 = arith.addf %218, %219 : vector<16x128xf32>
    %c1_i32_87 = arith.constant 1 : i32
    %221 = arith.addi %c2_i32, %c1_i32_87 : i32
    %222 = vector.broadcast %221 : i32 to vector<16x1xi32>
    %223 = arith.cmpi eq, %2, %222 : vector<16x1xi32>
    %224 = vector.shape_cast %223 : vector<16x1xi1> to vector<16x1xi1>
    %225 = vector.broadcast %224 : vector<16x1xi1> to vector<16x128xi1>
    %226 = arith.select %225, %220, %154 : vector<16x128xi1>, vector<16x128xf32>
    %c3_i32 = arith.constant 3 : i32
    %c16_i32_88 = arith.constant 16 : i32
    %227 = arith.muli %c3_i32, %c16_i32_88 : i32
    %228 = tpu.assume_multiple %227, 16 : i32
    %229 = arith.index_cast %228 : i32 to index
    %c0_89 = arith.constant 0 : index
    %230 = vector.load %arg19[%229, %c0_89] : memref<64x256xf32, #tpu.memory_space<vmem>>, vector<16x256xf32>
    %231 = arith.truncf %220 : vector<16x128xf32> to vector<16x128xbf16>
    %c0_90 = arith.constant 0 : index
    %c0_91 = arith.constant 0 : index
    %232 = vector.load %arg6[%c0_90, %c0_91] : memref<128x512xbf16, #tpu.memory_space<vmem>>, vector<128x512xbf16>
    %cst_92 = arith.constant dense<0.000000e+00> : vector<16x512xf32>
    %233 = tpu.matmul %231, %232, %cst_92 {dimension_numbers = #tpu.dot_dimension_numbers<[1], [0], [0], [1], [0, 0, 1, 1], [], []>} : vector<16x128xbf16>, vector<128x512xbf16>, vector<16x512xf32> -> vector<16x512xf32>
    %234 = vector.extract_strided_slice %230 {offsets = [0, 0], sizes = [16, 128], strides = [1, 1]} : vector<16x256xf32> to vector<16x128xf32>
    %235 = vector.extract_strided_slice %233 {offsets = [0, 0], sizes = [16, 128], strides = [1, 1]} : vector<16x512xf32> to vector<16x128xf32>
    %236 = arith.addf %234, %235 : vector<16x128xf32>
    %c0_93 = arith.constant 0 : index
    %c0_94 = arith.constant 0 : index
    %237 = vector.load %arg9[%c0_93, %c0_94] : memref<1x128xf32, #tpu.memory_space<vmem>>, vector<1x128xf32>
    %238 = vector.broadcast %237 : vector<1x128xf32> to vector<16x128xf32>
    %239 = arith.addf %236, %238 : vector<16x128xf32>
    %cst_95 = arith.constant -1.000000e+30 : f32
    %240 = vector.broadcast %cst_95 : f32 to vector<16x128xf32>
    %241 = arith.select %10, %239, %240 : vector<16x128xi1>, vector<16x128xf32>
    %cst_96 = arith.constant dense<0xFF800000> : vector<16xf32>
    %242 = vector.multi_reduction <maximumf>, %241, %cst_96 [1] : vector<16x128xf32> to vector<16xf32>
    %243 = vector.shape_cast %242 : vector<16xf32> to vector<16x1xf32>
    %244 = vector.broadcast %243 : vector<16x1xf32> to vector<16x128xf32>
    %245 = arith.subf %241, %244 : vector<16x128xf32>
    %246 = math.exp %245 : vector<16x128xf32>
    %cst_97 = arith.constant dense<0.000000e+00> : vector<16xf32>
    %247 = vector.multi_reduction <add>, %246, %cst_97 [1] : vector<16x128xf32> to vector<16xf32>
    %248 = vector.shape_cast %247 : vector<16xf32> to vector<16x1xf32>
    %249 = tpu.reciprocal %248 {approx = true} : vector<16x1xf32> -> vector<16x1xf32>
    %250 = vector.broadcast %249 : vector<16x1xf32> to vector<16x128xf32>
    %251 = arith.mulf %246, %250 : vector<16x128xf32>
    %252 = arith.mulf %0, %251 : vector<16x128xf32>
    %253 = vector.extract_strided_slice %230 {offsets = [0, 128], sizes = [16, 128], strides = [1, 1]} : vector<16x256xf32> to vector<16x128xf32>
    %254 = arith.truncf %252 : vector<16x128xf32> to vector<16x128xbf16>
    %c0_98 = arith.constant 0 : index
    %c0_99 = arith.constant 0 : index
    %255 = vector.load %arg7[%c0_98, %c0_99] : memref<128x128xbf16, #tpu.memory_space<vmem>>, vector<128x128xbf16>
    %cst_100 = arith.constant dense<0.000000e+00> : vector<16x128xf32>
    %256 = tpu.matmul %254, %255, %cst_100 {dimension_numbers = #tpu.dot_dimension_numbers<[1], [0], [0], [1], [0, 0, 1, 1], [], []>} : vector<16x128xbf16>, vector<128x128xbf16>, vector<16x128xf32> -> vector<16x128xf32>
    %257 = arith.addf %253, %256 : vector<16x128xf32>
    %c0_101 = arith.constant 0 : index
    %c0_102 = arith.constant 0 : index
    %258 = vector.load %arg10[%c0_101, %c0_102] : memref<1x128xf32, #tpu.memory_space<vmem>>, vector<1x128xf32>
    %259 = vector.broadcast %258 : vector<1x128xf32> to vector<16x128xf32>
    %260 = arith.addf %257, %259 : vector<16x128xf32>
    %cst_103 = arith.constant 0.000000e+00 : f32
    %261 = vector.broadcast %cst_103 : f32 to vector<16x128xf32>
    %262 = arith.maximumf %260, %261 : vector<16x128xf32>
    %263 = arith.truncf %262 : vector<16x128xf32> to vector<16x128xbf16>
    %c0_104 = arith.constant 0 : index
    %c0_105 = arith.constant 0 : index
    %264 = vector.load %arg8[%c0_104, %c0_105] : memref<128x384xbf16, #tpu.memory_space<vmem>>, vector<128x384xbf16>
    %cst_106 = arith.constant dense<0.000000e+00> : vector<16x384xf32>
    %265 = tpu.matmul %263, %264, %cst_106 {dimension_numbers = #tpu.dot_dimension_numbers<[1], [0], [0], [1], [0, 0, 1, 1], [], []>} : vector<16x128xbf16>, vector<128x384xbf16>, vector<16x384xf32> -> vector<16x384xf32>
    %c0_107 = arith.constant 0 : index
    %c0_108 = arith.constant 0 : index
    %266 = vector.load %arg11[%c0_107, %c0_108] : memref<1x384xf32, #tpu.memory_space<vmem>>, vector<1x384xf32>
    %267 = vector.broadcast %266 : vector<1x384xf32> to vector<16x384xf32>
    %268 = arith.addf %265, %267 : vector<16x384xf32>
    %269 = vector.extract_strided_slice %233 {offsets = [0, 128], sizes = [16, 384], strides = [1, 1]} : vector<16x512xf32> to vector<16x384xf32>
    %c0_109 = arith.constant 0 : index
    %c0_110 = arith.constant 0 : index
    %270 = vector.load %arg12[%c0_109, %c0_110] : memref<1x384xf32, #tpu.memory_space<vmem>>, vector<1x384xf32>
    %271 = vector.broadcast %270 : vector<1x384xf32> to vector<16x384xf32>
    %272 = arith.addf %269, %271 : vector<16x384xf32>
    %273 = vector.extract_strided_slice %268 {offsets = [0, 0], sizes = [16, 256], strides = [1, 1]} : vector<16x384xf32> to vector<16x256xf32>
    %274 = vector.extract_strided_slice %272 {offsets = [0, 0], sizes = [16, 256], strides = [1, 1]} : vector<16x384xf32> to vector<16x256xf32>
    %275 = arith.addf %273, %274 : vector<16x256xf32>
    %276 = arith.negf %275 : vector<16x256xf32>
    %277 = math.exp %276 : vector<16x256xf32>
    %cst_111 = arith.constant 1.000000e+00 : f32
    %278 = vector.broadcast %cst_111 : f32 to vector<16x256xf32>
    %279 = arith.addf %278, %277 : vector<16x256xf32>
    %280 = arith.divf %278, %279 : vector<16x256xf32>
    %281 = vector.extract_strided_slice %280 {offsets = [0, 0], sizes = [16, 128], strides = [1, 1]} : vector<16x256xf32> to vector<16x128xf32>
    %282 = vector.extract_strided_slice %280 {offsets = [0, 128], sizes = [16, 128], strides = [1, 1]} : vector<16x256xf32> to vector<16x128xf32>
    %283 = vector.extract_strided_slice %268 {offsets = [0, 256], sizes = [16, 128], strides = [1, 1]} : vector<16x384xf32> to vector<16x128xf32>
    %284 = vector.extract_strided_slice %272 {offsets = [0, 256], sizes = [16, 128], strides = [1, 1]} : vector<16x384xf32> to vector<16x128xf32>
    %285 = arith.mulf %281, %284 : vector<16x128xf32>
    %286 = arith.addf %283, %285 : vector<16x128xf32>
    %287 = math.tanh %286 : vector<16x128xf32>
    %cst_112 = arith.constant 1.000000e+00 : f32
    %288 = vector.broadcast %cst_112 : f32 to vector<16x128xf32>
    %289 = arith.subf %288, %282 : vector<16x128xf32>
    %290 = arith.mulf %289, %287 : vector<16x128xf32>
    %291 = arith.mulf %282, %220 : vector<16x128xf32>
    %292 = arith.addf %290, %291 : vector<16x128xf32>
    %c1_i32_113 = arith.constant 1 : i32
    %293 = arith.addi %c3_i32, %c1_i32_113 : i32
    %294 = vector.broadcast %293 : i32 to vector<16x1xi32>
    %295 = arith.cmpi eq, %2, %294 : vector<16x1xi32>
    %296 = vector.shape_cast %295 : vector<16x1xi1> to vector<16x1xi1>
    %297 = vector.broadcast %296 : vector<16x1xi1> to vector<16x128xi1>
    %298 = arith.select %297, %292, %226 : vector<16x128xi1>, vector<16x128xf32>
    %c4_i32 = arith.constant 4 : i32
    %c0_114 = arith.constant 0 : index
    %c0_115 = arith.constant 0 : index
    %299 = vector.load %arg17[%c0_114, %c0_115] : memref<16x128xf32, #tpu.memory_space<vmem>>, vector<16x128xf32>
    tpu.vector_store %arg17[%c0_114, %c0_115], %298 {strides = array<i32>} : memref<16x128xf32, #tpu.memory_space<vmem>>, vector<16x128xf32>,
    %300 = arith.truncf %298 : vector<16x128xf32> to vector<16x128xbf16>
    %c0_116 = arith.constant 0 : index
    %c0_117 = arith.constant 0 : index
    %301 = vector.load %arg13[%c0_116, %c0_117] : memref<256x128xbf16, #tpu.memory_space<vmem>>, vector<128x128xbf16>
    %cst_118 = arith.constant dense<0.000000e+00> : vector<16x128xf32>
    %302 = tpu.matmul %300, %301, %cst_118 {dimension_numbers = #tpu.dot_dimension_numbers<[1], [0], [0], [1], [0, 0, 1, 1], [], []>} : vector<16x128xbf16>, vector<128x128xbf16>, vector<16x128xf32> -> vector<16x128xf32>
    %303 = arith.truncf %0 : vector<16x128xf32> to vector<16x128xbf16>
    %c128 = arith.constant 128 : index
    %c0_119 = arith.constant 0 : index
    %304 = vector.load %arg13[%c128, %c0_119] : memref<256x128xbf16, #tpu.memory_space<vmem>>, vector<128x128xbf16>
    %cst_120 = arith.constant dense<0.000000e+00> : vector<16x128xf32>
    %305 = tpu.matmul %303, %304, %cst_120 {dimension_numbers = #tpu.dot_dimension_numbers<[1], [0], [0], [1], [0, 0, 1, 1], [], []>} : vector<16x128xbf16>, vector<128x128xbf16>, vector<16x128xf32> -> vector<16x128xf32>
    %306 = arith.addf %302, %305 : vector<16x128xf32>
    %c0_121 = arith.constant 0 : index
    %c0_122 = arith.constant 0 : index
    %307 = vector.load %arg14[%c0_121, %c0_122] : memref<1x128xf32, #tpu.memory_space<vmem>>, vector<1x128xf32>
    %308 = vector.broadcast %307 : vector<1x128xf32> to vector<16x128xf32>
    %309 = arith.addf %306, %308 : vector<16x128xf32>
    %cst_123 = arith.constant 0.000000e+00 : f32
    %310 = vector.broadcast %cst_123 : f32 to vector<16x128xf32>
    %311 = arith.maximumf %309, %310 : vector<16x128xf32>
    %312 = arith.truncf %311 : vector<16x128xf32> to vector<16x128xbf16>
    %c0_124 = arith.constant 0 : index
    %c0_125 = arith.constant 0 : index
    %313 = vector.load %arg15[%c0_124, %c0_125] : memref<128x128xbf16, #tpu.memory_space<vmem>>, vector<128x128xbf16>
    %cst_126 = arith.constant dense<0.000000e+00> : vector<16x128xf32>
    %314 = tpu.matmul %312, %313, %cst_126 {dimension_numbers = #tpu.dot_dimension_numbers<[1], [0], [0], [1], [0, 0, 1, 1], [], []>} : vector<16x128xbf16>, vector<128x128xbf16>, vector<16x128xf32> -> vector<16x128xf32>
    %c0_127 = arith.constant 0 : index
    %c0_128 = arith.constant 0 : index
    %315 = vector.load %arg16[%c0_127, %c0_128] : memref<1x128xf32, #tpu.memory_space<vmem>>, vector<1x128xf32>
    %316 = vector.broadcast %315 : vector<1x128xf32> to vector<16x128xf32>
    %317 = arith.addf %314, %316 : vector<16x128xf32>
    %c0_129 = arith.constant 0 : index
    %c0_130 = arith.constant 0 : index
    %318 = vector.load %arg18[%c0_129, %c0_130] : memref<16x128xf32, #tpu.memory_space<vmem>>, vector<16x128xf32>
    tpu.vector_store %arg18[%c0_129, %c0_130], %317 {strides = array<i32>} : memref<16x128xf32, #tpu.memory_space<vmem>>, vector<16x128xf32>,
    return
  }
  func.func @transform_0(%arg0: i32) -> (i32, i32) {
    %c0_i32 = arith.constant 0 : i32
    %c0_i32_0 = arith.constant 0 : i32
    %c0_i32_1 = arith.constant 0 : i32
    return %c0_i32, %c0_i32_0 : i32, i32
  }
  func.func @transform_1(%arg0: i32) -> (i32, i32) {
    %c0_i32 = arith.constant 0 : i32
    %c0_i32_0 = arith.constant 0 : i32
    %c0_i32_1 = arith.constant 0 : i32
    return %c0_i32, %c0_i32_0 : i32, i32
  }
  func.func @transform_2(%arg0: i32) -> (i32, i32) {
    %c0_i32 = arith.constant 0 : i32
    %c0_i32_0 = arith.constant 0 : i32
    %c0_i32_1 = arith.constant 0 : i32
    return %c0_i32, %c0_i32_0 : i32, i32
  }
  func.func @transform_3(%arg0: i32) -> (i32, i32) {
    %c0_i32 = arith.constant 0 : i32
    %c0_i32_0 = arith.constant 0 : i32
    %c0_i32_1 = arith.constant 0 : i32
    return %c0_i32, %c0_i32_0 : i32, i32
  }
  func.func @transform_4(%arg0: i32) -> (i32, i32) {
    %c0_i32 = arith.constant 0 : i32
    %c0_i32_0 = arith.constant 0 : i32
    %c0_i32_1 = arith.constant 0 : i32
    return %c0_i32, %c0_i32_0 : i32, i32
  }
  func.func @transform_5(%arg0: i32) -> (i32, i32) {
    %c0_i32 = arith.constant 0 : i32
    %c0_i32_0 = arith.constant 0 : i32
    %c0_i32_1 = arith.constant 0 : i32
    return %c0_i32, %c0_i32_0 : i32, i32
  }
  func.func @transform_6(%arg0: i32) -> (i32, i32) {
    %c0_i32 = arith.constant 0 : i32
    %c0_i32_0 = arith.constant 0 : i32
    %c0_i32_1 = arith.constant 0 : i32
    return %c0_i32, %c0_i32_0 : i32, i32
  }
  func.func @transform_7(%arg0: i32) -> (i32, i32) {
    %c0_i32 = arith.constant 0 : i32
    %c0_i32_0 = arith.constant 0 : i32
    %c0_i32_1 = arith.constant 0 : i32
    return %c0_i32, %c0_i32_0 : i32, i32
  }
  func.func @transform_8(%arg0: i32) -> (i32, i32) {
    %c0_i32 = arith.constant 0 : i32
    %c0_i32_0 = arith.constant 0 : i32
    %c0_i32_1 = arith.constant 0 : i32
    return %c0_i32, %c0_i32_0 : i32, i32
  }
  func.func @transform_9(%arg0: i32) -> (i32, i32) {
    %c0_i32 = arith.constant 0 : i32
    %c0_i32_0 = arith.constant 0 : i32
    %c0_i32_1 = arith.constant 0 : i32
    return %c0_i32, %c0_i32_0 : i32, i32
  }
  func.func @transform_10(%arg0: i32) -> (i32, i32) {
    %c0_i32 = arith.constant 0 : i32
    %c0_i32_0 = arith.constant 0 : i32
    %c0_i32_1 = arith.constant 0 : i32
    return %c0_i32, %c0_i32_0 : i32, i32
  }
  func.func @transform_11(%arg0: i32) -> (i32, i32) {
    %c0_i32 = arith.constant 0 : i32
    %c0_i32_0 = arith.constant 0 : i32
    %c0_i32_1 = arith.constant 0 : i32
    return %c0_i32, %c0_i32_0 : i32, i32
  }
  func.func @transform_12(%arg0: i32) -> (i32, i32) {
    %c0_i32 = arith.constant 0 : i32
    %c0_i32_0 = arith.constant 0 : i32
    %c0_i32_1 = arith.constant 0 : i32
    return %c0_i32, %c0_i32_0 : i32, i32
  }
  func.func @transform_13(%arg0: i32) -> (i32, i32) {
    %c0_i32 = arith.constant 0 : i32
    %c0_i32_0 = arith.constant 0 : i32
    %c0_i32_1 = arith.constant 0 : i32
    return %c0_i32, %c0_i32_0 : i32, i32
  }
  func.func @transform_14(%arg0: i32) -> (i32, i32) {
    %c0_i32 = arith.constant 0 : i32
    %c0_i32_0 = arith.constant 0 : i32
    %c0_i32_1 = arith.constant 0 : i32
    return %c0_i32, %c0_i32_0 : i32, i32
  }
  func.func @transform_15(%arg0: i32) -> (i32, i32) {
    %c0_i32 = arith.constant 0 : i32
    %c0_i32_0 = arith.constant 0 : i32
    %c0_i32_1 = arith.constant 0 : i32
    return %c0_i32, %c0_i32_0 : i32, i32
  }
  func.func @transform_16(%arg0: i32) -> (i32, i32) {
    %c0_i32 = arith.constant 0 : i32
    %c0_i32_0 = arith.constant 0 : i32
    %c0_i32_1 = arith.constant 0 : i32
    return %c0_i32, %c0_i32_0 : i32, i32
  }
  func.func @transform_17(%arg0: i32) -> (i32, i32) {
    %c0_i32 = arith.constant 0 : i32
    %c0_i32_0 = arith.constant 0 : i32
    %c0_i32_1 = arith.constant 0 : i32
    return %c0_i32, %c0_i32_0 : i32, i32
  }
}

</mosaic_0001>

<bundles_post_ra>
// kernel: _forward_impl.6
= control target key start
LH: loop header
LB: loop body
LE: loop exit
PB: predicated region body
PF: predicated region fallthrough
CT: control target
= control target key end

     0   :  { %v147_v0 = vmov 0.0   ;;  %vm148_vm0 = vmmov 0   ;;  %vm61_vm1 = vcmask 392192   ;;  %s190_s1 = inlined_call_operand.vmem [shape: bf16[48,128], index: 1, kind: input, shape index: {}]   ;;  %s191_s0 = inlined_call_operand.vmem [shape: bf16[16,48], index: 0, kind: input, shape index: {}]   ;;  %s192_s2 = inlined_call_operand.vmem [shape: f32[1,128], index: 2, kind: input, shape index: {}]   ;;  %s193_s3 = inlined_call_operand.vmem [shape: f32[16,128], index: 3, kind: output, shape index: {}]  }
   0x1   :  { %131 = vmatprep.subr.bf16.mxu0 %v147_v0  ;;  %v143_v1 = vld [vmem:[%s190_s1 + $0x10] sm:$0xff]   ;;  %137 = vmatprep.mubr.msk.bf16.mxu0 %vm148_vm0, %v147_v0  ;;  %v144_v2 = vld [vmem:[%s190_s1 + $0x8] sm:$0xff]   ;;  %v145_v3 = vld [vmem:[%s190_s1] sm:$0xff]  }
   0x2   :  { %132 = vmatpush3.bf16.msra.mxu0 %v143_v1  ;;  %v146_v4 = vld [vmem:[%s191_s0] sm:$0xff]  }
   0x3   :  { %133 = vmatprep.subr.bf16.mxu0 %v147_v0  ;;  %v121_v5 = vld [vmem:[%s192_s2] ss:$0 sm:$0xff] }
   0x6   :  { %134 = vmatpush3.bf16.msra.mxu0 %v144_v2 }
   0x7   :  { %135 = vmatprep.subr.bf16.mxu0 %v147_v0 }
   0xa   :  { %136 = vmatpush3.bf16.msra.mxu0 %v145_v3 }
   0xd   :  { %138 = vmatmul.mubr.msk.bf16.vlgmr.msra.gmra.mxu0 %vm61_vm1, %v146_v4 }
  0xcd   :  { %v99_v6 = vpop.f32.mrf.mxu0 }
  0xce   :  { %v106_v7 = vadd.f32 %v121_v5, %v99_v6 }
  0xcf   :  { %v139_v8 = vpop.f32.mrf.mxu0 }
  0xd0   :  { %115 = vst [vmem:[%s193_s3] sm:$0xff] %v106_v7 }
  0xd1   :  { %v102_v9 = vpop.f32.mrf.mxu0 }
  0xd2   :  { %v107_v10 = vadd.f32 %v121_v5, %v102_v9 }
  0xd3   :  { %v140_v11 = vpop.f32.mrf.mxu0 }
  0xd4   :  { %116 = vst [vmem:[%s193_s3 + $0x8] sm:$0xff] %v107_v10 }

// kernel: _forward_impl.5
= control target key start
LH: loop header
LB: loop body
LE: loop exit
PB: predicated region body
PF: predicated region fallthrough
CT: control target
= control target key end

     0   :  { %s2403_s1 = inlined_call_operand.vmem [shape: bf16[2048,128], index: 1, kind: input, shape index: {}]   ;;  %s2404_s0 = inlined_call_operand.vmem [shape: bf16[16,2048], index: 0, kind: input, shape index: {}]   ;;  %s2405_s2 = inlined_call_operand.vmem [shape: f32[1,128], index: 2, kind: input, shape index: {}]   ;;  %s2406_s3 = inlined_call_operand.vmem [shape: f32[16,128], index: 3, kind: output, shape index: {}]  }
   0x1   :  { %v1814_v0 = vld [vmem:[%s2403_s1 + $0x78] sm:$0xff]   ;;  %v1818_v4 = vld [vmem:[%s2403_s1 + $0x70] sm:$0xff]   ;;  %v1822_v8 = vld [vmem:[%s2403_s1 + $0x68] sm:$0xff]  }
   0x2   :  { %v1815_v1 = vld [vmem:[%s2403_s1 + $0xf8] sm:$0xff]   ;;  %1638 = vmatprep.subr.bf16.mxu0 %v1814_v0  ;;  %v1819_v5 = vld [vmem:[%s2403_s1 + $0xf0] sm:$0xff]   ;;  %v1823_v9 = vld [vmem:[%s2403_s1 + $0xe8] sm:$0xff]  }
   0x3   :  { %v1816_v2 = vld [vmem:[%s2403_s1 + $0x38] sm:$0xff]   ;;  %1660 = vmatprep.subr.bf16.mxu1 %v1815_v1  ;;  %v1820_v6 = vld [vmem:[%s2403_s1 + $0x30] sm:$0xff]   ;;  %v1824_v10 = vld [vmem:[%s2403_s1 + $0x28] sm:$0xff]  }
   0x4   :  { %v1817_v3 = vld [vmem:[%s2403_s1 + $0xb8] sm:$0xff]   ;;  %1639 = vmatpush3.bf16.msra.mxu0 %v1816_v2  ;;  %v1821_v7 = vld [vmem:[%s2403_s1 + $0xb0] sm:$0xff]   ;;  %v1825_v11 = vld [vmem:[%s2403_s1 + $0xa8] sm:$0xff]  }
   0x5   :  { %1661 = vmatpush3.bf16.msra.mxu1 %v1817_v3  ;;  %1640 = vmatprep.subr.bf16.mxu0 %v1818_v4  ;;  %v1826_v12 = vld [vmem:[%s2403_s1 + $0x60] sm:$0xff]   ;;  %v1830_v16 = vld [vmem:[%s2403_s1 + $0x58] sm:$0xff]   ;;  %v1834_v20 = vld [vmem:[%s2403_s1 + $0x50] sm:$0xff]  }
   0x6   :  { %1662 = vmatprep.subr.bf16.mxu1 %v1819_v5  ;;  %v1827_v13 = vld [vmem:[%s2403_s1 + $0xe0] sm:$0xff]   ;;  %v1831_v17 = vld [vmem:[%s2403_s1 + $0xd8] sm:$0xff]   ;;  %v1835_v21 = vld [vmem:[%s2403_s1 + $0xd0] sm:$0xff]  }
   0x7   :  { %v1828_v14 = vld [vmem:[%s2403_s1 + $0x20] sm:$0xff]   ;;  %v1832_v18 = vld [vmem:[%s2403_s1 + $0x18] sm:$0xff]   ;;  %v1836_v22 = vld [vmem:[%s2403_s1 + $0x10] sm:$0xff]  }
   0x8   :  { %1641 = vmatpush3.bf16.msra.mxu0 %v1820_v6  ;;  %v1829_v15 = vld [vmem:[%s2403_s1 + $0xa0] sm:$0xff]   ;;  %v1833_v19 = vld [vmem:[%s2403_s1 + $0x98] sm:$0xff]   ;;  %v1837_v23 = vld [vmem:[%s2403_s1 + $0x90] sm:$0xff]  }
   0x9   :  { %1663 = vmatpush3.bf16.msra.mxu1 %v1821_v7  ;;  %1642 = vmatprep.subr.bf16.mxu0 %v1822_v8  ;;  %v1838_v24 = vld [vmem:[%s2403_s1 + $0x48] sm:$0xff]   ;;  %v1842_v28 = vld [vmem:[%s2403_s1 + $0x40] sm:$0xff]   ;;  %v1846_v40 = vld [vmem:[%s2403_s1 + $0x178] sm:$0xff]  }
   0xa   :  { %1664 = vmatprep.subr.bf16.mxu1 %v1823_v9  ;;  %v1839_v25 = vld [vmem:[%s2403_s1 + $0xc8] sm:$0xff]   ;;  %v1843_v29 = vld [vmem:[%s2403_s1 + $0xc0] sm:$0xff]   ;;  %v1847_v41 = vld [vmem:[%s2403_s1 + $0x1f8] sm:$0xff]  }
   0xb   :  { %v1840_v26 = vld [vmem:[%s2403_s1 + $0x8] sm:$0xff]   ;;  %v1844_v30 = vld [vmem:[%s2403_s1] sm:$0xff]   ;;  %v1848_v42 = vld [vmem:[%s2403_s1 + $0x138] sm:$0xff]  }
   0xc   :  { %1643 = vmatpush3.bf16.msra.mxu0 %v1824_v10  ;;  %v1841_v27 = vld [vmem:[%s2403_s1 + $0x88] sm:$0xff]   ;;  %v1845_v31 = vld [vmem:[%s2403_s1 + $0x80] sm:$0xff]   ;;  %v1849_v43 = vld [vmem:[%s2403_s1 + $0x1b8] sm:$0xff]  }
   0xd   :  { %1665 = vmatpush3.bf16.msra.mxu1 %v1825_v11  ;;  %1644 = vmatprep.subr.bf16.mxu0 %v1826_v12  ;;  %v30_v32 = vld [vmem:[%s2404_s0] sm:$0xff]  ;;  %v31_v34 = vld [vmem:[%s2404_s0 + $0x8] sm:$0xff]  ;;  %v1850_v44 = vld [vmem:[%s2403_s1 + $0x170] sm:$0xff]  }
   0xe   :  { %1666 = vmatprep.subr.bf16.mxu1 %v1827_v13  ;;  %v38_v33 = vld [vmem:[%s2404_s0 + $0x40] sm:$0xff]  ;;  %v39_v37 = vld [vmem:[%s2404_s0 + $0x48] sm:$0xff]  ;;  %v1851_v45 = vld [vmem:[%s2403_s1 + $0x1f0] sm:$0xff]  }
   0xf   :  { %v1494_v35 = vcombine.low %v30_v32, %v38_v33  ;;  %v1495_v36 = vcombine.high %v30_v32, %v38_v33  ;;  %v1496_v38 = vcombine.low %v31_v34, %v39_v37  ;;  %v1497_v39 = vcombine.high %v31_v34, %v39_v37  ;;  %v1852_v46 = vld [vmem:[%s2403_s1 + $0x130] sm:$0xff]   ;;  %v1854_v48 = vld [vmem:[%s2403_s1 + $0x168] sm:$0xff]   ;;  %v1858_v52 = vld [vmem:[%s2403_s1 + $0x160] sm:$0xff]  }
  0x10   :  { %1645 = vmatpush3.bf16.msra.mxu0 %v1828_v14  ;;  %v1853_v47 = vld [vmem:[%s2403_s1 + $0x1b0] sm:$0xff]   ;;  %v1855_v49 = vld [vmem:[%s2403_s1 + $0x1e8] sm:$0xff]   ;;  %v1859_v53 = vld [vmem:[%s2403_s1 + $0x1e0] sm:$0xff]  }
  0x11   :  { %1667 = vmatpush3.bf16.msra.mxu1 %v1829_v15  ;;  %1646 = vmatprep.subr.bf16.mxu0 %v1830_v16  ;;  %v1856_v50 = vld [vmem:[%s2403_s1 + $0x128] sm:$0xff]   ;;  %v1860_v54 = vld [vmem:[%s2403_s1 + $0x120] sm:$0xff]   ;;  %v1862_v56 = vld [vmem:[%s2403_s1 + $0x158] sm:$0xff]  }
  0x12   :  { %1668 = vmatprep.subr.bf16.mxu1 %v1831_v17  ;;  %1182 = vmatprep.mubr.bf16.mxu0 %v1495_v36  ;;  %v1857_v51 = vld [vmem:[%s2403_s1 + $0x1a8] sm:$0xff]   ;;  %v1861_v55 = vld [vmem:[%s2403_s1 + $0x1a0] sm:$0xff]   ;;  %v1863_v57 = vld [vmem:[%s2403_s1 + $0x1d8] sm:$0xff]  }
  0x13   :  { %1223 = vmatprep.mubr.bf16.mxu1 %v1497_v39  ;;  %v1864_v58 = vld [vmem:[%s2403_s1 + $0x118] sm:$0xff]   ;;  %v1866_v60 = vld [vmem:[%s2403_s1 + $0x150] sm:$0xff]   ;;  %v1870_v0 = vld [vmem:[%s2403_s1 + $0x148] sm:$0xff]  }
  0x14   :  { %1647 = vmatpush3.bf16.msra.mxu0 %v1832_v18  ;;  %v1865_v59 = vld [vmem:[%s2403_s1 + $0x198] sm:$0xff]   ;;  %v1867_v61 = vld [vmem:[%s2403_s1 + $0x1d0] sm:$0xff]   ;;  %v1871_v1 = vld [vmem:[%s2403_s1 + $0x1c8] sm:$0xff]  }
  0x15   :  { %1669 = vmatpush3.bf16.msra.mxu1 %v1833_v19  ;;  %1648 = vmatprep.subr.bf16.mxu0 %v1834_v20  ;;  %v1868_v62 = vld [vmem:[%s2403_s1 + $0x110] sm:$0xff]   ;;  %v1872_v2 = vld [vmem:[%s2403_s1 + $0x108] sm:$0xff]   ;;  %v1874_v4 = vld [vmem:[%s2403_s1 + $0x140] sm:$0xff]  }
  0x16   :  { %1670 = vmatprep.subr.bf16.mxu1 %v1835_v21  ;;  %v1869_v63 = vld [vmem:[%s2403_s1 + $0x190] sm:$0xff]   ;;  %v1873_v3 = vld [vmem:[%s2403_s1 + $0x188] sm:$0xff]   ;;  %v1875_v5 = vld [vmem:[%s2403_s1 + $0x1c0] sm:$0xff]  }
  0x17   :  { %v1876_v6 = vld [vmem:[%s2403_s1 + $0x100] sm:$0xff]   ;;  %v32_v8 = vld [vmem:[%s2404_s0 + $0x10] sm:$0xff]  ;;  %v33_v12 = vld [vmem:[%s2404_s0 + $0x18] sm:$0xff] }
  0x18   :  { %1649 = vmatpush3.bf16.msra.mxu0 %v1836_v22  ;;  %v1877_v7 = vld [vmem:[%s2403_s1 + $0x180] sm:$0xff]   ;;  %v40_v9 = vld [vmem:[%s2404_s0 + $0x50] sm:$0xff]  ;;  %v41_v13 = vld [vmem:[%s2404_s0 + $0x58] sm:$0xff] }
  0x19   :  { %1671 = vmatpush3.bf16.msra.mxu1 %v1837_v23  ;;  %1650 = vmatprep.subr.bf16.mxu0 %v1838_v24  ;;  %v1498_v10 = vcombine.low %v32_v8, %v40_v9  ;;  %v1499_v11 = vcombine.high %v32_v8, %v40_v9  ;;  %v1500_v14 = vcombine.low %v33_v12, %v41_v13  ;;  %v1878_v16 = vld [vmem:[%s2403_s1 + $0x278] sm:$0xff]   ;;  %v1882_v20 = vld [vmem:[%s2403_s1 + $0x270] sm:$0xff]   ;;  %v1886_v24 = vld [vmem:[%s2403_s1 + $0x268] sm:$0xff]  }
  0x1a   :  { %1672 = vmatprep.subr.bf16.mxu1 %v1839_v25  ;;  %v1501_v15 = vcombine.high %v33_v12, %v41_v13  ;;  %v1879_v17 = vld [vmem:[%s2403_s1 + $0x2f8] sm:$0xff]   ;;  %v1883_v21 = vld [vmem:[%s2403_s1 + $0x2f0] sm:$0xff]   ;;  %v1887_v25 = vld [vmem:[%s2403_s1 + $0x2e8] sm:$0xff]  }
  0x1b   :  { %v1880_v18 = vld [vmem:[%s2403_s1 + $0x238] sm:$0xff]   ;;  %v1884_v22 = vld [vmem:[%s2403_s1 + $0x230] sm:$0xff]  }
  0x1c   :  { %1651 = vmatpush3.bf16.msra.mxu0 %v1840_v26  ;;  %v1881_v19 = vld [vmem:[%s2403_s1 + $0x2b8] sm:$0xff]   ;;  %v1885_v23 = vld [vmem:[%s2403_s1 + $0x2b0] sm:$0xff]   ;;  %v1888_v26 = vld [vmem:[%s2403_s1 + $0x228] sm:$0xff]  }
  0x1d   :  { %1673 = vmatpush3.bf16.msra.mxu1 %v1841_v27  ;;  %1652 = vmatprep.subr.bf16.mxu0 %v1842_v28  ;;  %v1889_v27 = vld [vmem:[%s2403_s1 + $0x2a8] sm:$0xff]   ;;  %v1890_v28 = vld [vmem:[%s2403_s1 + $0x260] sm:$0xff]   ;;  %v1894_v32 = vld [vmem:[%s2403_s1 + $0x258] sm:$0xff]  }
  0x1e   :  { %1674 = vmatprep.subr.bf16.mxu1 %v1843_v29  ;;  %v1891_v29 = vld [vmem:[%s2403_s1 + $0x2e0] sm:$0xff]   ;;  %v1895_v33 = vld [vmem:[%s2403_s1 + $0x2d8] sm:$0xff]   ;;  %v1898_v36 = vld [vmem:[%s2403_s1 + $0x250] sm:$0xff]  }
  0x1f   :  { %v1896_v34 = vld [vmem:[%s2403_s1 + $0x218] sm:$0xff]   ;;  %v1899_v37 = vld [vmem:[%s2403_s1 + $0x2d0] sm:$0xff]  }
  0x20   :  { %1653 = vmatpush3.bf16.msra.mxu0 %v1844_v30  ;;  %v1892_v30 = vld [vmem:[%s2403_s1 + $0x220] sm:$0xff]   ;;  %v1901_v39 = vld [vmem:[%s2403_s1 + $0x290] sm:$0xff]   ;;  %v1926_v8 = vld [vmem:[%s2403_s1 + $0x358] sm:$0xff]  }
  0x21   :  { %1675 = vmatpush3.bf16.msra.mxu1 %v1845_v31  ;;  %1682 = vmatprep.subr.bf16.mxu0 %v1846_v40  ;;  %v1893_v31 = vld [vmem:[%s2403_s1 + $0x2a0] sm:$0xff]   ;;  %v1902_v40 = vld [vmem:[%s2403_s1 + $0x248] sm:$0xff]   ;;  %v1927_v9 = vld [vmem:[%s2403_s1 + $0x3d8] sm:$0xff]  }
  0x22   :  { %1704 = vmatprep.subr.bf16.mxu1 %v1847_v41  ;;  %v1903_v41 = vld [vmem:[%s2403_s1 + $0x2c8] sm:$0xff]   ;;  %v1930_v12 = vld [vmem:[%s2403_s1 + $0x350] sm:$0xff]  }
  0x23   :  { %1183 = vmatmul.mubr.bf16.vlgmr.msra.gmra.mxu0 %v1494_v35  ;;  %v1897_v35 = vld [vmem:[%s2403_s1 + $0x298] sm:$0xff]   ;;  %v1931_v13 = vld [vmem:[%s2403_s1 + $0x3d0] sm:$0xff]  }
  0x24   :  { %1224 = vmatmul.mubr.bf16.vlgmr.msra.gmra.mxu1 %v1496_v38  ;;  %1683 = vmatpush3.bf16.msra.mxu0 %v1848_v42  ;;  %v1900_v38 = vld [vmem:[%s2403_s1 + $0x210] sm:$0xff]   ;;  %v1904_v42 = vld [vmem:[%s2403_s1 + $0x208] sm:$0xff]  }
  0x25   :  { %1705 = vmatpush3.bf16.msra.mxu1 %v1849_v43  ;;  %1684 = vmatprep.subr.bf16.mxu0 %v1850_v44  ;;  %v1905_v43 = vld [vmem:[%s2403_s1 + $0x288] sm:$0xff]   ;;  %v1906_v44 = vld [vmem:[%s2403_s1 + $0x240] sm:$0xff]  }
  0x26   :  { %1706 = vmatprep.subr.bf16.mxu1 %v1851_v45  ;;  %1264 = vmatprep.mubr.bf16.mxu0 %v1499_v11  ;;  %v1907_v45 = vld [vmem:[%s2403_s1 + $0x2c0] sm:$0xff]   ;;  %v1929_v11 = vld [vmem:[%s2403_s1 + $0x398] sm:$0xff]  }
  0x27   :  { %1305 = vmatprep.mubr.bf16.mxu1 %v1501_v15  ;;  %v1933_v15 = vld [vmem:[%s2403_s1 + $0x390] sm:$0xff]  }
  0x28   :  { %1685 = vmatpush3.bf16.msra.mxu0 %v1852_v46  ;;  %v1908_v46 = vld [vmem:[%s2403_s1 + $0x200] sm:$0xff]  }
  0x29   :  { %1707 = vmatpush3.bf16.msra.mxu1 %v1853_v47  ;;  %1686 = vmatprep.subr.bf16.mxu0 %v1854_v48  ;;  %v1909_v47 = vld [vmem:[%s2403_s1 + $0x280] sm:$0xff]  }
  0x2a   :  { %1708 = vmatprep.subr.bf16.mxu1 %v1855_v49  ;;  %v34_v48 = vld [vmem:[%s2404_s0 + $0x20] sm:$0xff] }
  0x2b   :  { %v42_v49 = vld [vmem:[%s2404_s0 + $0x60] sm:$0xff] }
  0x2c   :  { %1687 = vmatpush3.bf16.msra.mxu0 %v1856_v50  ;;  %v35_v50 = vld [vmem:[%s2404_s0 + $0x28] sm:$0xff] }
  0x2d   :  { %1709 = vmatpush3.bf16.msra.mxu1 %v1857_v51  ;;  %1688 = vmatprep.subr.bf16.mxu0 %v1858_v52  ;;  %v43_v51 = vld [vmem:[%s2404_s0 + $0x68] sm:$0xff]  ;;  %v1502_v52 = vcombine.low %v34_v48, %v42_v49 }
  0x2e   :  { %1710 = vmatprep.subr.bf16.mxu1 %v1859_v53  ;;  %v1503_v53 = vcombine.high %v34_v48, %v42_v49 }
  0x30   :  { %1689 = vmatpush3.bf16.msra.mxu0 %v1860_v54  ;;  %v1504_v54 = vcombine.low %v35_v50, %v43_v51 }
  0x31   :  { %1711 = vmatpush3.bf16.msra.mxu1 %v1861_v55  ;;  %1690 = vmatprep.subr.bf16.mxu0 %v1862_v56  ;;  %v1505_v55 = vcombine.high %v35_v50, %v43_v51  ;;  %v1910_v56 = vld [vmem:[%s2403_s1 + $0x378] sm:$0xff]  }
  0x32   :  { %1712 = vmatprep.subr.bf16.mxu1 %v1863_v57  ;;  %v1911_v57 = vld [vmem:[%s2403_s1 + $0x3f8] sm:$0xff]  }
  0x34   :  { %1691 = vmatpush3.bf16.msra.mxu0 %v1864_v58  ;;  %v1912_v58 = vld [vmem:[%s2403_s1 + $0x338] sm:$0xff]  }
  0x35   :  { %1713 = vmatpush3.bf16.msra.mxu1 %v1865_v59  ;;  %1692 = vmatprep.subr.bf16.mxu0 %v1866_v60  ;;  %v1913_v59 = vld [vmem:[%s2403_s1 + $0x3b8] sm:$0xff]   ;;  %v1914_v60 = vld [vmem:[%s2403_s1 + $0x370] sm:$0xff]  }
  0x36   :  { %1714 = vmatprep.subr.bf16.mxu1 %v1867_v61  ;;  %v1915_v61 = vld [vmem:[%s2403_s1 + $0x3f0] sm:$0xff]  }
  0x38   :  { %1693 = vmatpush3.bf16.msra.mxu0 %v1868_v62  ;;  %v1916_v62 = vld [vmem:[%s2403_s1 + $0x330] sm:$0xff]  }
  0x39   :  { %1715 = vmatpush3.bf16.msra.mxu1 %v1869_v63  ;;  %1694 = vmatprep.subr.bf16.mxu0 %v1870_v0  ;;  %v1917_v63 = vld [vmem:[%s2403_s1 + $0x3b0] sm:$0xff]   ;;  %v1918_v0 = vld [vmem:[%s2403_s1 + $0x368] sm:$0xff]  }
  0x3a   :  { %1716 = vmatprep.subr.bf16.mxu1 %v1871_v1  ;;  %v1919_v1 = vld [vmem:[%s2403_s1 + $0x3e8] sm:$0xff]  }
  0x3c   :  { %1695 = vmatpush3.bf16.msra.mxu0 %v1872_v2  ;;  %v1920_v2 = vld [vmem:[%s2403_s1 + $0x328] sm:$0xff]  }
  0x3d   :  { %1717 = vmatpush3.bf16.msra.mxu1 %v1873_v3  ;;  %1696 = vmatprep.subr.bf16.mxu0 %v1874_v4  ;;  %v1921_v3 = vld [vmem:[%s2403_s1 + $0x3a8] sm:$0xff]   ;;  %v1922_v4 = vld [vmem:[%s2403_s1 + $0x360] sm:$0xff]  }
  0x3e   :  { %1718 = vmatprep.subr.bf16.mxu1 %v1875_v5  ;;  %v1923_v5 = vld [vmem:[%s2403_s1 + $0x3e0] sm:$0xff]  }
  0x40   :  { %1697 = vmatpush3.bf16.msra.mxu0 %v1876_v6  ;;  %v1924_v6 = vld [vmem:[%s2403_s1 + $0x320] sm:$0xff]  }
  0x41   :  { %1719 = vmatpush3.bf16.msra.mxu1 %v1877_v7  ;;  %1726 = vmatprep.subr.bf16.mxu0 %v1878_v16  ;;  %v1925_v7 = vld [vmem:[%s2403_s1 + $0x3a0] sm:$0xff]   ;;  %v1934_v16 = vld [vmem:[%s2403_s1 + $0x348] sm:$0xff]  }
  0x42   :  { %1748 = vmatprep.subr.bf16.mxu1 %v1879_v17  ;;  %v1935_v17 = vld [vmem:[%s2403_s1 + $0x3c8] sm:$0xff]  }
  0x43   :  { %1265 = vmatmul.mubr.bf16.vlgmr.msra.gmra.mxu0 %v1498_v10  ;;  %v1928_v10 = vld [vmem:[%s2403_s1 + $0x318] sm:$0xff]  }
  0x44   :  { %1306 = vmatmul.mubr.bf16.vlgmr.msra.gmra.mxu1 %v1500_v14  ;;  %1727 = vmatpush3.bf16.msra.mxu0 %v1880_v18  ;;  %v1932_v14 = vld [vmem:[%s2403_s1 + $0x310] sm:$0xff]   ;;  %v1936_v18 = vld [vmem:[%s2403_s1 + $0x308] sm:$0xff]  }
  0x45   :  { %1749 = vmatpush3.bf16.msra.mxu1 %v1881_v19  ;;  %1728 = vmatprep.subr.bf16.mxu0 %v1882_v20  ;;  %v1937_v19 = vld [vmem:[%s2403_s1 + $0x388] sm:$0xff]   ;;  %v1938_v20 = vld [vmem:[%s2403_s1 + $0x340] sm:$0xff]  }
  0x46   :  { %1750 = vmatprep.subr.bf16.mxu1 %v1883_v21  ;;  %1346 = vmatprep.mubr.bf16.mxu0 %v1503_v53  ;;  %v1939_v21 = vld [vmem:[%s2403_s1 + $0x3c0] sm:$0xff]  }
  0x47   :  { %1387 = vmatprep.mubr.bf16.mxu1 %v1505_v55 }
  0x48   :  { %1729 = vmatpush3.bf16.msra.mxu0 %v1884_v22  ;;  %v1940_v22 = vld [vmem:[%s2403_s1 + $0x300] sm:$0xff]  }
  0x49   :  { %1751 = vmatpush3.bf16.msra.mxu1 %v1885_v23  ;;  %1730 = vmatprep.subr.bf16.mxu0 %v1886_v24  ;;  %v1941_v23 = vld [vmem:[%s2403_s1 + $0x380] sm:$0xff]   ;;  %v36_v24 = vld [vmem:[%s2404_s0 + $0x30] sm:$0xff] }
  0x4a   :  { %1752 = vmatprep.subr.bf16.mxu1 %v1887_v25  ;;  %v44_v25 = vld [vmem:[%s2404_s0 + $0x70] sm:$0xff] }
  0x4c   :  { %1731 = vmatpush3.bf16.msra.mxu0 %v1888_v26  ;;  %v37_v26 = vld [vmem:[%s2404_s0 + $0x38] sm:$0xff] }
  0x4d   :  { %1753 = vmatpush3.bf16.msra.mxu1 %v1889_v27  ;;  %1732 = vmatprep.subr.bf16.mxu0 %v1890_v28  ;;  %v1506_v27 = vcombine.low %v36_v24, %v44_v25  ;;  %v1507_v28 = vcombine.high %v36_v24, %v44_v25 }
  0x4e   :  { %1754 = vmatprep.subr.bf16.mxu1 %v1891_v29  ;;  %v45_v29 = vld [vmem:[%s2404_s0 + $0x78] sm:$0xff] }
  0x50   :  { %1733 = vmatpush3.bf16.msra.mxu0 %v1892_v30  ;;  %v1508_v30 = vcombine.low %v37_v26, %v45_v29 }
  0x51   :  { %1755 = vmatpush3.bf16.msra.mxu1 %v1893_v31  ;;  %1734 = vmatprep.subr.bf16.mxu0 %v1894_v32  ;;  %v1509_v31 = vcombine.high %v37_v26, %v45_v29 }
  0x52   :  { %1756 = vmatprep.subr.bf16.mxu1 %v1895_v33 }
  0x54   :  { %1735 = vmatpush3.bf16.msra.mxu0 %v1896_v34 }
  0x55   :  { %1757 = vmatpush3.bf16.msra.mxu1 %v1897_v35  ;;  %1736 = vmatprep.subr.bf16.mxu0 %v1898_v36 }
  0x56   :  { %1758 = vmatprep.subr.bf16.mxu1 %v1899_v37 }
  0x58   :  { %1737 = vmatpush3.bf16.msra.mxu0 %v1900_v38 }
  0x59   :  { %1759 = vmatpush3.bf16.msra.mxu1 %v1901_v39  ;;  %1738 = vmatprep.subr.bf16.mxu0 %v1902_v40 }
  0x5a   :  { %1760 = vmatprep.subr.bf16.mxu1 %v1903_v41 }
  0x5c   :  { %1739 = vmatpush3.bf16.msra.mxu0 %v1904_v42 }
  0x5d   :  { %1761 = vmatpush3.bf16.msra.mxu1 %v1905_v43  ;;  %1740 = vmatprep.subr.bf16.mxu0 %v1906_v44 }
  0x5e   :  { %1762 = vmatprep.subr.bf16.mxu1 %v1907_v45 }
  0x60   :  { %1741 = vmatpush3.bf16.msra.mxu0 %v1908_v46 }
  0x61   :  { %1763 = vmatpush3.bf16.msra.mxu1 %v1909_v47  ;;  %1770 = vmatprep.subr.bf16.mxu0 %v1910_v56 }
  0x62   :  { %1792 = vmatprep.subr.bf16.mxu1 %v1911_v57 }
  0x63   :  { %1347 = vmatmul.mubr.bf16.vlgmr.msra.gmra.mxu0 %v1502_v52 }
  0x64   :  { %1388 = vmatmul.mubr.bf16.vlgmr.msra.gmra.mxu1 %v1504_v54  ;;  %1771 = vmatpush3.bf16.msra.mxu0 %v1912_v58 }
  0x65   :  { %1793 = vmatpush3.bf16.msra.mxu1 %v1913_v59  ;;  %1772 = vmatprep.subr.bf16.mxu0 %v1914_v60 }
  0x66   :  { %1794 = vmatprep.subr.bf16.mxu1 %v1915_v61  ;;  %1428 = vmatprep.mubr.bf16.mxu0 %v1507_v28 }
  0x67   :  { %1469 = vmatprep.mubr.bf16.mxu1 %v1509_v31 }
  0x68   :  { %1773 = vmatpush3.bf16.msra.mxu0 %v1916_v62 }
  0x69   :  { %1795 = vmatpush3.bf16.msra.mxu1 %v1917_v63  ;;  %1774 = vmatprep.subr.bf16.mxu0 %v1918_v0 }
  0x6a   :  { %1796 = vmatprep.subr.bf16.mxu1 %v1919_v1 }
  0x6c   :  { %1775 = vmatpush3.bf16.msra.mxu0 %v1920_v2 }
  0x6d   :  { %1797 = vmatpush3.bf16.msra.mxu1 %v1921_v3  ;;  %1776 = vmatprep.subr.bf16.mxu0 %v1922_v4 }
  0x6e   :  { %1798 = vmatprep.subr.bf16.mxu1 %v1923_v5 }
  0x70   :  { %1777 = vmatpush3.bf16.msra.mxu0 %v1924_v6 }
  0x71   :  { %1799 = vmatpush3.bf16.msra.mxu1 %v1925_v7  ;;  %1778 = vmatprep.subr.bf16.mxu0 %v1926_v8 }
  0x72   :  { %1800 = vmatprep.subr.bf16.mxu1 %v1927_v9 }
  0x74   :  { %1779 = vmatpush3.bf16.msra.mxu0 %v1928_v10 }
  0x75   :  { %1801 = vmatpush3.bf16.msra.mxu1 %v1929_v11  ;;  %1780 = vmatprep.subr.bf16.mxu0 %v1930_v12 }
  0x76   :  { %1802 = vmatprep.subr.bf16.mxu1 %v1931_v13 }
  0x78   :  { %1781 = vmatpush3.bf16.msra.mxu0 %v1932_v14 }
  0x79   :  { %1803 = vmatpush3.bf16.msra.mxu1 %v1933_v15  ;;  %1782 = vmatprep.subr.bf16.mxu0 %v1934_v16 }
  0x7a   :  { %1804 = vmatprep.subr.bf16.mxu1 %v1935_v17 }
  0x7c   :  { %1783 = vmatpush3.bf16.msra.mxu0 %v1936_v18 }
  0x7d   :  { %1805 = vmatpush3.bf16.msra.mxu1 %v1937_v19  ;;  %1784 = vmatprep.subr.bf16.mxu0 %v1938_v20 }
  0x7e   :  { %1806 = vmatprep.subr.bf16.mxu1 %v1939_v21 }
  0x80   :  { %1785 = vmatpush3.bf16.msra.mxu0 %v1940_v22  ;;  %v1493_v22 = vld [vmem:[%s2405_s2] ss:$0 sm:$0xff] }
  0x81   :  { %1807 = vmatpush3.bf16.msra.mxu1 %v1941_v23 }
  0x83   :  { %1429 = vmatmul.mubr.bf16.vlgmr.msra.gmra.mxu0 %v1506_v27 }
  0x84   :  { %1470 = vmatmul.mubr.bf16.vlgmr.msra.gmra.mxu1 %v1508_v30 }
  0xe3   :  { %v1654_v32 = vpop.f32.mrf.mxu0 }
  0xe4   :  { %v1676_v33 = vpop.f32.mrf.mxu1 }
  0xe5   :  { %v1655_v34 = vpop.f32.mrf.mxu0 }
  0xe6   :  { %v1677_v35 = vpop.f32.mrf.mxu1  ;;  %v1656_v49 = vadd.f32 %v1655_v34, %v1654_v32 }
  0xe7   :  { %v1657_v36 = vpop.f32.mrf.mxu0  ;;  %v1678_v50 = vadd.f32 %v1677_v35, %v1676_v33 }
  0xe8   :  { %v1679_v37 = vpop.f32.mrf.mxu1 }
  0xe9   :  { %v1658_v38 = vpop.f32.mrf.mxu0  ;;  %v1226_v54 = vadd.f32 %v1678_v50, %v1656_v49 }
  0xea   :  { %v1680_v40 = vpop.f32.mrf.mxu1  ;;  %v1659_v55 = vadd.f32 %v1658_v38, %v1657_v36 }
  0xeb   :  { %v1681_v56 = vadd.f32 %v1680_v40, %v1679_v37 }
  0xed   :  { %v1229_v62 = vadd.f32 %v1681_v56, %v1659_v55 }
 0x103   :  { %v1698_v39 = vpop.f32.mrf.mxu0 }
 0x104   :  { %v1720_v41 = vpop.f32.mrf.mxu1 }
 0x105   :  { %v1699_v42 = vpop.f32.mrf.mxu0 }
 0x106   :  { %v1721_v43 = vpop.f32.mrf.mxu1  ;;  %v1700_v53 = vadd.f32 %v1699_v42, %v1698_v39 }
 0x107   :  { %v1701_v44 = vpop.f32.mrf.mxu0  ;;  %v1722_v60 = vadd.f32 %v1721_v43, %v1720_v41 }
 0x108   :  { %v1723_v45 = vpop.f32.mrf.mxu1  ;;  %v1267_v59 = vadd.f32 %v1700_v53, %v1226_v54 }
 0x109   :  { %v1702_v46 = vpop.f32.mrf.mxu0 }
 0x10a   :  { %v1724_v48 = vpop.f32.mrf.mxu1  ;;  %v1703_v61 = vadd.f32 %v1702_v46, %v1701_v44  ;;  %v1308_v2 = vadd.f32 %v1722_v60, %v1267_v59 }
 0x10b   :  { %v1725_v4 = vadd.f32 %v1724_v48, %v1723_v45 }
 0x10c   :  { %v1270_v3 = vadd.f32 %v1703_v61, %v1229_v62 }
 0x10e   :  { %v1311_v10 = vadd.f32 %v1725_v4, %v1270_v3 }
 0x123   :  { %v1742_v47 = vpop.f32.mrf.mxu0 }
 0x124   :  { %v1764_v51 = vpop.f32.mrf.mxu1 }
 0x125   :  { %v1743_v52 = vpop.f32.mrf.mxu0 }
 0x126   :  { %v1765_v57 = vpop.f32.mrf.mxu1  ;;  %v1744_v63 = vadd.f32 %v1743_v52, %v1742_v47 }
 0x127   :  { %v1745_v58 = vpop.f32.mrf.mxu0  ;;  %v1766_v6 = vadd.f32 %v1765_v57, %v1764_v51 }
 0x128   :  { %v1767_v0 = vpop.f32.mrf.mxu1  ;;  %v1349_v5 = vadd.f32 %v1744_v63, %v1308_v2 }
 0x129   :  { %v1746_v1 = vpop.f32.mrf.mxu0 }
 0x12a   :  { %v1747_v7 = vadd.f32 %v1746_v1, %v1745_v58  ;;  %v1768_v8 = vpop.f32.mrf.mxu1  ;;  %v1390_v13 = vadd.f32 %v1766_v6, %v1349_v5 }
 0x12b   :  { %v1769_v18 = vadd.f32 %v1768_v8, %v1767_v0 }
 0x12c   :  { %v1352_v14 = vadd.f32 %v1747_v7, %v1311_v10 }
 0x12e   :  { %v1393_v24 = vadd.f32 %v1769_v18, %v1352_v14 }
 0x143   :  { %v1786_v9 = vpop.f32.mrf.mxu0 }
 0x144   :  { %v1808_v11 = vpop.f32.mrf.mxu1 }
 0x145   :  { %v1787_v12 = vpop.f32.mrf.mxu0 }
 0x146   :  { %v1788_v15 = vadd.f32 %v1787_v12, %v1786_v9  ;;  %v1809_v16 = vpop.f32.mrf.mxu1 }
 0x147   :  { %v1789_v17 = vpop.f32.mrf.mxu0  ;;  %v1810_v20 = vadd.f32 %v1809_v16, %v1808_v11 }
 0x148   :  { %v1431_v19 = vadd.f32 %v1788_v15, %v1390_v13  ;;  %v1811_v21 = vpop.f32.mrf.mxu1 }
 0x149   :  { %v1790_v23 = vpop.f32.mrf.mxu0 }
 0x14a   :  { %v1472_v25 = vadd.f32 %v1810_v20, %v1431_v19  ;;  %v1791_v26 = vadd.f32 %v1790_v23, %v1789_v17  ;;  %v1812_v27 = vpop.f32.mrf.mxu1 }
 0x14b   :  { %v1813_v30 = vadd.f32 %v1812_v27, %v1811_v21 }
 0x14c   :  { %v1478_v28 = vadd.f32 %v1493_v22, %v1472_v25  ;;  %v1434_v29 = vadd.f32 %v1791_v26, %v1393_v24 }
 0x14e   :  { %1487 = vst [vmem:[%s2406_s3] sm:$0xff] %v1478_v28  ;;  %v1475_v31 = vadd.f32 %v1813_v30, %v1434_v29 }
 0x150   :  { %v1479_v32 = vadd.f32 %v1493_v22, %v1475_v31 }
 0x152   :  { %1488 = vst [vmem:[%s2406_s3 + $0x8] sm:$0xff] %v1479_v32 }

// kernel: _forward_impl.4
= control target key start
LH: loop header
LB: loop body
LE: loop exit
PB: predicated region body
PF: predicated region fallthrough
CT: control target
= control target key end

     0   :  { %s4333_s12 = smov 0   ;;  %s4335_s13 = smov 0   ;;  %s5247_s0 = inlined_call_operand.vmem [shape: bf16[128,18432], index: 0, kind: input, shape index: {}]   ;;  %s5248_s1 = inlined_call_operand.vmem [shape: bf16[18432,128], index: 1, kind: input, shape index: {}]   ;;  %s5249_s2 = inlined_call_operand.vmem [shape: f32[1,128], index: 2, kind: input, shape index: {}]   ;;  %s5250_s3 = inlined_call_operand.vmem [shape: f32[128,128], index: 3, kind: output, shape index: {}]  }
   0x1   :  { %s4337_s14 = smov 0   ;;  %s4339_s15 = smov 0  }
   0x2   :  { %s4341_s16 = smov 0  }
   0x3 LB: > { %s25_s17 = sadd.s32 1, %s4307_s15  ;;  %p48_p1 = scmp.ne.s32.totalorder %s4299_s13, %s4295_s12  ;;  %s4311_s16 = sphi %s4341_s16, %s13_s16   ;;  %s4307_s15 = sphi %s4339_s15, %s5312_s15   ;;  %s4303_s14 = sphi %s4337_s14, %s5311_s14   ;;  %s4299_s13 = sphi %s4335_s13, %s5310_s13   ;;  %s4295_s12 = sphi %s4333_s12, %s5309_s12  }
   0x4   : > { %p26_p0 = scmp.ge.s32.totalorder %s25_s17, 9  ;;  %p49_p2 = scmp.eq.s32.totalorder %s4311_s16, 0 }
   0x5   : > { %s41_s19 = sadd.s32 1, %s4299_s13  ;;  %p3321_p5 = scmp.ge.s32.totalorder %s4311_s16, 9 }
   0x6   : > { %s5314_s17 = smov (%p26_p0, %s25_s17), 0  ;;  %p50_p3 = por %p49_p2, %p48_p1 }
   0x7   : > { %s37_s18 = ssub.s32 %s4307_s15, %s5314_s17  ;;  %162 = sbr.rel (%p3321_p5) target bundleno = 80 (0x50), region = 20 }
   0x8   : > { %p39_p4 = scmp.eq.s32.totalorder %s37_s18, 0 }
   0xa   : > { %s4368_s20 = scalar_select %p39_p4, %s4299_s13, %s41_s19  }
   0xc   : > { %165 = sbr.rel (!%p50_p3) target bundleno = 80 (0x50), region = 24  ;;  %s167_s21 = sand.u32 (%p50_p3), 1, %s4299_s13  }
   0xd   : > { %s3592_s22 = sshll.u32 (%p50_p3), %s4307_s15, 6  ;;  %s3322_s23 = sshll.u32 (%p50_p3), %s167_s21, 10 }
   0xe   : > { %s4376_s26 = scalar_lea.vmem (%p50_p3), %s5247_s0, %s3592_s22  ;;  %s4381_s27 = scalar_lea.vmem (%p50_p3), [#allocation3], %s3322_s23 }
   0xf   : > { %v188_v0 = vld [vmem:[%s4376_s26] sm:$0xff] (%p50_p3)  ;;  %v190_v1 = vld [vmem:[%s4376_s26 + $0x8] sm:$0xff] (%p50_p3)  ;;  %v192_v2 = vld [vmem:[%s4376_s26 + $0x10] sm:$0xff] (%p50_p3) }
  0x10   : > { %189 = vst [vmem:[%s4381_s27] sm:$0xff] (%p50_p3), %v188_v0  ;;  %191 = vst [vmem:[%s4381_s27 + $0x8] sm:$0xff] (%p50_p3), %v190_v1  ;;  %v194_v3 = vld [vmem:[%s4376_s26 + $0x18] sm:$0xff] (%p50_p3)  ;;  %v196_v4 = vld [vmem:[%s4376_s26 + $0x20] sm:$0xff] (%p50_p3) }
  0x11   : > { %193 = vst [vmem:[%s4381_s27 + $0x10] sm:$0xff] %v192_v2  ;;  %v198_v5 = vld [vmem:[%s4376_s26 + $0x28] sm:$0xff]  ;;  %195 = vst [vmem:[%s4381_s27 + $0x18] sm:$0xff] %v194_v3  ;;  %v200_v6 = vld [vmem:[%s4376_s26 + $0x30] sm:$0xff] }
  0x12   : > { %197 = vst [vmem:[%s4381_s27 + $0x20] sm:$0xff] %v196_v4  ;;  %199 = vst [vmem:[%s4381_s27 + $0x28] sm:$0xff] %v198_v5  ;;  %v202_v7 = vld [vmem:[%s4376_s26 + $0x38] sm:$0xff]  ;;  %v204_v8 = vld [vmem:[%s4376_s26 + $0x240] sm:$0xff] }
  0x13   : > { %201 = vst [vmem:[%s4381_s27 + $0x30] sm:$0xff] %v200_v6  ;;  %203 = vst [vmem:[%s4381_s27 + $0x38] sm:$0xff] %v202_v7  ;;  %v206_v9 = vld [vmem:[%s4376_s26 + $0x248] sm:$0xff]  ;;  %v208_v10 = vld [vmem:[%s4376_s26 + $0x250] sm:$0xff] }
  0x14   : > { %205 = vst [vmem:[%s4381_s27 + $0x40] sm:$0xff] %v204_v8  ;;  %v210_v11 = vld [vmem:[%s4376_s26 + $0x258] sm:$0xff]  ;;  %207 = vst [vmem:[%s4381_s27 + $0x48] sm:$0xff] %v206_v9  ;;  %v212_v12 = vld [vmem:[%s4376_s26 + $0x260] sm:$0xff] }
  0x15   : > { %209 = vst [vmem:[%s4381_s27 + $0x50] sm:$0xff] %v208_v10  ;;  %211 = vst [vmem:[%s4381_s27 + $0x58] sm:$0xff] %v210_v11  ;;  %v214_v13 = vld [vmem:[%s4376_s26 + $0x268] sm:$0xff]  ;;  %v216_v14 = vld [vmem:[%s4376_s26 + $0x270] sm:$0xff] }
  0x16   : > { %213 = vst [vmem:[%s4381_s27 + $0x60] sm:$0xff] %v212_v12  ;;  %215 = vst [vmem:[%s4381_s27 + $0x68] sm:$0xff] %v214_v13  ;;  %v218_v15 = vld [vmem:[%s4376_s26 + $0x278] sm:$0xff]  ;;  %v220_v16 = vld [vmem:[%s4376_s26 + $0x480] sm:$0xff] }
  0x17   : > { %217 = vst [vmem:[%s4381_s27 + $0x70] sm:$0xff] %v216_v14  ;;  %v222_v17 = vld [vmem:[%s4376_s26 + $0x488] sm:$0xff]  ;;  %219 = vst [vmem:[%s4381_s27 + $0x78] sm:$0xff] %v218_v15  ;;  %v224_v18 = vld [vmem:[%s4376_s26 + $0x490] sm:$0xff] }
  0x18   : > { %221 = vst [vmem:[%s4381_s27 + $0x80] sm:$0xff] %v220_v16  ;;  %223 = vst [vmem:[%s4381_s27 + $0x88] sm:$0xff] %v222_v17  ;;  %v226_v19 = vld [vmem:[%s4376_s26 + $0x498] sm:$0xff]  ;;  %v228_v20 = vld [vmem:[%s4376_s26 + $0x4a0] sm:$0xff] }
  0x19   : > { %225 = vst [vmem:[%s4381_s27 + $0x90] sm:$0xff] %v224_v18  ;;  %227 = vst [vmem:[%s4381_s27 + $0x98] sm:$0xff] %v226_v19  ;;  %v230_v21 = vld [vmem:[%s4376_s26 + $0x4a8] sm:$0xff]  ;;  %v232_v22 = vld [vmem:[%s4376_s26 + $0x4b0] sm:$0xff] }
  0x1a   : > { %229 = vst [vmem:[%s4381_s27 + $0xa0] sm:$0xff] %v228_v20  ;;  %v234_v23 = vld [vmem:[%s4376_s26 + $0x4b8] sm:$0xff]  ;;  %231 = vst [vmem:[%s4381_s27 + $0xa8] sm:$0xff] %v230_v21  ;;  %v236_v24 = vld [vmem:[%s4376_s26 + $0x6c0] sm:$0xff] }
  0x1b   : > { %233 = vst [vmem:[%s4381_s27 + $0xb0] sm:$0xff] %v232_v22  ;;  %235 = vst [vmem:[%s4381_s27 + $0xb8] sm:$0xff] %v234_v23  ;;  %v238_v25 = vld [vmem:[%s4376_s26 + $0x6c8] sm:$0xff]  ;;  %v240_v26 = vld [vmem:[%s4376_s26 + $0x6d0] sm:$0xff] }
  0x1c   : > { %237 = vst [vmem:[%s4381_s27 + $0xc0] sm:$0xff] %v236_v24  ;;  %239 = vst [vmem:[%s4381_s27 + $0xc8] sm:$0xff] %v238_v25  ;;  %v242_v27 = vld [vmem:[%s4376_s26 + $0x6d8] sm:$0xff]  ;;  %v244_v28 = vld [vmem:[%s4376_s26 + $0x6e0] sm:$0xff] }
  0x1d   : > { %241 = vst [vmem:[%s4381_s27 + $0xd0] sm:$0xff] %v240_v26  ;;  %v246_v29 = vld [vmem:[%s4376_s26 + $0x6e8] sm:$0xff]  ;;  %243 = vst [vmem:[%s4381_s27 + $0xd8] sm:$0xff] %v242_v27  ;;  %v248_v30 = vld [vmem:[%s4376_s26 + $0x6f0] sm:$0xff] }
  0x1e   : > { %245 = vst [vmem:[%s4381_s27 + $0xe0] sm:$0xff] %v244_v28  ;;  %247 = vst [vmem:[%s4381_s27 + $0xe8] sm:$0xff] %v246_v29  ;;  %v250_v31 = vld [vmem:[%s4376_s26 + $0x6f8] sm:$0xff]  ;;  %v252_v32 = vld [vmem:[%s4376_s26 + $0x900] sm:$0xff] }
  0x1f   : > { %249 = vst [vmem:[%s4381_s27 + $0xf0] sm:$0xff] %v248_v30  ;;  %251 = vst [vmem:[%s4381_s27 + $0xf8] sm:$0xff] %v250_v31  ;;  %v254_v33 = vld [vmem:[%s4376_s26 + $0x908] sm:$0xff]  ;;  %v256_v34 = vld [vmem:[%s4376_s26 + $0x910] sm:$0xff] }
  0x20   : > { %253 = vst [vmem:[%s4381_s27 + $0x100] sm:$0xff] %v252_v32  ;;  %v258_v35 = vld [vmem:[%s4376_s26 + $0x918] sm:$0xff]  ;;  %255 = vst [vmem:[%s4381_s27 + $0x108] sm:$0xff] %v254_v33  ;;  %v260_v36 = vld [vmem:[%s4376_s26 + $0x920] sm:$0xff] }
  0x21   : > { %257 = vst [vmem:[%s4381_s27 + $0x110] sm:$0xff] %v256_v34  ;;  %259 = vst [vmem:[%s4381_s27 + $0x118] sm:$0xff] %v258_v35  ;;  %v262_v37 = vld [vmem:[%s4376_s26 + $0x928] sm:$0xff]  ;;  %v264_v38 = vld [vmem:[%s4376_s26 + $0x930] sm:$0xff] }
  0x22   : > { %261 = vst [vmem:[%s4381_s27 + $0x120] sm:$0xff] %v260_v36  ;;  %263 = vst [vmem:[%s4381_s27 + $0x128] sm:$0xff] %v262_v37  ;;  %v266_v39 = vld [vmem:[%s4376_s26 + $0x938] sm:$0xff]  ;;  %v268_v40 = vld [vmem:[%s4376_s26 + $0xb40] sm:$0xff] }
  0x23   : > { %265 = vst [vmem:[%s4381_s27 + $0x130] sm:$0xff] %v264_v38  ;;  %v270_v41 = vld [vmem:[%s4376_s26 + $0xb48] sm:$0xff]  ;;  %267 = vst [vmem:[%s4381_s27 + $0x138] sm:$0xff] %v266_v39  ;;  %v272_v42 = vld [vmem:[%s4376_s26 + $0xb50] sm:$0xff] }
  0x24   : > { %269 = vst [vmem:[%s4381_s27 + $0x140] sm:$0xff] %v268_v40  ;;  %271 = vst [vmem:[%s4381_s27 + $0x148] sm:$0xff] %v270_v41  ;;  %v274_v43 = vld [vmem:[%s4376_s26 + $0xb58] sm:$0xff]  ;;  %v276_v44 = vld [vmem:[%s4376_s26 + $0xb60] sm:$0xff] }
  0x25   : > { %273 = vst [vmem:[%s4381_s27 + $0x150] sm:$0xff] %v272_v42  ;;  %275 = vst [vmem:[%s4381_s27 + $0x158] sm:$0xff] %v274_v43  ;;  %v278_v45 = vld [vmem:[%s4376_s26 + $0xb68] sm:$0xff]  ;;  %v280_v46 = vld [vmem:[%s4376_s26 + $0xb70] sm:$0xff] }
  0x26   : > { %277 = vst [vmem:[%s4381_s27 + $0x160] sm:$0xff] %v276_v44  ;;  %v282_v47 = vld [vmem:[%s4376_s26 + $0xb78] sm:$0xff]  ;;  %279 = vst [vmem:[%s4381_s27 + $0x168] sm:$0xff] %v278_v45  ;;  %v284_v48 = vld [vmem:[%s4376_s26 + $0xd80] sm:$0xff] }
  0x27   : > { %281 = vst [vmem:[%s4381_s27 + $0x170] sm:$0xff] %v280_v46  ;;  %283 = vst [vmem:[%s4381_s27 + $0x178] sm:$0xff] %v282_v47  ;;  %v286_v49 = vld [vmem:[%s4376_s26 + $0xd88] sm:$0xff]  ;;  %v288_v50 = vld [vmem:[%s4376_s26 + $0xd90] sm:$0xff] }
  0x28   : > { %285 = vst [vmem:[%s4381_s27 + $0x180] sm:$0xff] %v284_v48  ;;  %287 = vst [vmem:[%s4381_s27 + $0x188] sm:$0xff] %v286_v49  ;;  %v290_v51 = vld [vmem:[%s4376_s26 + $0xd98] sm:$0xff]  ;;  %v292_v52 = vld [vmem:[%s4376_s26 + $0xda0] sm:$0xff] }
  0x29   : > { %289 = vst [vmem:[%s4381_s27 + $0x190] sm:$0xff] %v288_v50  ;;  %v294_v53 = vld [vmem:[%s4376_s26 + $0xda8] sm:$0xff]  ;;  %291 = vst [vmem:[%s4381_s27 + $0x198] sm:$0xff] %v290_v51  ;;  %v296_v54 = vld [vmem:[%s4376_s26 + $0xdb0] sm:$0xff] }
  0x2a   : > { %293 = vst [vmem:[%s4381_s27 + $0x1a0] sm:$0xff] %v292_v52  ;;  %295 = vst [vmem:[%s4381_s27 + $0x1a8] sm:$0xff] %v294_v53  ;;  %v298_v55 = vld [vmem:[%s4376_s26 + $0xdb8] sm:$0xff]  ;;  %v300_v56 = vld [vmem:[%s4376_s26 + $0xfc0] sm:$0xff] }
  0x2b   : > { %297 = vst [vmem:[%s4381_s27 + $0x1b0] sm:$0xff] %v296_v54  ;;  %299 = vst [vmem:[%s4381_s27 + $0x1b8] sm:$0xff] %v298_v55  ;;  %v302_v57 = vld [vmem:[%s4376_s26 + $0xfc8] sm:$0xff]  ;;  %v304_v58 = vld [vmem:[%s4376_s26 + $0xfd0] sm:$0xff] }
  0x2c   : > { %301 = vst [vmem:[%s4381_s27 + $0x1c0] sm:$0xff] %v300_v56  ;;  %v306_v59 = vld [vmem:[%s4376_s26 + $0xfd8] sm:$0xff]  ;;  %303 = vst [vmem:[%s4381_s27 + $0x1c8] sm:$0xff] %v302_v57  ;;  %v308_v60 = vld [vmem:[%s4376_s26 + $0xfe0] sm:$0xff] }
  0x2d   : > { %305 = vst [vmem:[%s4381_s27 + $0x1d0] sm:$0xff] %v304_v58  ;;  %307 = vst [vmem:[%s4381_s27 + $0x1d8] sm:$0xff] %v306_v59  ;;  %v310_v61 = vld [vmem:[%s4376_s26 + $0xfe8] sm:$0xff]  ;;  %v312_v62 = vld [vmem:[%s4376_s26 + $0xff0] sm:$0xff] }
  0x2e   : > { %309 = vst [vmem:[%s4381_s27 + $0x1e0] sm:$0xff] %v308_v60  ;;  %311 = vst [vmem:[%s4381_s27 + $0x1e8] sm:$0xff] %v310_v61  ;;  %v314_v63 = vld [vmem:[%s4376_s26 + $0xff8] sm:$0xff]  ;;  %v316_v0 = vld [vmem:[%s4376_s26 + $0x1200] sm:$0xff] }
  0x2f   : > { %313 = vst [vmem:[%s4381_s27 + $0x1f0] sm:$0xff] %v312_v62  ;;  %v318_v1 = vld [vmem:[%s4376_s26 + $0x1208] sm:$0xff]  ;;  %315 = vst [vmem:[%s4381_s27 + $0x1f8] sm:$0xff] %v314_v63  ;;  %v320_v2 = vld [vmem:[%s4376_s26 + $0x1210] sm:$0xff] }
  0x30   : > { %317 = vst [vmem:[%s4381_s27 + $0x200] sm:$0xff] %v316_v0  ;;  %319 = vst [vmem:[%s4381_s27 + $0x208] sm:$0xff] %v318_v1  ;;  %v322_v3 = vld [vmem:[%s4376_s26 + $0x1218] sm:$0xff]  ;;  %v324_v4 = vld [vmem:[%s4376_s26 + $0x1220] sm:$0xff] }
  0x31   : > { %321 = vst [vmem:[%s4381_s27 + $0x210] sm:$0xff] %v320_v2  ;;  %323 = vst [vmem:[%s4381_s27 + $0x218] sm:$0xff] %v322_v3  ;;  %v326_v5 = vld [vmem:[%s4376_s26 + $0x1228] sm:$0xff]  ;;  %v328_v6 = vld [vmem:[%s4376_s26 + $0x1230] sm:$0xff] }
  0x32   : > { %325 = vst [vmem:[%s4381_s27 + $0x220] sm:$0xff] %v324_v4  ;;  %v330_v7 = vld [vmem:[%s4376_s26 + $0x1238] sm:$0xff]  ;;  %327 = vst [vmem:[%s4381_s27 + $0x228] sm:$0xff] %v326_v5  ;;  %v332_v8 = vld [vmem:[%s4376_s26 + $0x1440] sm:$0xff] }
  0x33   : > { %329 = vst [vmem:[%s4381_s27 + $0x230] sm:$0xff] %v328_v6  ;;  %331 = vst [vmem:[%s4381_s27 + $0x238] sm:$0xff] %v330_v7  ;;  %v334_v9 = vld [vmem:[%s4376_s26 + $0x1448] sm:$0xff]  ;;  %v336_v10 = vld [vmem:[%s4376_s26 + $0x1450] sm:$0xff] }
  0x34   : > { %333 = vst [vmem:[%s4381_s27 + $0x240] sm:$0xff] %v332_v8  ;;  %335 = vst [vmem:[%s4381_s27 + $0x248] sm:$0xff] %v334_v9  ;;  %v338_v11 = vld [vmem:[%s4376_s26 + $0x1458] sm:$0xff]  ;;  %v340_v12 = vld [vmem:[%s4376_s26 + $0x1460] sm:$0xff] }
  0x35   : > { %337 = vst [vmem:[%s4381_s27 + $0x250] sm:$0xff] %v336_v10  ;;  %v342_v13 = vld [vmem:[%s4376_s26 + $0x1468] sm:$0xff]  ;;  %339 = vst [vmem:[%s4381_s27 + $0x258] sm:$0xff] %v338_v11  ;;  %v344_v14 = vld [vmem:[%s4376_s26 + $0x1470] sm:$0xff] }
  0x36   : > { %341 = vst [vmem:[%s4381_s27 + $0x260] sm:$0xff] %v340_v12  ;;  %343 = vst [vmem:[%s4381_s27 + $0x268] sm:$0xff] %v342_v13  ;;  %v346_v15 = vld [vmem:[%s4376_s26 + $0x1478] sm:$0xff]  ;;  %v348_v16 = vld [vmem:[%s4376_s26 + $0x1680] sm:$0xff] }
  0x37   : > { %345 = vst [vmem:[%s4381_s27 + $0x270] sm:$0xff] %v344_v14  ;;  %347 = vst [vmem:[%s4381_s27 + $0x278] sm:$0xff] %v346_v15  ;;  %v350_v17 = vld [vmem:[%s4376_s26 + $0x1688] sm:$0xff]  ;;  %v352_v18 = vld [vmem:[%s4376_s26 + $0x1690] sm:$0xff] }
  0x38   : > { %349 = vst [vmem:[%s4381_s27 + $0x280] sm:$0xff] %v348_v16  ;;  %v354_v19 = vld [vmem:[%s4376_s26 + $0x1698] sm:$0xff]  ;;  %351 = vst [vmem:[%s4381_s27 + $0x288] sm:$0xff] %v350_v17  ;;  %v356_v20 = vld [vmem:[%s4376_s26 + $0x16a0] sm:$0xff] }
  0x39   : > { %353 = vst [vmem:[%s4381_s27 + $0x290] sm:$0xff] %v352_v18  ;;  %355 = vst [vmem:[%s4381_s27 + $0x298] sm:$0xff] %v354_v19  ;;  %v358_v21 = vld [vmem:[%s4376_s26 + $0x16a8] sm:$0xff]  ;;  %v360_v22 = vld [vmem:[%s4376_s26 + $0x16b0] sm:$0xff] }
  0x3a   : > { %357 = vst [vmem:[%s4381_s27 + $0x2a0] sm:$0xff] %v356_v20  ;;  %359 = vst [vmem:[%s4381_s27 + $0x2a8] sm:$0xff] %v358_v21  ;;  %v362_v23 = vld [vmem:[%s4376_s26 + $0x16b8] sm:$0xff]  ;;  %v364_v24 = vld [vmem:[%s4376_s26 + $0x18c0] sm:$0xff] }
  0x3b   : > { %361 = vst [vmem:[%s4381_s27 + $0x2b0] sm:$0xff] %v360_v22  ;;  %v366_v25 = vld [vmem:[%s4376_s26 + $0x18c8] sm:$0xff]  ;;  %363 = vst [vmem:[%s4381_s27 + $0x2b8] sm:$0xff] %v362_v23  ;;  %v368_v26 = vld [vmem:[%s4376_s26 + $0x18d0] sm:$0xff] }
  0x3c   : > { %365 = vst [vmem:[%s4381_s27 + $0x2c0] sm:$0xff] %v364_v24  ;;  %367 = vst [vmem:[%s4381_s27 + $0x2c8] sm:$0xff] %v366_v25  ;;  %v370_v27 = vld [vmem:[%s4376_s26 + $0x18d8] sm:$0xff]  ;;  %v372_v28 = vld [vmem:[%s4376_s26 + $0x18e0] sm:$0xff] }
  0x3d   : > { %369 = vst [vmem:[%s4381_s27 + $0x2d0] sm:$0xff] %v368_v26  ;;  %371 = vst [vmem:[%s4381_s27 + $0x2d8] sm:$0xff] %v370_v27  ;;  %v374_v29 = vld [vmem:[%s4376_s26 + $0x18e8] sm:$0xff]  ;;  %v376_v30 = vld [vmem:[%s4376_s26 + $0x18f0] sm:$0xff] }
  0x3e   : > { %373 = vst [vmem:[%s4381_s27 + $0x2e0] sm:$0xff] %v372_v28  ;;  %v378_v31 = vld [vmem:[%s4376_s26 + $0x18f8] sm:$0xff]  ;;  %375 = vst [vmem:[%s4381_s27 + $0x2e8] sm:$0xff] %v374_v29  ;;  %v380_v32 = vld [vmem:[%s4376_s26 + $0x1b00] sm:$0xff] }
  0x3f   : > { %377 = vst [vmem:[%s4381_s27 + $0x2f0] sm:$0xff] %v376_v30  ;;  %379 = vst [vmem:[%s4381_s27 + $0x2f8] sm:$0xff] %v378_v31  ;;  %v382_v33 = vld [vmem:[%s4376_s26 + $0x1b08] sm:$0xff]  ;;  %v384_v34 = vld [vmem:[%s4376_s26 + $0x1b10] sm:$0xff] }
  0x40   : > { %381 = vst [vmem:[%s4381_s27 + $0x300] sm:$0xff] %v380_v32  ;;  %383 = vst [vmem:[%s4381_s27 + $0x308] sm:$0xff] %v382_v33  ;;  %v386_v35 = vld [vmem:[%s4376_s26 + $0x1b18] sm:$0xff]  ;;  %v388_v36 = vld [vmem:[%s4376_s26 + $0x1b20] sm:$0xff] }
  0x41   : > { %385 = vst [vmem:[%s4381_s27 + $0x310] sm:$0xff] %v384_v34  ;;  %v390_v37 = vld [vmem:[%s4376_s26 + $0x1b28] sm:$0xff]  ;;  %387 = vst [vmem:[%s4381_s27 + $0x318] sm:$0xff] %v386_v35  ;;  %v392_v38 = vld [vmem:[%s4376_s26 + $0x1b30] sm:$0xff] }
  0x42   : > { %389 = vst [vmem:[%s4381_s27 + $0x320] sm:$0xff] %v388_v36  ;;  %391 = vst [vmem:[%s4381_s27 + $0x328] sm:$0xff] %v390_v37  ;;  %v394_v39 = vld [vmem:[%s4376_s26 + $0x1b38] sm:$0xff]  ;;  %v396_v40 = vld [vmem:[%s4376_s26 + $0x1d40] sm:$0xff] }
  0x43   : > { %393 = vst [vmem:[%s4381_s27 + $0x330] sm:$0xff] %v392_v38  ;;  %395 = vst [vmem:[%s4381_s27 + $0x338] sm:$0xff] %v394_v39  ;;  %v398_v41 = vld [vmem:[%s4376_s26 + $0x1d48] sm:$0xff]  ;;  %v400_v42 = vld [vmem:[%s4376_s26 + $0x1d50] sm:$0xff] }
  0x44   : > { %397 = vst [vmem:[%s4381_s27 + $0x340] sm:$0xff] %v396_v40  ;;  %v402_v43 = vld [vmem:[%s4376_s26 + $0x1d58] sm:$0xff]  ;;  %399 = vst [vmem:[%s4381_s27 + $0x348] sm:$0xff] %v398_v41  ;;  %v404_v44 = vld [vmem:[%s4376_s26 + $0x1d60] sm:$0xff] }
  0x45   : > { %401 = vst [vmem:[%s4381_s27 + $0x350] sm:$0xff] %v400_v42  ;;  %403 = vst [vmem:[%s4381_s27 + $0x358] sm:$0xff] %v402_v43  ;;  %v406_v45 = vld [vmem:[%s4376_s26 + $0x1d68] sm:$0xff]  ;;  %v408_v46 = vld [vmem:[%s4376_s26 + $0x1d70] sm:$0xff] }
  0x46   : > { %405 = vst [vmem:[%s4381_s27 + $0x360] sm:$0xff] %v404_v44  ;;  %407 = vst [vmem:[%s4381_s27 + $0x368] sm:$0xff] %v406_v45  ;;  %v410_v47 = vld [vmem:[%s4376_s26 + $0x1d78] sm:$0xff]  ;;  %v412_v48 = vld [vmem:[%s4376_s26 + $0x1f80] sm:$0xff] }
  0x47   : > { %409 = vst [vmem:[%s4381_s27 + $0x370] sm:$0xff] %v408_v46  ;;  %v414_v49 = vld [vmem:[%s4376_s26 + $0x1f88] sm:$0xff]  ;;  %411 = vst [vmem:[%s4381_s27 + $0x378] sm:$0xff] %v410_v47  ;;  %v416_v50 = vld [vmem:[%s4376_s26 + $0x1f90] sm:$0xff] }
  0x48   : > { %413 = vst [vmem:[%s4381_s27 + $0x380] sm:$0xff] %v412_v48  ;;  %415 = vst [vmem:[%s4381_s27 + $0x388] sm:$0xff] %v414_v49  ;;  %v418_v51 = vld [vmem:[%s4376_s26 + $0x1f98] sm:$0xff]  ;;  %v420_v52 = vld [vmem:[%s4376_s26 + $0x1fa0] sm:$0xff] }
  0x49   : > { %417 = vst [vmem:[%s4381_s27 + $0x390] sm:$0xff] %v416_v50  ;;  %419 = vst [vmem:[%s4381_s27 + $0x398] sm:$0xff] %v418_v51  ;;  %v422_v53 = vld [vmem:[%s4376_s26 + $0x1fa8] sm:$0xff]  ;;  %v424_v54 = vld [vmem:[%s4376_s26 + $0x1fb0] sm:$0xff] }
  0x4a   : > { %421 = vst [vmem:[%s4381_s27 + $0x3a0] sm:$0xff] %v420_v52  ;;  %v426_v55 = vld [vmem:[%s4376_s26 + $0x1fb8] sm:$0xff]  ;;  %423 = vst [vmem:[%s4381_s27 + $0x3a8] sm:$0xff] %v422_v53  ;;  %v428_v56 = vld [vmem:[%s4376_s26 + $0x21c0] sm:$0xff] }
  0x4b   : > { %425 = vst [vmem:[%s4381_s27 + $0x3b0] sm:$0xff] %v424_v54  ;;  %427 = vst [vmem:[%s4381_s27 + $0x3b8] sm:$0xff] %v426_v55  ;;  %v430_v57 = vld [vmem:[%s4376_s26 + $0x21c8] sm:$0xff]  ;;  %v432_v58 = vld [vmem:[%s4376_s26 + $0x21d0] sm:$0xff] }
  0x4c   : > { %429 = vst [vmem:[%s4381_s27 + $0x3c0] sm:$0xff] %v428_v56  ;;  %431 = vst [vmem:[%s4381_s27 + $0x3c8] sm:$0xff] %v430_v57  ;;  %v434_v59 = vld [vmem:[%s4376_s26 + $0x21d8] sm:$0xff]  ;;  %v436_v60 = vld [vmem:[%s4376_s26 + $0x21e0] sm:$0xff] }
  0x4d   : > { %433 = vst [vmem:[%s4381_s27 + $0x3d0] sm:$0xff] %v432_v58  ;;  %v438_v61 = vld [vmem:[%s4376_s26 + $0x21e8] sm:$0xff]  ;;  %435 = vst [vmem:[%s4381_s27 + $0x3d8] sm:$0xff] %v434_v59  ;;  %v440_v62 = vld [vmem:[%s4376_s26 + $0x21f0] sm:$0xff] }
  0x4e   : > { %437 = vst [vmem:[%s4381_s27 + $0x3e0] sm:$0xff] %v436_v60  ;;  %439 = vst [vmem:[%s4381_s27 + $0x3e8] sm:$0xff] %v438_v61  ;;  %v442_v63 = vld [vmem:[%s4376_s26 + $0x21f8] sm:$0xff] }
  0x4f   : > { %441 = vst [vmem:[%s4381_s27 + $0x3f0] sm:$0xff] %v440_v62  ;;  %443 = vst [vmem:[%s4381_s27 + $0x3f8] sm:$0xff] %v442_v63 }
  0x50 PF: > { %p3325_p6 = scmp.ge.s32.totalorder %s4311_s16, 1  ;;  %p460_p7 = scmp.lt.s32.totalorder %s4311_s16, 10 }
  0x52   : > { %p461_p8 = pnand %p3325_p6, %p460_p7 }
  0x54   : > { %464 = sbr.rel (%p461_p8) target bundleno = 606 (0x25e), region = 51 }
  0x59   : > { %s467_s28 = sand.u32 1, %s4295_s12   ;;  %s3327_s29 = sshll.u32 %s4303_s14, 8 }
  0x5a   : > { %s3326_s30 = sshll.u32 %s467_s28, 10  ;;  %p507_p9 = scmp.lt.s32.totalorder %s3327_s29, 2303 }
  0x5b   : > { %s4645_s8 = scalar_lea.vmem [#allocation3], %s3326_s30  ;;  %p3329_p10 = scmp.ne.s32.totalorder %s4303_s14, 0 }
  0x5c   : > { %s5316_s29 = smov (!%p507_p9, %s3327_s29), 2303 }
  0x5d   : > { %s3328_s4 = sshll.u32 %s5316_s29, 2  ;;  %531 = sbr.rel (%p3329_p10) target bundleno = 107 (0x6b), region = 59 }
  0x5e   : > { %s4643_s7 = scalar_lea.vmem %s5248_s1, %s3328_s4 }
  0x62   : > { %v3330_v0 = vld [vmem:[%s5249_s2] ss:$0 sm:$0xff] }
  0x63   : > { %539 = vst [vmem:[#allocation2 + $0x30] sm:$0xff] %v3330_v0  ;;  %540 = vst [vmem:[#allocation2] sm:$0xff] %v3330_v0 }
  0x64   : > { %541 = vst [vmem:[#allocation2 + $0x58] sm:$0xff] %v3330_v0  ;;  %542 = vst [vmem:[#allocation2 + $0x18] sm:$0xff] %v3330_v0 }
  0x65   : > { %543 = vst [vmem:[#allocation2 + $0x50] sm:$0xff] %v3330_v0  ;;  %544 = vst [vmem:[#allocation2 + $0x68] sm:$0xff] %v3330_v0 }
  0x66   : > { %545 = vst [vmem:[#allocation2 + $0x8] sm:$0xff] %v3330_v0  ;;  %546 = vst [vmem:[#allocation2 + $0x48] sm:$0xff] %v3330_v0 }
  0x67   : > { %547 = vst [vmem:[#allocation2 + $0x40] sm:$0xff] %v3330_v0  ;;  %548 = vst [vmem:[#allocation2 + $0x20] sm:$0xff] %v3330_v0 }
  0x68   : > { %549 = vst [vmem:[#allocation2 + $0x10] sm:$0xff] %v3330_v0  ;;  %550 = vst [vmem:[#allocation2 + $0x38] sm:$0xff] %v3330_v0 }
  0x69   : > { %551 = vst [vmem:[#allocation2 + $0x60] sm:$0xff] %v3330_v0  ;;  %552 = vst [vmem:[#allocation2 + $0x70] sm:$0xff] %v3330_v0 }
  0x6a   : > { %553 = vst [vmem:[#allocation2 + $0x78] sm:$0xff] %v3330_v0  ;;  %554 = vst [vmem:[#allocation2 + $0x28] sm:$0xff] %v3330_v0 }
  0x6b PF: > { %v4145_v1 = vld [vmem:[%s4643_s7 + $0x78] sm:$0xff]   ;;  %v4149_v5 = vld [vmem:[%s4643_s7 + $0x70] sm:$0xff]   ;;  %v4153_v9 = vld [vmem:[%s4643_s7 + $0x68] sm:$0xff]   ;;  %p3587_p11 = scmp.ne.s32.totalorder %s4303_s14, 8 }
  0x6c   : > { %v4146_v2 = vld [vmem:[%s4643_s7 + $0xf8] sm:$0xff]   ;;  %3593 = vmatprep.subr.bf16.mxu0 %v4145_v1  ;;  %v4150_v6 = vld [vmem:[%s4643_s7 + $0xf0] sm:$0xff]   ;;  %v4154_v10 = vld [vmem:[%s4643_s7 + $0xe8] sm:$0xff]  }
  0x6d   : > { %v4147_v3 = vld [vmem:[%s4643_s7 + $0x38] sm:$0xff]   ;;  %3657 = vmatprep.subr.bf16.mxu1 %v4146_v2  ;;  %v4151_v7 = vld [vmem:[%s4643_s7 + $0x30] sm:$0xff]   ;;  %v4155_v11 = vld [vmem:[%s4643_s7 + $0x28] sm:$0xff]  }
  0x6e   : > { %v4148_v4 = vld [vmem:[%s4643_s7 + $0xb8] sm:$0xff]   ;;  %3594 = vmatpush3.bf16.msra.mxu0 %v4147_v3  ;;  %v4152_v8 = vld [vmem:[%s4643_s7 + $0xb0] sm:$0xff]   ;;  %v4156_v12 = vld [vmem:[%s4643_s7 + $0xa8] sm:$0xff]  }
  0x6f   : > { %3658 = vmatpush3.bf16.msra.mxu1 %v4148_v4  ;;  %3595 = vmatprep.subr.bf16.mxu0 %v4149_v5  ;;  %v4157_v13 = vld [vmem:[%s4643_s7 + $0x60] sm:$0xff]   ;;  %v4161_v17 = vld [vmem:[%s4643_s7 + $0x58] sm:$0xff]   ;;  %v4165_v21 = vld [vmem:[%s4643_s7 + $0x50] sm:$0xff]  }
  0x70   : > { %3659 = vmatprep.subr.bf16.mxu1 %v4150_v6  ;;  %v4158_v14 = vld [vmem:[%s4643_s7 + $0xe0] sm:$0xff]   ;;  %v4162_v18 = vld [vmem:[%s4643_s7 + $0xd8] sm:$0xff]   ;;  %v4166_v22 = vld [vmem:[%s4643_s7 + $0xd0] sm:$0xff]  }
  0x71   : > { %v4159_v15 = vld [vmem:[%s4643_s7 + $0x20] sm:$0xff]   ;;  %v4163_v19 = vld [vmem:[%s4643_s7 + $0x18] sm:$0xff]   ;;  %v4167_v23 = vld [vmem:[%s4643_s7 + $0x10] sm:$0xff]  }
  0x72   : > { %3596 = vmatpush3.bf16.msra.mxu0 %v4151_v7  ;;  %v4160_v16 = vld [vmem:[%s4643_s7 + $0xa0] sm:$0xff]   ;;  %v4164_v20 = vld [vmem:[%s4643_s7 + $0x98] sm:$0xff]   ;;  %v4168_v24 = vld [vmem:[%s4643_s7 + $0x90] sm:$0xff]  }
  0x73   : > { %3660 = vmatpush3.bf16.msra.mxu1 %v4152_v8  ;;  %3597 = vmatprep.subr.bf16.mxu0 %v4153_v9  ;;  %v4169_v25 = vld [vmem:[%s4643_s7 + $0x48] sm:$0xff]   ;;  %v4173_v29 = vld [vmem:[%s4643_s7 + $0x40] sm:$0xff]   ;;  %v4177_v41 = vld [vmem:[%s4643_s7 + $0x178] sm:$0xff]  }
  0x74   : > { %3661 = vmatprep.subr.bf16.mxu1 %v4154_v10  ;;  %v4170_v26 = vld [vmem:[%s4643_s7 + $0xc8] sm:$0xff]   ;;  %v4174_v30 = vld [vmem:[%s4643_s7 + $0xc0] sm:$0xff]   ;;  %v4178_v42 = vld [vmem:[%s4643_s7 + $0x138] sm:$0xff]  }
  0x75   : > { %v4171_v27 = vld [vmem:[%s4643_s7 + $0x8] sm:$0xff]   ;;  %v4175_v31 = vld [vmem:[%s4643_s7] sm:$0xff]   ;;  %v4179_v43 = vld [vmem:[%s4643_s7 + $0x1f8] sm:$0xff]  }
  0x76   : > { %3598 = vmatpush3.bf16.msra.mxu0 %v4155_v11  ;;  %v4172_v28 = vld [vmem:[%s4643_s7 + $0x88] sm:$0xff]   ;;  %v4176_v32 = vld [vmem:[%s4643_s7 + $0x80] sm:$0xff]   ;;  %v4180_v44 = vld [vmem:[%s4643_s7 + $0x1b8] sm:$0xff]  }
  0x77   : > { %3662 = vmatpush3.bf16.msra.mxu1 %v4156_v12  ;;  %3599 = vmatprep.subr.bf16.mxu0 %v4157_v13  ;;  %v571_v33 = vld [vmem:[%s4645_s8] sm:$0xff]  ;;  %v572_v35 = vld [vmem:[%s4645_s8 + $0x8] sm:$0xff]  ;;  %v4181_v51 = vld [vmem:[%s4643_s7 + $0x170] sm:$0xff]  }
  0x78   : > { %3663 = vmatprep.subr.bf16.mxu1 %v4158_v14  ;;  %v579_v34 = vld [vmem:[%s4645_s8 + $0x40] sm:$0xff]  ;;  %v580_v38 = vld [vmem:[%s4645_s8 + $0x48] sm:$0xff]  ;;  %v4182_v53 = vld [vmem:[%s4643_s7 + $0x130] sm:$0xff]  }
  0x79   : > { %v3331_v36 = vcombine.low %v571_v33, %v579_v34  ;;  %v3332_v37 = vcombine.high %v571_v33, %v579_v34  ;;  %v3333_v39 = vcombine.low %v572_v35, %v580_v38  ;;  %v3334_v40 = vcombine.high %v572_v35, %v580_v38  ;;  %v587_v45 = vld [vmem:[%s4645_s8 + $0x80] sm:$0xff]  ;;  %v588_v48 = vld [vmem:[%s4645_s8 + $0x88] sm:$0xff]  ;;  %v4183_v55 = vld [vmem:[%s4643_s7 + $0x1f0] sm:$0xff]  }
  0x7a   : > { %3600 = vmatpush3.bf16.msra.mxu0 %v4159_v15  ;;  %v595_v46 = vld [vmem:[%s4645_s8 + $0xc0] sm:$0xff]  ;;  %v596_v49 = vld [vmem:[%s4645_s8 + $0xc8] sm:$0xff]  ;;  %v4184_v56 = vld [vmem:[%s4643_s7 + $0x1b0] sm:$0xff]  }
  0x7b   : > { %3664 = vmatpush3.bf16.msra.mxu1 %v4160_v16  ;;  %3601 = vmatprep.subr.bf16.mxu0 %v4161_v17  ;;  %v3348_v47 = vcombine.high %v587_v45, %v595_v46  ;;  %v3350_v50 = vcombine.high %v588_v48, %v596_v49  ;;  %v3347_v52 = vcombine.low %v587_v45, %v595_v46  ;;  %v603_v57 = vld [vmem:[%s4645_s8 + $0x100] sm:$0xff]  ;;  %v604_v59 = vld [vmem:[%s4645_s8 + $0x108] sm:$0xff]  ;;  %v4199_v33 = vld [vmem:[%s4643_s7 + $0x1d0] sm:$0xff]  }
  0x7c   : > { %3665 = vmatprep.subr.bf16.mxu1 %v4162_v18  ;;  %2395 = vmatprep.mubr.bf16.mxu0 %v3332_v37  ;;  %v3349_v54 = vcombine.low %v588_v48, %v596_v49  ;;  %v611_v58 = vld [vmem:[%s4645_s8 + $0x140] sm:$0xff]  ;;  %v612_v60 = vld [vmem:[%s4645_s8 + $0x148] sm:$0xff]  ;;  %v4200_v34 = vld [vmem:[%s4643_s7 + $0x190] sm:$0xff]  }
  0x7d   : > { %2492 = vmatprep.mubr.bf16.mxu1 %v3334_v40  ;;  %v3364_v61 = vcombine.high %v603_v57, %v611_v58  ;;  %v3366_v62 = vcombine.high %v604_v59, %v612_v60  ;;  %v4185_v63 = vld [vmem:[%s4643_s7 + $0x168] sm:$0xff]   ;;  %v3363_v3 = vcombine.low %v603_v57, %v611_v58  ;;  %v619_v4 = vld [vmem:[%s4645_s8 + $0x180] sm:$0xff]  ;;  %v3365_v7 = vcombine.low %v604_v59, %v612_v60  ;;  %v4209_v57 = vld [vmem:[%s4643_s7 + $0x278] sm:$0xff]  }
  0x7e   : > { %3602 = vmatpush3.bf16.msra.mxu0 %v4163_v19  ;;  %v4186_v0 = vld [vmem:[%s4643_s7 + $0x128] sm:$0xff]   ;;  %v627_v5 = vld [vmem:[%s4645_s8 + $0x1c0] sm:$0xff]  ;;  %v4193_v19 = vld [vmem:[%s4643_s7 + $0x158] sm:$0xff]  }
  0x7f   : > { %3666 = vmatpush3.bf16.msra.mxu1 %v4164_v20  ;;  %3603 = vmatprep.subr.bf16.mxu0 %v4165_v21  ;;  %v4187_v1 = vld [vmem:[%s4643_s7 + $0x1e8] sm:$0xff]   ;;  %v3380_v8 = vcombine.high %v619_v4, %v627_v5  ;;  %v4189_v11 = vld [vmem:[%s4643_s7 + $0x160] sm:$0xff]   ;;  %v3379_v20 = vcombine.low %v619_v4, %v627_v5  ;;  %v4194_v21 = vld [vmem:[%s4643_s7 + $0x118] sm:$0xff]  }
  0x80   : > { %3667 = vmatprep.subr.bf16.mxu1 %v4166_v22  ;;  %v4188_v2 = vld [vmem:[%s4643_s7 + $0x1a8] sm:$0xff]   ;;  %v4190_v12 = vld [vmem:[%s4643_s7 + $0x120] sm:$0xff]   ;;  %v4211_v59 = vld [vmem:[%s4643_s7 + $0x2f8] sm:$0xff]  }
  0x81   : > { %v620_v6 = vld [vmem:[%s4645_s8 + $0x188] sm:$0xff]  ;;  %v4191_v13 = vld [vmem:[%s4643_s7 + $0x1e0] sm:$0xff]   ;;  %v582_v4 = vld [vmem:[%s4645_s8 + $0x58] sm:$0xff] }
  0x82   : > { %3604 = vmatpush3.bf16.msra.mxu0 %v4167_v23  ;;  %v628_v9 = vld [vmem:[%s4645_s8 + $0x1c8] sm:$0xff]  ;;  %v4192_v14 = vld [vmem:[%s4643_s7 + $0x1a0] sm:$0xff]  }
  0x83   : > { %3668 = vmatpush3.bf16.msra.mxu1 %v4168_v24  ;;  %3605 = vmatprep.subr.bf16.mxu0 %v4169_v25  ;;  %v3382_v10 = vcombine.high %v620_v6, %v628_v9  ;;  %v635_v15 = vld [vmem:[%s4645_s8 + $0x200] sm:$0xff]  ;;  %v636_v17 = vld [vmem:[%s4645_s8 + $0x208] sm:$0xff]  ;;  %v3381_v22 = vcombine.low %v620_v6, %v628_v9  ;;  %v4195_v24 = vld [vmem:[%s4643_s7 + $0x1d8] sm:$0xff]  }
  0x84   : > { %3669 = vmatprep.subr.bf16.mxu1 %v4170_v26  ;;  %v643_v16 = vld [vmem:[%s4645_s8 + $0x240] sm:$0xff]  ;;  %v644_v18 = vld [vmem:[%s4645_s8 + $0x248] sm:$0xff]  ;;  %v4196_v26 = vld [vmem:[%s4643_s7 + $0x198] sm:$0xff]  }
  0x85   : > { %v3396_v23 = vcombine.high %v635_v15, %v643_v16  ;;  %v3398_v25 = vcombine.high %v636_v17, %v644_v18  ;;  %v3395_v35 = vcombine.low %v635_v15, %v643_v16  ;;  %v4202_v40 = vld [vmem:[%s4643_s7 + $0x108] sm:$0xff]   ;;  %v4206_v49 = vld [vmem:[%s4643_s7 + $0x100] sm:$0xff]   ;;  %v589_v9 = vld [vmem:[%s4645_s8 + $0x90] sm:$0xff] }
  0x86   : > { %3606 = vmatpush3.bf16.msra.mxu0 %v4171_v27  ;;  %v651_v27 = vld [vmem:[%s4645_s8 + $0x280] sm:$0xff]  ;;  %v668_v45 = vld [vmem:[%s4645_s8 + $0x308] sm:$0xff]  ;;  %v4212_v16 = vld [vmem:[%s4643_s7 + $0x2b8] sm:$0xff]  }
  0x87   : > { %3670 = vmatpush3.bf16.msra.mxu1 %v4172_v28  ;;  %3607 = vmatprep.subr.bf16.mxu0 %v4173_v29  ;;  %v659_v28 = vld [vmem:[%s4645_s8 + $0x2c0] sm:$0xff]  ;;  %v4197_v29 = vld [vmem:[%s4643_s7 + $0x150] sm:$0xff]   ;;  %v676_v46 = vld [vmem:[%s4645_s8 + $0x348] sm:$0xff] }
  0x88   : > { %3671 = vmatprep.subr.bf16.mxu1 %v4174_v30  ;;  %v652_v30 = vld [vmem:[%s4645_s8 + $0x288] sm:$0xff]  ;;  %v3412_v37 = vcombine.high %v651_v27, %v659_v28  ;;  %v3411_v48 = vcombine.low %v651_v27, %v659_v28 }
  0x89   : > { %v684_v58 = vld [vmem:[%s4645_s8 + $0x388] sm:$0xff] }
  0x8a   : > { %3608 = vmatpush3.bf16.msra.mxu0 %v4175_v31  ;;  %v660_v31 = vld [vmem:[%s4645_s8 + $0x2c8] sm:$0xff] }
  0x8b   : > { %3672 = vmatpush3.bf16.msra.mxu1 %v4176_v32  ;;  %3721 = vmatprep.subr.bf16.mxu0 %v4177_v41  ;;  %v4198_v32 = vld [vmem:[%s4643_s7 + $0x110] sm:$0xff]   ;;  %v3414_v38 = vcombine.high %v652_v30, %v660_v31  ;;  %v4203_v41 = vld [vmem:[%s4643_s7 + $0x1c8] sm:$0xff]  }
  0x8c   : > { %3785 = vmatprep.subr.bf16.mxu1 %v4179_v43  ;;  %v675_v43 = vld [vmem:[%s4645_s8 + $0x340] sm:$0xff]  ;;  %v692_v60 = vld [vmem:[%s4645_s8 + $0x3c8] sm:$0xff] }
  0x8d   : > { %2396 = vmatmul.mubr.bf16.vlgmr.msra.gmra.mxu0 %v3331_v36  ;;  %v3397_v36 = vcombine.low %v636_v17, %v644_v18  ;;  %v3445_v6 = vcombine.low %v684_v58, %v692_v60  ;;  %v4213_v18 = vld [vmem:[%s4643_s7 + $0x270] sm:$0xff]   ;;  %v4217_v27 = vld [vmem:[%s4643_s7 + $0x268] sm:$0xff]  }
  0x8e   : > { %2493 = vmatmul.mubr.bf16.vlgmr.msra.gmra.mxu1 %v3333_v39  ;;  %3722 = vmatpush3.bf16.msra.mxu0 %v4178_v42  ;;  %v4201_v39 = vld [vmem:[%s4643_s7 + $0x148] sm:$0xff]   ;;  %v667_v42 = vld [vmem:[%s4645_s8 + $0x300] sm:$0xff] }
  0x8f   : > { %3786 = vmatpush3.bf16.msra.mxu1 %v4180_v44  ;;  %2403 = vmatprep.mubr.bf16.mxu0 %v3348_v47  ;;  %v4204_v44 = vld [vmem:[%s4643_s7 + $0x188] sm:$0xff]   ;;  %v4205_v47 = vld [vmem:[%s4643_s7 + $0x140] sm:$0xff]  }
  0x90   : > { %2500 = vmatprep.mubr.bf16.mxu1 %v3350_v50  ;;  %3723 = vmatprep.subr.bf16.mxu0 %v4181_v51  ;;  %v3413_v50 = vcombine.low %v652_v30, %v660_v31  ;;  %v3428_v51 = vcombine.high %v667_v42, %v675_v43  ;;  %v4219_v28 = vld [vmem:[%s4643_s7 + $0x2e8] sm:$0xff]  }
  0x91   : > { %3787 = vmatprep.subr.bf16.mxu1 %v4183_v55  ;;  %v683_v55 = vld [vmem:[%s4645_s8 + $0x380] sm:$0xff] }
  0x92   : > { %3724 = vmatpush3.bf16.msra.mxu0 %v4182_v53  ;;  %v3430_v53 = vcombine.high %v668_v45, %v676_v46 }
  0x93   : > { %3788 = vmatpush3.bf16.msra.mxu1 %v4184_v56  ;;  %3725 = vmatprep.subr.bf16.mxu0 %v4185_v63  ;;  %v691_v56 = vld [vmem:[%s4645_s8 + $0x3c0] sm:$0xff] }
  0x94   : > { %3789 = vmatprep.subr.bf16.mxu1 %v4187_v1  ;;  %v3444_v63 = vcombine.high %v683_v55, %v691_v56  ;;  %v573_v1 = vld [vmem:[%s4645_s8 + $0x10] sm:$0xff]  ;;  %v3443_v5 = vcombine.low %v683_v55, %v691_v56  ;;  %v638_v55 = vld [vmem:[%s4645_s8 + $0x218] sm:$0xff] }
  0x95   : > { %2404 = vmatmul.mubr.bf16.gmra.mxu0 %v3347_v52  ;;  %v4207_v52 = vld [vmem:[%s4643_s7 + $0x1c0] sm:$0xff]   ;;  %v646_v56 = vld [vmem:[%s4645_s8 + $0x258] sm:$0xff] }
  0x96   : > { %2501 = vmatmul.mubr.bf16.gmra.mxu1 %v3349_v54  ;;  %2411 = vmatprep.mubr.bf16.mxu0 %v3364_v61  ;;  %v4208_v54 = vld [vmem:[%s4643_s7 + $0x180] sm:$0xff]   ;;  %v3427_v61 = vcombine.low %v667_v42, %v675_v43  ;;  %v4225_v43 = vld [vmem:[%s4643_s7 + $0x258] sm:$0xff]  }
  0x97   : > { %2508 = vmatprep.mubr.bf16.mxu1 %v3366_v62  ;;  %3726 = vmatpush3.bf16.msra.mxu0 %v4186_v0  ;;  %v3429_v62 = vcombine.low %v668_v45, %v676_v46  ;;  %v3446_v0 = vcombine.high %v684_v58, %v692_v60  ;;  %v4224_v42 = vld [vmem:[%s4643_s7 + $0x2a0] sm:$0xff]   ;;  %v4227_v45 = vld [vmem:[%s4643_s7 + $0x2d8] sm:$0xff]   ;;  %v4232_v58 = vld [vmem:[%s4643_s7 + $0x290] sm:$0xff]  }
  0x98   : > { %3790 = vmatpush3.bf16.msra.mxu1 %v4188_v2  ;;  %3727 = vmatprep.subr.bf16.mxu0 %v4189_v11  ;;  %v581_v2 = vld [vmem:[%s4645_s8 + $0x50] sm:$0xff] }
  0x99   : > { %3791 = vmatprep.subr.bf16.mxu1 %v4191_v13  ;;  %v3335_v11 = vcombine.low %v573_v1, %v581_v2  ;;  %v590_v13 = vld [vmem:[%s4645_s8 + $0x98] sm:$0xff] }
  0x9b   : > { %3728 = vmatpush3.bf16.msra.mxu0 %v4190_v12  ;;  %v4210_v12 = vld [vmem:[%s4643_s7 + $0x238] sm:$0xff]  }
  0x9c   : > { %3792 = vmatpush3.bf16.msra.mxu1 %v4192_v14  ;;  %3729 = vmatprep.subr.bf16.mxu0 %v4193_v19  ;;  %v598_v14 = vld [vmem:[%s4645_s8 + $0xd8] sm:$0xff] }
  0x9d   : > { %2412 = vmatmul.mubr.bf16.gmra.mxu0 %v3363_v3  ;;  %3793 = vmatprep.subr.bf16.mxu1 %v4195_v24  ;;  %v574_v3 = vld [vmem:[%s4645_s8 + $0x18] sm:$0xff]  ;;  %v3354_v19 = vcombine.high %v590_v13, %v598_v14  ;;  %v613_v24 = vld [vmem:[%s4645_s8 + $0x150] sm:$0xff]  ;;  %v3353_v30 = vcombine.low %v590_v13, %v598_v14  ;;  %v3401_v14 = vcombine.low %v638_v55, %v646_v56 }
  0x9e   : > { %2509 = vmatmul.mubr.bf16.gmra.mxu1 %v3365_v7  ;;  %2419 = vmatprep.mubr.bf16.mxu0 %v3380_v8  ;;  %v3336_v7 = vcombine.high %v573_v1, %v581_v2  ;;  %v3338_v8 = vcombine.high %v574_v3, %v582_v4  ;;  %v3337_v15 = vcombine.low %v574_v3, %v582_v4  ;;  %v4234_v1 = vld [vmem:[%s4643_s7 + $0x208] sm:$0xff]   ;;  %v4237_v3 = vld [vmem:[%s4643_s7 + $0x240] sm:$0xff]   ;;  %v653_v4 = vld [vmem:[%s4645_s8 + $0x290] sm:$0xff] }
  0x9f   : > { %2516 = vmatprep.mubr.bf16.mxu1 %v3382_v10  ;;  %3730 = vmatpush3.bf16.msra.mxu0 %v4194_v21  ;;  %v597_v10 = vld [vmem:[%s4645_s8 + $0xd0] sm:$0xff]  ;;  %v4236_v2 = vld [vmem:[%s4643_s7 + $0x288] sm:$0xff]   ;;  %v4243_v13 = vld [vmem:[%s4643_s7 + $0x3f8] sm:$0xff]  }
  0xa0   : > { %3794 = vmatpush3.bf16.msra.mxu1 %v4196_v26  ;;  %3731 = vmatprep.subr.bf16.mxu0 %v4197_v29  ;;  %v3352_v17 = vcombine.high %v589_v9, %v597_v10  ;;  %v4215_v21 = vld [vmem:[%s4643_s7 + $0x2f0] sm:$0xff]   ;;  %v614_v26 = vld [vmem:[%s4645_s8 + $0x158] sm:$0xff]  ;;  %v3351_v29 = vcombine.low %v589_v9, %v597_v10  ;;  %v4238_v9 = vld [vmem:[%s4643_s7 + $0x200] sm:$0xff]  }
  0xa1   : > { %3795 = vmatprep.subr.bf16.mxu1 %v4199_v33  ;;  %v4218_v33 = vld [vmem:[%s4643_s7 + $0x228] sm:$0xff]   ;;  %v4240_v10 = vld [vmem:[%s4643_s7 + $0x280] sm:$0xff]  }
  0xa3   : > { %3732 = vmatpush3.bf16.msra.mxu0 %v4198_v32 }
  0xa4   : > { %3796 = vmatpush3.bf16.msra.mxu1 %v4200_v34  ;;  %3733 = vmatprep.subr.bf16.mxu0 %v4201_v39  ;;  %v4220_v34 = vld [vmem:[%s4643_s7 + $0x2a8] sm:$0xff]   ;;  %v622_v39 = vld [vmem:[%s4645_s8 + $0x198] sm:$0xff] }
  0xa5   : > { %2420 = vmatmul.mubr.bf16.gmra.mxu0 %v3379_v20  ;;  %3797 = vmatprep.subr.bf16.mxu1 %v4203_v41  ;;  %v4214_v20 = vld [vmem:[%s4643_s7 + $0x230] sm:$0xff]   ;;  %v4222_v41 = vld [vmem:[%s4643_s7 + $0x220] sm:$0xff]  }
  0xa6   : > { %2517 = vmatmul.mubr.bf16.gmra.mxu1 %v3381_v22  ;;  %2427 = vmatprep.mubr.bf16.mxu0 %v3396_v23  ;;  %v4216_v22 = vld [vmem:[%s4643_s7 + $0x2b0] sm:$0xff]  }
  0xa7   : > { %2524 = vmatprep.mubr.bf16.mxu1 %v3398_v25  ;;  %3734 = vmatpush3.bf16.msra.mxu0 %v4202_v40  ;;  %v605_v23 = vld [vmem:[%s4645_s8 + $0x110] sm:$0xff]  ;;  %v606_v25 = vld [vmem:[%s4645_s8 + $0x118] sm:$0xff] }
  0xa8   : > { %3798 = vmatpush3.bf16.msra.mxu1 %v4204_v44  ;;  %3735 = vmatprep.subr.bf16.mxu0 %v4205_v47  ;;  %v3368_v31 = vcombine.high %v605_v23, %v613_v24  ;;  %v3370_v32 = vcombine.high %v606_v25, %v614_v26  ;;  %v630_v40 = vld [vmem:[%s4645_s8 + $0x1d8] sm:$0xff]  ;;  %v3367_v44 = vcombine.low %v605_v23, %v613_v24 }
  0xa9   : > { %3799 = vmatprep.subr.bf16.mxu1 %v4207_v52  ;;  %v3369_v46 = vcombine.low %v606_v25, %v614_v26  ;;  %v637_v52 = vld [vmem:[%s4645_s8 + $0x210] sm:$0xff] }
  0xaa   : > { %v685_v25 = vld [vmem:[%s4645_s8 + $0x390] sm:$0xff] }
  0xab   : > { %3736 = vmatpush3.bf16.msra.mxu0 %v4206_v49  ;;  %v3386_v49 = vcombine.high %v622_v39, %v630_v40  ;;  %v693_v26 = vld [vmem:[%s4645_s8 + $0x3d0] sm:$0xff] }
  0xac   : > { %3800 = vmatpush3.bf16.msra.mxu1 %v4208_v54  ;;  %3849 = vmatprep.subr.bf16.mxu0 %v4209_v57  ;;  %v645_v54 = vld [vmem:[%s4645_s8 + $0x250] sm:$0xff] }
  0xad   : > { %2428 = vmatmul.mubr.bf16.gmra.mxu0 %v3395_v35  ;;  %3913 = vmatprep.subr.bf16.mxu1 %v4211_v59  ;;  %v4221_v35 = vld [vmem:[%s4643_s7 + $0x260] sm:$0xff]   ;;  %v4230_v57 = vld [vmem:[%s4643_s7 + $0x210] sm:$0xff]   ;;  %v4233_v59 = vld [vmem:[%s4643_s7 + $0x248] sm:$0xff]  }
  0xae   : > { %2525 = vmatmul.mubr.bf16.gmra.mxu1 %v3397_v36  ;;  %2435 = vmatprep.mubr.bf16.mxu0 %v3412_v37  ;;  %v621_v36 = vld [vmem:[%s4645_s8 + $0x190] sm:$0xff] }
  0xaf   : > { %2532 = vmatprep.mubr.bf16.mxu1 %v3414_v38  ;;  %v629_v37 = vld [vmem:[%s4645_s8 + $0x1d0] sm:$0xff]  ;;  %v4223_v38 = vld [vmem:[%s4643_s7 + $0x2e0] sm:$0xff]  }
  0xb0   : > { %v3384_v47 = vcombine.high %v621_v36, %v629_v37  ;;  %v3383_v60 = vcombine.low %v621_v36, %v629_v37  ;;  %v584_v36 = vld [vmem:[%s4645_s8 + $0x68] sm:$0xff]  ;;  %v3447_v37 = vcombine.low %v685_v25, %v693_v26 }
  0xb5   : > { %2436 = vmatmul.mubr.bf16.gmra.mxu0 %v3411_v48  ;;  %v4226_v48 = vld [vmem:[%s4643_s7 + $0x218] sm:$0xff]  }
  0xb6   : > { %2533 = vmatmul.mubr.bf16.gmra.mxu1 %v3413_v50  ;;  %2443 = vmatprep.mubr.bf16.mxu0 %v3428_v51  ;;  %v4228_v50 = vld [vmem:[%s4643_s7 + $0x298] sm:$0xff]   ;;  %v4229_v51 = vld [vmem:[%s4643_s7 + $0x250] sm:$0xff]  }
  0xb7   : > { %2540 = vmatprep.mubr.bf16.mxu1 %v3430_v53  ;;  %v4231_v53 = vld [vmem:[%s4643_s7 + $0x2d0] sm:$0xff]  }
  0xbd   : > { %2444 = vmatmul.mubr.bf16.gmra.mxu0 %v3427_v61  ;;  %v4235_v61 = vld [vmem:[%s4643_s7 + $0x2c8] sm:$0xff]  }
  0xbe   : > { %2541 = vmatmul.mubr.bf16.gmra.mxu1 %v3429_v62  ;;  %2451 = vmatprep.mubr.bf16.mxu0 %v3444_v63  ;;  %v3385_v62 = vcombine.low %v622_v39, %v630_v40  ;;  %v3400_v63 = vcombine.high %v637_v52, %v645_v54 }
  0xbf   : > { %2548 = vmatprep.mubr.bf16.mxu1 %v3446_v0  ;;  %v3402_v0 = vcombine.high %v638_v55, %v646_v56  ;;  %v607_v55 = vld [vmem:[%s4645_s8 + $0x120] sm:$0xff] }
  0xc0   : > { %v615_v56 = vld [vmem:[%s4645_s8 + $0x160] sm:$0xff] }
  0xc5   : > { %2452 = vmatmul.mubr.bf16.gmra.mxu0 %v3443_v5  ;;  %v661_v5 = vld [vmem:[%s4645_s8 + $0x2d0] sm:$0xff] }
  0xc6   : > { %2549 = vmatmul.mubr.bf16.gmra.mxu1 %v3445_v6  ;;  %2589 = vmatprep.mubr.bf16.mxu0 %v3336_v7  ;;  %v4239_v6 = vld [vmem:[%s4643_s7 + $0x2c0] sm:$0xff]   ;;  %v654_v7 = vld [vmem:[%s4645_s8 + $0x298] sm:$0xff] }
  0xc7   : > { %2686 = vmatprep.mubr.bf16.mxu1 %v3338_v8  ;;  %v662_v8 = vld [vmem:[%s4645_s8 + $0x2d8] sm:$0xff] }
  0xcd   : > { %2590 = vmatmul.mubr.bf16.vlgmr.msra.gmra.mxu0 %v3335_v11  ;;  %v4241_v11 = vld [vmem:[%s4643_s7 + $0x378] sm:$0xff]  }
  0xce   : > { %2687 = vmatmul.mubr.bf16.vlgmr.msra.gmra.mxu1 %v3337_v15  ;;  %3850 = vmatpush3.bf16.msra.mxu0 %v4210_v12  ;;  %v3399_v12 = vcombine.low %v637_v52, %v645_v54  ;;  %v3416_v15 = vcombine.high %v653_v4, %v661_v5  ;;  %v4247_v52 = vld [vmem:[%s4643_s7 + $0x3f0] sm:$0xff]  }
  0xcf   : > { %3914 = vmatpush3.bf16.msra.mxu1 %v4212_v16  ;;  %2597 = vmatprep.mubr.bf16.mxu0 %v3352_v17  ;;  %v3418_v16 = vcombine.high %v654_v7, %v662_v8  ;;  %v669_v17 = vld [vmem:[%s4645_s8 + $0x310] sm:$0xff] }
  0xd0   : > { %2694 = vmatprep.mubr.bf16.mxu1 %v3354_v19  ;;  %3851 = vmatprep.subr.bf16.mxu0 %v4213_v18  ;;  %v677_v18 = vld [vmem:[%s4645_s8 + $0x350] sm:$0xff]  ;;  %v670_v19 = vld [vmem:[%s4645_s8 + $0x318] sm:$0xff] }
  0xd1   : > { %3915 = vmatprep.subr.bf16.mxu1 %v4215_v21  ;;  %v3415_v21 = vcombine.low %v653_v4, %v661_v5  ;;  %v3432_v23 = vcombine.high %v669_v17, %v677_v18  ;;  %v4248_v54 = vld [vmem:[%s4643_s7 + $0x3b0] sm:$0xff]   ;;  %v4255_v4 = vld [vmem:[%s4643_s7 + $0x3e0] sm:$0xff]  }
  0xd2   : > { %3852 = vmatpush3.bf16.msra.mxu0 %v4214_v20  ;;  %v678_v20 = vld [vmem:[%s4645_s8 + $0x358] sm:$0xff]  ;;  %v623_v5 = vld [vmem:[%s4645_s8 + $0x1a0] sm:$0xff] }
  0xd3   : > { %3916 = vmatpush3.bf16.msra.mxu1 %v4216_v22  ;;  %3853 = vmatprep.subr.bf16.mxu0 %v4217_v27  ;;  %v3417_v22 = vcombine.low %v654_v7, %v662_v8  ;;  %v3434_v24 = vcombine.high %v670_v19, %v678_v20  ;;  %v686_v27 = vld [vmem:[%s4645_s8 + $0x398] sm:$0xff]  ;;  %v624_v7 = vld [vmem:[%s4645_s8 + $0x1a8] sm:$0xff]  ;;  %v4254_v8 = vld [vmem:[%s4643_s7 + $0x320] sm:$0xff]  }
  0xd4   : > { %3917 = vmatprep.subr.bf16.mxu1 %v4219_v28  ;;  %v694_v28 = vld [vmem:[%s4645_s8 + $0x3d8] sm:$0xff] }
  0xd5   : > { %2598 = vmatmul.mubr.bf16.gmra.mxu0 %v3351_v29  ;;  %v3431_v29 = vcombine.low %v669_v17, %v677_v18  ;;  %v4258_v17 = vld [vmem:[%s4643_s7 + $0x318] sm:$0xff]  }
  0xd6   : > { %2695 = vmatmul.mubr.bf16.gmra.mxu1 %v3353_v30  ;;  %2605 = vmatprep.mubr.bf16.mxu0 %v3368_v31  ;;  %v3433_v30 = vcombine.low %v670_v19, %v678_v20  ;;  %v3448_v31 = vcombine.high %v685_v25, %v693_v26  ;;  %v4260_v18 = vld [vmem:[%s4643_s7 + $0x398] sm:$0xff]   ;;  %v4261_v19 = vld [vmem:[%s4643_s7 + $0x350] sm:$0xff]   ;;  %v648_v25 = vld [vmem:[%s4645_s8 + $0x268] sm:$0xff] }
  0xd7   : > { %2702 = vmatprep.mubr.bf16.mxu1 %v3370_v32  ;;  %3854 = vmatpush3.bf16.msra.mxu0 %v4218_v33  ;;  %v3450_v32 = vcombine.high %v686_v27, %v694_v28  ;;  %v575_v33 = vld [vmem:[%s4645_s8 + $0x20] sm:$0xff]  ;;  %v4263_v20 = vld [vmem:[%s4643_s7 + $0x3d0] sm:$0xff]  }
  0xd8   : > { %3918 = vmatpush3.bf16.msra.mxu1 %v4220_v34  ;;  %3855 = vmatprep.subr.bf16.mxu0 %v4221_v35  ;;  %v583_v34 = vld [vmem:[%s4645_s8 + $0x60] sm:$0xff]  ;;  %v576_v35 = vld [vmem:[%s4645_s8 + $0x28] sm:$0xff]  ;;  %v4264_v26 = vld [vmem:[%s4643_s7 + $0x390] sm:$0xff]  }
  0xd9   : > { %3919 = vmatprep.subr.bf16.mxu1 %v4223_v38  ;;  %v3449_v38 = vcombine.low %v686_v27, %v694_v28  ;;  %v3340_v39 = vcombine.high %v575_v33, %v583_v34  ;;  %v3342_v40 = vcombine.high %v576_v35, %v584_v36  ;;  %v4265_v27 = vld [vmem:[%s4643_s7 + $0x348] sm:$0xff]  }
  0xdb   : > { %3856 = vmatpush3.bf16.msra.mxu0 %v4222_v41  ;;  %v591_v41 = vld [vmem:[%s4645_s8 + $0xa0] sm:$0xff] }
  0xdc   : > { %3920 = vmatpush3.bf16.msra.mxu1 %v4224_v42  ;;  %3857 = vmatprep.subr.bf16.mxu0 %v4225_v43  ;;  %v599_v42 = vld [vmem:[%s4645_s8 + $0xe0] sm:$0xff]  ;;  %v3339_v43 = vcombine.low %v575_v33, %v583_v34  ;;  %v4266_v33 = vld [vmem:[%s4643_s7 + $0x308] sm:$0xff]  }
  0xdd   : > { %2606 = vmatmul.mubr.bf16.gmra.mxu0 %v3367_v44  ;;  %3921 = vmatprep.subr.bf16.mxu1 %v4227_v45  ;;  %v592_v44 = vld [vmem:[%s4645_s8 + $0xa8] sm:$0xff] }
  0xde   : > { %2703 = vmatmul.mubr.bf16.gmra.mxu1 %v3369_v46  ;;  %2613 = vmatprep.mubr.bf16.mxu0 %v3384_v47  ;;  %v600_v45 = vld [vmem:[%s4645_s8 + $0xe8] sm:$0xff]  ;;  %v3341_v46 = vcombine.low %v576_v35, %v584_v36  ;;  %v4242_v47 = vld [vmem:[%s4643_s7 + $0x338] sm:$0xff]   ;;  %v4269_v35 = vld [vmem:[%s4643_s7 + $0x340] sm:$0xff]  }
  0xdf   : > { %2710 = vmatprep.mubr.bf16.mxu1 %v3386_v49  ;;  %3858 = vmatpush3.bf16.msra.mxu0 %v4226_v48  ;;  %v4244_v48 = vld [vmem:[%s4643_s7 + $0x3b8] sm:$0xff]   ;;  %v3356_v49 = vcombine.high %v591_v41, %v599_v42  ;;  %v4268_v34 = vld [vmem:[%s4643_s7 + $0x388] sm:$0xff]   ;;  %v4271_v36 = vld [vmem:[%s4643_s7 + $0x3c0] sm:$0xff]  }
  0xe0   : > { %3922 = vmatpush3.bf16.msra.mxu1 %v4228_v50  ;;  %3859 = vmatprep.subr.bf16.mxu0 %v4229_v51  ;;  %v3358_v50 = vcombine.high %v592_v44, %v600_v45  ;;  %v4245_v51 = vld [vmem:[%s4643_s7 + $0x370] sm:$0xff]  }
  0xe1   : > { %3923 = vmatprep.subr.bf16.mxu1 %v4231_v53  ;;  %v4246_v53 = vld [vmem:[%s4643_s7 + $0x330] sm:$0xff]  }
  0xe3   : > { %3860 = vmatpush3.bf16.msra.mxu0 %v4230_v57  ;;  %v4249_v57 = vld [vmem:[%s4643_s7 + $0x368] sm:$0xff]  }
  0xe4   : > { %3924 = vmatpush3.bf16.msra.mxu1 %v4232_v58  ;;  %3861 = vmatprep.subr.bf16.mxu0 %v4233_v59  ;;  %v608_v58 = vld [vmem:[%s4645_s8 + $0x128] sm:$0xff] }
  0xe5   : > { %2614 = vmatmul.mubr.bf16.gmra.mxu0 %v3383_v60  ;;  %3925 = vmatprep.subr.bf16.mxu1 %v4235_v61  ;;  %v616_v59 = vld [vmem:[%s4645_s8 + $0x168] sm:$0xff]  ;;  %v3355_v61 = vcombine.low %v591_v41, %v599_v42  ;;  %v4272_v42 = vld [vmem:[%s4643_s7 + $0x380] sm:$0xff]  }
  0xe6   : > { %2711 = vmatmul.mubr.bf16.gmra.mxu1 %v3385_v62  ;;  %2621 = vmatprep.mubr.bf16.mxu0 %v3400_v63  ;;  %v4251_v60 = vld [vmem:[%s4643_s7 + $0x3e8] sm:$0xff]   ;;  %v3357_v62 = vcombine.low %v592_v44, %v600_v45  ;;  %v3372_v63 = vcombine.high %v607_v55, %v615_v56 }
  0xe7   : > { %2718 = vmatprep.mubr.bf16.mxu1 %v3402_v0  ;;  %3862 = vmatpush3.bf16.msra.mxu0 %v4234_v1  ;;  %v3374_v0 = vcombine.high %v608_v58, %v616_v59  ;;  %v4250_v1 = vld [vmem:[%s4643_s7 + $0x328] sm:$0xff]  }
  0xe8   : > { %3926 = vmatpush3.bf16.msra.mxu1 %v4236_v2  ;;  %3863 = vmatprep.subr.bf16.mxu0 %v4237_v3  ;;  %v4252_v2 = vld [vmem:[%s4643_s7 + $0x3a8] sm:$0xff]   ;;  %v4253_v3 = vld [vmem:[%s4643_s7 + $0x360] sm:$0xff]  }
  0xe9   : > { %3927 = vmatprep.subr.bf16.mxu1 %v4239_v6  ;;  %v631_v6 = vld [vmem:[%s4645_s8 + $0x1e0] sm:$0xff]  ;;  %v664_v41 = vld [vmem:[%s4645_s8 + $0x2e8] sm:$0xff] }
  0xea   : > { %v3387_v28 = vcombine.low %v623_v5, %v631_v6 }
  0xeb   : > { %3864 = vmatpush3.bf16.msra.mxu0 %v4238_v9  ;;  %v632_v9 = vld [vmem:[%s4645_s8 + $0x1e8] sm:$0xff] }
  0xec   : > { %3928 = vmatpush3.bf16.msra.mxu1 %v4240_v10  ;;  %3977 = vmatprep.subr.bf16.mxu0 %v4241_v11  ;;  %v4256_v10 = vld [vmem:[%s4643_s7 + $0x3a0] sm:$0xff]   ;;  %v4257_v11 = vld [vmem:[%s4643_s7 + $0x358] sm:$0xff]  }
  0xed   : > { %2622 = vmatmul.mubr.bf16.gmra.mxu0 %v3399_v12  ;;  %4041 = vmatprep.subr.bf16.mxu1 %v4243_v13  ;;  %v3371_v12 = vcombine.low %v607_v55, %v615_v56  ;;  %v4259_v13 = vld [vmem:[%s4643_s7 + $0x3d8] sm:$0xff]   ;;  %v687_v55 = vld [vmem:[%s4645_s8 + $0x3a0] sm:$0xff] }
  0xee   : > { %2719 = vmatmul.mubr.bf16.gmra.mxu1 %v3401_v14  ;;  %2629 = vmatprep.mubr.bf16.mxu0 %v3416_v15  ;;  %v3373_v14 = vcombine.low %v608_v58, %v616_v59  ;;  %v3388_v15 = vcombine.high %v623_v5, %v631_v6  ;;  %v695_v56 = vld [vmem:[%s4645_s8 + $0x3e0] sm:$0xff]  ;;  %v696_v58 = vld [vmem:[%s4645_s8 + $0x3e8] sm:$0xff] }
  0xef   : > { %2726 = vmatprep.mubr.bf16.mxu1 %v3418_v16  ;;  %v3390_v16 = vcombine.high %v624_v7, %v632_v9 }
  0xf5   : > { %2630 = vmatmul.mubr.bf16.gmra.mxu0 %v3415_v21  ;;  %v639_v21 = vld [vmem:[%s4645_s8 + $0x220] sm:$0xff] }
  0xf6   : > { %2727 = vmatmul.mubr.bf16.gmra.mxu1 %v3417_v22  ;;  %2637 = vmatprep.mubr.bf16.mxu0 %v3432_v23  ;;  %v647_v22 = vld [vmem:[%s4645_s8 + $0x260] sm:$0xff]  ;;  %v640_v23 = vld [vmem:[%s4645_s8 + $0x228] sm:$0xff] }
  0xf7   : > { %2734 = vmatprep.mubr.bf16.mxu1 %v3434_v24  ;;  %v4262_v24 = vld [vmem:[%s4643_s7 + $0x310] sm:$0xff]   ;;  %v3405_v44 = vcombine.low %v640_v23, %v648_v25 }
  0xfd   : > { %2638 = vmatmul.mubr.bf16.gmra.mxu0 %v3431_v29  ;;  %v4267_v29 = vld [vmem:[%s4643_s7 + $0x3c8] sm:$0xff]  }
  0xfe   : > { %2735 = vmatmul.mubr.bf16.gmra.mxu1 %v3433_v30  ;;  %2645 = vmatprep.mubr.bf16.mxu0 %v3448_v31  ;;  %v3389_v30 = vcombine.low %v624_v7, %v632_v9  ;;  %v3404_v31 = vcombine.high %v639_v21, %v647_v22  ;;  %v593_v7 = vld [vmem:[%s4645_s8 + $0xb0] sm:$0xff]  ;;  %v594_v9 = vld [vmem:[%s4645_s8 + $0xb8] sm:$0xff] }
  0xff   : > { %2742 = vmatprep.mubr.bf16.mxu1 %v3450_v32  ;;  %v3406_v32 = vcombine.high %v640_v23, %v648_v25  ;;  %v618_v23 = vld [vmem:[%s4645_s8 + $0x178] sm:$0xff] }
 0x105   : > { %2646 = vmatmul.mubr.bf16.gmra.mxu0 %v3447_v37  ;;  %v655_v37 = vld [vmem:[%s4645_s8 + $0x2a0] sm:$0xff] }
 0x106   : > { %2743 = vmatmul.mubr.bf16.gmra.mxu1 %v3449_v38  ;;  %2783 = vmatprep.mubr.bf16.mxu0 %v3340_v39  ;;  %v663_v38 = vld [vmem:[%s4645_s8 + $0x2e0] sm:$0xff] }
 0x107   : > { %2880 = vmatprep.mubr.bf16.mxu1 %v3342_v40  ;;  %v4270_v39 = vld [vmem:[%s4643_s7 + $0x300] sm:$0xff]   ;;  %v656_v40 = vld [vmem:[%s4645_s8 + $0x2a8] sm:$0xff]  ;;  %v3420_v45 = vcombine.high %v655_v37, %v663_v38 }
 0x10d   : > { %2784 = vmatmul.mubr.bf16.vlgmr.msra.gmra.mxu0 %v3339_v43  ;;  %v3403_v43 = vcombine.low %v639_v21, %v647_v22  ;;  %v610_v22 = vld [vmem:[%s4645_s8 + $0x138] sm:$0xff] }
 0x10e   : > { %2881 = vmatmul.mubr.bf16.vlgmr.msra.gmra.mxu1 %v3341_v46  ;;  %3978 = vmatpush3.bf16.msra.mxu0 %v4242_v47  ;;  %v3422_v46 = vcombine.high %v656_v40, %v664_v41  ;;  %v671_v47 = vld [vmem:[%s4645_s8 + $0x320] sm:$0xff] }
 0x10f   : > { %4042 = vmatpush3.bf16.msra.mxu1 %v4244_v48  ;;  %2791 = vmatprep.mubr.bf16.mxu0 %v3356_v49  ;;  %v679_v48 = vld [vmem:[%s4645_s8 + $0x360] sm:$0xff]  ;;  %v672_v49 = vld [vmem:[%s4645_s8 + $0x328] sm:$0xff] }
 0x110   : > { %2888 = vmatprep.mubr.bf16.mxu1 %v3358_v50  ;;  %3979 = vmatprep.subr.bf16.mxu0 %v4245_v51  ;;  %v680_v50 = vld [vmem:[%s4645_s8 + $0x368] sm:$0xff]  ;;  %v3419_v51 = vcombine.low %v655_v37, %v663_v38  ;;  %v3435_v59 = vcombine.low %v671_v47, %v679_v48 }
 0x111   : > { %4043 = vmatprep.subr.bf16.mxu1 %v4247_v52  ;;  %v3421_v52 = vcombine.low %v656_v40, %v664_v41  ;;  %v625_v40 = vld [vmem:[%s4645_s8 + $0x1b0] sm:$0xff] }
 0x112   : > { %3980 = vmatpush3.bf16.msra.mxu0 %v4246_v53  ;;  %v3436_v53 = vcombine.high %v671_v47, %v679_v48  ;;  %v633_v41 = vld [vmem:[%s4645_s8 + $0x1f0] sm:$0xff] }
 0x113   : > { %4044 = vmatpush3.bf16.msra.mxu1 %v4248_v54  ;;  %3981 = vmatprep.subr.bf16.mxu0 %v4249_v57  ;;  %v3438_v54 = vcombine.high %v672_v49, %v680_v50  ;;  %v688_v57 = vld [vmem:[%s4645_s8 + $0x3a8] sm:$0xff] }
 0x114   : > { %4045 = vmatprep.subr.bf16.mxu1 %v4251_v60  ;;  %v3437_v60 = vcombine.low %v672_v49, %v680_v50  ;;  %v3377_v50 = vcombine.low %v610_v22, %v618_v23 }
 0x115   : > { %2792 = vmatmul.mubr.bf16.gmra.mxu0 %v3355_v61  ;;  %v3452_v61 = vcombine.high %v687_v55, %v695_v56 }
 0x116   : > { %2889 = vmatmul.mubr.bf16.gmra.mxu1 %v3357_v62  ;;  %2799 = vmatprep.mubr.bf16.mxu0 %v3372_v63  ;;  %v3454_v62 = vcombine.high %v688_v57, %v696_v58  ;;  %v577_v63 = vld [vmem:[%s4645_s8 + $0x30] sm:$0xff] }
 0x117   : > { %2896 = vmatprep.mubr.bf16.mxu1 %v3374_v0  ;;  %3982 = vmatpush3.bf16.msra.mxu0 %v4250_v1  ;;  %v585_v0 = vld [vmem:[%s4645_s8 + $0x70] sm:$0xff]  ;;  %v578_v1 = vld [vmem:[%s4645_s8 + $0x38] sm:$0xff] }
 0x118   : > { %4046 = vmatpush3.bf16.msra.mxu1 %v4252_v2  ;;  %3983 = vmatprep.subr.bf16.mxu0 %v4253_v3  ;;  %v586_v2 = vld [vmem:[%s4645_s8 + $0x78] sm:$0xff]  ;;  %v3451_v3 = vcombine.low %v687_v55, %v695_v56  ;;  %v3344_v5 = vcombine.high %v577_v63, %v585_v0 }
 0x119   : > { %4047 = vmatprep.subr.bf16.mxu1 %v4255_v4  ;;  %v3453_v4 = vcombine.low %v688_v57, %v696_v58  ;;  %v3346_v6 = vcombine.high %v578_v1, %v586_v2 }
 0x11b   : > { %3984 = vmatpush3.bf16.msra.mxu0 %v4254_v8  ;;  %v601_v8 = vld [vmem:[%s4645_s8 + $0xf0] sm:$0xff] }
 0x11c   : > { %4048 = vmatpush3.bf16.msra.mxu1 %v4256_v10  ;;  %3985 = vmatprep.subr.bf16.mxu0 %v4257_v11  ;;  %v602_v10 = vld [vmem:[%s4645_s8 + $0xf8] sm:$0xff]  ;;  %v3343_v11 = vcombine.low %v577_v63, %v585_v0  ;;  %v649_v63 = vld [vmem:[%s4645_s8 + $0x270] sm:$0xff] }
 0x11d   : > { %2800 = vmatmul.mubr.bf16.gmra.mxu0 %v3371_v12  ;;  %4049 = vmatprep.subr.bf16.mxu1 %v4259_v13  ;;  %v3345_v12 = vcombine.low %v578_v1, %v586_v2  ;;  %v3360_v13 = vcombine.high %v593_v7, %v601_v8  ;;  %v642_v2 = vld [vmem:[%s4645_s8 + $0x238] sm:$0xff] }
 0x11e   : > { %2897 = vmatmul.mubr.bf16.gmra.mxu1 %v3373_v14  ;;  %2807 = vmatprep.mubr.bf16.mxu0 %v3388_v15  ;;  %v3362_v14 = vcombine.high %v594_v9, %v602_v10 }
 0x11f   : > { %2904 = vmatprep.mubr.bf16.mxu1 %v3390_v16  ;;  %3986 = vmatpush3.bf16.msra.mxu0 %v4258_v17 }
 0x120   : > { %4050 = vmatpush3.bf16.msra.mxu1 %v4260_v18  ;;  %3987 = vmatprep.subr.bf16.mxu0 %v4261_v19  ;;  %v609_v18 = vld [vmem:[%s4645_s8 + $0x130] sm:$0xff] }
 0x121   : > { %4051 = vmatprep.subr.bf16.mxu1 %v4263_v20  ;;  %v617_v19 = vld [vmem:[%s4645_s8 + $0x170] sm:$0xff] }
 0x122   : > { %v3375_v48 = vcombine.low %v609_v18, %v617_v19 }
 0x123   : > { %3988 = vmatpush3.bf16.msra.mxu0 %v4262_v24 }
 0x124   : > { %4052 = vmatpush3.bf16.msra.mxu1 %v4264_v26  ;;  %3989 = vmatprep.subr.bf16.mxu0 %v4265_v27  ;;  %v3359_v26 = vcombine.low %v593_v7, %v601_v8 }
 0x125   : > { %2808 = vmatmul.mubr.bf16.gmra.mxu0 %v3387_v28  ;;  %4053 = vmatprep.subr.bf16.mxu1 %v4267_v29  ;;  %v3361_v28 = vcombine.low %v594_v9, %v602_v10  ;;  %v3376_v29 = vcombine.high %v609_v18, %v617_v19 }
 0x126   : > { %2905 = vmatmul.mubr.bf16.gmra.mxu1 %v3389_v30  ;;  %2815 = vmatprep.mubr.bf16.mxu0 %v3404_v31 }
 0x127   : > { %2912 = vmatprep.mubr.bf16.mxu1 %v3406_v32  ;;  %3990 = vmatpush3.bf16.msra.mxu0 %v4266_v33  ;;  %v3378_v32 = vcombine.high %v610_v22, %v618_v23 }
 0x128   : > { %4054 = vmatpush3.bf16.msra.mxu1 %v4268_v34  ;;  %3991 = vmatprep.subr.bf16.mxu0 %v4269_v35 }
 0x129   : > { %4055 = vmatprep.subr.bf16.mxu1 %v4271_v36 }
 0x12b   : > { %3992 = vmatpush3.bf16.msra.mxu0 %v4270_v39 }
 0x12c   : > { %4056 = vmatpush3.bf16.msra.mxu1 %v4272_v42 }
 0x12d   : > { %2816 = vmatmul.mubr.bf16.gmra.mxu0 %v3403_v43 }
 0x12e   : > { %2913 = vmatmul.mubr.bf16.gmra.mxu1 %v3405_v44  ;;  %2823 = vmatprep.mubr.bf16.mxu0 %v3420_v45  ;;  %v626_v44 = vld [vmem:[%s4645_s8 + $0x1b8] sm:$0xff] }
 0x12f   : > { %2920 = vmatprep.mubr.bf16.mxu1 %v3422_v46  ;;  %v634_v45 = vld [vmem:[%s4645_s8 + $0x1f8] sm:$0xff] }
 0x130   : > { %v3393_v8 = vcombine.low %v626_v44, %v634_v45 }
 0x135   : > { %2824 = vmatmul.mubr.bf16.gmra.mxu0 %v3419_v51  ;;  %v3392_v51 = vcombine.high %v625_v40, %v633_v41 }
 0x136   : > { %2921 = vmatmul.mubr.bf16.gmra.mxu1 %v3421_v52  ;;  %2831 = vmatprep.mubr.bf16.mxu0 %v3436_v53 }
 0x137   : > { %2928 = vmatprep.mubr.bf16.mxu1 %v3438_v54  ;;  %v3394_v54 = vcombine.high %v626_v44, %v634_v45  ;;  %v673_v44 = vld [vmem:[%s4645_s8 + $0x330] sm:$0xff] }
 0x138   : > { %v681_v45 = vld [vmem:[%s4645_s8 + $0x370] sm:$0xff] }
 0x13d   : > { %2832 = vmatmul.mubr.bf16.gmra.mxu0 %v3435_v59 }
 0x13e   : > { %2929 = vmatmul.mubr.bf16.gmra.mxu1 %v3437_v60  ;;  %2839 = vmatprep.mubr.bf16.mxu0 %v3452_v61 }
 0x13f   : > { %2936 = vmatprep.mubr.bf16.mxu1 %v3454_v62  ;;  %v641_v62 = vld [vmem:[%s4645_s8 + $0x230] sm:$0xff] }
 0x140   : > { %v3408_v9 = vcombine.high %v641_v62, %v649_v63 }
 0x145   : > { %2840 = vmatmul.mubr.bf16.gmra.mxu0 %v3451_v3  ;;  %v650_v3 = vld [vmem:[%s4645_s8 + $0x278] sm:$0xff] }
 0x146   : > { %2937 = vmatmul.mubr.bf16.gmra.mxu1 %v3453_v4  ;;  %2977 = vmatprep.mubr.bf16.mxu0 %v3344_v5 }
 0x147   : > { %3074 = vmatprep.mubr.bf16.mxu1 %v3346_v6  ;;  %v3391_v6 = vcombine.low %v625_v40, %v633_v41 }
 0x14d   : > { %v3609_v15 = vpop.f32.mrf.mxu0  ;;  %2978 = vmatmul.mubr.bf16.vlgmr.msra.gmra.mxu0 %v3343_v11 }
 0x14e   : > { %v3673_v16 = vpop.f32.mrf.mxu1  ;;  %3075 = vmatmul.mubr.bf16.vlgmr.msra.gmra.mxu1 %v3345_v12  ;;  %2985 = vmatprep.mubr.bf16.mxu0 %v3360_v13  ;;  %v3410_v12 = vcombine.high %v642_v2, %v650_v3 }
 0x14f   : > { %v3610_v17 = vpop.f32.mrf.mxu0  ;;  %3082 = vmatprep.mubr.bf16.mxu1 %v3362_v14 }
 0x150   : > { %v3611_v20 = vadd.f32 %v3610_v17, %v3609_v15  ;;  %v3674_v21 = vpop.f32.mrf.mxu1 }
 0x151   : > { %v3675_v24 = vadd.f32 %v3674_v21, %v3673_v16  ;;  %v3612_v25 = vpop.f32.mrf.mxu0  ;;  %v665_v21 = vld [vmem:[%s4645_s8 + $0x2f0] sm:$0xff] }
 0x152   : > { %v3676_v27 = vpop.f32.mrf.mxu1 }
 0x153   : > { %v4887_v30 = vadd.f32 %v3675_v24, %v3611_v20  ;;  %v3613_v31 = vpop.f32.mrf.mxu0  ;;  %v657_v20 = vld [vmem:[%s4645_s8 + $0x2b0] sm:$0xff]  ;;  %v658_v24 = vld [vmem:[%s4645_s8 + $0x2b8] sm:$0xff] }
 0x154   : > { %v3614_v33 = vadd.f32 %v3613_v31, %v3612_v25  ;;  %v3677_v34 = vpop.f32.mrf.mxu1  ;;  %v666_v25 = vld [vmem:[%s4645_s8 + $0x2f8] sm:$0xff]  ;;  %v3409_v31 = vcombine.low %v642_v2, %v650_v3 }
 0x155   : > { %v3678_v35 = vadd.f32 %v3677_v34, %v3676_v27  ;;  %v3615_v36 = vpop.f32.mrf.mxu0  ;;  %2986 = vmatmul.mubr.bf16.gmra.mxu0 %v3359_v26 }
 0x156   : > { %v3679_v37 = vpop.f32.mrf.mxu1  ;;  %3083 = vmatmul.mubr.bf16.gmra.mxu1 %v3361_v28  ;;  %2993 = vmatprep.mubr.bf16.mxu0 %v3376_v29  ;;  %v3407_v28 = vcombine.low %v641_v62, %v649_v63 }
 0x157   : > { %v4889_v38 = vadd.f32 %v3678_v35, %v3614_v33  ;;  %v3616_v39 = vpop.f32.mrf.mxu0  ;;  %3090 = vmatprep.mubr.bf16.mxu1 %v3378_v32  ;;  %v3424_v32 = vcombine.high %v657_v20, %v665_v21  ;;  %v3426_v35 = vcombine.high %v658_v24, %v666_v25 }
 0x158   : > { %v3617_v42 = vadd.f32 %v3616_v39, %v3615_v36  ;;  %v3680_v43 = vpop.f32.mrf.mxu1 }
 0x159   : > { %v3681_v46 = vadd.f32 %v3680_v43, %v3679_v37  ;;  %v3618_v47 = vpop.f32.mrf.mxu0 }
 0x15a   : > { %v3682_v49 = vpop.f32.mrf.mxu1 }
 0x15b   : > { %v4895_v52 = vadd.f32 %v3681_v46, %v3617_v42  ;;  %v3619_v53 = vpop.f32.mrf.mxu0 }
 0x15c   : > { %v3620_v55 = vadd.f32 %v3619_v53, %v3618_v47  ;;  %v3683_v56 = vpop.f32.mrf.mxu1  ;;  %v3423_v53 = vcombine.low %v657_v20, %v665_v21 }
 0x15d   : > { %v3684_v57 = vadd.f32 %v3683_v56, %v3682_v49  ;;  %v3621_v58 = vpop.f32.mrf.mxu0  ;;  %2994 = vmatmul.mubr.bf16.gmra.mxu0 %v3375_v48  ;;  %v674_v48 = vld [vmem:[%s4645_s8 + $0x338] sm:$0xff]  ;;  %v3440_v56 = vcombine.high %v673_v44, %v681_v45 }
 0x15e   : > { %v3685_v59 = vpop.f32.mrf.mxu1  ;;  %3091 = vmatmul.mubr.bf16.gmra.mxu1 %v3377_v50  ;;  %3001 = vmatprep.mubr.bf16.mxu0 %v3392_v51  ;;  %v682_v49 = vld [vmem:[%s4645_s8 + $0x378] sm:$0xff] }
 0x15f   : > { %v4897_v60 = vadd.f32 %v3684_v57, %v3620_v55  ;;  %v3622_v61 = vpop.f32.mrf.mxu0  ;;  %3098 = vmatprep.mubr.bf16.mxu1 %v3394_v54  ;;  %v3425_v55 = vcombine.low %v658_v24, %v666_v25 }
 0x160   : > { %v3623_v0 = vadd.f32 %v3622_v61, %v3621_v58  ;;  %v3686_v1 = vpop.f32.mrf.mxu1 }
 0x161   : > { %v3687_v4 = vadd.f32 %v3686_v1, %v3685_v59  ;;  %v3624_v5 = vpop.f32.mrf.mxu0  ;;  %v3442_v59 = vcombine.high %v674_v48, %v682_v49 }
 0x162   : > { %v3688_v7 = vpop.f32.mrf.mxu1 }
 0x163   : > { %v4903_v10 = vadd.f32 %v3687_v4, %v3623_v0  ;;  %v3625_v11 = vpop.f32.mrf.mxu0  ;;  %v689_v4 = vld [vmem:[%s4645_s8 + $0x3b0] sm:$0xff] }
 0x164   : > { %v3626_v13 = vadd.f32 %v3625_v11, %v3624_v5  ;;  %v3689_v14 = vpop.f32.mrf.mxu1  ;;  %v697_v5 = vld [vmem:[%s4645_s8 + $0x3f0] sm:$0xff] }
 0x165   : > { %v3690_v15 = vadd.f32 %v3689_v14, %v3688_v7  ;;  %v3627_v16 = vpop.f32.mrf.mxu0  ;;  %3002 = vmatmul.mubr.bf16.gmra.mxu0 %v3391_v6 }
 0x166   : > { %v3691_v17 = vpop.f32.mrf.mxu1  ;;  %3099 = vmatmul.mubr.bf16.gmra.mxu1 %v3393_v8  ;;  %3009 = vmatprep.mubr.bf16.mxu0 %v3408_v9  ;;  %v690_v8 = vld [vmem:[%s4645_s8 + $0x3b8] sm:$0xff] }
 0x167   : > { %v4905_v18 = vadd.f32 %v3690_v15, %v3626_v13  ;;  %v3628_v19 = vpop.f32.mrf.mxu0  ;;  %3106 = vmatprep.mubr.bf16.mxu1 %v3410_v12  ;;  %v698_v9 = vld [vmem:[%s4645_s8 + $0x3f8] sm:$0xff]  ;;  %v3439_v13 = vcombine.low %v673_v44, %v681_v45  ;;  %v3441_v15 = vcombine.low %v674_v48, %v682_v49 }
 0x168   : > { %v3629_v22 = vadd.f32 %v3628_v19, %v3627_v16  ;;  %v3692_v23 = vpop.f32.mrf.mxu1  ;;  %v3456_v16 = vcombine.high %v689_v4, %v697_v5  ;;  %v3458_v20 = vcombine.high %v690_v8, %v698_v9 }
 0x169   : > { %v3693_v26 = vadd.f32 %v3692_v23, %v3691_v17  ;;  %v3630_v27 = vpop.f32.mrf.mxu0 }
 0x16a   : > { %v3694_v29 = vpop.f32.mrf.mxu1 }
 0x16b   : > { %v4911_v33 = vadd.f32 %v3693_v26, %v3629_v22  ;;  %v3631_v34 = vpop.f32.mrf.mxu0 }
 0x16c   : > { %v3632_v36 = vadd.f32 %v3631_v34, %v3630_v27  ;;  %v3695_v37 = vpop.f32.mrf.mxu1  ;;  %v3455_v34 = vcombine.low %v689_v4, %v697_v5 }
 0x16d   : > { %v3696_v39 = vadd.f32 %v3695_v37, %v3694_v29  ;;  %v3633_v40 = vpop.f32.mrf.mxu0  ;;  %3010 = vmatmul.mubr.bf16.gmra.mxu0 %v3407_v28 }
 0x16e   : > { %v3697_v41 = vpop.f32.mrf.mxu1  ;;  %3107 = vmatmul.mubr.bf16.gmra.mxu1 %v3409_v31  ;;  %3017 = vmatprep.mubr.bf16.mxu0 %v3424_v32 }
 0x16f   : > { %v4913_v42 = vadd.f32 %v3696_v39, %v3632_v36  ;;  %v3634_v43 = vpop.f32.mrf.mxu0  ;;  %3114 = vmatprep.mubr.bf16.mxu1 %v3426_v35  ;;  %v3457_v36 = vcombine.low %v690_v8, %v698_v9 }
 0x170   : > { %v3635_v46 = vadd.f32 %v3634_v43, %v3633_v40  ;;  %v3698_v47 = vpop.f32.mrf.mxu1 }
 0x171   : > { %v3699_v50 = vadd.f32 %v3698_v47, %v3697_v41  ;;  %v3636_v51 = vpop.f32.mrf.mxu0 }
 0x172   : > { %v3700_v54 = vpop.f32.mrf.mxu1 }
 0x173   : > { %v4919_v57 = vadd.f32 %v3699_v50, %v3635_v46  ;;  %v3637_v58 = vpop.f32.mrf.mxu0 }
 0x174   : > { %v3638_v61 = vadd.f32 %v3637_v58, %v3636_v51  ;;  %v3701_v62 = vpop.f32.mrf.mxu1 }
 0x175   : > { %v3702_v63 = vadd.f32 %v3701_v62, %v3700_v54  ;;  %v3639_v0 = vpop.f32.mrf.mxu0  ;;  %3018 = vmatmul.mubr.bf16.gmra.mxu0 %v3423_v53 }
 0x176   : > { %v3703_v1 = vpop.f32.mrf.mxu1  ;;  %3115 = vmatmul.mubr.bf16.gmra.mxu1 %v3425_v55  ;;  %3025 = vmatprep.mubr.bf16.mxu0 %v3440_v56 }
 0x177   : > { %v4921_v2 = vadd.f32 %v3702_v63, %v3638_v61  ;;  %v3640_v3 = vpop.f32.mrf.mxu0  ;;  %3122 = vmatprep.mubr.bf16.mxu1 %v3442_v59 }
 0x178   : > { %v3641_v6 = vadd.f32 %v3640_v3, %v3639_v0  ;;  %v3704_v7 = vpop.f32.mrf.mxu1 }
 0x179   : > { %v3705_v11 = vadd.f32 %v3704_v7, %v3703_v1  ;;  %v3642_v12 = vpop.f32.mrf.mxu0 }
 0x17a   : > { %v3706_v14 = vpop.f32.mrf.mxu1 }
 0x17b   : > { %v4927_v17 = vadd.f32 %v3705_v11, %v3641_v6  ;;  %v3643_v19 = vpop.f32.mrf.mxu0 }
 0x17c   : > { %v3644_v21 = vadd.f32 %v3643_v19, %v3642_v12  ;;  %v3707_v22 = vpop.f32.mrf.mxu1 }
 0x17d   : > { %v3708_v23 = vadd.f32 %v3707_v22, %v3706_v14  ;;  %v3645_v24 = vpop.f32.mrf.mxu0  ;;  %3026 = vmatmul.mubr.bf16.gmra.mxu0 %v3439_v13 }
 0x17e   : > { %v3709_v25 = vpop.f32.mrf.mxu1  ;;  %3123 = vmatmul.mubr.bf16.gmra.mxu1 %v3441_v15  ;;  %3033 = vmatprep.mubr.bf16.mxu0 %v3456_v16 }
 0x17f   : > { %v4929_v26 = vadd.f32 %v3708_v23, %v3644_v21  ;;  %v3646_v27 = vpop.f32.mrf.mxu0  ;;  %3130 = vmatprep.mubr.bf16.mxu1 %v3458_v20 }
 0x180   : > { %v3647_v28 = vadd.f32 %v3646_v27, %v3645_v24  ;;  %v3710_v29 = vpop.f32.mrf.mxu1 }
 0x181   : > { %v3711_v31 = vadd.f32 %v3710_v29, %v3709_v25  ;;  %v3648_v32 = vpop.f32.mrf.mxu0 }
 0x182   : > { %v3712_v35 = vpop.f32.mrf.mxu1 }
 0x183   : > { %v4931_v37 = vadd.f32 %v3711_v31, %v3647_v28  ;;  %v3649_v39 = vpop.f32.mrf.mxu0 }
 0x184   : > { %v3650_v40 = vadd.f32 %v3649_v39, %v3648_v32  ;;  %v3713_v41 = vpop.f32.mrf.mxu1 }
 0x185   : > { %v3714_v43 = vadd.f32 %v3713_v41, %v3712_v35  ;;  %v3651_v44 = vpop.f32.mrf.mxu0  ;;  %3034 = vmatmul.mubr.bf16.gmra.mxu0 %v3455_v34 }
 0x186   : > { %v3715_v45 = vpop.f32.mrf.mxu1  ;;  %3131 = vmatmul.mubr.bf16.gmra.mxu1 %v3457_v36 }
 0x187   : > { %v4933_v46 = vadd.f32 %v3714_v43, %v3650_v40  ;;  %v3652_v47 = vpop.f32.mrf.mxu0 }
 0x188   : > { %v3653_v48 = vadd.f32 %v3652_v47, %v3651_v44  ;;  %v3716_v49 = vpop.f32.mrf.mxu1 }
 0x189   : > { %v3717_v50 = vadd.f32 %v3716_v49, %v3715_v45  ;;  %v3654_v51 = vpop.f32.mrf.mxu0 }
 0x18a   : > { %v3718_v53 = vpop.f32.mrf.mxu1 }
 0x18b   : > { %v4935_v54 = vadd.f32 %v3717_v50, %v3653_v48  ;;  %v3655_v55 = vpop.f32.mrf.mxu0 }
 0x18c   : > { %v3656_v56 = vadd.f32 %v3655_v55, %v3654_v51  ;;  %v3719_v58 = vpop.f32.mrf.mxu1 }
 0x18d   : > { %v3720_v59 = vadd.f32 %v3719_v58, %v3718_v53  ;;  %v3737_v61 = vpop.f32.mrf.mxu0 }
 0x18e   : > { %v3801_v62 = vpop.f32.mrf.mxu1 }
 0x18f   : > { %v4937_v63 = vadd.f32 %v3720_v59, %v3656_v56  ;;  %v3738_v0 = vpop.f32.mrf.mxu0 }
 0x190   : > { %v3739_v1 = vadd.f32 %v3738_v0, %v3737_v61  ;;  %v3802_v3 = vpop.f32.mrf.mxu1 }
 0x191   : > { %v3803_v4 = vadd.f32 %v3802_v3, %v3801_v62  ;;  %v3740_v5 = vpop.f32.mrf.mxu0 }
 0x192   : > { %v2592_v6 = vadd.f32 %v3739_v1, %v4887_v30  ;;  %v3804_v7 = vpop.f32.mrf.mxu1 }
 0x193   : > { %v3741_v8 = vpop.f32.mrf.mxu0 }
 0x194   : > { %v4940_v9 = vadd.f32 %v3803_v4, %v2592_v6  ;;  %v3742_v11 = vadd.f32 %v3741_v8, %v3740_v5  ;;  %v3805_v12 = vpop.f32.mrf.mxu1 }
 0x195   : > { %v3806_v13 = vadd.f32 %v3805_v12, %v3804_v7  ;;  %v3743_v14 = vpop.f32.mrf.mxu0 }
 0x196   : > { %v2595_v15 = vadd.f32 %v3742_v11, %v4889_v38  ;;  %v3807_v16 = vpop.f32.mrf.mxu1 }
 0x197   : > { %v3744_v19 = vpop.f32.mrf.mxu0 }
 0x198   : > { %v4943_v20 = vadd.f32 %v3806_v13, %v2595_v15  ;;  %v3745_v21 = vadd.f32 %v3744_v19, %v3743_v14  ;;  %v3808_v22 = vpop.f32.mrf.mxu1 }
 0x199   : > { %v3809_v23 = vadd.f32 %v3808_v22, %v3807_v16  ;;  %v3746_v24 = vpop.f32.mrf.mxu0 }
 0x19a   : > { %v2600_v30 = vadd.f32 %v3745_v21, %v4895_v52  ;;  %v3810_v25 = vpop.f32.mrf.mxu1 }
 0x19b   : > { %v3747_v27 = vpop.f32.mrf.mxu0 }
 0x19c   : > { %v4946_v28 = vadd.f32 %v3809_v23, %v2600_v30  ;;  %v3748_v29 = vadd.f32 %v3747_v27, %v3746_v24  ;;  %v3811_v31 = vpop.f32.mrf.mxu1 }
 0x19d   : > { %v3812_v32 = vadd.f32 %v3811_v31, %v3810_v25  ;;  %v3749_v34 = vpop.f32.mrf.mxu0 }
 0x19e   : > { %v2603_v38 = vadd.f32 %v3748_v29, %v4897_v60  ;;  %v3813_v35 = vpop.f32.mrf.mxu1 }
 0x19f   : > { %v3750_v36 = vpop.f32.mrf.mxu0 }
 0x1a0   : > { %v4949_v39 = vadd.f32 %v3812_v32, %v2603_v38  ;;  %v3751_v40 = vadd.f32 %v3750_v36, %v3749_v34  ;;  %v3814_v41 = vpop.f32.mrf.mxu1 }
 0x1a1   : > { %v3815_v43 = vadd.f32 %v3814_v41, %v3813_v35  ;;  %v3752_v44 = vpop.f32.mrf.mxu0 }
 0x1a2   : > { %v2608_v52 = vadd.f32 %v3751_v40, %v4903_v10  ;;  %v3816_v45 = vpop.f32.mrf.mxu1 }
 0x1a3   : > { %v3753_v47 = vpop.f32.mrf.mxu0 }
 0x1a4   : > { %v4952_v48 = vadd.f32 %v3815_v43, %v2608_v52  ;;  %v3754_v49 = vadd.f32 %v3753_v47, %v3752_v44  ;;  %v3817_v50 = vpop.f32.mrf.mxu1 }
 0x1a5   : > { %v3818_v51 = vadd.f32 %v3817_v50, %v3816_v45  ;;  %v3755_v53 = vpop.f32.mrf.mxu0 }
 0x1a6   : > { %v2611_v60 = vadd.f32 %v3754_v49, %v4905_v18  ;;  %v3819_v55 = vpop.f32.mrf.mxu1 }
 0x1a7   : > { %v3756_v56 = vpop.f32.mrf.mxu0 }
 0x1a8   : > { %v4955_v58 = vadd.f32 %v3818_v51, %v2611_v60  ;;  %v3757_v59 = vadd.f32 %v3756_v56, %v3755_v53  ;;  %v3820_v61 = vpop.f32.mrf.mxu1 }
 0x1a9   : > { %v3821_v62 = vadd.f32 %v3820_v61, %v3819_v55  ;;  %v3758_v0 = vpop.f32.mrf.mxu0 }
 0x1aa   : > { %v2616_v10 = vadd.f32 %v3757_v59, %v4911_v33  ;;  %v3822_v1 = vpop.f32.mrf.mxu1 }
 0x1ab   : > { %v3759_v3 = vpop.f32.mrf.mxu0 }
 0x1ac   : > { %v4958_v4 = vadd.f32 %v3821_v62, %v2616_v10  ;;  %v3760_v5 = vadd.f32 %v3759_v3, %v3758_v0  ;;  %v3823_v6 = vpop.f32.mrf.mxu1 }
 0x1ad   : > { %v3824_v7 = vadd.f32 %v3823_v6, %v3822_v1  ;;  %v3761_v8 = vpop.f32.mrf.mxu0 }
 0x1ae   : > { %v2619_v18 = vadd.f32 %v3760_v5, %v4913_v42  ;;  %v3825_v11 = vpop.f32.mrf.mxu1 }
 0x1af   : > { %v3762_v12 = vpop.f32.mrf.mxu0 }
 0x1b0   : > { %v4961_v13 = vadd.f32 %v3824_v7, %v2619_v18  ;;  %v3763_v14 = vadd.f32 %v3762_v12, %v3761_v8  ;;  %v3826_v15 = vpop.f32.mrf.mxu1 }
 0x1b1   : > { %v3827_v16 = vadd.f32 %v3826_v15, %v3825_v11  ;;  %v3764_v19 = vpop.f32.mrf.mxu0 }
 0x1b2   : > { %v2624_v33 = vadd.f32 %v3763_v14, %v4919_v57  ;;  %v3828_v21 = vpop.f32.mrf.mxu1 }
 0x1b3   : > { %v3765_v22 = vpop.f32.mrf.mxu0 }
 0x1b4   : > { %v4964_v23 = vadd.f32 %v3827_v16, %v2624_v33  ;;  %v3766_v24 = vadd.f32 %v3765_v22, %v3764_v19  ;;  %v3829_v30 = vpop.f32.mrf.mxu1 }
 0x1b5   : > { %v3830_v25 = vadd.f32 %v3829_v30, %v3828_v21  ;;  %v3767_v27 = vpop.f32.mrf.mxu0 }
 0x1b6   : > { %v2627_v42 = vadd.f32 %v3766_v24, %v4921_v2  ;;  %v3831_v29 = vpop.f32.mrf.mxu1 }
 0x1b7   : > { %v3768_v31 = vpop.f32.mrf.mxu0 }
 0x1b8   : > { %v4967_v32 = vadd.f32 %v3830_v25, %v2627_v42  ;;  %v3769_v34 = vadd.f32 %v3768_v31, %v3767_v27  ;;  %v3832_v38 = vpop.f32.mrf.mxu1 }
 0x1b9   : > { %v3833_v35 = vadd.f32 %v3832_v38, %v3831_v29  ;;  %v3770_v36 = vpop.f32.mrf.mxu0 }
 0x1ba   : > { %v2632_v57 = vadd.f32 %v3769_v34, %v4927_v17  ;;  %v3834_v40 = vpop.f32.mrf.mxu1 }
 0x1bb   : > { %v3771_v41 = vpop.f32.mrf.mxu0 }
 0x1bc   : > { %v4970_v43 = vadd.f32 %v3833_v35, %v2632_v57  ;;  %v3772_v44 = vadd.f32 %v3771_v41, %v3770_v36  ;;  %v3835_v52 = vpop.f32.mrf.mxu1 }
 0x1bd   : > { %v3836_v45 = vadd.f32 %v3835_v52, %v3834_v40  ;;  %v3773_v47 = vpop.f32.mrf.mxu0 }
 0x1be   : > { %5251 = vst [vmem:[#allocation4_spill] sm:$0xff] %v4970_v43  ;;  %v2635_v2 = vadd.f32 %v3772_v44, %v4929_v26  ;;  %v3837_v49 = vpop.f32.mrf.mxu1 }
 0x1bf   : > { %v3774_v50 = vpop.f32.mrf.mxu0 }
 0x1c0   : > { %v4973_v51 = vadd.f32 %v3836_v45, %v2635_v2  ;;  %v3775_v53 = vadd.f32 %v3774_v50, %v3773_v47  ;;  %v3838_v60 = vpop.f32.mrf.mxu1 }
 0x1c1   : > { %v3839_v55 = vadd.f32 %v3838_v60, %v3837_v49  ;;  %v3776_v56 = vpop.f32.mrf.mxu0 }
 0x1c2   : > { %5252 = vst [vmem:[#allocation5_spill] sm:$0xff] %v4973_v51  ;;  %v2640_v17 = vadd.f32 %v3775_v53, %v4931_v37  ;;  %v3840_v59 = vpop.f32.mrf.mxu1 }
 0x1c3   : > { %v3777_v61 = vpop.f32.mrf.mxu0 }
 0x1c4   : > { %v4976_v62 = vadd.f32 %v3839_v55, %v2640_v17  ;;  %v3778_v0 = vadd.f32 %v3777_v61, %v3776_v56  ;;  %v3841_v10 = vpop.f32.mrf.mxu1 }
 0x1c5   : > { %v3842_v1 = vadd.f32 %v3841_v10, %v3840_v59  ;;  %v3779_v3 = vpop.f32.mrf.mxu0 }
 0x1c6   : > { %5253 = vst [vmem:[#allocation6_spill] sm:$0xff] %v4976_v62  ;;  %v2643_v26 = vadd.f32 %v3778_v0, %v4933_v46  ;;  %v3843_v5 = vpop.f32.mrf.mxu1 }
 0x1c7   : > { %v3780_v6 = vpop.f32.mrf.mxu0 }
 0x1c8   : > { %v4979_v7 = vadd.f32 %v3842_v1, %v2643_v26  ;;  %v3781_v8 = vadd.f32 %v3780_v6, %v3779_v3  ;;  %v3844_v18 = vpop.f32.mrf.mxu1 }
 0x1c9   : > { %v3845_v11 = vadd.f32 %v3844_v18, %v3843_v5  ;;  %v3782_v12 = vpop.f32.mrf.mxu0 }
 0x1ca   : > { %5254 = vst [vmem:[#allocation7_spill] sm:$0xff] %v4979_v7  ;;  %v2648_v37 = vadd.f32 %v3781_v8, %v4935_v54  ;;  %v3846_v14 = vpop.f32.mrf.mxu1 }
 0x1cb   : > { %v3783_v15 = vpop.f32.mrf.mxu0 }
 0x1cc   : > { %v4982_v16 = vadd.f32 %v3845_v11, %v2648_v37  ;;  %v3784_v19 = vadd.f32 %v3783_v15, %v3782_v12  ;;  %v3847_v33 = vpop.f32.mrf.mxu1 }
 0x1cd   : > { %v3848_v21 = vadd.f32 %v3847_v33, %v3846_v14  ;;  %v3865_v22 = vpop.f32.mrf.mxu0 }
 0x1ce   : > { %5255 = vst [vmem:[#allocation8_spill] sm:$0xff] %v4982_v16  ;;  %v2651_v46 = vadd.f32 %v3784_v19, %v4937_v63  ;;  %v4985_v24 = vpop.f32.mrf.mxu1 }
 0x1cf   : > { %v3866_v30 = vpop.f32.mrf.mxu0 }
 0x1d0   : > { %v4987_v25 = vadd.f32 %v3848_v21, %v2651_v46  ;;  %v4989_v27 = vpop.f32.mrf.mxu1 }
 0x1d1   : > { %v3868_v42 = vpop.f32.mrf.mxu0 }
 0x1d2   : > { %5256 = vst [vmem:[#allocation9_spill] sm:$0xff] %v4987_v25  ;;  %v4991_v29 = vpop.f32.mrf.mxu1 }
 0x1d3   : > { %v3869_v54 = vpop.f32.mrf.mxu0 }
 0x1d4   : > { %v4993_v31 = vpop.f32.mrf.mxu1 }
 0x1d5   : > { %v4995_v34 = vpop.f32.mrf.mxu0 }
 0x1d6   : > { %v4997_v38 = vpop.f32.mrf.mxu1 }
 0x1d7   : > { %v4999_v35 = vpop.f32.mrf.mxu0 }
 0x1d8   : > { %v5001_v63 = vpop.f32.mrf.mxu1 }
 0x1d9   : > { %v5003_v36 = vpop.f32.mrf.mxu0 }
 0x1da   : > { %v5005_v57 = vpop.f32.mrf.mxu1 }
 0x1db   : > { %v5007_v40 = vpop.f32.mrf.mxu0 }
 0x1dc   : > { %v5009_v41 = vpop.f32.mrf.mxu1 }
 0x1dd   : > { %v5011_v44 = vpop.f32.mrf.mxu0 }
 0x1de   : > { %v5013_v52 = vpop.f32.mrf.mxu1 }
 0x1df   : > { %v5015_v45 = vpop.f32.mrf.mxu0 }
 0x1e0   : > { %v5017_v47 = vpop.f32.mrf.mxu1 }
 0x1e1   : > { %v5019_v2 = vpop.f32.mrf.mxu0 }
 0x1e2   : > { %v5021_v49 = vpop.f32.mrf.mxu1 }
 0x1e3   : > { %v5023_v50 = vpop.f32.mrf.mxu0 }
 0x1e4   : > { %v5025_v53 = vpop.f32.mrf.mxu1 }
 0x1e5   : > { %v5027_v60 = vpop.f32.mrf.mxu0 }
 0x1e6   : > { %v5029_v55 = vpop.f32.mrf.mxu1 }
 0x1e7   : > { %v5031_v56 = vpop.f32.mrf.mxu0 }
 0x1e8   : > { %v5033_v17 = vpop.f32.mrf.mxu1 }
 0x1e9   : > { %v5035_v59 = vpop.f32.mrf.mxu0 }
 0x1ea   : > { %v5037_v61 = vpop.f32.mrf.mxu1 }
 0x1eb   : > { %v5039_v0 = vpop.f32.mrf.mxu0 }
 0x1ec   : > { %v5041_v10 = vpop.f32.mrf.mxu1 }
 0x1ed   : > { %v5043_v1 = vpop.f32.mrf.mxu0 }
 0x1ee   : > { %v5045_v3 = vpop.f32.mrf.mxu1 }
 0x1ef   : > { %v5047_v26 = vpop.f32.mrf.mxu0 }
 0x1f0   : > { %v5049_v5 = vpop.f32.mrf.mxu1 }
 0x1f1   : > { %v5051_v6 = vpop.f32.mrf.mxu0 }
 0x1f2   : > { %v5053_v8 = vpop.f32.mrf.mxu1 }
 0x1f3   : > { %v5055_v18 = vpop.f32.mrf.mxu0 }
 0x1f4   : > { %v5057_v11 = vpop.f32.mrf.mxu1 }
 0x1f5   : > { %5257 = vst [vmem:[#allocation10_spill] sm:$0xff] %v5057_v11  ;;  %v5059_v12 = vpop.f32.mrf.mxu0  ;;  %v555_v11 = vld [vmem:[#allocation2 + $0x30] sm:$0xff] }
 0x1f6   : > { %v5061_v37 = vpop.f32.mrf.mxu1 }
 0x1f7   : > { %5258 = vst [vmem:[#allocation11_spill] sm:$0xff] %v5061_v37  ;;  %v5063_v14 = vpop.f32.mrf.mxu0 }
 0x1f8   : > { %v5065_v15 = vpop.f32.mrf.mxu1 }
 0x1f9   : > { %5259 = vst [vmem:[#allocation12_spill] sm:$0xff] %v5065_v15  ;;  %v5067_v19 = vpop.f32.mrf.mxu0 }
 0x1fa   : > { %5260 = vst [vmem:[#allocation13_spill] sm:$0xff] %v5067_v19  ;;  %v5069_v33 = vpop.f32.mrf.mxu1 }
 0x1fb   : > { %5261 = vst [vmem:[#allocation14_spill] sm:$0xff] %v5069_v33  ;;  %v5071_v21 = vpop.f32.mrf.mxu0 }
 0x1fc   : > { %5262 = vst [vmem:[#allocation15_spill] sm:$0xff] %v5071_v21  ;;  %v5073_v46 = vpop.f32.mrf.mxu1 }
 0x1fd   : > { %5263 = vst [vmem:[#allocation16_spill] sm:$0xff] %v5073_v46  ;;  %v5075_v25 = vpop.f32.mrf.mxu0 }
 0x1fe   : > { %5264 = vst [vmem:[#allocation17_spill] sm:$0xff] %v5075_v25  ;;  %v5077_v16 = vpop.f32.mrf.mxu1  ;;  %v3867_v25 = vadd.f32 %v3866_v30, %v3865_v22 }
 0x1ff   : > { %5265 = vst [vmem:[#allocation18_spill] sm:$0xff] %v5077_v16  ;;  %v5079_v7 = vpop.f32.mrf.mxu0 }
 0x200   : > { %5266 = vst [vmem:[#allocation19_spill] sm:$0xff] %v5079_v7  ;;  %v5081_v62 = vpop.f32.mrf.mxu1 }
 0x201   : > { %5267 = vst [vmem:[#allocation20_spill] sm:$0xff] %v5081_v62  ;;  %v5083_v51 = vpop.f32.mrf.mxu0 }
 0x202   : > { %5268 = vst [vmem:[#allocation21_spill] sm:$0xff] %v5083_v51  ;;  %v5085_v37 = vpop.f32.mrf.mxu1  ;;  %v3870_v51 = vadd.f32 %v3869_v54, %v3868_v42  ;;  %v3934_v54 = vadd.f32 %v4993_v31, %v4991_v29 }
 0x203   : > { %5269 = vst [vmem:[#allocation22_spill] sm:$0xff] %v5085_v37  ;;  %v5087_v15 = vpop.f32.mrf.mxu0  ;;  %v2786_v37 = vadd.f32 %v3867_v25, %v4940_v9 }
 0x204   : > { %5270 = vst [vmem:[#allocation23_spill] sm:$0xff] %v5087_v15  ;;  %v5089_v19 = vpop.f32.mrf.mxu1  ;;  %v2789_v22 = vadd.f32 %v3870_v51, %v4943_v20  ;;  %v3876_v20 = vadd.f32 %v5007_v40, %v5003_v36 }
 0x205   : > { %5271 = vst [vmem:[#allocation24_spill] sm:$0xff] %v5089_v19  ;;  %v5091_v33 = vpop.f32.mrf.mxu0 }
 0x206   : > { %5272 = vst [vmem:[#allocation25_spill] sm:$0xff] %v5091_v33  ;;  %v5093_v21 = vpop.f32.mrf.mxu1 }
 0x207   : > { %5273 = vst [vmem:[#allocation26_spill] sm:$0xff] %v5093_v21  ;;  %v5095_v46 = vpop.f32.mrf.mxu0  ;;  %v3931_v21 = vadd.f32 %v4989_v27, %v4985_v24 }
 0x208   : > { %5274 = vst [vmem:[#allocation27_spill] sm:$0xff] %v5095_v46  ;;  %v5097_v16 = vpop.f32.mrf.mxu1  ;;  %v2886_v46 = vadd.f32 %v3934_v54, %v2789_v22 }
 0x209   : > { %5275 = vst [vmem:[#allocation28_spill] sm:$0xff] %v5097_v16  ;;  %v5099_v7 = vpop.f32.mrf.mxu0  ;;  %v2883_v16 = vadd.f32 %v3931_v21, %v2786_v37  ;;  %v556_v21 = vld [vmem:[#allocation2] sm:$0xff] }
 0x20a   : > { %5276 = vst [vmem:[#allocation29_spill] sm:$0xff] %v5099_v7  ;;  %v5101_v62 = vpop.f32.mrf.mxu1  ;;  %v3873_v7 = vadd.f32 %v4999_v35, %v4995_v34 }
 0x20b   : > { %5277 = vst [vmem:[#allocation30_spill] sm:$0xff] %v5101_v62  ;;  %v5103_v43 = vpop.f32.mrf.mxu0 }
 0x20c   : > { %5278 = vst [vmem:[#allocation31_spill] sm:$0xff] %v5103_v43  ;;  %v5106_v15 = vpop.f32.mrf.mxu1  ;;  %v2794_v27 = vadd.f32 %v3873_v7, %v4946_v28  ;;  %v2797_v7 = vadd.f32 %v3876_v20, %v4949_v39  ;;  %v3882_v39 = vadd.f32 %v5023_v50, %v5019_v2  ;;  %v3885_v2 = vadd.f32 %v5031_v56, %v5027_v60 }
 0x20d   : > { %5279 = vst [vmem:[#allocation32_spill] sm:$0xff] %v5106_v15  ;;  %v3993_v19 = vpop.f32.mrf.mxu0 }
 0x20e   : > { %v4057_v33 = vpop.f32.mrf.mxu1  ;;  %v2810_v60 = vadd.f32 %v3885_v2, %v4958_v4  ;;  %v3891_v4 = vadd.f32 %v5047_v26, %v5043_v1  ;;  %v3894_v1 = vadd.f32 %v5055_v18, %v5051_v6 }
 0x20f   : > { %v3994_v30 = vpop.f32.mrf.mxu0 }
 0x210   : > { %v3995_v62 = vadd.f32 %v3994_v30, %v3993_v19  ;;  %v4058_v42 = vpop.f32.mrf.mxu1  ;;  %v3937_v19 = vadd.f32 %v5001_v63, %v4997_v38  ;;  %v3940_v38 = vadd.f32 %v5009_v41, %v5005_v57  ;;  %v2821_v6 = vadd.f32 %v3894_v1, %v4967_v32  ;;  %v5292_v1 = vld [vmem:[#allocation23_spill] sm:$0xff] }
 0x211   : > { %v3996_v9 = vpop.f32.mrf.mxu0  ;;  %v4059_v15 = vadd.f32 %v4058_v42, %v4057_v33  ;;  %v3879_v33 = vadd.f32 %v5015_v45, %v5011_v44  ;;  %v557_v44 = vld [vmem:[#allocation2 + $0x58] sm:$0xff] }
 0x212   : > { %v2980_v25 = vadd.f32 %v3995_v62, %v2883_v16  ;;  %v4060_v43 = vpop.f32.mrf.mxu1  ;;  %v2891_v28 = vadd.f32 %v3937_v19, %v2794_v27  ;;  %v2894_v54 = vadd.f32 %v3940_v38, %v2797_v7  ;;  %v3943_v27 = vadd.f32 %v5017_v47, %v5013_v52 }
 0x213   : > { %v3997_v24 = vpop.f32.mrf.mxu0  ;;  %v2802_v42 = vadd.f32 %v3879_v33, %v4952_v48  ;;  %v558_v48 = vld [vmem:[#allocation2 + $0x18] sm:$0xff]  ;;  %v2805_v19 = vadd.f32 %v3882_v39, %v4955_v58  ;;  %v3946_v52 = vadd.f32 %v5025_v53, %v5021_v49  ;;  %v3949_v49 = vadd.f32 %v5033_v17, %v5029_v55 }
 0x214   : > { %v3077_v51 = vadd.f32 %v4059_v15, %v2980_v25  ;;  %v3998_v37 = vadd.f32 %v3997_v24, %v3996_v9  ;;  %v4061_v34 = vpop.f32.mrf.mxu1 }
 0x215   : > { %v3999_v35 = vpop.f32.mrf.mxu0  ;;  %v4062_v62 = vadd.f32 %v4061_v34, %v4060_v43  ;;  %v2899_v34 = vadd.f32 %v3943_v27, %v2802_v42  ;;  %v2902_v7 = vadd.f32 %v3946_v52, %v2805_v19  ;;  %v2818_v27 = vadd.f32 %v3891_v4, %v4964_v23  ;;  %v5288_v4 = vld [vmem:[#allocation19_spill] sm:$0xff] }
 0x216   : > { %v3139_v29 = vadd.f32 %v3077_v51, %v555_v11  ;;  %v2983_v31 = vadd.f32 %v3998_v37, %v2886_v46  ;;  %v4063_v16 = vpop.f32.mrf.mxu1 }
 0x217   : > { %v4000_v22 = vpop.f32.mrf.mxu0 }
 0x218   : > { %3155 = vst [vmem:[#allocation2 + $0x30] sm:$0xff] %v3139_v29  ;;  %v3080_v36 = vadd.f32 %v4062_v62, %v2983_v31  ;;  %v4001_v40 = vadd.f32 %v4000_v22, %v3999_v35  ;;  %v4064_v15 = vpop.f32.mrf.mxu1  ;;  %v3888_v22 = vadd.f32 %v5039_v0, %v5035_v59  ;;  %v560_v59 = vld [vmem:[#allocation2 + $0x68] sm:$0xff] }
 0x219   : > { %v4002_v30 = vpop.f32.mrf.mxu0  ;;  %v4065_v43 = vadd.f32 %v4064_v15, %v4063_v16 }
 0x21a   : > { %v3140_v63 = vadd.f32 %v3080_v36, %v556_v21  ;;  %v2988_v11 = vadd.f32 %v4001_v40, %v2891_v28  ;;  %v4066_v46 = vpop.f32.mrf.mxu1  ;;  %v559_v28 = vld [vmem:[#allocation2 + $0x50] sm:$0xff] }
 0x21b   : > { %v4003_v45 = vpop.f32.mrf.mxu0 }
 0x21c   : > { %3156 = vst [vmem:[#allocation2] sm:$0xff] %v3140_v63  ;;  %v3085_v9 = vadd.f32 %v4065_v43, %v2988_v11  ;;  %v4004_v25 = vadd.f32 %v4003_v45, %v4002_v30  ;;  %v4067_v24 = vpop.f32.mrf.mxu1  ;;  %v2813_v11 = vadd.f32 %v3888_v22, %v4961_v13  ;;  %v2907_v43 = vadd.f32 %v3949_v49, %v2810_v60  ;;  %v561_v13 = vld [vmem:[#allocation2 + $0x8] sm:$0xff] }
 0x21d   : > { %v4005_v57 = vpop.f32.mrf.mxu0  ;;  %v4068_v51 = vadd.f32 %v4067_v24, %v4066_v46  ;;  %v3952_v45 = vadd.f32 %v5041_v10, %v5037_v61  ;;  %v3955_v61 = vadd.f32 %v5049_v5, %v5045_v3  ;;  %v5282_v22 = vld [vmem:[#allocation13_spill] sm:$0xff] }
 0x21e   : > { %v3141_v41 = vadd.f32 %v3085_v9, %v557_v44  ;;  %v2991_v20 = vadd.f32 %v4004_v25, %v2894_v54  ;;  %v4069_v37 = vpop.f32.mrf.mxu1 }
 0x21f   : > { %v4006_v35 = vpop.f32.mrf.mxu0  ;;  %v2910_v25 = vadd.f32 %v3952_v45, %v2813_v11  ;;  %v2915_v19 = vadd.f32 %v3955_v61, %v2818_v27  ;;  %v5291_v27 = vld [vmem:[#allocation21_spill] sm:$0xff]  ;;  %v5293_v61 = vld [vmem:[#allocation6_spill] sm:$0xff] }
 0x220   : > { %3157 = vst [vmem:[#allocation2 + $0x58] sm:$0xff] %v3141_v41  ;;  %v3088_v50 = vadd.f32 %v4068_v51, %v2991_v20  ;;  %v4007_v29 = vadd.f32 %v4006_v35, %v4005_v57  ;;  %v4070_v31 = vpop.f32.mrf.mxu1  ;;  %v562_v35 = vld [vmem:[#allocation2 + $0x48] sm:$0xff] }
 0x221   : > { %v4008_v62 = vpop.f32.mrf.mxu0  ;;  %v4071_v33 = vadd.f32 %v4070_v31, %v4069_v37  ;;  %v5280_v31 = vld [vmem:[#allocation10_spill] sm:$0xff] }
 0x222   : > { %v3142_v47 = vadd.f32 %v3088_v50, %v558_v48  ;;  %v2996_v16 = vadd.f32 %v4007_v29, %v2899_v34  ;;  %v4072_v21 = vpop.f32.mrf.mxu1  ;;  %v3897_v48 = vadd.f32 %v5063_v14, %v5059_v12  ;;  %v3958_v3 = vadd.f32 %v5280_v31, %v5053_v8  ;;  %v563_v12 = vld [vmem:[#allocation2 + $0x40] sm:$0xff] }
 0x223   : > { %v4009_v58 = vpop.f32.mrf.mxu0 }
 0x224   : > { %3158 = vst [vmem:[#allocation2 + $0x18] sm:$0xff] %v3142_v47  ;;  %v3093_v56 = vadd.f32 %v4071_v33, %v2996_v16  ;;  %v4010_v36 = vadd.f32 %v4009_v58, %v4008_v62  ;;  %v4073_v40 = vpop.f32.mrf.mxu1  ;;  %v5281_v16 = vld [vmem:[#allocation4_spill] sm:$0xff] }
 0x225   : > { %v4011_v15 = vpop.f32.mrf.mxu0  ;;  %v4074_v38 = vadd.f32 %v4073_v40, %v4072_v21  ;;  %v2826_v33 = vadd.f32 %v3897_v48, %v5281_v16  ;;  %v2918_v21 = vadd.f32 %v3958_v3, %v2821_v6  ;;  %v566_v3 = vld [vmem:[#allocation2 + $0x38] sm:$0xff] }
 0x226   : > { %v3143_v53 = vadd.f32 %v3093_v56, %v559_v28  ;;  %v2999_v30 = vadd.f32 %v4010_v36, %v2902_v7  ;;  %v4075_v63 = vpop.f32.mrf.mxu1  ;;  %v5283_v28 = vld [vmem:[#allocation15_spill] sm:$0xff]  ;;  %v5285_v36 = vld [vmem:[#allocation12_spill] sm:$0xff] }
 0x227   : > { %v4012_v0 = vpop.f32.mrf.mxu0  ;;  %v3900_v32 = vadd.f32 %v5283_v28, %v5282_v22  ;;  %v5284_v56 = vld [vmem:[#allocation11_spill] sm:$0xff]  ;;  %v5300_v22 = vld [vmem:[#allocation24_spill] sm:$0xff] }
 0x228   : > { %3159 = vst [vmem:[#allocation2 + $0x50] sm:$0xff] %v3143_v53  ;;  %v3096_v46 = vadd.f32 %v4074_v38, %v2999_v30  ;;  %v4013_v42 = vadd.f32 %v4012_v0, %v4011_v15  ;;  %v4076_v44 = vpop.f32.mrf.mxu1  ;;  %v3961_v40 = vadd.f32 %v5285_v36, %v5284_v56 }
 0x229   : > { %v4014_v55 = vpop.f32.mrf.mxu0  ;;  %v4077_v39 = vadd.f32 %v4076_v44, %v4075_v63  ;;  %v564_v63 = vld [vmem:[#allocation2 + $0x20] sm:$0xff] }
 0x22a   : > { %v3144_v17 = vadd.f32 %v3096_v46, %v560_v59  ;;  %v3004_v54 = vadd.f32 %v4013_v42, %v2907_v43  ;;  %v4078_v9 = vpop.f32.mrf.mxu1  ;;  %v2923_v38 = vadd.f32 %v3961_v40, %v2826_v33  ;;  %v5286_v59 = vld [vmem:[#allocation5_spill] sm:$0xff]  ;;  %v567_v40 = vld [vmem:[#allocation2 + $0x60] sm:$0xff] }
 0x22b   : > { %v4015_v24 = vpop.f32.mrf.mxu0  ;;  %v2829_v0 = vadd.f32 %v3900_v32, %v5286_v59  ;;  %v5287_v43 = vld [vmem:[#allocation17_spill] sm:$0xff] }
 0x22c   : > { %3160 = vst [vmem:[#allocation2 + $0x68] sm:$0xff] %v3144_v17  ;;  %v3101_v26 = vadd.f32 %v4077_v39, %v3004_v54  ;;  %v4016_v57 = vadd.f32 %v4015_v24, %v4014_v55  ;;  %v4079_v41 = vpop.f32.mrf.mxu1  ;;  %v3903_v46 = vadd.f32 %v5288_v4, %v5287_v43  ;;  %v5289_v17 = vld [vmem:[#allocation14_spill] sm:$0xff]  ;;  %v5290_v54 = vld [vmem:[#allocation16_spill] sm:$0xff] }
 0x22d   : > { %v4017_v20 = vpop.f32.mrf.mxu0  ;;  %v4080_v37 = vadd.f32 %v4079_v41, %v4078_v9  ;;  %v3964_v39 = vadd.f32 %v5290_v54, %v5289_v17  ;;  %v5304_v43 = vld [vmem:[#allocation26_spill] sm:$0xff]  ;;  %v5305_v4 = vld [vmem:[#allocation28_spill] sm:$0xff] }
 0x22e   : > { %v3145_v10 = vadd.f32 %v3101_v26, %v561_v13  ;;  %v3007_v51 = vadd.f32 %v4016_v57, %v2910_v25  ;;  %v4081_v34 = vpop.f32.mrf.mxu1  ;;  %v3906_v26 = vadd.f32 %v5292_v1, %v5291_v27  ;;  %v565_v57 = vld [vmem:[#allocation2 + $0x10] sm:$0xff] }
 0x22f   : > { %v4018_v23 = vpop.f32.mrf.mxu0  ;;  %v568_v17 = vld [vmem:[#allocation2 + $0x70] sm:$0xff] }
 0x230   : > { %3161 = vst [vmem:[#allocation2 + $0x8] sm:$0xff] %v3145_v10  ;;  %v3104_v18 = vadd.f32 %v4080_v37, %v3007_v51  ;;  %v4019_v2 = vadd.f32 %v4018_v23, %v4017_v20  ;;  %v4082_v50 = vpop.f32.mrf.mxu1  ;;  %v2926_v20 = vadd.f32 %v3964_v39, %v2829_v0  ;;  %v2834_v10 = vadd.f32 %v3903_v46, %v5293_v61  ;;  %v5295_v23 = vld [vmem:[#allocation20_spill] sm:$0xff] }
 0x231   : > { %v4020_v29 = vpop.f32.mrf.mxu0  ;;  %v4083_v52 = vadd.f32 %v4082_v50, %v4081_v34  ;;  %v3973_v46 = vadd.f32 %v5305_v4, %v5304_v43 }
 0x232   : > { %v3146_v5 = vadd.f32 %v3104_v18, %v562_v35  ;;  %v3012_v62 = vadd.f32 %v4019_v2, %v2915_v19  ;;  %v4084_v47 = vpop.f32.mrf.mxu1  ;;  %v5294_v35 = vld [vmem:[#allocation18_spill] sm:$0xff] }
 0x233   : > { %v4021_v14 = vpop.f32.mrf.mxu0  ;;  %v3967_v19 = vadd.f32 %v5295_v23, %v5294_v35 }
 0x234   : > { %3162 = vst [vmem:[#allocation2 + $0x48] sm:$0xff] %v3146_v5  ;;  %v3109_v58 = vadd.f32 %v4083_v52, %v3012_v62  ;;  %v4022_v7 = vadd.f32 %v4021_v14, %v4020_v29  ;;  %v4085_v60 = vpop.f32.mrf.mxu1  ;;  %v5296_v29 = vld [vmem:[#allocation7_spill] sm:$0xff]  ;;  %v5297_v52 = vld [vmem:[#allocation25_spill] sm:$0xff] }
 0x235   : > { %v4023_v8 = vpop.f32.mrf.mxu0  ;;  %v4086_v53 = vadd.f32 %v4085_v60, %v4084_v47  ;;  %v2837_v31 = vadd.f32 %v3906_v26, %v5296_v29  ;;  %v2931_v62 = vadd.f32 %v3967_v19, %v2834_v10  ;;  %v5298_v47 = vld [vmem:[#allocation27_spill] sm:$0xff]  ;;  %v5307_v26 = vld [vmem:[#allocation30_spill] sm:$0xff] }
 0x236   : > { %v3147_v15 = vadd.f32 %v3109_v58, %v563_v12  ;;  %v3015_v49 = vadd.f32 %v4022_v7, %v2918_v21  ;;  %v4087_v30 = vpop.f32.mrf.mxu1  ;;  %v3909_v16 = vadd.f32 %v5298_v47, %v5297_v52  ;;  %v5299_v21 = vld [vmem:[#allocation22_spill] sm:$0xff] }
 0x237   : > { %v4024_v11 = vpop.f32.mrf.mxu0  ;;  %v3970_v28 = vadd.f32 %v5300_v22, %v5299_v21 }
 0x238   : > { %3163 = vst [vmem:[#allocation2 + $0x40] sm:$0xff] %v3147_v15  ;;  %v3112_v42 = vadd.f32 %v4086_v53, %v3015_v49  ;;  %v4025_v44 = vadd.f32 %v4024_v11, %v4023_v8  ;;  %v4088_v45 = vpop.f32.mrf.mxu1  ;;  %v5301_v15 = vld [vmem:[#allocation8_spill] sm:$0xff]  ;;  %v5302_v53 = vld [vmem:[#allocation29_spill] sm:$0xff] }
 0x239   : > { %v4026_v55 = vpop.f32.mrf.mxu0  ;;  %v4089_v13 = vadd.f32 %v4088_v45, %v4087_v30  ;;  %v2934_v36 = vadd.f32 %v3970_v28, %v2837_v31  ;;  %v2842_v49 = vadd.f32 %v3909_v16, %v5301_v15  ;;  %v5303_v30 = vld [vmem:[#allocation31_spill] sm:$0xff] }
 0x23a   : > { %v3148_v9 = vadd.f32 %v3112_v42, %v564_v63  ;;  %v3020_v25 = vadd.f32 %v4025_v44, %v2923_v38  ;;  %v4090_v24 = vpop.f32.mrf.mxu1  ;;  %v3912_v38 = vadd.f32 %v5303_v30, %v5302_v53 }
 0x23b   : > { %v4027_v41 = vpop.f32.mrf.mxu0  ;;  %v2939_v39 = vadd.f32 %v3973_v46, %v2842_v49 }
 0x23c   : > { %3164 = vst [vmem:[#allocation2 + $0x20] sm:$0xff] %v3148_v9  ;;  %v3117_v51 = vadd.f32 %v4089_v13, %v3020_v25  ;;  %v4028_v37 = vadd.f32 %v4027_v41, %v4026_v55  ;;  %v4091_v34 = vpop.f32.mrf.mxu1  ;;  %v5306_v9 = vld [vmem:[#allocation9_spill] sm:$0xff] }
 0x23d   : > { %v4029_v48 = vpop.f32.mrf.mxu0  ;;  %v4092_v2 = vadd.f32 %v4091_v34, %v4090_v24  ;;  %v2845_v25 = vadd.f32 %v3912_v38, %v5306_v9 }
 0x23e   : > { %v3149_v6 = vadd.f32 %v3117_v51, %v565_v57  ;;  %v3023_v18 = vadd.f32 %v4028_v37, %v2926_v20  ;;  %v4093_v50 = vpop.f32.mrf.mxu1  ;;  %v5308_v57 = vld [vmem:[#allocation32_spill] sm:$0xff]  ;;  %v569_v37 = vld [vmem:[#allocation2 + $0x78] sm:$0xff] }
 0x23f   : > { %v4030_v5 = vpop.f32.mrf.mxu0  ;;  %v3976_v41 = vadd.f32 %v5308_v57, %v5307_v26 }
 0x240   : > { %3165 = vst [vmem:[#allocation2 + $0x10] sm:$0xff] %v3149_v6  ;;  %v3120_v33 = vadd.f32 %v4092_v2, %v3023_v18  ;;  %v4031_v12 = vadd.f32 %v4030_v5, %v4029_v48  ;;  %v4094_v14 = vpop.f32.mrf.mxu1 }
 0x241   : > { %v4032_v32 = vpop.f32.mrf.mxu0  ;;  %v4095_v60 = vadd.f32 %v4094_v14, %v4093_v50  ;;  %v2942_v48 = vadd.f32 %v3976_v41, %v2845_v25  ;;  %v570_v50 = vld [vmem:[#allocation2 + $0x28] sm:$0xff] }
 0x242   : > { %v3150_v58 = vadd.f32 %v3120_v33, %v566_v3  ;;  %v3028_v7 = vadd.f32 %v4031_v12, %v2931_v62  ;;  %v4096_v56 = vpop.f32.mrf.mxu1 }
 0x243   : > { %v4033_v8 = vpop.f32.mrf.mxu0 }
 0x244   : > { %3166 = vst [vmem:[#allocation2 + $0x38] sm:$0xff] %v3150_v58  ;;  %v3125_v63 = vadd.f32 %v4095_v60, %v3028_v7  ;;  %v4034_v11 = vadd.f32 %v4033_v8, %v4032_v32  ;;  %v4097_v59 = vpop.f32.mrf.mxu1 }
 0x245   : > { %v4035_v0 = vpop.f32.mrf.mxu0  ;;  %v4098_v45 = vadd.f32 %v4097_v59, %v4096_v56 }
 0x246   : > { %v3151_v42 = vadd.f32 %v3125_v63, %v567_v40  ;;  %v3031_v44 = vadd.f32 %v4034_v11, %v2934_v36  ;;  %v4099_v55 = vpop.f32.mrf.mxu1 }
 0x247   : > { %v4036_v54 = vpop.f32.mrf.mxu0 }
 0x248   : > { %3167 = vst [vmem:[#allocation2 + $0x60] sm:$0xff] %v3151_v42  ;;  %v3128_v13 = vadd.f32 %v4098_v45, %v3031_v44  ;;  %v4037_v24 = vadd.f32 %v4036_v54, %v4035_v0  ;;  %v4100_v27 = vpop.f32.mrf.mxu1 }
 0x249   : > { %v4038_v1 = vpop.f32.mrf.mxu0  ;;  %v4101_v10 = vadd.f32 %v4100_v27, %v4099_v55 }
 0x24a   : > { %v3152_v20 = vadd.f32 %v3128_v13, %v568_v17  ;;  %v3036_v61 = vadd.f32 %v4037_v24, %v2939_v39  ;;  %v4102_v51 = vpop.f32.mrf.mxu1 }
 0x24b   : > { %v4039_v34 = vpop.f32.mrf.mxu0 }
 0x24c   : > { %3168 = vst [vmem:[#allocation2 + $0x70] sm:$0xff] %v3152_v20  ;;  %v3133_v35 = vadd.f32 %v4101_v10, %v3036_v61  ;;  %v4040_v23 = vadd.f32 %v4039_v34, %v4038_v1  ;;  %v4103_v19 = vpop.f32.mrf.mxu1 }
 0x24d   : > { %v4104_v2 = vadd.f32 %v4103_v19, %v4102_v51 }
 0x24e   : > { %v3153_v6 = vadd.f32 %v3133_v35, %v569_v37  ;;  %v3039_v18 = vadd.f32 %v4040_v23, %v2942_v48 }
 0x250   : > { %3169 = vst [vmem:[#allocation2 + $0x78] sm:$0xff] %v3153_v6  ;;  %v3136_v29 = vadd.f32 %v4104_v2, %v3039_v18  ;;  %3174 = sbr.rel (%p3587_p11) target bundleno = 606 (0x25e), region = 63 }
 0x252   : > { %v3154_v31 = vadd.f32 %v3136_v29, %v570_v50 }
 0x254   : > { %3170 = vst [vmem:[#allocation2 + $0x28] sm:$0xff] %v3154_v31 }
 0x255   : > { %v3175_v3 = vld [vmem:[#allocation2 + $0x30] sm:$0xff]  ;;  %v3176_v5 = vld [vmem:[#allocation2] sm:$0xff]  ;;  %v3177_v62 = vld [vmem:[#allocation2 + $0x58] sm:$0xff] }
 0x256   : > { %3191 = vst [vmem:[%s5250_s3] sm:$0xff] %v3175_v3  ;;  %3192 = vst [vmem:[%s5250_s3 + $0x8] sm:$0xff] %v3176_v5  ;;  %v3178_v52 = vld [vmem:[#allocation2 + $0x18] sm:$0xff]  ;;  %v3179_v47 = vld [vmem:[#allocation2 + $0x50] sm:$0xff] }
 0x257   : > { %3193 = vst [vmem:[%s5250_s3 + $0x10] sm:$0xff] %v3177_v62  ;;  %v3180_v16 = vld [vmem:[#allocation2 + $0x68] sm:$0xff]  ;;  %3194 = vst [vmem:[%s5250_s3 + $0x18] sm:$0xff] %v3178_v52  ;;  %v3183_v14 = vld [vmem:[#allocation2 + $0x40] sm:$0xff] }
 0x258   : > { %3195 = vst [vmem:[%s5250_s3 + $0x20] sm:$0xff] %v3179_v47  ;;  %3196 = vst [vmem:[%s5250_s3 + $0x28] sm:$0xff] %v3180_v16  ;;  %v3181_v33 = vld [vmem:[#allocation2 + $0x8] sm:$0xff]  ;;  %v3184_v21 = vld [vmem:[#allocation2 + $0x20] sm:$0xff] }
 0x259   : > { %v3182_v12 = vld [vmem:[#allocation2 + $0x48] sm:$0xff]  ;;  %3197 = vst [vmem:[%s5250_s3 + $0x30] sm:$0xff] %v3181_v33  ;;  %3199 = vst [vmem:[%s5250_s3 + $0x40] sm:$0xff] %v3183_v14  ;;  %v3185_v22 = vld [vmem:[#allocation2 + $0x10] sm:$0xff] }
 0x25a   : > { %3198 = vst [vmem:[%s5250_s3 + $0x38] sm:$0xff] %v3182_v12  ;;  %v3186_v28 = vld [vmem:[#allocation2 + $0x38] sm:$0xff]  ;;  %3200 = vst [vmem:[%s5250_s3 + $0x48] sm:$0xff] %v3184_v21  ;;  %v3187_v32 = vld [vmem:[#allocation2 + $0x60] sm:$0xff] }
 0x25b   : > { %3201 = vst [vmem:[%s5250_s3 + $0x50] sm:$0xff] %v3185_v22  ;;  %3202 = vst [vmem:[%s5250_s3 + $0x58] sm:$0xff] %v3186_v28  ;;  %v3188_v58 = vld [vmem:[#allocation2 + $0x70] sm:$0xff]  ;;  %v3189_v7 = vld [vmem:[#allocation2 + $0x78] sm:$0xff] }
 0x25c   : > { %3203 = vst [vmem:[%s5250_s3 + $0x60] sm:$0xff] %v3187_v32  ;;  %3204 = vst [vmem:[%s5250_s3 + $0x68] sm:$0xff] %v3188_v58  ;;  %v3190_v60 = vld [vmem:[#allocation2 + $0x28] sm:$0xff] }
 0x25d   : > { %3205 = vst [vmem:[%s5250_s3 + $0x70] sm:$0xff] %v3189_v7  ;;  %3206 = vst [vmem:[%s5250_s3 + $0x78] sm:$0xff] %v3190_v60 }
 0x25e PF: > { %s13_s16 = sadd.s32 1, %s4311_s16   ;;  %s5309_s12 = smov %s4299_s13 }
 0x25f   : > { %p10_p12 = scmp.ge.s32.totalorder %s13_s16, 11   ;;  %s5310_s13 = smov %s4368_s20 }
 0x260   : > { %s5311_s14 = smov %s4307_s15  ;;  %s5312_s15 = smov %s5314_s17 }
 0x261   :  { %12 = sbr.rel (!%p10_p12) target bundleno = 3 (0x3), region = 104 }

// kernel: _forward_impl.7
= control target key start
LH: loop header
LB: loop body
LE: loop exit
PB: predicated region body
PF: predicated region fallthrough
CT: control target
= control target key end

     0   :  { %s4573_s0 = inlined_call_operand.vmem [shape: s32[16,1], index: 0, kind: input, shape index: {}]   ;;  %s4574_s1 = inlined_call_operand.vmem [shape: f32[64,128], index: 1, kind: input, shape index: {}]   ;;  %s4575_s2 = inlined_call_operand.vmem [shape: f32[16,128], index: 2, kind: input, shape index: {}]   ;;  %s4576_s3 = inlined_call_operand.vmem [shape: f32[16,128], index: 3, kind: input, shape index: {}]   ;;  %s4577_s4 = inlined_call_operand.vmem [shape: bf16[128,256], index: 4, kind: input, shape index: {}]   ;;  %s4578_s5 = inlined_call_operand.vmem [shape: bf16[128,512], index: 5, kind: input, shape index: {}]   ;;  %s4579_s6 = inlined_call_operand.vmem [shape: bf16[128,128], index: 6, kind: input, shape index: {}]   ;;  %s4580_s7 = inlined_call_operand.vmem [shape: bf16[128,384], index: 7, kind: input, shape index: {}]   ;;  %s4581_s8 = inlined_call_operand.vmem [shape: f32[1,128], index: 8, kind: input, shape index: {}, may-alias: {8,9,13,15}]   ;;  %s4582_s9 = inlined_call_operand.vmem [shape: f32[1,128], index: 9, kind: input, shape index: {}, may-alias: {8,9,13,15}]   ;;  %s4583_s10 = inlined_call_operand.vmem [shape: f32[1,384], index: 10, kind: input, shape index: {}]   ;;  %s4584_s11 = inlined_call_operand.vmem [shape: f32[1,384], index: 11, kind: input, shape index: {}]   ;;  %s4585_s12 = inlined_call_operand.vmem [shape: bf16[256,128], index: 12, kind: input, shape index: {}]   ;;  %s4586_s13 = inlined_call_operand.vmem [shape: f32[1,128], index: 13, kind: input, shape index: {}, may-alias: {8,9,13,15}]   ;;  %s4587_s14 = inlined_call_operand.vmem [shape: bf16[128,128], index: 14, kind: input, shape index: {}]   ;;  %s4588_s15 = inlined_call_operand.vmem [shape: f32[1,128], index: 15, kind: input, shape index: {}, may-alias: {8,9,13,15}]   ;;  %s4589_s16 = inlined_call_operand.hbm [shape: f32[16,128], index: 16, kind: output, shape index: {0}]   ;;  %s4590_s17 = inlined_call_operand.vmem [shape: f32[16,128], index: 17, kind: output, shape index: {1}]  }
   0x1   :  { %4659 = sst [smem:[#allocation41_spill]] %s4573_s0 }
   0x2   :  { %4660 = sst [smem:[#allocation42_spill]] %s4574_s1 }
   0x3   :  { %v2801_v0 = vld [vmem:[%s4577_s4 + $0x74] ss:$8 sps:$4 sm:$0xff]   ;;  %v4594_v2 = vmov 0   ;;  %v2805_v3 = vld [vmem:[%s4577_s4 + $0x70] ss:$8 sps:$4 sm:$0xff]   ;;  %s4661_s0 = sld [smem:[#allocation42_spill]] }
   0x4   :  { %v3243_v1 = vld [vmem:[%s4578_s5 + $0xe4] ss:$16 sps:$4 sm:$0xff]   ;;  %203 = vmatprep.mubr.bf16.mxu0 %v4594_v2  ;;  %495 = vmatprep.mubr.bf16.mxu1 %v4594_v2  ;;  %v3253_v4 = vld [vmem:[%s4578_s5 + $0xe0] ss:$16 sps:$4 sm:$0xff]   ;;  %v3396_v36 = vld [vmem:[%s4576_s3 + $0x8] sm:$0xff] }
   0x5   :  { %171 = vmatprep.subr.bf16.mxu0 %v2801_v0  ;;  %2800 = vset.pattern.permute.xlu1 %v4594_v2  ;;  %v2807_v5 = vld [vmem:[%s4577_s4 + $0x64] ss:$8 sps:$4 sm:$0xff]   ;;  %v2811_v7 = vld [vmem:[%s4577_s4 + $0x60] ss:$8 sps:$4 sm:$0xff]   ;;  %v2813_v9 = vld [vmem:[%s4577_s4 + $0x54] ss:$8 sps:$4 sm:$0xff]  }
   0x6   :  { %463 = vmatprep.subr.bf16.mxu1 %v3243_v1  ;;  %2799 = vset.pattern.permute.xlu0 %v4594_v2  ;;  %v3265_v6 = vld [vmem:[%s4578_s5 + $0xc4] ss:$16 sps:$4 sm:$0xff]   ;;  %v3273_v8 = vld [vmem:[%s4578_s5 + $0xc0] ss:$16 sps:$4 sm:$0xff]  }
   0x7   :  { %172 = vmatpush1.bf16.msra.mxu0 %v2805_v3  ;;  %464 = vmatpush1.bf16.msra.mxu1 %v3253_v4  ;;  %v3282_v10 = vld [vmem:[%s4578_s5 + $0xa4] ss:$16 sps:$4 sm:$0xff]   ;;  %v2817_v11 = vld [vmem:[%s4577_s4 + $0x50] ss:$8 sps:$4 sm:$0xff]   ;;  %v2823_v15 = vld [vmem:[%s4577_s4 + $0x40] ss:$8 sps:$4 sm:$0xff]  }
   0x8   :  { %173 = vmatprep.subr.bf16.mxu0 %v2807_v5  ;;  %465 = vmatprep.subr.bf16.mxu1 %v3265_v6  ;;  %v3290_v12 = vld [vmem:[%s4578_s5 + $0xa0] ss:$16 sps:$4 sm:$0xff]   ;;  %v2819_v13 = vld [vmem:[%s4577_s4 + $0x44] ss:$8 sps:$4 sm:$0xff]   ;;  %v2825_v17 = vld [vmem:[%s4577_s4 + $0x34] ss:$8 sps:$4 sm:$0xff]  }
   0x9   :  { %v3300_v14 = vld [vmem:[%s4578_s5 + $0x84] ss:$16 sps:$4 sm:$0xff]   ;;  %v3309_v16 = vld [vmem:[%s4578_s5 + $0x80] ss:$16 sps:$4 sm:$0xff]   ;;  %v64_v34 = vld [vmem:[%s4661_s0 + $0x8] sm:$0xff] }
   0xa   :  { %v3318_v18 = vld [vmem:[%s4578_s5 + $0x64] ss:$16 sps:$4 sm:$0xff]   ;;  %v2829_v19 = vld [vmem:[%s4577_s4 + $0x30] ss:$8 sps:$4 sm:$0xff]   ;;  %v2835_v23 = vld [vmem:[%s4577_s4 + $0x20] ss:$8 sps:$4 sm:$0xff]  }
   0xb   :  { %174 = vmatpush1.bf16.msra.mxu0 %v2811_v7  ;;  %466 = vmatpush1.bf16.msra.mxu1 %v3273_v8  ;;  %v3326_v20 = vld [vmem:[%s4578_s5 + $0x60] ss:$16 sps:$4 sm:$0xff]   ;;  %v2831_v21 = vld [vmem:[%s4577_s4 + $0x24] ss:$8 sps:$4 sm:$0xff]   ;;  %v2837_v25 = vld [vmem:[%s4577_s4 + $0x14] ss:$8 sps:$4 sm:$0xff]  }
   0xc   :  { %175 = vmatprep.subr.bf16.mxu0 %v2813_v9  ;;  %467 = vmatprep.subr.bf16.mxu1 %v3282_v10  ;;  %v3336_v22 = vld [vmem:[%s4578_s5 + $0x44] ss:$16 sps:$4 sm:$0xff]   ;;  %v3345_v24 = vld [vmem:[%s4578_s5 + $0x40] ss:$16 sps:$4 sm:$0xff]  }
   0xd   :  { %v3354_v26 = vld [vmem:[%s4578_s5 + $0x24] ss:$16 sps:$4 sm:$0xff]   ;;  %v2841_v27 = vld [vmem:[%s4577_s4 + $0x10] ss:$8 sps:$4 sm:$0xff]   ;;  %v2847_v31 = vld [vmem:[%s4577_s4] ss:$8 sps:$4 sm:$0xff]  }
   0xe   :  { %v3362_v28 = vld [vmem:[%s4578_s5 + $0x20] ss:$16 sps:$4 sm:$0xff]   ;;  %v2843_v29 = vld [vmem:[%s4577_s4 + $0x4] ss:$8 sps:$4 sm:$0xff]  }
   0xf   :  { %176 = vmatpush1.bf16.msra.mxu0 %v2817_v11  ;;  %468 = vmatpush1.bf16.msra.mxu1 %v3290_v12  ;;  %v3370_v30 = vld [vmem:[%s4578_s5 + $0x4] ss:$16 sps:$4 sm:$0xff]   ;;  %v3380_v32 = vld [vmem:[%s4578_s5] ss:$16 sps:$4 sm:$0xff]  }
  0x10   :  { %177 = vmatprep.subr.bf16.mxu0 %v2819_v13  ;;  %469 = vmatprep.subr.bf16.mxu1 %v3300_v14  ;;  %v63_v33 = vld [vmem:[%s4661_s0] sm:$0xff] }
  0x11   :  { %v3391_v35 = vld [vmem:[%s4576_s3] sm:$0xff]  ;;  %v71_v37 = vpack.c.bf16 %v64_v34, %v63_v33 }
  0x12   :  { %v3402_v38 = vpack.c.bf16 %v3396_v36, %v3391_v35 }
  0x13   :  { %178 = vmatpush1.bf16.msra.mxu0 %v2823_v15  ;;  %470 = vmatpush1.bf16.msra.mxu1 %v3309_v16 }
  0x14   :  { %179 = vmatprep.subr.bf16.mxu0 %v2825_v17  ;;  %471 = vmatprep.subr.bf16.mxu1 %v3318_v18 }
  0x17   :  { %180 = vmatpush1.bf16.msra.mxu0 %v2829_v19  ;;  %472 = vmatpush1.bf16.msra.mxu1 %v3326_v20 }
  0x18   :  { %181 = vmatprep.subr.bf16.mxu0 %v2831_v21  ;;  %473 = vmatprep.subr.bf16.mxu1 %v3336_v22 }
  0x1b   :  { %182 = vmatpush1.bf16.msra.mxu0 %v2835_v23  ;;  %474 = vmatpush1.bf16.msra.mxu1 %v3345_v24 }
  0x1c   :  { %183 = vmatprep.subr.bf16.mxu0 %v2837_v25  ;;  %475 = vmatprep.subr.bf16.mxu1 %v3354_v26 }
  0x1f   :  { %184 = vmatpush1.bf16.msra.mxu0 %v2841_v27  ;;  %476 = vmatpush1.bf16.msra.mxu1 %v3362_v28 }
  0x20   :  { %185 = vmatprep.subr.bf16.mxu0 %v2843_v29  ;;  %477 = vmatprep.subr.bf16.mxu1 %v3370_v30 }
  0x23   :  { %186 = vmatpush1.bf16.msra.mxu0 %v2847_v31  ;;  %478 = vmatpush1.bf16.msra.mxu1 %v3380_v32 }
  0x26   :  { %204 = vmatmul.mubr.bf16.vlgmr.msra.gmra.mxu0 %v71_v37  ;;  %496 = vmatmul.mubr.bf16.vlgmr.msra.gmra.mxu1 %v3402_v38 }
  0x27   :  { %213 = vmatprep.mubr.bf16.mxu0 %v4594_v2 }
  0x28   :  { %23 = vsyncpa [#allocation4], 0  ;;  %v4593_v39 = vlaneseq  ;;  %v3413_v43 = vld [vmem:[%s4581_s8] ss:$0 sm:$0xff]  ;;  %v3429_v54 = vld [vmem:[%s4579_s6 + $0x38] sm:$0xff]   ;;  %v4596_v55 = vmov 0.0  }
  0x29   :  { %4663 = vst [vmem:[#allocation7_spill] sm:$0xff] %v3413_v43  ;;  %2573 = vmatprep.subr.bf16.mxu1 %v4596_v55  ;;  %v3436_v56 = vld [vmem:[%s4579_s6 + $0x30] sm:$0xff]   ;;  %v3450_v3 = vld [vmem:[%s4579_s6 + $0x28] sm:$0xff]   ;;  %v3457_v5 = vld [vmem:[%s4579_s6 + $0x20] sm:$0xff]   ;;  %vm3143_vm1 = vmmov 0   ;;  %s3144_s1 = smov [#allocation3]  }
  0x2a   :  { %v3408_v40 = vand.u32 127, %v4593_v39  ;;  %2574 = vmatpush3.bf16.msra.mxu1 %v3429_v54  ;;  %v3463_v7 = vld [vmem:[%s4579_s6 + $0x18] sm:$0xff]   ;;  %2589 = vmatprep.mubr.msk.bf16.mxu1 %vm3143_vm1, %v4596_v55  ;;  %v3472_v9 = vld [vmem:[%s4579_s6 + $0x10] sm:$0xff]   ;;  %v3479_v11 = vld [vmem:[%s4579_s6 + $0x8] sm:$0xff]   ;;  %s2332_s20 = sshll.u32 %s3144_s1, 4  ;;  %s2333_s20 = int_to_ptr.vmem [resolvable:$true] %s2332_s20 }
  0x2b   :  { %2575 = vmatprep.subr.bf16.mxu1 %v4596_v55  ;;  %4664 = vst [vmem:[#allocation8_spill] sm:$0xff] %v3472_v9  ;;  %4665 = vst [vmem:[#allocation9_spill] sm:$0xff] %v3479_v11  ;;  %v3486_v13 = vld [vmem:[%s4579_s6] sm:$0xff]   ;;  %v3494_v15 = vld [vmem:[%s4578_s5 + $0xec] ss:$16 sps:$4 sm:$0xff]   ;;  %p3124_p1 = scmp.lt.s32.totalorder %s2333_s20, %s2333_s20 }
  0x2c   :  { %4662 = vst [vmem:[#allocation6_spill] sm:$0xff] %v3408_v40  ;;  %vm262_vm0 = vcmp.lt.s32.totalorder %v3408_v40, 32  ;;  %4666 = vst [vmem:[#allocation10_spill] sm:$0xff] %v3486_v13  ;;  %v3499_v17 = vld [vmem:[%s4578_s5 + $0xe8] ss:$16 sps:$4 sm:$0xff]   ;;  %v65_v21 = vld [vmem:[%s4661_s0 + $0x10] sm:$0xff]  ;;  %506 = vmatprep.subr.bf16.mxu0 %v3494_v15 }
  0x2d   :  { %4667 = vst [vmem:[#allocation11_spill] sm:$0xff] %v3494_v15  ;;  %v3504_v19 = vld [vmem:[%s4578_s5 + $0xcc] ss:$16 sps:$4 sm:$0xff]   ;;  %507 = vmatpush1.bf16.msra.mxu0 %v3499_v17  ;;  %v3517_v27 = vld [vmem:[%s4578_s5 + $0xc8] ss:$16 sps:$4 sm:$0xff]   ;;  %v67_v31 = vld [vmem:[%s4661_s0 + $0x20] sm:$0xff] }
  0x2e   :  { %2576 = vmatpush3.bf16.msra.mxu1 %v3436_v56  ;;  %v66_v23 = vld [vmem:[%s4661_s0 + $0x18] sm:$0xff]  ;;  %508 = vmatprep.subr.bf16.mxu0 %v3504_v19  ;;  %v68_v33 = vld [vmem:[%s4661_s0 + $0x28] sm:$0xff] }
  0x2f   :  { %2577 = vmatprep.subr.bf16.mxu1 %v4596_v55  ;;  %v72_v25 = vpack.c.bf16 %v66_v23, %v65_v21  ;;  %v3523_v29 = vld [vmem:[%s4578_s5 + $0xac] ss:$16 sps:$4 sm:$0xff]   ;;  %v3536_v34 = vld [vmem:[%s4578_s5 + $0xa8] ss:$16 sps:$4 sm:$0xff]  }
  0x30   :  { %v3542_v37 = vld [vmem:[%s4578_s5 + $0x8c] ss:$16 sps:$4 sm:$0xff]  }
  0x31   :  { %214 = vmatmul.mubr.bf16.gmra.mxu0 %v72_v25  ;;  %v3629_v21 = vld [vmem:[%s4580_s7 + $0x90] ss:$12 sps:$4 sm:$0xff]   ;;  %v3679_v40 = vld [vmem:[%s4575_s2 + $0x8] sm:$0xff] }
  0x32   :  { %2578 = vmatpush3.bf16.msra.mxu1 %v3450_v3  ;;  %223 = vmatprep.mubr.bf16.mxu0 %v4594_v2  ;;  %v3636_v23 = vld [vmem:[%s4580_s7 + $0x7c] ss:$12 sps:$4 sm:$0xff]   ;;  %v3648_v25 = vld [vmem:[%s4580_s7 + $0x64] ss:$12 sps:$4 sm:$0xff]   ;;  %4674 = vst [vmem:[#allocation18_spill] sm:$0xff] %v3679_v40 }
  0x33   :  { %2579 = vmatprep.subr.bf16.mxu1 %v4596_v55  ;;  %509 = vmatpush1.bf16.msra.mxu0 %v3517_v27 }
  0x34   :  { %510 = vmatprep.subr.bf16.mxu0 %v3523_v29 }
  0x36   :  { %2580 = vmatpush3.bf16.msra.mxu1 %v3457_v5 }
  0x37   :  { %2581 = vmatprep.subr.bf16.mxu1 %v4596_v55  ;;  %511 = vmatpush1.bf16.msra.mxu0 %v3536_v34 }
  0x38   :  { %512 = vmatprep.subr.bf16.mxu0 %v3542_v37 }
  0x3a   :  { %2582 = vmatpush3.bf16.msra.mxu1 %v3463_v7 }
  0x3b   :  { %2583 = vmatprep.subr.bf16.mxu1 %v4596_v55 }
  0x3e   :  { %2584 = vmatpush3.bf16.msra.mxu1 %v3472_v9 }
  0x3f   :  { %2585 = vmatprep.subr.bf16.mxu1 %v4596_v55 }
  0x42   :  { %2586 = vmatpush3.bf16.msra.mxu1 %v3479_v11  ;;  %v4677_v11 = vmov 0.0  }
  0x43   :  { %2587 = vmatprep.subr.bf16.mxu1 %v4596_v55 }
  0x46   :  { %2588 = vmatpush3.bf16.msra.mxu1 %v3486_v13  ;;  %v3693_v13 = vld [vmem:[%s4580_s7 + $0x98] ss:$12 sps:$4 sm:$0xff]  }
  0x47   :  { %2593 = vmatprep.subr.bf16.mxu1 %v4596_v55  ;;  %v3674_v55 = vld [vmem:[%s4575_s2] sm:$0xff]  ;;  %4676 = vst [vmem:[#allocation20_spill] sm:$0xff] %v3693_v13 }
  0x48   :  { %4673 = vst [vmem:[#allocation17_spill] sm:$0xff] %v3674_v55 }
  0xe6   :  { %v205_v41 = vpop.f32.mrf.mxu0  ;;  %v497_v42 = vpop.f32.mrf.mxu1 }
  0xe7   :  { %v549_v44 = vadd.f32 %v497_v42, %v205_v41  ;;  %v73_v41 = vpack.c.bf16 %v68_v33, %v67_v31  ;;  %v3548_v42 = vld [vmem:[%s4578_s5 + $0x88] ss:$16 sps:$4 sm:$0xff]   ;;  %v3654_v31 = vld [vmem:[%s4580_s7 + $0x60] ss:$12 sps:$4 sm:$0xff]  }
  0xe8   :  { %v3415_v45 = vpop.f32.mrf.mxu0  ;;  %v3417_v46 = vpop.f32.mrf.mxu1  ;;  %513 = vmatpush1.bf16.msra.mxu0 %v3548_v42  ;;  %v3660_v33 = vld [vmem:[%s4580_s7 + $0x4c] ss:$12 sps:$4 sm:$0xff]  }
  0xe9   :  { %v558_v47 = vadd.f32 %v3413_v43, %v549_v44  ;;  %224 = vmatmul.mubr.bf16.gmra.mxu0 %v73_v41  ;;  %v3554_v44 = vld [vmem:[%s4578_s5 + $0x6c] ss:$16 sps:$4 sm:$0xff]   ;;  %v3666_v41 = vld [vmem:[%s4580_s7 + $0x48] ss:$12 sps:$4 sm:$0xff]  }
  0xea   :  { %v209_v48 = vpop.f32.mrf.mxu0  ;;  %v501_v49 = vpop.f32.mrf.mxu1  ;;  %233 = vmatprep.mubr.bf16.mxu0 %v4594_v2  ;;  %514 = vmatprep.subr.bf16.mxu0 %v3554_v44 }
  0xeb   :  { %v550_v50 = vadd.f32 %v501_v49, %v209_v48  ;;  %v560_v51 = vsel %vm262_vm0, %v558_v47, -1e+30  ;;  %v69_v47 = vld [vmem:[%s4661_s0 + $0x30] sm:$0xff]  ;;  %v70_v48 = vld [vmem:[%s4661_s0 + $0x38] sm:$0xff] }
  0xec   :  { %562 = vmax.xlane.f32.xlu0 %v560_v51  ;;  %v3567_v49 = vld [vmem:[%s4578_s5 + $0x68] ss:$16 sps:$4 sm:$0xff]  }
  0xed   :  { %v559_v52 = vadd.f32 %v3413_v43, %v550_v50  ;;  %v3573_v50 = vld [vmem:[%s4578_s5 + $0x4c] ss:$16 sps:$4 sm:$0xff]   ;;  %515 = vmatpush1.bf16.msra.mxu0 %v3567_v49 }
  0xee   :  { %516 = vmatprep.subr.bf16.mxu0 %v3573_v50 }
  0xef   :  { %v561_v53 = vsel %vm262_vm0, %v559_v52, -1e+30  ;;  %v3579_v52 = vld [vmem:[%s4578_s5 + $0x48] ss:$16 sps:$4 sm:$0xff]  }
  0xf0   :  { %564 = vmax.xlane.f32.xlu0 %v561_v53 }
  0xf1   :  { %517 = vmatpush1.bf16.msra.mxu0 %v3579_v52 }
 0x175   :  { %v563_v57 = vpop.xlane.xlu0 %562 }
 0x176   :  { %v566_v58 = vsub.f32 %v560_v51, %v563_v57  ;;  %v74_v51 = vpack.c.bf16 %v70_v48, %v69_v47  ;;  %v3592_v57 = vld [vmem:[%s4578_s5 + $0x28] ss:$16 sps:$4 sm:$0xff]  }
 0x177   :  { %4669 = vst [vmem:[#allocation13_spill] sm:$0xff] %v3592_v57 }
 0x178   :  { %v568_v59 = vmul.f32 1.442695, %v566_v58  ;;  %234 = vmatmul.mubr.bf16.gmra.mxu0 %v74_v51  ;;  %v3598_v58 = vld [vmem:[%s4578_s5 + $0xc] ss:$16 sps:$4 sm:$0xff]  }
 0x179   :  { %v565_v60 = vpop.xlane.xlu0 %564  ;;  %538 = vmatprep.mubr.bf16.mxu0 %v4594_v2  ;;  %4670 = vst [vmem:[#allocation14_spill] sm:$0xff] %v3598_v58 }
 0x17a   :  { %2937 = vpow2.f32 %v568_v59  ;;  %v567_v61 = vsub.f32 %v561_v53, %v565_v60  ;;  %v3585_v53 = vld [vmem:[%s4578_s5 + $0x2c] ss:$16 sps:$4 sm:$0xff]   ;;  %v3604_v59 = vld [vmem:[%s4578_s5 + $0x8] ss:$16 sps:$4 sm:$0xff]  }
 0x17b   :  { %4668 = vst [vmem:[#allocation12_spill] sm:$0xff] %v3585_v53  ;;  %518 = vmatprep.subr.bf16.mxu0 %v3585_v53  ;;  %4671 = vst [vmem:[#allocation15_spill] sm:$0xff] %v3604_v59  ;;  %v3610_v60 = vld [vmem:[%s4580_s7 + $0xac] ss:$12 sps:$4 sm:$0xff]  }
 0x17c   :  { %v570_v62 = vmul.f32 1.442695, %v567_v61  ;;  %519 = vmatpush1.bf16.msra.mxu0 %v3592_v57  ;;  %4672 = vst [vmem:[#allocation16_spill] sm:$0xff] %v3610_v60  ;;  %v3616_v61 = vld [vmem:[%s4580_s7 + $0xa8] ss:$12 sps:$4 sm:$0xff]  }
 0x17d   :  { %520 = vmatprep.subr.bf16.mxu0 %v3598_v58 }
 0x17e   :  { %2939 = vpow2.f32 %v570_v62  ;;  %v3622_v62 = vld [vmem:[%s4580_s7 + $0x94] ss:$12 sps:$4 sm:$0xff]  }
 0x180   :  { %521 = vmatpush1.bf16.msra.mxu0 %v3604_v59 }
 0x181   :  { %879 = vmatprep.subr.bf16.mxu0 %v3610_v60 }
 0x183   :  { %539 = vmatmul.mubr.bf16.vlgmr.msra.gmra.mxu0 %v3402_v38  ;;  %v3642_v38 = vld [vmem:[%s4580_s7 + $0x78] ss:$12 sps:$4 sm:$0xff]  }
 0x184   :  { %880 = vmatpush1.bf16.msra.mxu0 %v3616_v61  ;;  %911 = vmatprep.mubr.bf16.mxu0 %v4594_v2 }
 0x185   :  { %881 = vmatprep.subr.bf16.mxu0 %v3622_v62 }
 0x187   :  { %v3441_v63 = vpop.eup %2937 }
 0x188   :  { %572 = vadd.xlane.f32.xlu1 %v3441_v63  ;;  %882 = vmatpush1.bf16.msra.mxu0 %v3629_v21 }
 0x189   :  { %883 = vmatprep.subr.bf16.mxu0 %v3636_v23 }
 0x18b   :  { %v3444_v0 = vpop.eup %2939 }
 0x18c   :  { %574 = vadd.xlane.f32.xlu1 %v3444_v0  ;;  %884 = vmatpush1.bf16.msra.mxu0 %v3642_v38 }
 0x18d   :  { %885 = vmatprep.subr.bf16.mxu0 %v3648_v25 }
 0x190   :  { %886 = vmatpush1.bf16.msra.mxu0 %v3654_v31 }
 0x191   :  { %887 = vmatprep.subr.bf16.mxu0 %v3660_v33 }
 0x194   :  { %888 = vmatpush1.bf16.msra.mxu0 %v3666_v41 }
 0x211   :  { %v573_v47 = vpop.xlane.xlu1 %572 }
 0x212   :  { %2941 = vrcp.f32 %v573_v47 }
 0x215   :  { %v575_v48 = vpop.xlane.xlu1 %574 }
 0x216   :  { %2943 = vrcp.f32 %v575_v48 }
 0x21f   :  { %v2942_v51 = vpop.eup %2941 }
 0x220   :  { %v578_v39 = vmul.f32 %v2942_v51, %v3441_v63  ;;  %v3687_v63 = vld [vmem:[%s4580_s7 + $0xb0] ss:$12 sps:$4 sm:$0xff]  }
 0x221   :  { %4675 = vst [vmem:[#allocation19_spill] sm:$0xff] %v3687_v63 }
 0x222   :  { %v580_v47 = vmul.f32 %v578_v39, %v3674_v55  ;;  %v3709_v39 = vld [vmem:[%s4580_s7 + $0x68] ss:$12 sps:$4 sm:$0xff]   ;;  %v3785_v55 = vld [vmem:[%s4582_s9] ss:$0 sm:$0xff] }
 0x223   :  { %v2944_v2 = vpop.eup %2943  ;;  %4679 = vst [vmem:[#allocation22_spill] sm:$0xff] %v3709_v39 }
 0x224   :  { %v579_v43 = vmul.f32 %v2944_v2, %v3444_v0  ;;  %v3702_v2 = vld [vmem:[%s4580_s7 + $0x80] ss:$12 sps:$4 sm:$0xff]  }
 0x225   :  { %4678 = vst [vmem:[#allocation21_spill] sm:$0xff] %v3702_v2  ;;  %v3724_v0 = vld [vmem:[%s4580_s7 + $0x34] ss:$12 sps:$4 sm:$0xff]  }
 0x226   :  { %v581_v48 = vmul.f32 %v579_v43, %v3679_v40  ;;  %v3716_v43 = vld [vmem:[%s4580_s7 + $0x50] ss:$12 sps:$4 sm:$0xff]   ;;  %4681 = vst [vmem:[#allocation24_spill] sm:$0xff] %v3724_v0  ;;  %889 = vmatprep.subr.bf16.mxu0 %v3724_v0 }
 0x227   :  { %4680 = vst [vmem:[#allocation23_spill] sm:$0xff] %v3716_v43 }
 0x228   :  { %v582_v51 = vpack.c.bf16 %v581_v48, %v580_v47  ;;  %v3729_v47 = vld [vmem:[%s4580_s7 + $0x30] ss:$12 sps:$4 sm:$0xff]   ;;  %v3734_v48 = vld [vmem:[%s4580_s7 + $0x38] ss:$12 sps:$4 sm:$0xff]  }
 0x229   :  { %4682 = vst [vmem:[#allocation25_spill] sm:$0xff] %v3729_v47  ;;  %4683 = vst [vmem:[#allocation26_spill] sm:$0xff] %v3734_v48  ;;  %890 = vmatpush1.bf16.msra.mxu0 %v3729_v47 }
 0x22a   :  { %2590 = vmatmul.mubr.bf16.vlgmr.msra.gmra.mxu1 %v582_v51  ;;  %v3742_v51 = vld [vmem:[%s4580_s7 + $0x1c] ss:$12 sps:$4 sm:$0xff]  }
 0x22b   :  { %2594 = vmatpush3.bf16.msra.mxu1 %v3687_v63  ;;  %2609 = vmatprep.mubr.msk.bf16.mxu1 %vm3143_vm1, %v4677_v11  ;;  %4684 = vst [vmem:[#allocation27_spill] sm:$0xff] %v3742_v51 }
 0x22c   :  { %2595 = vmatprep.subr.bf16.mxu1 %v4677_v11  ;;  %891 = vmatprep.subr.bf16.mxu0 %v3742_v51 }
 0x22f   :  { %2596 = vmatpush3.bf16.msra.mxu1 %v3693_v13  ;;  %v3772_v13 = vld [vmem:[%s4580_s7 + $0x8] ss:$12 sps:$4 sm:$0xff]  }
 0x230   :  { %2597 = vmatprep.subr.bf16.mxu1 %v4677_v11  ;;  %4689 = vst [vmem:[#allocation32_spill] sm:$0xff] %v3772_v13 }
 0x233   :  { %2598 = vmatpush3.bf16.msra.mxu1 %v3702_v2  ;;  %v3767_v2 = vld [vmem:[%s4580_s7] ss:$12 sps:$4 sm:$0xff]  }
 0x234   :  { %2599 = vmatprep.subr.bf16.mxu1 %v4677_v11  ;;  %4688 = vst [vmem:[#allocation31_spill] sm:$0xff] %v3767_v2 }
 0x237   :  { %2600 = vmatpush3.bf16.msra.mxu1 %v3709_v39  ;;  %v3753_v39 = vld [vmem:[%s4580_s7 + $0x20] ss:$12 sps:$4 sm:$0xff]  }
 0x238   :  { %2601 = vmatprep.subr.bf16.mxu1 %v4677_v11  ;;  %4686 = vst [vmem:[#allocation29_spill] sm:$0xff] %v3753_v39 }
 0x23b   :  { %2602 = vmatpush3.bf16.msra.mxu1 %v3716_v43  ;;  %v3748_v43 = vld [vmem:[%s4580_s7 + $0x18] ss:$12 sps:$4 sm:$0xff]  }
 0x23c   :  { %2603 = vmatprep.subr.bf16.mxu1 %v4677_v11  ;;  %4685 = vst [vmem:[#allocation28_spill] sm:$0xff] %v3748_v43  ;;  %892 = vmatpush1.bf16.msra.mxu0 %v3748_v43 }
 0x23f   :  { %2604 = vmatpush3.bf16.msra.mxu1 %v3734_v48  ;;  %v3761_v48 = vld [vmem:[%s4580_s7 + $0x4] ss:$12 sps:$4 sm:$0xff]  }
 0x240   :  { %2605 = vmatprep.subr.bf16.mxu1 %v4677_v11  ;;  %4687 = vst [vmem:[#allocation30_spill] sm:$0xff] %v3761_v48  ;;  %893 = vmatprep.subr.bf16.mxu0 %v3761_v48  ;;  %v211_v48 = vpop.f32.mrf.mxu0 }
 0x241   :  { %894 = vmatpush1.bf16.msra.mxu0 %v3767_v2 }
 0x242   :  { %1050 = vmatprep.subr.bf16.mxu0 %v3243_v1 }
 0x243   :  { %2606 = vmatpush3.bf16.msra.mxu1 %v3753_v39  ;;  %v3779_v39 = vpop.f32.mrf.mxu1 }
 0x244   :  { %2607 = vmatprep.subr.bf16.mxu1 %v4677_v11 }
 0x247   :  { %2608 = vmatpush3.bf16.msra.mxu1 %v3772_v13 }
 0x248   :  { %1093 = vmatprep.subr.bf16.mxu1 %v3494_v15 }
 0x2ea   :  { %v681_v63 = vpop.f32.mrf.mxu1 }
 0x2eb   :  { %v688_v40 = vadd.f32 %v681_v63, %v3415_v45  ;;  %v4690_v45 = vmov 0   ;;  %v734_v63 = vld [vmem:[%s4583_s10] sm:$0x7] }
 0x2ec   :  { %v2591_v43 = vpop.f32.mrf.mxu1 }
 0x2ed   :  { %v697_v2 = vadd.f32 %v3785_v55, %v688_v40 }
 0x2ee   :  { %v684_v51 = vpop.f32.mrf.mxu1 }
 0x2ef   :  { %v689_v13 = vadd.f32 %v684_v51, %v211_v48  ;;  %v699_v15 = vmax.f32 %v697_v2, 0.0 }
 0x2f0   :  { %v2592_v47 = vpop.f32.mrf.mxu1 }
 0x2f1   :  { %v698_v1 = vadd.f32 %v3785_v55, %v689_v13  ;;  %v963_v13 = vld [vmem:[%s4584_s11] sm:$0x7] }
 0x2f3   :  { %v700_v9 = vmax.f32 %v698_v1, 0.0 }
 0x2f5   :  { %v701_v0 = vpack.c.bf16 %v700_v9, %v699_v15 }
 0x2f7   :  { %912 = vmatmul.mubr.bf16.vlgmr.msra.gmra.mxu0 %v701_v0  ;;  %2610 = vmatmul.mubr.bf16.vlgmr.msra.gmra.mxu1 %v701_v0 }
 0x2f8   :  { %1051 = vmatpush1.bf16.msra.mxu0 %v3253_v4  ;;  %1094 = vmatpush1.bf16.msra.mxu1 %v3499_v17  ;;  %v3823_v4 = vpop.f32.mrf.mxu0 }
 0x2f9   :  { %1052 = vmatprep.subr.bf16.mxu0 %v3265_v6  ;;  %1095 = vmatprep.subr.bf16.mxu1 %v3504_v19 }
 0x2fa   :  { %1082 = vmatprep.mubr.bf16.mxu0 %v4690_v45  ;;  %1125 = vmatprep.mubr.bf16.mxu1 %v4690_v45  ;;  %v3825_v6 = vpop.f32.mrf.mxu0 }
 0x2fc   :  { %1053 = vmatpush1.bf16.msra.mxu0 %v3273_v8  ;;  %1096 = vmatpush1.bf16.msra.mxu1 %v3517_v27  ;;  %v3827_v8 = vpop.f32.mrf.mxu0 }
 0x2fd   :  { %1054 = vmatprep.subr.bf16.mxu0 %v3282_v10  ;;  %1097 = vmatprep.subr.bf16.mxu1 %v3523_v29 }
 0x2fe   :  { %v3829_v10 = vpop.f32.mrf.mxu0 }
 0x300   :  { %1055 = vmatpush1.bf16.msra.mxu0 %v3290_v12  ;;  %1098 = vmatpush1.bf16.msra.mxu1 %v3536_v34  ;;  %v3831_v12 = vpop.f32.mrf.mxu0 }
 0x301   :  { %1056 = vmatprep.subr.bf16.mxu0 %v3300_v14  ;;  %1099 = vmatprep.subr.bf16.mxu1 %v3542_v37  ;;  %4691 = vst [vmem:[#allocation33_spill] sm:$0xff] %v3831_v12 }
 0x302   :  { %v3833_v14 = vpop.f32.mrf.mxu0 }
 0x303   :  { %4692 = vst [vmem:[#allocation34_spill] sm:$0xff] %v3833_v14 }
 0x304   :  { %1057 = vmatpush1.bf16.msra.mxu0 %v3309_v16  ;;  %1100 = vmatpush1.bf16.msra.mxu1 %v3548_v42  ;;  %v3835_v16 = vpop.f32.mrf.mxu0 }
 0x305   :  { %1058 = vmatprep.subr.bf16.mxu0 %v3318_v18  ;;  %1101 = vmatprep.subr.bf16.mxu1 %v3554_v44  ;;  %4693 = vst [vmem:[#allocation35_spill] sm:$0xff] %v3835_v16 }
 0x306   :  { %v3837_v18 = vpop.f32.mrf.mxu0 }
 0x307   :  { %4694 = vst [vmem:[#allocation36_spill] sm:$0xff] %v3837_v18 }
 0x308   :  { %1059 = vmatpush1.bf16.msra.mxu0 %v3326_v20  ;;  %1102 = vmatpush1.bf16.msra.mxu1 %v3567_v49  ;;  %v3839_v20 = vpop.f32.mrf.mxu0 }
 0x309   :  { %1060 = vmatprep.subr.bf16.mxu0 %v3336_v22  ;;  %1103 = vmatprep.subr.bf16.mxu1 %v3573_v50  ;;  %4695 = vst [vmem:[#allocation37_spill] sm:$0xff] %v3839_v20 }
 0x30a   :  { %v3841_v22 = vpop.f32.mrf.mxu0 }
 0x30b   :  { %4696 = vst [vmem:[#allocation38_spill] sm:$0xff] %v3841_v22 }
 0x30c   :  { %1061 = vmatpush1.bf16.msra.mxu0 %v3345_v24  ;;  %1104 = vmatpush1.bf16.msra.mxu1 %v3579_v52  ;;  %v3843_v24 = vpop.f32.mrf.mxu0 }
 0x30d   :  { %1062 = vmatprep.subr.bf16.mxu0 %v3354_v26  ;;  %1105 = vmatprep.subr.bf16.mxu1 %v3585_v53  ;;  %4697 = vst [vmem:[#allocation39_spill] sm:$0xff] %v3843_v24 }
 0x30e   :  { %v3845_v26 = vpop.f32.mrf.mxu0 }
 0x30f   :  { %4698 = vst [vmem:[#allocation40_spill] sm:$0xff] %v3845_v26 }
 0x310   :  { %1063 = vmatpush1.bf16.msra.mxu0 %v3362_v28  ;;  %1106 = vmatpush1.bf16.msra.mxu1 %v3592_v57  ;;  %v540_v28 = vpop.f32.mrf.mxu0 }
 0x311   :  { %1064 = vmatprep.subr.bf16.mxu0 %v3370_v30  ;;  %1107 = vmatprep.subr.bf16.mxu1 %v3598_v58  ;;  %v4699_v30 = vlaneseq }
 0x312   :  { %v542_v40 = vpop.f32.mrf.mxu0 }
 0x314   :  { %1065 = vmatpush1.bf16.msra.mxu0 %v3380_v32  ;;  %1108 = vmatpush1.bf16.msra.mxu1 %v3604_v59  ;;  %v737_v32 = vshrl.u32 %v4699_v30, 7  ;;  %v544_v15 = vpop.f32.mrf.mxu0 }
 0x315   :  { %2613 = vmatprep.subr.bf16.mxu0 %v4677_v11  ;;  %1211 = vmatprep.subr.bf16.mxu1 %v3610_v60 }
 0x316   :  { %v738_v9 = vsub.s32 0, %v737_v32  ;;  %v546_v0 = vpop.f32.mrf.mxu0  ;;  %v742_v1 = vsub.s32 1, %v737_v32 }
 0x318   :  { %v3854_v2 = vrot.slane %v963_v13, %v738_v9  ;;  %v3856_v43 = vrot.slane %v734_v63, %v738_v9  ;;  %v3861_v20 = vrot.slane %v734_v63, %v742_v1  ;;  %v3865_v16 = vrot.slane %v963_v13, %v742_v1 }
 0x31a   :  { %v980_v51 = vadd.f32 %v3854_v2, %v3417_v46  ;;  %v983_v9 = vadd.f32 %v3854_v2, %v3779_v39  ;;  %v984_v57 = vadd.f32 %v3865_v16, %v544_v15 }
 0x3b7   :  { %v913_v47 = vpop.f32.mrf.mxu0  ;;  %v956_v48 = vpop.f32.mrf.mxu1 }
 0x3b8   :  { %v914_v30 = vadd.f32 %v913_v47, %v3856_v43 }
 0x3b9   :  { %v915_v26 = vpop.f32.mrf.mxu0  ;;  %v2611_v22 = vpop.f32.mrf.mxu1 }
 0x3ba   :  { %v986_v24 = vadd.f32 %v980_v51, %v914_v30  ;;  %v916_v47 = vadd.f32 %v915_v26, %v3861_v20  ;;  %v981_v51 = vadd.f32 %v3865_v16, %v540_v28 }
 0x3bb   :  { %v917_v18 = vpop.f32.mrf.mxu0  ;;  %v959_v14 = vpop.f32.mrf.mxu1 }
 0x3bc   :  { %v2432_v12 = vmul.f32 -1.442695, %v986_v24  ;;  %v918_v60 = vadd.f32 %v917_v18, %v3856_v43  ;;  %v987_v53 = vadd.f32 %v981_v51, %v916_v47 }
 0x3bd   :  { %v919_v59 = vpop.f32.mrf.mxu0  ;;  %v2612_v46 = vpop.f32.mrf.mxu1 }
 0x3be   :  { %2945 = vpow2.f32 %v2432_v12  ;;  %v988_v58 = vadd.f32 %v983_v9, %v918_v60  ;;  %v920_v22 = vadd.f32 %v919_v59, %v3861_v20  ;;  %v2433_v1 = vmul.f32 -1.442695, %v987_v53 }
 0x3bf   :  { %v746_v60 = vsub.s32 2, %v737_v32 }
 0x3c0   :  { %v2434_v30 = vmul.f32 -1.442695, %v988_v58  ;;  %v989_v39 = vadd.f32 %v984_v57, %v920_v22 }
 0x3c1   :  { %v3872_v59 = vrot.slane %v963_v13, %v746_v60  ;;  %v3874_v9 = vrot.slane %v734_v63, %v746_v60 }
 0x3c2   :  { %2947 = vpow2.f32 %v2434_v30  ;;  %v2435_v24 = vmul.f32 -1.442695, %v989_v39 }
 0x3c3   :  { %2949 = vpow2.f32 %v2433_v1  ;;  %v982_v15 = vadd.f32 %v3872_v59, %v542_v40  ;;  %v957_v22 = vadd.f32 %v956_v48, %v3874_v9  ;;  %v985_v30 = vadd.f32 %v3872_v59, %v546_v0 }
 0x3c4   :  { %2951 = vpow2.f32 %v2435_v24  ;;  %v960_v13 = vadd.f32 %v959_v14, %v3874_v9 }
 0x3cb   :  { %v2946_v18 = vpop.eup %2945 }
 0x3cc   :  { %v1002_v46 = vadd.f32 1.0, %v2946_v18 }
 0x3ce   :  { %2953 = vrcp.f32 %v1002_v46 }
 0x3cf   :  { %v2948_v12 = vpop.eup %2947 }
 0x3d0   :  { %v1004_v26 = vadd.f32 1.0, %v2948_v12  ;;  %v2950_v28 = vpop.eup %2949 }
 0x3d1   :  { %v2952_v58 = vpop.eup %2951  ;;  %v1003_v57 = vadd.f32 1.0, %v2950_v28 }
 0x3d2   :  { %2955 = vrcp.f32 %v1004_v26  ;;  %v1005_v47 = vadd.f32 1.0, %v2952_v58 }
 0x3d3   :  { %2957 = vrcp.f32 %v1003_v57  ;;  %v4703_v57 = vld [vmem:[#allocation27_spill] sm:$0xff] }
 0x3d4   :  { %2959 = vrcp.f32 %v1005_v47  ;;  %v4705_v47 = vld [vmem:[#allocation28_spill] sm:$0xff] }
 0x3db   :  { %v2954_v53 = vpop.eup %2953 }
 0x3dc   :  { %v1014_v51 = vmul.f32 %v2954_v53, %v982_v15  ;;  %v4704_v53 = vld [vmem:[#allocation9_spill] sm:$0xff] }
 0x3de   :  { %v1016_v39 = vadd.f32 %v1014_v51, %v957_v22  ;;  %v4706_v22 = vld [vmem:[#allocation30_spill] sm:$0xff] }
 0x3df   :  { %v2956_v32 = vpop.eup %2955  ;;  %v4707_v51 = vld [vmem:[#allocation10_spill] sm:$0xff] }
 0x3e0   :  { %2961 = vtanh.f32 %v1016_v39  ;;  %v1015_v1 = vmul.f32 %v2956_v32, %v985_v30  ;;  %v2958_v24 = vpop.eup %2957  ;;  %v4708_v30 = vld [vmem:[#allocation31_spill] sm:$0xff]  ;;  %v3925_v39 = vld [vmem:[%s4578_s5 + $0xe4] ss:$16 sps:$4 sm:$0xff]  }
 0x3e1   :  { %v2960_v40 = vpop.eup %2959  ;;  %v1020_v46 = vsub.f32 1.0, %v2958_v24  ;;  %v1024_v0 = vmul.f32 %v2958_v24, %v3391_v35  ;;  %v4700_v35 = vld [vmem:[#allocation24_spill] sm:$0xff] }
 0x3e2   :  { %v1017_v63 = vadd.f32 %v1015_v1, %v960_v13  ;;  %v1021_v12 = vsub.f32 1.0, %v2960_v40  ;;  %v1025_v28 = vmul.f32 %v2960_v40, %v3396_v36  ;;  %v4701_v36 = vld [vmem:[#allocation8_spill] sm:$0xff]  ;;  %4709 = vst [vmem:[#allocation24_spill] sm:$0xff] %v3925_v39 }
 0x3e4   :  { %2963 = vtanh.f32 %v1017_v63  ;;  %v4710_v63 = vld [vmem:[#allocation7_spill] sm:$0xff] }
 0x3ed   :  { %v2962_v18 = vpop.eup %2961 }
 0x3ee   :  { %v1022_v26 = vmul.f32 %v2962_v18, %v1020_v46 }
 0x3f0   :  { %v3882_v58 = vadd.f32 %v1024_v0, %v1022_v26 }
 0x3f1   :  { %v2964_v48 = vpop.eup %2963 }
 0x3f2   :  { %v1023_v60 = vmul.f32 %v2964_v48, %v1021_v12 }
 0x3f4   :  { %v3884_v15 = vadd.f32 %v1025_v28, %v1023_v60 }
 0x3f6   :  { %v1049_v14 = vpack.c.bf16 %v3884_v15, %v3882_v58 }
 0x3f8   :  { %1083 = vmatmul.mubr.bf16.vlgmr.msra.gmra.mxu0 %v1049_v14  ;;  %1126 = vmatmul.mubr.bf16.vlgmr.msra.gmra.mxu1 %v1049_v14 }
 0x3f9   :  { %2614 = vmatpush3.bf16.msra.mxu0 %v3429_v54  ;;  %2629 = vmatprep.mubr.msk.bf16.mxu0 %vm3143_vm1, %v4677_v11 }
 0x3fa   :  { %2615 = vmatprep.subr.bf16.mxu0 %v4677_v11  ;;  %1212 = vmatpush1.bf16.msra.mxu1 %v3616_v61 }
 0x3fb   :  { %1213 = vmatprep.subr.bf16.mxu1 %v3622_v62  ;;  %1243 = vmatprep.mubr.bf16.mxu1 %v4690_v45 }
 0x3fd   :  { %2616 = vmatpush3.bf16.msra.mxu0 %v3436_v56  ;;  %v4702_v56 = vld [vmem:[#allocation25_spill] sm:$0xff] }
 0x3fe   :  { %2617 = vmatprep.subr.bf16.mxu0 %v4677_v11  ;;  %1214 = vmatpush1.bf16.msra.mxu1 %v3629_v21 }
 0x3ff   :  { %1215 = vmatprep.subr.bf16.mxu1 %v3636_v23 }
 0x401   :  { %2618 = vmatpush3.bf16.msra.mxu0 %v3450_v3 }
 0x402   :  { %2619 = vmatprep.subr.bf16.mxu0 %v4677_v11  ;;  %1216 = vmatpush1.bf16.msra.mxu1 %v3642_v38 }
 0x403   :  { %1217 = vmatprep.subr.bf16.mxu1 %v3648_v25 }
 0x405   :  { %2620 = vmatpush3.bf16.msra.mxu0 %v3457_v5 }
 0x406   :  { %2621 = vmatprep.subr.bf16.mxu0 %v4677_v11  ;;  %1218 = vmatpush1.bf16.msra.mxu1 %v3654_v31 }
 0x407   :  { %1219 = vmatprep.subr.bf16.mxu1 %v3660_v33 }
 0x409   :  { %2622 = vmatpush3.bf16.msra.mxu0 %v3463_v7 }
 0x40a   :  { %2623 = vmatprep.subr.bf16.mxu0 %v4677_v11  ;;  %1220 = vmatpush1.bf16.msra.mxu1 %v3666_v41 }
 0x40b   :  { %1221 = vmatprep.subr.bf16.mxu1 %v4700_v35 }
 0x40d   :  { %2624 = vmatpush3.bf16.msra.mxu0 %v4701_v36 }
 0x40e   :  { %2625 = vmatprep.subr.bf16.mxu0 %v4677_v11  ;;  %1222 = vmatpush1.bf16.msra.mxu1 %v4702_v56 }
 0x40f   :  { %1223 = vmatprep.subr.bf16.mxu1 %v4703_v57 }
 0x411   :  { %2626 = vmatpush3.bf16.msra.mxu0 %v4704_v53 }
 0x412   :  { %2627 = vmatprep.subr.bf16.mxu0 %v4677_v11  ;;  %1224 = vmatpush1.bf16.msra.mxu1 %v4705_v47 }
 0x413   :  { %1225 = vmatprep.subr.bf16.mxu1 %v4706_v22 }
 0x415   :  { %2628 = vmatpush3.bf16.msra.mxu0 %v4707_v51 }
 0x416   :  { %2633 = vmatprep.subr.bf16.mxu0 %v4677_v11  ;;  %1226 = vmatpush1.bf16.msra.mxu1 %v4708_v30 }
 0x417   :  { %1365 = vmatprep.subr.bf16.mxu1 %v3925_v39  ;;  %v4712_v39 = vld [vmem:[#allocation17_spill] sm:$0xff] }
 0x4b8   :  { %v1084_v32 = vpop.f32.mrf.mxu0 }
 0x4b9   :  { %v1136_v13 = vadd.f32 %v1084_v32, %v3823_v4 }
 0x4ba   :  { %v3929_v1 = vpop.f32.mrf.mxu0 }
 0x4bb   :  { %v1138_v24 = vadd.f32 %v4710_v63, %v1136_v13 }
 0x4bc   :  { %v1088_v40 = vpop.f32.mrf.mxu0 }
 0x4bd   :  { %v1137_v18 = vadd.f32 %v1088_v40, %v3827_v8  ;;  %v1140_v12 = vsel %vm262_vm0, %v1138_v24, -1e+30 }
 0x4be   :  { %1142 = vmax.xlane.f32.xlu0 %v1140_v12 }
 0x4bf   :  { %v1139_v26 = vadd.f32 %v4710_v63, %v1137_v18 }
 0x4c1   :  { %v1141_v48 = vsel %vm262_vm0, %v1139_v26, -1e+30 }
 0x4c2   :  { %1144 = vmax.xlane.f32.xlu1 %v1141_v48 }
 0x547   :  { %v1143_v60 = vpop.xlane.xlu0 %1142 }
 0x548   :  { %v1146_v0 = vsub.f32 %v1140_v12, %v1143_v60  ;;  %v4713_v60 = vld [vmem:[#allocation18_spill] sm:$0xff] }
 0x54a   :  { %v1148_v4 = vmul.f32 1.442695, %v1146_v0 }
 0x54b   :  { %v1145_v28 = vpop.xlane.xlu1 %1144 }
 0x54c   :  { %2965 = vpow2.f32 %v1148_v4  ;;  %v1147_v14 = vsub.f32 %v1141_v48, %v1145_v28  ;;  %v4714_v48 = vld [vmem:[#allocation19_spill] sm:$0xff]  ;;  %v4715_v28 = vld [vmem:[#allocation20_spill] sm:$0xff] }
 0x54e   :  { %v1150_v32 = vmul.f32 1.442695, %v1147_v14  ;;  %v4716_v14 = vld [vmem:[#allocation21_spill] sm:$0xff] }
 0x550   :  { %2967 = vpow2.f32 %v1150_v32  ;;  %v4717_v32 = vld [vmem:[#allocation22_spill] sm:$0xff] }
 0x559   :  { %v2966_v13 = vpop.eup %2965 }
 0x55a   :  { %1152 = vadd.xlane.f32.xlu0 %v2966_v13 }
 0x55d   :  { %v2968_v8 = vpop.eup %2967 }
 0x55e   :  { %1154 = vadd.xlane.f32.xlu1 %v2968_v8 }
 0x5e3   :  { %v1153_v24 = vpop.xlane.xlu0 %1152 }
 0x5e4   :  { %2969 = vrcp.f32 %v1153_v24  ;;  %v4721_v24 = vld [vmem:[#allocation32_spill] sm:$0xff] }
 0x5e7   :  { %v1155_v40 = vpop.xlane.xlu1 %1154 }
 0x5e8   :  { %2971 = vrcp.f32 %v1155_v40  ;;  %v4722_v40 = vld [vmem:[#allocation11_spill] sm:$0xff] }
 0x5f1   :  { %v2970_v63 = vpop.eup %2969 }
 0x5f2   :  { %v1158_v18 = vmul.f32 %v2970_v63, %v2966_v13  ;;  %v4719_v13 = vld [vmem:[#allocation26_spill] sm:$0xff]  ;;  %v3958_v63 = vpop.f32.mrf.mxu0 }
 0x5f4   :  { %v1160_v12 = vmul.f32 %v1158_v18, %v4712_v39 }
 0x5f5   :  { %v2972_v26 = vpop.eup %2971 }
 0x5f6   :  { %v1159_v46 = vmul.f32 %v2972_v26, %v2968_v8  ;;  %v4720_v8 = vld [vmem:[#allocation29_spill] sm:$0xff] }
 0x5f8   :  { %v1161_v0 = vmul.f32 %v1159_v46, %v4713_v60  ;;  %v4718_v46 = vld [vmem:[#allocation23_spill] sm:$0xff] }
 0x5fa   :  { %v1162_v4 = vpack.c.bf16 %v1161_v0, %v1160_v12 }
 0x5fc   :  { %2630 = vmatmul.mubr.bf16.vlgmr.msra.gmra.mxu0 %v1162_v4 }
 0x5fd   :  { %2634 = vmatpush3.bf16.msra.mxu0 %v4714_v48  ;;  %2649 = vmatprep.mubr.msk.bf16.mxu0 %vm3143_vm1, %v4677_v11 }
 0x5fe   :  { %2635 = vmatprep.subr.bf16.mxu0 %v4677_v11 }
 0x601   :  { %2636 = vmatpush3.bf16.msra.mxu0 %v4715_v28 }
 0x602   :  { %2637 = vmatprep.subr.bf16.mxu0 %v4677_v11 }
 0x605   :  { %2638 = vmatpush3.bf16.msra.mxu0 %v4716_v14 }
 0x606   :  { %2639 = vmatprep.subr.bf16.mxu0 %v4677_v11 }
 0x609   :  { %2640 = vmatpush3.bf16.msra.mxu0 %v4717_v32 }
 0x60a   :  { %2641 = vmatprep.subr.bf16.mxu0 %v4677_v11 }
 0x60d   :  { %2642 = vmatpush3.bf16.msra.mxu0 %v4718_v46 }
 0x60e   :  { %2643 = vmatprep.subr.bf16.mxu0 %v4677_v11 }
 0x611   :  { %2644 = vmatpush3.bf16.msra.mxu0 %v4719_v13 }
 0x612   :  { %2645 = vmatprep.subr.bf16.mxu0 %v4677_v11 }
 0x615   :  { %2646 = vmatpush3.bf16.msra.mxu0 %v4720_v8 }
 0x616   :  { %2647 = vmatprep.subr.bf16.mxu0 %v4677_v11 }
 0x619   :  { %2648 = vmatpush3.bf16.msra.mxu0 %v4721_v24 }
 0x61a   :  { %1408 = vmatprep.subr.bf16.mxu0 %v4722_v40  ;;  %v3967_v40 = vld [vmem:[%s4578_s5 + $0xe0] ss:$16 sps:$4 sm:$0xff]  }
 0x6bc   :  { %v1197_v18 = vpop.f32.mrf.mxu0 }
 0x6bd   :  { %v1204_v26 = vadd.f32 %v1197_v18, %v3825_v6  ;;  %v3974_v6 = vld [vmem:[%s4578_s5 + $0xc4] ss:$16 sps:$4 sm:$0xff]   ;;  %v1127_v18 = vpop.f32.mrf.mxu1 }
 0x6be   :  { %v2631_v12 = vpop.f32.mrf.mxu0 }
 0x6bf   :  { %v1206_v4 = vadd.f32 %v3785_v55, %v1204_v26  ;;  %v1129_v26 = vpop.f32.mrf.mxu1 }
 0x6c0   :  { %v1200_v0 = vpop.f32.mrf.mxu0 }
 0x6c1   :  { %v1205_v13 = vadd.f32 %v1200_v0, %v3829_v10  ;;  %v1208_v32 = vmax.f32 %v1206_v4, 0.0  ;;  %v3983_v10 = vld [vmem:[%s4578_s5 + $0xc0] ss:$16 sps:$4 sm:$0xff]   ;;  %v1131_v12 = vpop.f32.mrf.mxu1 }
 0x6c2   :  { %v2632_v46 = vpop.f32.mrf.mxu0 }
 0x6c3   :  { %v1207_v8 = vadd.f32 %v3785_v55, %v1205_v13  ;;  %v4067_v46 = vld [vmem:[%s4578_s5] ss:$16 sps:$4 sm:$0xff]   ;;  %v4737_v13 = vld [vmem:[#allocation15_spill] sm:$0xff]  ;;  %v1133_v0 = vpop.f32.mrf.mxu1 }
 0x6c4   :  { %4736 = vst [vmem:[#allocation18_spill] sm:$0xff] %v4067_v46 }
 0x6c5   :  { %v1209_v14 = vmax.f32 %v1207_v8, 0.0  ;;  %v4738_v8 = vld [vmem:[#allocation16_spill] sm:$0xff] }
 0x6c7   :  { %v1210_v28 = vpack.c.bf16 %v1209_v14, %v1208_v32  ;;  %v4733_v14 = vld [vmem:[#allocation13_spill] sm:$0xff]  ;;  %v4735_v32 = vld [vmem:[#allocation14_spill] sm:$0xff] }
 0x6c9   :  { %1244 = vmatmul.mubr.bf16.vlgmr.msra.gmra.mxu1 %v1210_v28  ;;  %2650 = vmatmul.mubr.bf16.vlgmr.msra.gmra.mxu0 %v1210_v28  ;;  %v4731_v28 = vld [vmem:[#allocation12_spill] sm:$0xff] }
 0x6ca   :  { %1366 = vmatpush1.bf16.msra.mxu1 %v3967_v40  ;;  %1409 = vmatpush1.bf16.msra.mxu0 %v3499_v17  ;;  %v3990_v17 = vld [vmem:[%s4578_s5 + $0xa4] ss:$16 sps:$4 sm:$0xff]  }
 0x6cb   :  { %1367 = vmatprep.subr.bf16.mxu1 %v3974_v6  ;;  %1410 = vmatprep.subr.bf16.mxu0 %v3504_v19  ;;  %v3997_v19 = vld [vmem:[%s4578_s5 + $0xa0] ss:$16 sps:$4 sm:$0xff]  }
 0x6cc   :  { %1397 = vmatprep.mubr.bf16.mxu1 %v4690_v45  ;;  %1440 = vmatprep.mubr.bf16.mxu0 %v4690_v45  ;;  %4723 = vst [vmem:[#allocation8_spill] sm:$0xff] %v3997_v19 }
 0x6ce   :  { %1368 = vmatpush1.bf16.msra.mxu1 %v3983_v10  ;;  %1411 = vmatpush1.bf16.msra.mxu0 %v3517_v27  ;;  %v4004_v27 = vld [vmem:[%s4578_s5 + $0x84] ss:$16 sps:$4 sm:$0xff]  }
 0x6cf   :  { %1369 = vmatprep.subr.bf16.mxu1 %v3990_v17  ;;  %1412 = vmatprep.subr.bf16.mxu0 %v3523_v29  ;;  %4724 = vst [vmem:[#allocation25_spill] sm:$0xff] %v4004_v27  ;;  %v4011_v29 = vld [vmem:[%s4578_s5 + $0x80] ss:$16 sps:$4 sm:$0xff]  }
 0x6d0   :  { %4725 = vst [vmem:[#allocation27_spill] sm:$0xff] %v4011_v29 }
 0x6d2   :  { %1370 = vmatpush1.bf16.msra.mxu1 %v3997_v19  ;;  %1413 = vmatpush1.bf16.msra.mxu0 %v3536_v34  ;;  %v4018_v34 = vld [vmem:[%s4578_s5 + $0x64] ss:$16 sps:$4 sm:$0xff]  }
 0x6d3   :  { %1371 = vmatprep.subr.bf16.mxu1 %v4004_v27  ;;  %1414 = vmatprep.subr.bf16.mxu0 %v3542_v37  ;;  %4726 = vst [vmem:[#allocation9_spill] sm:$0xff] %v4018_v34  ;;  %v4025_v37 = vld [vmem:[%s4578_s5 + $0x60] ss:$16 sps:$4 sm:$0xff]  }
 0x6d4   :  { %4727 = vst [vmem:[#allocation28_spill] sm:$0xff] %v4025_v37 }
 0x6d6   :  { %1372 = vmatpush1.bf16.msra.mxu1 %v4011_v29  ;;  %1415 = vmatpush1.bf16.msra.mxu0 %v3548_v42  ;;  %v4032_v42 = vld [vmem:[%s4578_s5 + $0x44] ss:$16 sps:$4 sm:$0xff]  }
 0x6d7   :  { %1373 = vmatprep.subr.bf16.mxu1 %v4018_v34  ;;  %1416 = vmatprep.subr.bf16.mxu0 %v3554_v44  ;;  %4728 = vst [vmem:[#allocation30_spill] sm:$0xff] %v4032_v42  ;;  %v4039_v44 = vld [vmem:[%s4578_s5 + $0x40] ss:$16 sps:$4 sm:$0xff]  }
 0x6d8   :  { %4729 = vst [vmem:[#allocation10_spill] sm:$0xff] %v4039_v44 }
 0x6da   :  { %1374 = vmatpush1.bf16.msra.mxu1 %v4025_v37  ;;  %1417 = vmatpush1.bf16.msra.mxu0 %v3567_v49  ;;  %v4046_v49 = vld [vmem:[%s4578_s5 + $0x24] ss:$16 sps:$4 sm:$0xff]  }
 0x6db   :  { %1375 = vmatprep.subr.bf16.mxu1 %v4032_v42  ;;  %1418 = vmatprep.subr.bf16.mxu0 %v3573_v50  ;;  %4730 = vst [vmem:[#allocation31_spill] sm:$0xff] %v4046_v49  ;;  %v4053_v50 = vld [vmem:[%s4578_s5 + $0x20] ss:$16 sps:$4 sm:$0xff]  }
 0x6dc   :  { %4732 = vst [vmem:[#allocation7_spill] sm:$0xff] %v4053_v50 }
 0x6de   :  { %1376 = vmatpush1.bf16.msra.mxu1 %v4039_v44  ;;  %1419 = vmatpush1.bf16.msra.mxu0 %v3579_v52  ;;  %v4060_v52 = vld [vmem:[%s4578_s5 + $0x4] ss:$16 sps:$4 sm:$0xff]   ;;  %v1298_v44 = vadd.f32 %v3958_v63, %v3854_v2 }
 0x6df   :  { %1377 = vmatprep.subr.bf16.mxu1 %v4046_v49  ;;  %1420 = vmatprep.subr.bf16.mxu0 %v4731_v28  ;;  %4734 = vst [vmem:[#allocation17_spill] sm:$0xff] %v4060_v52 }
 0x6e2   :  { %1378 = vmatpush1.bf16.msra.mxu1 %v4053_v50  ;;  %1421 = vmatpush1.bf16.msra.mxu0 %v4733_v14  ;;  %v1295_v14 = vadd.f32 %v3929_v1, %v3854_v2 }
 0x6e3   :  { %1379 = vmatprep.subr.bf16.mxu1 %v4060_v52  ;;  %1422 = vmatprep.subr.bf16.mxu0 %v4735_v32 }
 0x6e6   :  { %1380 = vmatpush1.bf16.msra.mxu1 %v4067_v46  ;;  %1423 = vmatpush1.bf16.msra.mxu0 %v4737_v13 }
 0x6e7   :  { %2653 = vmatprep.subr.bf16.mxu1 %v4677_v11  ;;  %1526 = vmatprep.subr.bf16.mxu0 %v4738_v8 }
 0x789   :  { %v1245_v4 = vpop.f32.mrf.mxu1  ;;  %v1288_v28 = vpop.f32.mrf.mxu0 }
 0x78a   :  { %v1246_v32 = vadd.f32 %v1245_v4, %v3856_v43  ;;  %v1296_v4 = vadd.f32 %v1127_v18, %v3865_v16 }
 0x78b   :  { %v1247_v52 = vpop.f32.mrf.mxu1  ;;  %v2651_v50 = vpop.f32.mrf.mxu0 }
 0x78c   :  { %v1301_v46 = vadd.f32 %v1295_v14, %v1246_v32  ;;  %v1248_v29 = vadd.f32 %v1247_v52, %v3861_v20  ;;  %v1299_v14 = vadd.f32 %v1131_v12, %v3865_v16 }
 0x78d   :  { %v1249_v49 = vpop.f32.mrf.mxu1  ;;  %v1291_v13 = vpop.f32.mrf.mxu0 }
 0x78e   :  { %v2436_v8 = vmul.f32 -1.442695, %v1301_v46  ;;  %v1250_v42 = vadd.f32 %v1249_v49, %v3856_v43  ;;  %v1302_v32 = vadd.f32 %v1296_v4, %v1248_v29  ;;  %v1289_v29 = vadd.f32 %v1288_v28, %v3874_v9 }
 0x78f   :  { %v1251_v37 = vpop.f32.mrf.mxu1  ;;  %v2652_v34 = vpop.f32.mrf.mxu0 }
 0x790   :  { %2973 = vpow2.f32 %v2436_v8  ;;  %v1303_v27 = vadd.f32 %v1298_v44, %v1250_v42  ;;  %v1252_v1 = vadd.f32 %v1251_v37, %v3861_v20  ;;  %v2437_v63 = vmul.f32 -1.442695, %v1302_v32 }
 0x791   :  { %v1297_v44 = vadd.f32 %v1129_v26, %v3872_v59 }
 0x792   :  { %v2438_v50 = vmul.f32 -1.442695, %v1303_v27  ;;  %v1304_v19 = vadd.f32 %v1299_v14, %v1252_v1  ;;  %v1292_v14 = vadd.f32 %v1291_v13, %v3874_v9 }
 0x794   :  { %2975 = vpow2.f32 %v2438_v50  ;;  %v2439_v46 = vmul.f32 -1.442695, %v1304_v19  ;;  %v1300_v19 = vadd.f32 %v1133_v0, %v3872_v59 }
 0x795   :  { %2977 = vpow2.f32 %v2437_v63 }
 0x796   :  { %2979 = vpow2.f32 %v2439_v46 }
 0x79d   :  { %v2974_v49 = vpop.eup %2973 }
 0x79e   :  { %v1317_v34 = vadd.f32 1.0, %v2974_v49 }
 0x7a0   :  { %2981 = vrcp.f32 %v1317_v34 }
 0x7a1   :  { %v2976_v8 = vpop.eup %2975 }
 0x7a2   :  { %v1319_v52 = vadd.f32 1.0, %v2976_v8  ;;  %v2978_v42 = vpop.eup %2977 }
 0x7a3   :  { %v2980_v37 = vpop.eup %2979  ;;  %v1318_v27 = vadd.f32 1.0, %v2978_v42 }
 0x7a4   :  { %2983 = vrcp.f32 %v1319_v52  ;;  %v1320_v12 = vadd.f32 1.0, %v2980_v37 }
 0x7a5   :  { %2985 = vrcp.f32 %v1318_v27 }
 0x7a6   :  { %2987 = vrcp.f32 %v1320_v12 }
 0x7ad   :  { %v2982_v18 = vpop.eup %2981 }
 0x7ae   :  { %v1329_v1 = vmul.f32 %v2982_v18, %v1297_v44  ;;  %v4105_v18 = vld [vmem:[%s4579_s6 + $0x30] sm:$0xff]  }
 0x7b0   :  { %v1331_v4 = vadd.f32 %v1329_v1, %v1289_v29 }
 0x7b1   :  { %v2984_v50 = vpop.eup %2983 }
 0x7b2   :  { %2989 = vtanh.f32 %v1331_v4  ;;  %v1330_v32 = vmul.f32 %v2984_v50, %v1300_v19  ;;  %v2986_v46 = vpop.eup %2985 }
 0x7b3   :  { %v2988_v26 = vpop.eup %2987  ;;  %v1335_v34 = vsub.f32 1.0, %v2986_v46  ;;  %v1339_v0 = vmul.f32 %v2986_v46, %v3882_v58  ;;  %v4743_v46 = vld [vmem:[#allocation20_spill] sm:$0xff] }
 0x7b4   :  { %v1332_v63 = vadd.f32 %v1330_v32, %v1292_v14  ;;  %v1336_v8 = vsub.f32 1.0, %v2988_v26  ;;  %v1340_v37 = vmul.f32 %v2988_v26, %v3884_v15  ;;  %v4744_v26 = vld [vmem:[#allocation21_spill] sm:$0xff] }
 0x7b6   :  { %2991 = vtanh.f32 %v1332_v63 }
 0x7bf   :  { %v2990_v49 = vpop.eup %2989 }
 0x7c0   :  { %v1337_v52 = vmul.f32 %v2990_v49, %v1335_v34  ;;  %v4748_v49 = vld [vmem:[#allocation29_spill] sm:$0xff] }
 0x7c1   :  { %v3067_v34 = vld [vmem:[%s4578_s5 + $0xec] ss:$16 sps:$4 sm:$0xff]  }
 0x7c2   :  { %v4089_v44 = vadd.f32 %v1339_v0, %v1337_v52 }
 0x7c3   :  { %v2992_v28 = vpop.eup %2991 }
 0x7c4   :  { %v1338_v42 = vmul.f32 %v2992_v28, %v1336_v8  ;;  %v4749_v28 = vld [vmem:[#allocation34_spill] sm:$0xff] }
 0x7c6   :  { %v4091_v27 = vadd.f32 %v1340_v37, %v1338_v42 }
 0x7c8   :  { %v1364_v13 = vpack.c.bf16 %v4091_v27, %v4089_v44 }
 0x7ca   :  { %1398 = vmatmul.mubr.bf16.vlgmr.msra.gmra.mxu1 %v1364_v13  ;;  %1441 = vmatmul.mubr.bf16.vlgmr.msra.gmra.mxu0 %v1364_v13 }
 0x7cb   :  { %2654 = vmatpush3.bf16.msra.mxu1 %v3429_v54  ;;  %2669 = vmatprep.mubr.msk.bf16.mxu1 %vm3143_vm1, %v4677_v11  ;;  %v4739_v54 = vld [vmem:[#allocation24_spill] sm:$0xff] }
 0x7cc   :  { %2655 = vmatprep.subr.bf16.mxu1 %v4677_v11  ;;  %1527 = vmatpush1.bf16.msra.mxu0 %v3616_v61 }
 0x7cd   :  { %1528 = vmatprep.subr.bf16.mxu0 %v3622_v62  ;;  %1558 = vmatprep.mubr.bf16.mxu0 %v4690_v45  ;;  %v4141_v62 = vld [vmem:[%s4581_s8] ss:$0 sm:$0xff]  ;;  %s4764_s8 = sld [smem:[#allocation41_spill]] }
 0x7cf   :  { %2656 = vmatpush3.bf16.msra.mxu1 %v4105_v18 }
 0x7d0   :  { %2657 = vmatprep.subr.bf16.mxu1 %v4677_v11  ;;  %1529 = vmatpush1.bf16.msra.mxu0 %v3629_v21 }
 0x7d1   :  { %1530 = vmatprep.subr.bf16.mxu0 %v3636_v23 }
 0x7d3   :  { %2658 = vmatpush3.bf16.msra.mxu1 %v3450_v3 }
 0x7d4   :  { %2659 = vmatprep.subr.bf16.mxu1 %v4677_v11  ;;  %1531 = vmatpush1.bf16.msra.mxu0 %v3642_v38  ;;  %v4741_v38 = vld [vmem:[#allocation35_spill] sm:$0xff] }
 0x7d5   :  { %1532 = vmatprep.subr.bf16.mxu0 %v3648_v25 }
 0x7d7   :  { %2660 = vmatpush3.bf16.msra.mxu1 %v3457_v5  ;;  %v4740_v5 = vld [vmem:[#allocation33_spill] sm:$0xff] }
 0x7d8   :  { %2661 = vmatprep.subr.bf16.mxu1 %v4677_v11  ;;  %1533 = vmatpush1.bf16.msra.mxu0 %v3654_v31  ;;  %v61_v31 = vld [vmem:[%s4764_s8] sm:$0xff] }
 0x7d9   :  { %1534 = vmatprep.subr.bf16.mxu0 %v3660_v33  ;;  %vm1028_vm3 = vcmp.eq.s32.totalorder %v61_v31, 1  ;;  %vm1343_vm4 = vcmp.eq.s32.totalorder %v61_v31, 2  ;;  %vm1658_vm6 = vcmp.eq.s32.totalorder %v61_v31, 3  ;;  %vm1973_vm8 = vcmp.eq.s32.totalorder %v61_v31, 4  ;;  %v2920_v31 = vld [vmem:[%s4585_s12 + $0x58] sm:$0xff]  }
 0x7db   :  { %2662 = vmatpush3.bf16.msra.mxu1 %v3463_v7 }
 0x7dc   :  { %2663 = vmatprep.subr.bf16.mxu1 %v4677_v11  ;;  %1535 = vmatpush1.bf16.msra.mxu0 %v3666_v41 }
 0x7dd   :  { %1536 = vmatprep.subr.bf16.mxu0 %v4700_v35 }
 0x7df   :  { %2664 = vmatpush3.bf16.msra.mxu1 %v4701_v36 }
 0x7e0   :  { %2665 = vmatprep.subr.bf16.mxu1 %v4677_v11  ;;  %1537 = vmatpush1.bf16.msra.mxu0 %v4702_v56 }
 0x7e1   :  { %1538 = vmatprep.subr.bf16.mxu0 %v4703_v57 }
 0x7e3   :  { %2666 = vmatpush3.bf16.msra.mxu1 %v4704_v53 }
 0x7e4   :  { %2667 = vmatprep.subr.bf16.mxu1 %v4677_v11  ;;  %1539 = vmatpush1.bf16.msra.mxu0 %v4705_v47 }
 0x7e5   :  { %1540 = vmatprep.subr.bf16.mxu0 %v4706_v22 }
 0x7e7   :  { %2668 = vmatpush3.bf16.msra.mxu1 %v4707_v51 }
 0x7e8   :  { %2673 = vmatprep.subr.bf16.mxu1 %v4677_v11  ;;  %1541 = vmatpush1.bf16.msra.mxu0 %v4708_v30 }
 0x7e9   :  { %1680 = vmatprep.subr.bf16.mxu0 %v4739_v54  ;;  %v4750_v54 = vld [vmem:[#allocation36_spill] sm:$0xff] }
 0x88a   :  { %v1399_v3 = vpop.f32.mrf.mxu1 }
 0x88b   :  { %v1451_v7 = vadd.f32 %v1399_v3, %v4740_v5 }
 0x88c   :  { %v4136_v61 = vpop.f32.mrf.mxu1 }
 0x88d   :  { %v1453_v21 = vadd.f32 %v4141_v62, %v1451_v7 }
 0x88e   :  { %v1403_v23 = vpop.f32.mrf.mxu1 }
 0x88f   :  { %v1452_v25 = vadd.f32 %v1403_v23, %v4741_v38  ;;  %v1455_v33 = vsel %vm262_vm0, %v1453_v21, -1e+30  ;;  %v3068_v38 = vld [vmem:[%s4578_s5 + $0xe8] ss:$16 sps:$4 sm:$0xff]  }
 0x890   :  { %1457 = vmax.xlane.f32.xlu0 %v1455_v33  ;;  %v4172_v8 = vpop.f32.mrf.mxu1 }
 0x891   :  { %v1454_v41 = vadd.f32 %v4141_v62, %v1452_v25  ;;  %v3069_v25 = vld [vmem:[%s4578_s5 + $0xcc] ss:$16 sps:$4 sm:$0xff]  }
 0x893   :  { %v1456_v35 = vsel %vm262_vm0, %v1454_v41, -1e+30  ;;  %v3073_v41 = vld [vmem:[%s4578_s5 + $0x8c] ss:$16 sps:$4 sm:$0xff]  }
 0x894   :  { %1459 = vmax.xlane.f32.xlu1 %v1456_v35 }
 0x919   :  { %v1458_v36 = vpop.xlane.xlu0 %1457 }
 0x91a   :  { %v1461_v56 = vsub.f32 %v1455_v33, %v1458_v36  ;;  %v3072_v33 = vld [vmem:[%s4578_s5 + $0xa8] ss:$16 sps:$4 sm:$0xff]  }
 0x91b   :  { %v4754_v36 = vld [vmem:[#allocation9_spill] sm:$0xff] }
 0x91c   :  { %v1463_v57 = vmul.f32 1.442695, %v1461_v56  ;;  %v3075_v56 = vld [vmem:[%s4578_s5 + $0x6c] ss:$16 sps:$4 sm:$0xff]  }
 0x91d   :  { %v1460_v53 = vpop.xlane.xlu1 %1459 }
 0x91e   :  { %2993 = vpow2.f32 %v1463_v57  ;;  %v1462_v47 = vsub.f32 %v1456_v35, %v1460_v53  ;;  %v3074_v35 = vld [vmem:[%s4578_s5 + $0x88] ss:$16 sps:$4 sm:$0xff]   ;;  %v4755_v57 = vld [vmem:[#allocation28_spill] sm:$0xff] }
 0x91f   :  { %v3076_v53 = vld [vmem:[%s4578_s5 + $0x68] ss:$16 sps:$4 sm:$0xff]  }
 0x920   :  { %v1465_v22 = vmul.f32 1.442695, %v1462_v47  ;;  %v4756_v47 = vld [vmem:[#allocation30_spill] sm:$0xff] }
 0x922   :  { %2995 = vpow2.f32 %v1465_v22  ;;  %v3077_v22 = vld [vmem:[%s4578_s5 + $0x4c] ss:$16 sps:$4 sm:$0xff]  }
 0x92b   :  { %v2994_v51 = vpop.eup %2993 }
 0x92c   :  { %1467 = vadd.xlane.f32.xlu0 %v2994_v51 }
 0x92f   :  { %v2996_v30 = vpop.eup %2995 }
 0x930   :  { %1469 = vadd.xlane.f32.xlu1 %v2996_v30 }
 0x9b5   :  { %v1468_v12 = vpop.xlane.xlu0 %1467 }
 0x9b6   :  { %2997 = vrcp.f32 %v1468_v12  ;;  %v4758_v12 = vld [vmem:[#allocation31_spill] sm:$0xff] }
 0x9b9   :  { %v1470_v29 = vpop.xlane.xlu1 %1469 }
 0x9ba   :  { %2999 = vrcp.f32 %v1470_v29  ;;  %v3079_v29 = vld [vmem:[%s4578_s5 + $0x2c] ss:$16 sps:$4 sm:$0xff]  }
 0x9c3   :  { %v2998_v1 = vpop.eup %2997 }
 0x9c4   :  { %v1473_v19 = vmul.f32 %v2998_v1, %v2994_v51  ;;  %v4757_v51 = vld [vmem:[#allocation10_spill] sm:$0xff]  ;;  %v4759_v1 = vld [vmem:[#allocation7_spill] sm:$0xff] }
 0x9c6   :  { %v1475_v14 = vmul.f32 %v1473_v19, %v4712_v39  ;;  %v4745_v39 = vld [vmem:[#allocation22_spill] sm:$0xff]  ;;  %v3080_v19 = vld [vmem:[%s4578_s5 + $0x28] ss:$16 sps:$4 sm:$0xff]  }
 0x9c7   :  { %v3000_v4 = vpop.eup %2999 }
 0x9c8   :  { %v1474_v50 = vmul.f32 %v3000_v4, %v2996_v30  ;;  %v3078_v30 = vld [vmem:[%s4578_s5 + $0x48] ss:$16 sps:$4 sm:$0xff]  }
 0x9c9   :  { %v4760_v4 = vld [vmem:[#allocation17_spill] sm:$0xff] }
 0x9ca   :  { %v1476_v32 = vmul.f32 %v1474_v50, %v4713_v60  ;;  %v4746_v60 = vld [vmem:[#allocation23_spill] sm:$0xff] }
 0x9cb   :  { %v3081_v50 = vld [vmem:[%s4578_s5 + $0xc] ss:$16 sps:$4 sm:$0xff]  }
 0x9cc   :  { %v1477_v63 = vpack.c.bf16 %v1476_v32, %v1475_v14  ;;  %v4761_v14 = vld [vmem:[#allocation18_spill] sm:$0xff]  ;;  %v3082_v32 = vld [vmem:[%s4578_s5 + $0x8] ss:$16 sps:$4 sm:$0xff]  }
 0x9ce   :  { %2670 = vmatmul.mubr.bf16.vlgmr.msra.gmra.mxu1 %v1477_v63  ;;  %v3083_v63 = vld [vmem:[%s4580_s7 + $0xac] ss:$12 sps:$4 sm:$0xff]  }
 0x9cf   :  { %2674 = vmatpush3.bf16.msra.mxu1 %v4714_v48  ;;  %2689 = vmatprep.mubr.msk.bf16.mxu1 %vm3143_vm1, %v4677_v11  ;;  %v4747_v48 = vld [vmem:[#allocation26_spill] sm:$0xff] }
 0x9d0   :  { %2675 = vmatprep.subr.bf16.mxu1 %v4677_v11 }
 0x9d3   :  { %2676 = vmatpush3.bf16.msra.mxu1 %v4743_v46  ;;  %v1442_v46 = vpop.f32.mrf.mxu0 }
 0x9d4   :  { %2677 = vmatprep.subr.bf16.mxu1 %v4677_v11 }
 0x9d7   :  { %2678 = vmatpush3.bf16.msra.mxu1 %v4744_v26  ;;  %v1444_v26 = vpop.f32.mrf.mxu0 }
 0x9d8   :  { %2679 = vmatprep.subr.bf16.mxu1 %v4677_v11 }
 0x9db   :  { %2680 = vmatpush3.bf16.msra.mxu1 %v4745_v39  ;;  %v1446_v39 = vpop.f32.mrf.mxu0 }
 0x9dc   :  { %2681 = vmatprep.subr.bf16.mxu1 %v4677_v11 }
 0x9df   :  { %2682 = vmatpush3.bf16.msra.mxu1 %v4746_v60  ;;  %v1448_v60 = vpop.f32.mrf.mxu0 }
 0x9e0   :  { %2683 = vmatprep.subr.bf16.mxu1 %v4677_v11 }
 0x9e3   :  { %2684 = vmatpush3.bf16.msra.mxu1 %v4747_v48 }
 0x9e4   :  { %2685 = vmatprep.subr.bf16.mxu1 %v4677_v11 }
 0x9e7   :  { %2686 = vmatpush3.bf16.msra.mxu1 %v4748_v49 }
 0x9e8   :  { %2687 = vmatprep.subr.bf16.mxu1 %v4677_v11 }
 0x9eb   :  { %2688 = vmatpush3.bf16.msra.mxu1 %v4721_v24 }
 0x9ec   :  { %1723 = vmatprep.subr.bf16.mxu1 %v3067_v34  ;;  %v1610_v34 = vadd.f32 %v4136_v61, %v3854_v2 }
 0xa8e   :  { %v1512_v52 = vpop.f32.mrf.mxu1 }
 0xa8f   :  { %v1519_v42 = vadd.f32 %v1512_v52, %v4749_v28 }
 0xa90   :  { %v2671_v0 = vpop.f32.mrf.mxu1 }
 0xa91   :  { %v1521_v13 = vadd.f32 %v3785_v55, %v1519_v42 }
 0xa92   :  { %v1515_v37 = vpop.f32.mrf.mxu1 }
 0xa93   :  { %v1520_v3 = vadd.f32 %v1515_v37, %v4750_v54  ;;  %v1523_v24 = vmax.f32 %v1521_v13, 0.0  ;;  %v1613_v54 = vadd.f32 %v4172_v8, %v3854_v2 }
 0xa94   :  { %v2672_v5 = vpop.f32.mrf.mxu1 }
 0xa95   :  { %v1522_v7 = vadd.f32 %v3785_v55, %v1520_v3  ;;  %v3070_v55 = vld [vmem:[%s4578_s5 + $0xc8] ss:$16 sps:$4 sm:$0xff]  }
 0xa97   :  { %v1524_v21 = vmax.f32 %v1522_v7, 0.0 }
 0xa99   :  { %v1525_v23 = vpack.c.bf16 %v1524_v21, %v1523_v24 }
 0xa9b   :  { %1559 = vmatmul.mubr.bf16.vlgmr.msra.gmra.mxu0 %v1525_v23  ;;  %2690 = vmatmul.mubr.bf16.vlgmr.msra.gmra.mxu1 %v1525_v23 }
 0xa9c   :  { %1681 = vmatpush1.bf16.msra.mxu0 %v3967_v40  ;;  %1724 = vmatpush1.bf16.msra.mxu1 %v3068_v38  ;;  %v3071_v40 = vld [vmem:[%s4578_s5 + $0xac] ss:$16 sps:$4 sm:$0xff]   ;;  %v1611_v38 = vadd.f32 %v1442_v46, %v3865_v16 }
 0xa9d   :  { %1682 = vmatprep.subr.bf16.mxu0 %v3974_v6  ;;  %1725 = vmatprep.subr.bf16.mxu1 %v3069_v25  ;;  %v4751_v6 = vld [vmem:[#allocation8_spill] sm:$0xff] }
 0xa9e   :  { %1712 = vmatprep.mubr.bf16.mxu0 %v4690_v45  ;;  %1755 = vmatprep.mubr.bf16.mxu1 %v4690_v45 }
 0xaa0   :  { %1683 = vmatpush1.bf16.msra.mxu0 %v3983_v10  ;;  %1726 = vmatpush1.bf16.msra.mxu1 %v3070_v55  ;;  %v4752_v10 = vld [vmem:[#allocation25_spill] sm:$0xff]  ;;  %v1614_v55 = vadd.f32 %v1446_v39, %v3865_v16 }
 0xaa1   :  { %1684 = vmatprep.subr.bf16.mxu0 %v3990_v17  ;;  %1727 = vmatprep.subr.bf16.mxu1 %v3071_v40  ;;  %v4753_v17 = vld [vmem:[#allocation27_spill] sm:$0xff] }
 0xaa4   :  { %1685 = vmatpush1.bf16.msra.mxu0 %v4751_v6  ;;  %1728 = vmatpush1.bf16.msra.mxu1 %v3072_v33 }
 0xaa5   :  { %1686 = vmatprep.subr.bf16.mxu0 %v4752_v10  ;;  %1729 = vmatprep.subr.bf16.mxu1 %v3073_v41 }
 0xaa8   :  { %1687 = vmatpush1.bf16.msra.mxu0 %v4753_v17  ;;  %1730 = vmatpush1.bf16.msra.mxu1 %v3074_v35 }
 0xaa9   :  { %1688 = vmatprep.subr.bf16.mxu0 %v4754_v36  ;;  %1731 = vmatprep.subr.bf16.mxu1 %v3075_v56 }
 0xaac   :  { %1689 = vmatpush1.bf16.msra.mxu0 %v4755_v57  ;;  %1732 = vmatpush1.bf16.msra.mxu1 %v3076_v53  ;;  %v1612_v57 = vadd.f32 %v1444_v26, %v3872_v59 }
 0xaad   :  { %1690 = vmatprep.subr.bf16.mxu0 %v4756_v47  ;;  %1733 = vmatprep.subr.bf16.mxu1 %v3077_v22 }
 0xab0   :  { %1691 = vmatpush1.bf16.msra.mxu0 %v4757_v51  ;;  %1734 = vmatpush1.bf16.msra.mxu1 %v3078_v30 }
 0xab1   :  { %1692 = vmatprep.subr.bf16.mxu0 %v4758_v12  ;;  %1735 = vmatprep.subr.bf16.mxu1 %v3079_v29  ;;  %v1615_v12 = vadd.f32 %v1448_v60, %v3872_v59 }
 0xab4   :  { %1693 = vmatpush1.bf16.msra.mxu0 %v4759_v1  ;;  %1736 = vmatpush1.bf16.msra.mxu1 %v3080_v19 }
 0xab5   :  { %1694 = vmatprep.subr.bf16.mxu0 %v4760_v4  ;;  %1737 = vmatprep.subr.bf16.mxu1 %v3081_v50 }
 0xab8   :  { %1695 = vmatpush1.bf16.msra.mxu0 %v4761_v14  ;;  %1738 = vmatpush1.bf16.msra.mxu1 %v3082_v32 }
 0xab9   :  { %2693 = vmatprep.subr.bf16.mxu0 %v4677_v11  ;;  %1841 = vmatprep.subr.bf16.mxu1 %v3083_v63 }
 0xb5b   :  { %v1560_v48 = vpop.f32.mrf.mxu0  ;;  %v1603_v49 = vpop.f32.mrf.mxu1 }
 0xb5c   :  { %v1561_v52 = vadd.f32 %v1560_v48, %v3856_v43  ;;  %v1604_v51 = vadd.f32 %v1603_v49, %v3874_v9 }
 0xb5d   :  { %v1562_v28 = vpop.f32.mrf.mxu0  ;;  %v2691_v42 = vpop.f32.mrf.mxu1 }
 0xb5e   :  { %v1616_v0 = vadd.f32 %v1610_v34, %v1561_v52  ;;  %v1563_v21 = vadd.f32 %v1562_v28, %v3861_v20 }
 0xb5f   :  { %v1564_v37 = vpop.f32.mrf.mxu0  ;;  %v1606_v13 = vpop.f32.mrf.mxu1 }
 0xb60   :  { %v2440_v3 = vmul.f32 -1.442695, %v1616_v0  ;;  %v1565_v5 = vadd.f32 %v1564_v37, %v3856_v43  ;;  %v1617_v40 = vadd.f32 %v1611_v38, %v1563_v21  ;;  %v1607_v19 = vadd.f32 %v1606_v13, %v3874_v9  ;;  %v3084_v0 = vld [vmem:[%s4579_s6 + $0x38] sm:$0xff]   ;;  %v3085_v37 = vld [vmem:[%s4580_s7 + $0xa8] ss:$12 sps:$4 sm:$0xff]  }
 0xb61   :  { %v1566_v7 = vpop.f32.mrf.mxu0  ;;  %v2692_v24 = vpop.f32.mrf.mxu1  ;;  %v3086_v13 = vld [vmem:[%s4580_s7 + $0x94] ss:$12 sps:$4 sm:$0xff]  }
 0xb62   :  { %3001 = vpow2.f32 %v2440_v3  ;;  %v1618_v23 = vadd.f32 %v1613_v54, %v1565_v5  ;;  %v1567_v61 = vadd.f32 %v1566_v7, %v3861_v20  ;;  %v2441_v8 = vmul.f32 -1.442695, %v1617_v40  ;;  %v3087_v54 = vld [vmem:[%s4580_s7 + $0x90] ss:$12 sps:$4 sm:$0xff]   ;;  %v3089_v5 = vld [vmem:[%s4579_s6 + $0x28] sm:$0xff]   ;;  %v3092_v24 = vld [vmem:[%s4579_s6 + $0x20] sm:$0xff]  }
 0xb63   :  { %v3088_v3 = vld [vmem:[%s4580_s7 + $0x7c] ss:$12 sps:$4 sm:$0xff]   ;;  %v3091_v7 = vld [vmem:[%s4580_s7 + $0x64] ss:$12 sps:$4 sm:$0xff]   ;;  %v3093_v21 = vld [vmem:[%s4580_s7 + $0x60] ss:$12 sps:$4 sm:$0xff]  }
 0xb64   :  { %v2442_v25 = vmul.f32 -1.442695, %v1618_v23  ;;  %v1619_v6 = vadd.f32 %v1614_v55, %v1567_v61  ;;  %v3094_v23 = vld [vmem:[%s4580_s7 + $0x4c] ss:$12 sps:$4 sm:$0xff]   ;;  %v3096_v38 = vld [vmem:[%s4580_s7 + $0x48] ss:$12 sps:$4 sm:$0xff]  }
 0xb65   :  { %v3095_v61 = vld [vmem:[%s4579_s6 + $0x18] sm:$0xff]   ;;  %v3098_v55 = vld [vmem:[%s4579_s6 + $0x10] sm:$0xff]  }
 0xb66   :  { %3003 = vpow2.f32 %v2442_v25  ;;  %v2443_v33 = vmul.f32 -1.442695, %v1619_v6  ;;  %v3097_v25 = vld [vmem:[%s4580_s7 + $0x34] ss:$12 sps:$4 sm:$0xff]   ;;  %v3099_v40 = vld [vmem:[%s4580_s7 + $0x30] ss:$12 sps:$4 sm:$0xff]  }
 0xb67   :  { %3005 = vpow2.f32 %v2441_v8  ;;  %v3100_v6 = vld [vmem:[%s4580_s7 + $0x1c] ss:$12 sps:$4 sm:$0xff]  }
 0xb68   :  { %3007 = vpow2.f32 %v2443_v33  ;;  %v3101_v8 = vld [vmem:[%s4579_s6 + $0x8] sm:$0xff]   ;;  %v3102_v33 = vld [vmem:[%s4580_s7 + $0x18] ss:$12 sps:$4 sm:$0xff]  }
 0xb6f   :  { %v3002_v10 = vpop.eup %3001 }
 0xb70   :  { %v1632_v41 = vadd.f32 1.0, %v3002_v10  ;;  %v3103_v10 = vld [vmem:[%s4580_s7 + $0x4] ss:$12 sps:$4 sm:$0xff]  }
 0xb72   :  { %3009 = vrcp.f32 %v1632_v41  ;;  %v3104_v41 = vld [vmem:[%s4579_s6] sm:$0xff]  }
 0xb73   :  { %v3004_v17 = vpop.eup %3003 }
 0xb74   :  { %v1634_v35 = vadd.f32 1.0, %v3004_v17  ;;  %v3006_v36 = vpop.eup %3005  ;;  %v3105_v17 = vld [vmem:[%s4580_s7] ss:$12 sps:$4 sm:$0xff]  }
 0xb75   :  { %v3008_v56 = vpop.eup %3007  ;;  %v1633_v53 = vadd.f32 1.0, %v3006_v36  ;;  %v4762_v36 = vld [vmem:[#allocation37_spill] sm:$0xff] }
 0xb76   :  { %3011 = vrcp.f32 %v1634_v35  ;;  %v1635_v22 = vadd.f32 1.0, %v3008_v56 }
 0xb77   :  { %3013 = vrcp.f32 %v1633_v53 }
 0xb78   :  { %3015 = vrcp.f32 %v1635_v22  ;;  %v4763_v22 = vld [vmem:[#allocation39_spill] sm:$0xff] }
 0xb7f   :  { %v3010_v47 = vpop.eup %3009 }
 0xb80   :  { %v1644_v30 = vmul.f32 %v3010_v47, %v1612_v57 }
 0xb82   :  { %v1646_v29 = vadd.f32 %v1644_v30, %v1604_v51 }
 0xb83   :  { %v3012_v1 = vpop.eup %3011 }
 0xb84   :  { %3017 = vtanh.f32 %v1646_v29  ;;  %v1645_v4 = vmul.f32 %v3012_v1, %v1615_v12  ;;  %v3014_v14 = vpop.eup %3013 }
 0xb85   :  { %v3016_v32 = vpop.eup %3015  ;;  %v1650_v46 = vsub.f32 1.0, %v3014_v14  ;;  %v1654_v60 = vmul.f32 %v3014_v14, %v4089_v44 }
 0xb86   :  { %v1647_v50 = vadd.f32 %v1645_v4, %v1607_v19  ;;  %v1651_v26 = vsub.f32 1.0, %v3016_v32  ;;  %v1655_v34 = vmul.f32 %v3016_v32, %v4091_v27 }
 0xb88   :  { %3019 = vtanh.f32 %v1647_v50 }
 0xb91   :  { %v3018_v63 = vpop.eup %3017 }
 0xb92   :  { %v1652_v39 = vmul.f32 %v3018_v63, %v1650_v46 }
 0xb94   :  { %v4260_v52 = vadd.f32 %v1654_v60, %v1652_v39  ;;  %v1030_v39 = vsel %vm1028_vm3, 1, %v4690_v45  ;;  %v1660_v60 = vsel %vm1658_vm6, 1, %v4690_v45 }
 0xb95   :  { %v3020_v48 = vpop.eup %3019 }
 0xb96   :  { %v1653_v49 = vmul.f32 %v3020_v48, %v1651_v26  ;;  %v1345_v48 = vsel %vm1343_vm4, 1, %v4690_v45 }
 0xb98   :  { %v4262_v28 = vadd.f32 %v1655_v34, %v1653_v49 }
 0xb9a   :  { %v1679_v42 = vpack.c.bf16 %v4262_v28, %v4260_v52 }
 0xb9c   :  { %1713 = vmatmul.mubr.bf16.vlgmr.msra.gmra.mxu0 %v1679_v42  ;;  %1756 = vmatmul.mubr.bf16.vlgmr.msra.gmra.mxu1 %v1679_v42 }
 0xb9d   :  { %2694 = vmatpush3.bf16.msra.mxu0 %v3084_v0  ;;  %2709 = vmatprep.mubr.msk.bf16.mxu0 %vm3143_vm1, %v4677_v11 }
 0xb9e   :  { %2695 = vmatprep.subr.bf16.mxu0 %v4677_v11  ;;  %1842 = vmatpush1.bf16.msra.mxu1 %v3085_v37 }
 0xb9f   :  { %1843 = vmatprep.subr.bf16.mxu1 %v3086_v13  ;;  %1873 = vmatprep.mubr.bf16.mxu1 %v4690_v45 }
 0xba1   :  { %2696 = vmatpush3.bf16.msra.mxu0 %v4105_v18  ;;  %v3090_v18 = vld [vmem:[%s4580_s7 + $0x78] ss:$12 sps:$4 sm:$0xff]  }
 0xba2   :  { %2697 = vmatprep.subr.bf16.mxu0 %v4677_v11  ;;  %1844 = vmatpush1.bf16.msra.mxu1 %v3087_v54 }
 0xba3   :  { %1845 = vmatprep.subr.bf16.mxu1 %v3088_v3 }
 0xba5   :  { %2698 = vmatpush3.bf16.msra.mxu0 %v3089_v5  ;;  %v4375_v5 = vld [vmem:[%s4575_s2] sm:$0xff] }
 0xba6   :  { %2699 = vmatprep.subr.bf16.mxu0 %v4677_v11  ;;  %1846 = vmatpush1.bf16.msra.mxu1 %v3090_v18 }
 0xba7   :  { %1847 = vmatprep.subr.bf16.mxu1 %v3091_v7  ;;  %v4381_v7 = vld [vmem:[%s4575_s2 + $0x8] sm:$0xff] }
 0xba9   :  { %2700 = vmatpush3.bf16.msra.mxu0 %v3092_v24 }
 0xbaa   :  { %2701 = vmatprep.subr.bf16.mxu0 %v4677_v11  ;;  %1848 = vmatpush1.bf16.msra.mxu1 %v3093_v21 }
 0xbab   :  { %1849 = vmatprep.subr.bf16.mxu1 %v3094_v23  ;;  %v3108_v23 = vld [vmem:[%s4580_s7 + $0xb0] ss:$12 sps:$4 sm:$0xff]  }
 0xbad   :  { %2702 = vmatpush3.bf16.msra.mxu0 %v3095_v61  ;;  %v3109_v61 = vld [vmem:[%s4580_s7 + $0x98] ss:$12 sps:$4 sm:$0xff]  }
 0xbae   :  { %2703 = vmatprep.subr.bf16.mxu0 %v4677_v11  ;;  %1850 = vmatpush1.bf16.msra.mxu1 %v3096_v38  ;;  %v3110_v38 = vld [vmem:[%s4580_s7 + $0x80] ss:$12 sps:$4 sm:$0xff]  }
 0xbaf   :  { %1851 = vmatprep.subr.bf16.mxu1 %v3097_v25  ;;  %v3111_v25 = vld [vmem:[%s4580_s7 + $0x68] ss:$12 sps:$4 sm:$0xff]  }
 0xbb1   :  { %2704 = vmatpush3.bf16.msra.mxu0 %v3098_v55  ;;  %v3112_v55 = vld [vmem:[%s4580_s7 + $0x50] ss:$12 sps:$4 sm:$0xff]  }
 0xbb2   :  { %2705 = vmatprep.subr.bf16.mxu0 %v4677_v11  ;;  %1852 = vmatpush1.bf16.msra.mxu1 %v3099_v40  ;;  %v3113_v40 = vld [vmem:[%s4580_s7 + $0x38] ss:$12 sps:$4 sm:$0xff]  }
 0xbb3   :  { %1853 = vmatprep.subr.bf16.mxu1 %v3100_v6  ;;  %v3114_v6 = vld [vmem:[%s4580_s7 + $0x20] ss:$12 sps:$4 sm:$0xff]  }
 0xbb5   :  { %2706 = vmatpush3.bf16.msra.mxu0 %v3101_v8  ;;  %v3115_v8 = vld [vmem:[%s4580_s7 + $0x8] ss:$12 sps:$4 sm:$0xff]  }
 0xbb6   :  { %2707 = vmatprep.subr.bf16.mxu0 %v4677_v11  ;;  %1854 = vmatpush1.bf16.msra.mxu1 %v3102_v33  ;;  %v1975_v33 = vsel %vm1973_vm8, 1, %v4690_v45 }
 0xbb7   :  { %1855 = vmatprep.subr.bf16.mxu1 %v3103_v10 }
 0xbb9   :  { %2708 = vmatpush3.bf16.msra.mxu0 %v3104_v41 }
 0xbba   :  { %2713 = vmatprep.subr.bf16.mxu0 %v4677_v11  ;;  %1856 = vmatpush1.bf16.msra.mxu1 %v3105_v17 }
 0xbbb   :  { %2733 = vmatprep.subr.bf16.mxu1 %v4677_v11 }
 0xc5c   :  { %v1714_v35 = vpop.f32.mrf.mxu0 }
 0xc5d   :  { %v1766_v56 = vadd.f32 %v1714_v35, %v4762_v36  ;;  %v4765_v35 = vld [vmem:[#allocation38_spill] sm:$0xff] }
 0xc5e   :  { %v4346_v57 = vpop.f32.mrf.mxu0 }
 0xc5f   :  { %v1768_v53 = vadd.f32 %v4141_v62, %v1766_v56 }
 0xc60   :  { %v1718_v47 = vpop.f32.mrf.mxu0 }
 0xc61   :  { %v1767_v51 = vadd.f32 %v1718_v47, %v4763_v22  ;;  %v1770_v30 = vsel %vm262_vm0, %v1768_v53, -1e+30  ;;  %v3116_v47 = vld [vmem:[%s4582_s9] ss:$0 sm:$0xff] }
 0xc62   :  { %1772 = vmax.xlane.f32.xlu0 %v1770_v30  ;;  %v4421_v41 = vpop.f32.mrf.mxu0 }
 0xc63   :  { %v1769_v12 = vadd.f32 %v4141_v62, %v1767_v51  ;;  %v4358_v62 = vld [vmem:[%s4764_s8 + $0x8] sm:$0xff]  ;;  %v4766_v51 = vld [vmem:[#allocation40_spill] sm:$0xff] }
 0xc64   :  { %vm1029_vm2 = vcmp.eq.s32.totalorder %v4358_v62, 1  ;;  %vm1344_vm5 = vcmp.eq.s32.totalorder %v4358_v62, 2  ;;  %vm1659_vm7 = vcmp.eq.s32.totalorder %v4358_v62, 3  ;;  %vm1974_vm9 = vcmp.eq.s32.totalorder %v4358_v62, 4  ;;  %v2919_v62 = vld [vmem:[%s4585_s12 + $0x28] sm:$0xff]  }
 0xc65   :  { %v1771_v29 = vsel %vm262_vm0, %v1769_v12, -1e+30  ;;  %v1031_v26 = vsel %vm1029_vm2, 1, %v4690_v45  ;;  %v1346_v49 = vsel %vm1344_vm5, 1, %v4690_v45  ;;  %v1661_v34 = vsel %vm1659_vm7, 1, %v4690_v45 }
 0xc66   :  { %1774 = vmax.xlane.f32.xlu1 %v1771_v29  ;;  %v1976_v10 = vsel %vm1974_vm9, 1, %v4690_v45 }
 0xceb   :  { %v1773_v1 = vpop.xlane.xlu0 %1772 }
 0xcec   :  { %v1776_v19 = vsub.f32 %v1770_v30, %v1773_v1 }
 0xcee   :  { %v1778_v4 = vmul.f32 1.442695, %v1776_v19 }
 0xcef   :  { %v1775_v50 = vpop.xlane.xlu1 %1774 }
 0xcf0   :  { %3021 = vpow2.f32 %v1778_v4  ;;  %v1777_v14 = vsub.f32 %v1771_v29, %v1775_v50  ;;  %v2913_v4 = vld [vmem:[%s4585_s12 + $0x78] sm:$0xff]   ;;  %v2914_v50 = vld [vmem:[%s4585_s12 + $0x70] sm:$0xff]  }
 0xcf2   :  { %v1780_v32 = vmul.f32 1.442695, %v1777_v14  ;;  %v2915_v14 = vld [vmem:[%s4585_s12 + $0x38] sm:$0xff]  }
 0xcf4   :  { %3023 = vpow2.f32 %v1780_v32  ;;  %v2916_v32 = vld [vmem:[%s4585_s12 + $0x68] sm:$0xff]  }
 0xcfd   :  { %v3022_v63 = vpop.eup %3021 }
 0xcfe   :  { %1782 = vadd.xlane.f32.xlu0 %v3022_v63 }
 0xd01   :  { %v3024_v46 = vpop.eup %3023 }
 0xd02   :  { %1784 = vadd.xlane.f32.xlu1 %v3024_v46 }
 0xd13   :  { %1036 = vperm.xlu1 %2800, %v1031_v26   ;;  %v2921_v26 = vld [vmem:[%s4585_s12 + $0x20] sm:$0xff]  }
 0xd14   :  { %1033 = vperm.xlu0 %2799, %v1030_v39   ;;  %v2922_v39 = vld [vmem:[%s4585_s12 + $0x50] sm:$0xff]  }
 0xd17   :  { %1348 = vperm.xlu1 %2800, %v1345_v48   ;;  %v2923_v48 = vld [vmem:[%s4585_s12 + $0x18] sm:$0xff]  }
 0xd1b   :  { %1351 = vperm.xlu1 %2800, %v1346_v49   ;;  %v2924_v49 = vld [vmem:[%s4585_s12 + $0x48] sm:$0xff]  }
 0xd1f   :  { %1663 = vperm.xlu1 %2800, %v1660_v60   ;;  %v2925_v60 = vld [vmem:[%s4585_s12 + $0x10] sm:$0xff]  }
 0xd23   :  { %1666 = vperm.xlu1 %2800, %v1661_v34   ;;  %v2926_v34 = vld [vmem:[%s4585_s12 + $0x40] sm:$0xff]  }
 0xd27   :  { %1978 = vperm.xlu1 %2800, %v1975_v33  }
 0xd2b   :  { %1981 = vperm.xlu1 %2800, %v1976_v10  }
 0xd87   :  { %v1783_v42 = vpop.xlane.xlu0 %1782 }
 0xd88   :  { %3025 = vrcp.f32 %v1783_v42  ;;  %v2927_v42 = vld [vmem:[%s4585_s12 + $0x8] sm:$0xff]  }
 0xd8b   :  { %v1785_v0 = vpop.xlane.xlu1 %1784 }
 0xd8c   :  { %3027 = vrcp.f32 %v1785_v0  ;;  %v2006_v0 = vpack.c.bf16 %v4381_v7, %v4375_v5 }
 0xd95   :  { %v3026_v37 = vpop.eup %3025 }
 0xd96   :  { %v1788_v13 = vmul.f32 %v3026_v37, %v3022_v63  ;;  %v2917_v63 = vld [vmem:[%s4585_s12 + $0x30] sm:$0xff]   ;;  %v2928_v37 = vld [vmem:[%s4585_s12] sm:$0xff]  }
 0xd98   :  { %v1790_v18 = vmul.f32 %v4375_v5, %v1788_v13  ;;  %v2929_v13 = vld [vmem:[%s4587_s14 + $0x38] sm:$0xff]   ;;  %v1757_v5 = vpop.f32.mrf.mxu1 }
 0xd99   :  { %v3028_v54 = vpop.eup %3027 }
 0xd9a   :  { %v1789_v3 = vmul.f32 %v3028_v54, %v3024_v46  ;;  %v2918_v46 = vld [vmem:[%s4585_s12 + $0x60] sm:$0xff]   ;;  %v2930_v54 = vld [vmem:[%s4587_s14 + $0x30] sm:$0xff]  }
 0xd9c   :  { %v1791_v24 = vmul.f32 %v4381_v7, %v1789_v3  ;;  %v2931_v3 = vld [vmem:[%s4587_s14 + $0x28] sm:$0xff]  }
 0xd9e   :  { %v1792_v21 = vpack.c.bf16 %v1791_v24, %v1790_v18  ;;  %v1759_v18 = vpop.f32.mrf.mxu1  ;;  %v2932_v24 = vld [vmem:[%s4587_s14 + $0x20] sm:$0xff]  }
 0xda0   :  { %2710 = vmatmul.mubr.bf16.vlgmr.msra.gmra.mxu0 %v1792_v21  ;;  %v1761_v7 = vpop.f32.mrf.mxu1 }
 0xda1   :  { %2714 = vmatpush3.bf16.msra.mxu0 %v3108_v23  ;;  %2729 = vmatprep.mubr.msk.bf16.mxu0 %vm3143_vm1, %v4677_v11 }
 0xda2   :  { %2715 = vmatprep.subr.bf16.mxu0 %v4677_v11  ;;  %v1763_v21 = vpop.f32.mrf.mxu1 }
 0xda5   :  { %2716 = vmatpush3.bf16.msra.mxu0 %v3109_v61 }
 0xda6   :  { %2717 = vmatprep.subr.bf16.mxu0 %v4677_v11 }
 0xda9   :  { %2718 = vmatpush3.bf16.msra.mxu0 %v3110_v38  ;;  %v2933_v38 = vld [vmem:[%s4587_s14 + $0x18] sm:$0xff]  }
 0xdaa   :  { %2719 = vmatprep.subr.bf16.mxu0 %v4677_v11 }
 0xdad   :  { %2720 = vmatpush3.bf16.msra.mxu0 %v3111_v25  ;;  %v1925_v25 = vadd.f32 %v4346_v57, %v3854_v2 }
 0xdae   :  { %2721 = vmatprep.subr.bf16.mxu0 %v4677_v11 }
 0xdb1   :  { %2722 = vmatpush3.bf16.msra.mxu0 %v3112_v55 }
 0xdb2   :  { %2723 = vmatprep.subr.bf16.mxu0 %v4677_v11 }
 0xdb5   :  { %2724 = vmatpush3.bf16.msra.mxu0 %v3113_v40 }
 0xdb6   :  { %2725 = vmatprep.subr.bf16.mxu0 %v4677_v11 }
 0xdb9   :  { %2726 = vmatpush3.bf16.msra.mxu0 %v3114_v6 }
 0xdba   :  { %2727 = vmatprep.subr.bf16.mxu0 %v4677_v11 }
 0xdbd   :  { %2728 = vmatpush3.bf16.msra.mxu0 %v3115_v8 }
 0xdbe   :  { %2753 = vmatprep.subr.bf16.mxu0 %v4677_v11 }
 0xe60   :  { %v1827_v17 = vpop.f32.mrf.mxu0 }
 0xe61   :  { %v1834_v36 = vadd.f32 %v1827_v17, %v4765_v35  ;;  %v1928_v17 = vadd.f32 %v4421_v41, %v3854_v2 }
 0xe62   :  { %v2711_v56 = vpop.f32.mrf.mxu0 }
 0xe63   :  { %v1836_v22 = vadd.f32 %v3116_v47, %v1834_v36 }
 0xe64   :  { %v1830_v53 = vpop.f32.mrf.mxu0 }
 0xe65   :  { %v1835_v30 = vadd.f32 %v1830_v53, %v4766_v51  ;;  %v1838_v1 = vmax.f32 %v1836_v22, 0.0 }
 0xe66   :  { %v2712_v12 = vpop.f32.mrf.mxu0 }
 0xe67   :  { %v1837_v29 = vadd.f32 %v3116_v47, %v1835_v30  ;;  %v1926_v47 = vadd.f32 %v1757_v5, %v3865_v16 }
 0xe69   :  { %v1839_v19 = vmax.f32 %v1837_v29, 0.0  ;;  %v1929_v29 = vadd.f32 %v1761_v7, %v3865_v16 }
 0xe6b   :  { %v1840_v45 = vpack.c.bf16 %v1839_v19, %v1838_v1 }
 0xe6d   :  { %1874 = vmatmul.mubr.bf16.vlgmr.msra.gmra.mxu1 %v1840_v45  ;;  %2730 = vmatmul.mubr.bf16.vlgmr.msra.gmra.mxu0 %v1840_v45 }
 0xe6e   :  { %2749 = vmatprep.mubr.msk.bf16.mxu1 %vm3143_vm1, %v4677_v11  ;;  %2769 = vmatprep.mubr.msk.bf16.mxu0 %vm3143_vm1, %v4677_v11 }
 0xe6f   :  { %2734 = vmatpush3.bf16.msra.mxu1 %v2913_v4  ;;  %2754 = vmatpush3.bf16.msra.mxu0 %v2915_v14  ;;  %v1037_v4 = vpop.permute.xlu1 %1036 }
 0xe70   :  { %2735 = vmatprep.subr.bf16.mxu1 %v4677_v11  ;;  %2755 = vmatprep.subr.bf16.mxu0 %v4677_v11  ;;  %vm1039_vm13 = vcmp.eq.s32.totalorder %v1037_v4, 1 }
 0xe73   :  { %2736 = vmatpush3.bf16.msra.mxu1 %v2914_v50  ;;  %2756 = vmatpush3.bf16.msra.mxu0 %v2917_v63 }
 0xe74   :  { %2737 = vmatprep.subr.bf16.mxu1 %v4677_v11  ;;  %2757 = vmatprep.subr.bf16.mxu0 %v4677_v11 }
 0xe77   :  { %2738 = vmatpush3.bf16.msra.mxu1 %v2916_v32  ;;  %2758 = vmatpush3.bf16.msra.mxu0 %v2919_v62  ;;  %v1349_v32 = vpop.permute.xlu1 %1348 }
 0xe78   :  { %2739 = vmatprep.subr.bf16.mxu1 %v4677_v11  ;;  %2759 = vmatprep.subr.bf16.mxu0 %v4677_v11  ;;  %vm1353_vm11 = vcmp.eq.s32.totalorder %v1349_v32, 1 }
 0xe7b   :  { %2740 = vmatpush3.bf16.msra.mxu1 %v2918_v46  ;;  %2760 = vmatpush3.bf16.msra.mxu0 %v2921_v26  ;;  %v1927_v46 = vadd.f32 %v1759_v18, %v3872_v59 }
 0xe7c   :  { %2741 = vmatprep.subr.bf16.mxu1 %v4677_v11  ;;  %2761 = vmatprep.subr.bf16.mxu0 %v4677_v11 }
 0xe7f   :  { %2742 = vmatpush3.bf16.msra.mxu1 %v2920_v31  ;;  %2762 = vmatpush3.bf16.msra.mxu0 %v2923_v48  ;;  %v1352_v31 = vpop.permute.xlu1 %1351  ;;  %v1930_v48 = vadd.f32 %v1763_v21, %v3872_v59 }
 0xe80   :  { %2743 = vmatprep.subr.bf16.mxu1 %v4677_v11  ;;  %2763 = vmatprep.subr.bf16.mxu0 %v4677_v11  ;;  %vm1354_vm14 = vcmp.eq.s32.totalorder %v1352_v31, 1 }
 0xe83   :  { %2744 = vmatpush3.bf16.msra.mxu1 %v2922_v39  ;;  %2764 = vmatpush3.bf16.msra.mxu0 %v2925_v60 }
 0xe84   :  { %2745 = vmatprep.subr.bf16.mxu1 %v4677_v11  ;;  %2765 = vmatprep.subr.bf16.mxu0 %v4677_v11 }
 0xe87   :  { %2746 = vmatpush3.bf16.msra.mxu1 %v2924_v49  ;;  %2766 = vmatpush3.bf16.msra.mxu0 %v2927_v42 }
 0xe88   :  { %2747 = vmatprep.subr.bf16.mxu1 %v4677_v11  ;;  %2767 = vmatprep.subr.bf16.mxu0 %v4677_v11 }
 0xe8b   :  { %2748 = vmatpush3.bf16.msra.mxu1 %v2926_v34  ;;  %2768 = vmatpush3.bf16.msra.mxu0 %v2928_v37 }
 0xe8c   :  { %2773 = vmatprep.subr.bf16.mxu1 %v4677_v11 }
 0xe8e   :  { %2750 = vmatmul.mubr.bf16.vlgmr.msra.gmra.mxu1 %v2006_v0  ;;  %v1664_v0 = vpop.permute.xlu1 %1663 }
 0xe8f   :  { %2789 = vmatprep.mubr.msk.bf16.mxu1 %vm3143_vm1, %v4677_v11  ;;  %2774 = vmatpush3.bf16.msra.mxu1 %v2929_v13  ;;  %vm1668_vm12 = vcmp.eq.s32.totalorder %v1664_v0, 1 }
 0xe90   :  { %2775 = vmatprep.subr.bf16.mxu1 %v4677_v11 }
 0xe92   :  { %v1667_v13 = vpop.permute.xlu1 %1666 }
 0xe93   :  { %2776 = vmatpush3.bf16.msra.mxu1 %v2930_v54  ;;  %vm1669_vm0 = vcmp.eq.s32.totalorder %v1667_v13, 1 }
 0xe94   :  { %2777 = vmatprep.subr.bf16.mxu1 %v4677_v11 }
 0xe96   :  { %v1979_v18 = vpop.permute.xlu1 %1978 }
 0xe97   :  { %2778 = vmatpush3.bf16.msra.mxu1 %v2931_v3  ;;  %v1034_v3 = vpop.permute.xlu0 %1033  ;;  %vm1983_vm15 = vcmp.eq.s32.totalorder %v1979_v18, 1 }
 0xe98   :  { %2779 = vmatprep.subr.bf16.mxu1 %v4677_v11  ;;  %vm1038_vm10 = vcmp.eq.s32.totalorder %v1034_v3, 1 }
 0xe9b   :  { %2780 = vmatpush3.bf16.msra.mxu1 %v2932_v24 }
 0xe9c   :  { %2781 = vmatprep.subr.bf16.mxu1 %v4677_v11 }
 0xe9f   :  { %2782 = vmatpush3.bf16.msra.mxu1 %v2933_v38 }
 0xea0   :  { %2783 = vmatprep.subr.bf16.mxu1 %v4677_v11 }
 0xf2d   :  { %v1875_v23 = vpop.f32.mrf.mxu1  ;;  %v1918_v61 = vpop.f32.mrf.mxu0 }
 0xf2e   :  { %v1876_v55 = vadd.f32 %v1875_v23, %v3856_v43  ;;  %v1919_v26 = vadd.f32 %v1918_v61, %v3874_v9 }
 0xf2f   :  { %v1877_v40 = vpop.f32.mrf.mxu1  ;;  %v2731_v6 = vpop.f32.mrf.mxu0 }
 0xf30   :  { %v1931_v8 = vadd.f32 %v1925_v25, %v1876_v55  ;;  %v1878_v36 = vadd.f32 %v1877_v40, %v3861_v20 }
 0xf31   :  { %v1879_v33 = vpop.f32.mrf.mxu1  ;;  %v1921_v10 = vpop.f32.mrf.mxu0 }
 0xf32   :  { %v2444_v35 = vmul.f32 -1.442695, %v1931_v8  ;;  %v1880_v56 = vadd.f32 %v1879_v33, %v3856_v43  ;;  %v1932_v30 = vadd.f32 %v1926_v47, %v1878_v36  ;;  %v1922_v34 = vadd.f32 %v1921_v10, %v3874_v9  ;;  %v3117_v9 = vld [vmem:[%s4576_s3] sm:$0xff]  ;;  %v1982_v8 = vpop.permute.xlu1 %1981 }
 0xf33   :  { %v1881_v53 = vpop.f32.mrf.mxu1  ;;  %v2732_v57 = vpop.f32.mrf.mxu0  ;;  %v1040_v23 = vsel %vm1038_vm10, %v3882_v58, %v3117_v9  ;;  %v3118_v58 = vld [vmem:[%s4576_s3 + $0x8] sm:$0xff]  ;;  %vm1984_vm1 = vcmp.eq.s32.totalorder %v1982_v8, 1 }
 0xf34   :  { %3029 = vpow2.f32 %v2444_v35  ;;  %v1933_v22 = vadd.f32 %v1928_v17, %v1880_v56  ;;  %v1882_v51 = vadd.f32 %v1881_v53, %v3861_v20  ;;  %v2445_v2 = vmul.f32 -1.442695, %v1932_v30 }
 0xf35   :  { %v1355_v61 = vsel %vm1353_vm11, %v4089_v44, %v1040_v23  ;;  %v1041_v17 = vsel %vm1039_vm13, %v3884_v15, %v3118_v58  ;;  %v2935_v15 = vld [vmem:[%s4587_s14 + $0x8] sm:$0xff]  }
 0xf36   :  { %v2446_v12 = vmul.f32 -1.442695, %v1933_v22  ;;  %v1934_v1 = vadd.f32 %v1929_v29, %v1882_v51  ;;  %v1670_v40 = vsel %vm1668_vm12, %v4260_v52, %v1355_v61  ;;  %v1356_v44 = vsel %vm1354_vm14, %v4091_v27, %v1041_v17  ;;  %v2934_v51 = vld [vmem:[%s4587_s14 + $0x10] sm:$0xff]   ;;  %v2936_v27 = vld [vmem:[%s4587_s14] sm:$0xff]   ;;  %s3119_s14 = scalar_lea.vmem %s2333_s20, 256 }
 0xf37   :  { %v1671_v36 = vsel %vm1669_vm0, %v4262_v28, %v1356_v44  ;;  %2784 = vmatpush3.bf16.msra.mxu1 %v2934_v51  ;;  %p3120_p0 = scmp.ne.s32.totalorder %s2333_s20, %s3119_s14  ;;  %p3125_p2 = scmp.lt.s32.totalorder %s3119_s14, %s3119_s14 }
 0xf38   :  { %3031 = vpow2.f32 %v2446_v12  ;;  %v2447_v41 = vmul.f32 -1.442695, %v1934_v1  ;;  %2785 = vmatprep.subr.bf16.mxu1 %v4677_v11  ;;  %v2464_v12 = vld [vmem:[%s4586_s13] ss:$0 sm:$0xff] }
 0xf39   :  { %3033 = vpow2.f32 %v2445_v2  ;;  %p3126_p3 = por %p3125_p2, %p3124_p1 }
 0xf3a   :  { %3035 = vpow2.f32 %v2447_v41 }
 0xf3b   :  { %2786 = vmatpush3.bf16.msra.mxu1 %v2935_v15  ;;  %p3127_p4 = pnand %p3126_p3, %p3120_p0 }
 0xf3c   :  { %2787 = vmatprep.subr.bf16.mxu1 %v4677_v11 }
 0xf3f   :  { %2788 = vmatpush3.bf16.msra.mxu1 %v2936_v27 }
 0xf41   :  { %v3030_v19 = vpop.eup %3029 }
 0xf42   :  { %v1947_v43 = vadd.f32 1.0, %v3030_v19 }
 0xf44   :  { %3037 = vrcp.f32 %v1947_v43 }
 0xf45   :  { %v3032_v45 = vpop.eup %3031 }
 0xf46   :  { %v1949_v50 = vadd.f32 1.0, %v3032_v45  ;;  %v3034_v14 = vpop.eup %3033 }
 0xf47   :  { %v3036_v20 = vpop.eup %3035  ;;  %v1948_v63 = vadd.f32 1.0, %v3034_v14 }
 0xf48   :  { %3039 = vrcp.f32 %v1949_v50  ;;  %v1950_v62 = vadd.f32 1.0, %v3036_v20 }
 0xf49   :  { %3041 = vrcp.f32 %v1948_v63 }
 0xf4a   :  { %3043 = vrcp.f32 %v1950_v62 }
 0xf4e   :  { %v2105_v53 = vpop.f32.mrf.mxu1 }
 0xf50   :  { %v2751_v57 = vpop.f32.mrf.mxu1 }
 0xf51   :  { %v3038_v16 = vpop.eup %3037 }
 0xf52   :  { %v1959_v39 = vmul.f32 %v3038_v16, %v1927_v46  ;;  %v2108_v47 = vpop.f32.mrf.mxu1 }
 0xf54   :  { %v1961_v49 = vadd.f32 %v1959_v39, %v1919_v26  ;;  %v2752_v22 = vpop.f32.mrf.mxu1 }
 0xf55   :  { %v3040_v60 = vpop.eup %3039 }
 0xf56   :  { %3045 = vtanh.f32 %v1961_v49  ;;  %v1960_v42 = vmul.f32 %v3040_v60, %v1930_v48  ;;  %v3042_v54 = vpop.eup %3041 }
 0xf57   :  { %v3044_v5 = vpop.eup %3043  ;;  %v1965_v7 = vsub.f32 1.0, %v3042_v54  ;;  %v1969_v21 = vmul.f32 %v3042_v54, %v4260_v52 }
 0xf58   :  { %v1962_v37 = vadd.f32 %v1960_v42, %v1922_v34  ;;  %v1966_v25 = vsub.f32 1.0, %v3044_v5  ;;  %v1970_v10 = vmul.f32 %v3044_v5, %v4262_v28 }
 0xf5a   :  { %3047 = vtanh.f32 %v1962_v37 }
 0xf63   :  { %v3046_v24 = vpop.eup %3045 }
 0xf64   :  { %v1967_v59 = vmul.f32 %v3046_v24, %v1965_v7 }
 0xf66   :  { %v1971_v38 = vadd.f32 %v1969_v21, %v1967_v59 }
 0xf67   :  { %v3048_v55 = vpop.eup %3047 }
 0xf68   :  { %v1985_v6 = vsel %vm1983_vm15, %v1971_v38, %v1670_v40  ;;  %v1968_v33 = vmul.f32 %v3048_v55, %v1966_v25 }
 0xf69   :  { %1987 = vst [vmem:[#allocation3] sm:$0xff] %v1985_v6 }
 0xf6a   :  { %v1972_v35 = vadd.f32 %v1970_v10, %v1968_v33 }
 0xf6c   :  { %v1986_v52 = vsel %vm1984_vm1, %v1972_v35, %v1671_v36 }
 0xf6d   :  { %1988 = vst [vmem:[#allocation3 + $0x8] sm:$0xff] %v1986_v52  ;;  %v1989_v56 = vpack.c.bf16 %v1986_v52, %v1985_v6 }
 0xf6f   :  { %2770 = vmatmul.mubr.bf16.vlgmr.msra.gmra.mxu0 %v1989_v56 }
0x102f   :  { %v2194_v28 = vpop.f32.mrf.mxu0 }
0x1030   :  { %v2195_v30 = vadd.f32 %v2194_v28, %v2105_v53 }
0x1031   :  { %v2771_v29 = vpop.f32.mrf.mxu0 }
0x1032   :  { %v2208_v2 = vadd.f32 %v2464_v12, %v2195_v30 }
0x1033   :  { %v2197_v1 = vpop.f32.mrf.mxu0 }
0x1034   :  { %v2198_v41 = vadd.f32 %v2197_v1, %v2108_v47  ;;  %v2210_v45 = vmax.f32 %v2208_v2, 0.0 }
0x1035   :  { %v2772_v19 = vpop.f32.mrf.mxu0 }
0x1036   :  { %v2209_v43 = vadd.f32 %v2464_v12, %v2198_v41 }
0x1038   :  { %v2211_v4 = vmax.f32 %v2209_v43, 0.0 }
0x103a   :  { %v2212_v11 = vpack.c.bf16 %v2211_v4, %v2210_v45 }
0x103c   :  { %2790 = vmatmul.mubr.bf16.vlgmr.msra.gmra.mxu1 %v2212_v11 }
0x103d   :  { %3130 = shalt.err (!%p3127_p4)
}
0x103e   :  { %s3145_s13 = smov 128   ;;  %s3146_s4 = smov 8   ;;  %v2465_v50 = vld [vmem:[%s4588_s15] ss:$0 sm:$0xff] }
0x103f   :  { %2338 = dma.vmem_to_hbm [thread:$0]  %s2333_s20, 256, %s4589_s16, [#allocation4], %s3145_s13, %s3145_s13, %s3146_s4  }
0x10fc   :  { %v2318_v14 = vpop.f32.mrf.mxu1 }
0x10fd   :  { %v2319_v32 = vadd.f32 %v2465_v50, %v2318_v14 }
0x10fe   :  { %v2791_v20 = vpop.f32.mrf.mxu1 }
0x10ff   :  { %2325 = vst [vmem:[%s4590_s17] sm:$0xff] %v2319_v32 }
0x1100   :  { %v2321_v63 = vpop.f32.mrf.mxu1 }
0x1101   :  { %v2322_v46 = vadd.f32 %v2465_v50, %v2321_v63 }
0x1102   :  { %v2792_v16 = vpop.f32.mrf.mxu1 }
0x1103   :  { %2326 = vst [vmem:[%s4590_s17 + $0x8] sm:$0xff] %v2322_v46 }
0x1104   :  { %3139 = dma.done.wait [#allocation4], 256  }
0x1105   :  { %3140 = vsyncadd [#allocation4], 4294967040 }
0x1106   :  { %2346 = vsyncpa [#allocation4], 1 }

</bundles_post_ra>
